<compile_context>
chip_gen: v6e
topology: v6e:2x2x1
jax: 0.10.0
libtpu: 0.0.40
codegen_flags: <defaults>
</compile_context>

<pallas_src>
import math

import numpy as np
import jax
import jax.numpy as jnp
from jax.experimental import pallas as pl
from jax.experimental.pallas import tpu as pltpu

BN_EPS = 1e-5

_TAPS_PER_CHUNK = 5          # taps per streamed w5 chunk
_NUM_CHUNKS = 5              # 25 taps total -> 5 grid steps


def _tap_order():
    """25 (dy, dx) offsets ordered [center | rest of 3x3 | rest of 5x5]."""
    taps = [(0, 0)]
    for ky in range(3):
        for kx in range(3):
            dy, dx = ky - 1, kx - 1
            if (dy, dx) != (0, 0):
                taps.append((dy, dx))
    for ky in range(5):
        for kx in range(5):
            dy, dx = ky - 2, kx - 2
            if abs(dy) <= 1 and abs(dx) <= 1:
                continue
            taps.append((dy, dx))
    return tuple(taps)


_TAPS = _tap_order()
# Permutations taking original tap-major weights (index ky*k + kx) to _TAPS order.
_W3_PERM = np.asarray([(dy + 1) * 3 + (dx + 1) for dy, dx in _TAPS[:9]], dtype=np.int32)
_W5_PERM = np.asarray([(dy + 2) * 5 + (dx + 2) for dy, dx in _TAPS], dtype=np.int32)


def _msffe_kernel(x_ref, w1_ref, b1_ref, w3_ref, b3_ref, w5c_ref, b5_ref,
                  sew1_ref, sew2_ref, wf1_ref, wf3_ref, wf5_ref,
                  gamma_ref, beta_ref, out_ref,
                  xpad_ref, xshift_ref, slab_ref, c1_ref, c3_ref, c5_ref):
    """Fused MSFFE block, gridded over 5-tap chunks of the 5x5 conv weight.

    x_ref      : (B, H, W, C)            f32 input (resident)
    w1_ref     : (C, C)                  f32 1x1 conv weight (resident)
    w3_ref     : (9C, C)                 bf16 3x3 conv weight, _TAPS[:9] order (resident)
    w5c_ref    : (5C, C)                 bf16 5x5 conv weight chunk k (streamed)
    bK_ref     : (1, C)                  f32 conv biases
    sew1/sew2  : (3C, r) / (r, 3C)       f32 SE linear weights (no bias)
    wfK_ref    : (C, C)                  bf16 fusion-conv weight slice for branch K
    gamma/beta : (1, C)                  f32 BatchNorm affine
    out_ref    : (B, H, W, C)            f32 output (written at last grid step)
    xpad_ref   : (B, H+4, W+4, C)        bf16 scratch (zero halo, pad = 2)
    xshift_ref : (5, B, H+4, W, C)       bf16 scratch (dx-shifted copies)
    slab_ref   : (5, B*H*W, 5C)          bf16 scratch (im2col, chunked by tap group)
    cK_ref     : (B*H*W, C)              f32 branch outputs / c5 accumulator
    """
    B, H, W, C = out_ref.shape
    HW = H * W
    BHW = B * HW
    k = pl.program_id(0)

    @pl.when(k == 0)
    def _prologue():
        # Zero only the 2-wide halo strips; the interior is overwritten below.
        xpad_ref[:, 0:2, :, :] = jnp.zeros((B, 2, W + 4, C), jnp.bfloat16)
        xpad_ref[:, H + 2:H + 4, :, :] = jnp.zeros((B, 2, W + 4, C), jnp.bfloat16)
        xpad_ref[:, 2:H + 2, 0:2, :] = jnp.zeros((B, H, 2, C), jnp.bfloat16)
        xpad_ref[:, 2:H + 2, W + 2:W + 4, :] = jnp.zeros((B, H, 2, C), jnp.bfloat16)
        xpad_ref[:, 2:2 + H, 2:2 + W, :] = x_ref[...].astype(jnp.bfloat16)

        # 5 dx-shifted copies: one sublane-shift pass per dx instead of 25;
        # the dy offsets below are pure H-axis address offsets (free).
        for d in range(5):
            xshift_ref[d] = xpad_ref[:, :, d:d + W, :]

        # im2col slab, chunked along the tap axis so slab_ref[k] matches the
        # streamed w5 chunk k.  Tap order: [center | rest-3x3 | rest-5x5].
        # (For C < 128 the lane offsets j*C are not 128-aligned -> masked
        #  stores; acceptable at these test sizes, aligned at real C >= 128.)
        for t, (dy, dx) in enumerate(_TAPS):
            ck, j = divmod(t, _TAPS_PER_CHUNK)
            slab_ref[ck, :, j * C:(j + 1) * C] = (
                xshift_ref[dx + 2, :, 2 + dy:2 + dy + H, :, :].reshape(BHW, C))

        # 1x1 branch straight from the f32 input (no slab read, full precision).
        x2d = x_ref[...].reshape(BHW, C)
        c1_ref[...] = (jnp.dot(x2d, w1_ref[...],
                               preferred_element_type=jnp.float32) + b1_ref[...])

        # 3x3 branch: taps 0..8 live in slab chunks 0 (taps 0..4) and 1 (taps 5..8).
        c3_ref[...] = (
            jnp.dot(slab_ref[0], w3_ref[:5 * C, :],
                    preferred_element_type=jnp.float32)
            + jnp.dot(slab_ref[1][:, :4 * C], w3_ref[5 * C:9 * C, :],
                      preferred_element_type=jnp.float32)
            + b3_ref[...])

        # init 5x5 accumulator
        c5_ref[...] = jnp.zeros_like(c5_ref)

    # Every grid step: accumulate one streamed 5-tap chunk of the 5x5 branch.
    c5_ref[...] += jnp.dot(slab_ref[k], w5c_ref[...],
                           preferred_element_type=jnp.float32)

    @pl.when(k == pl.num_programs(0) - 1)
    def _epilogue():
        c1 = c1_ref[...]
        c3 = c3_ref[...]
        c5 = c5_ref[...] + b5_ref[...]

        # Squeeze & Excitation: global avg pool -> FC -> Swish -> FC -> sigmoid.
        pooled = jnp.concatenate(
            [c1.reshape(B, HW, C).mean(axis=1),
             c3.reshape(B, HW, C).mean(axis=1),
             c5.reshape(B, HW, C).mean(axis=1)], axis=-1)                 # (B, 3C)
        h = jnp.dot(pooled, sew1_ref[...], preferred_element_type=jnp.float32)
        h = h * jax.nn.sigmoid(h)                                         # Swish
        s = jax.nn.sigmoid(jnp.dot(h, sew2_ref[...],
                                   preferred_element_type=jnp.float32))   # (B, 3C)

        def scaled_bf16(c, lo):
            sk = s[:, lo:lo + C]                                          # (B, C)
            return (c.reshape(B, HW, C) * sk[:, None, :]
                    ).reshape(BHW, C).astype(jnp.bfloat16)

        # 1x1 fusion conv as three (C, C) matmuls.  The fusion bias is omitted:
        # training-mode BatchNorm mean subtraction cancels it exactly.
        y = (jnp.dot(scaled_bf16(c1, 0), wf1_ref[...],
                     preferred_element_type=jnp.float32)
             + jnp.dot(scaled_bf16(c3, C), wf3_ref[...],
                       preferred_element_type=jnp.float32)
             + jnp.dot(scaled_bf16(c5, 2 * C), wf5_ref[...],
                       preferred_element_type=jnp.float32))

        # Single-pass BatchNorm statistics (training mode, biased variance).
        mu = jnp.mean(y, axis=0, keepdims=True)
        msq = jnp.mean(y * y, axis=0, keepdims=True)
        var = jnp.maximum(msq - mu * mu, 0.0)
        y = (y - mu) * jax.lax.rsqrt(var + BN_EPS)
        y = y * gamma_ref[...] + beta_ref[...]

        # ReLU
        out_ref[...] = jnp.maximum(y, 0.0).reshape(B, H, W, C)


def _vmem_limit_bytes():
    """~80% of the actual chip's VMEM (≈51 MiB on v7x, ≈102 MiB on v5e/v6e)."""
    cap = None
    try:
        cap = pltpu.get_tpu_info().vmem_capacity_bytes
    except Exception:
        cap = None
    if not cap:
        cap = 64 * 1024 * 1024
    return int(cap * 4 // 5)


def prepare_msffe_params(p):
    """One-time, per-level kernel weight prep (hoisted out of the hot path).

    Tap-permutes + folds the 3x3/5x5 taps into the contraction dimension,
    splits the 1x1 fusion weight per branch, and casts matmul weights that
    feed bf16 MXU matmuls.  The fusion bias `bf` is intentionally dropped
    (cancelled by training-mode BatchNorm mean subtraction).
    """
    C = p['w1'].shape[-1]
    return {
        'w1': p['w1'][0].astype(jnp.float32),                                  # (C, C)
        'b1': p['b1'],
        'w3r': p['w3'][_W3_PERM].reshape(9 * C, C).astype(jnp.bfloat16),       # (9C, C)
        'b3': p['b3'],
        'w5r': p['w5'][_W5_PERM].reshape(25 * C, C).astype(jnp.bfloat16),      # (25C, C)
        'b5': p['b5'],
        'se_w1': p['se_w1'],
        'se_w2': p['se_w2'],
        'wf1': p['wf'][:C].astype(jnp.bfloat16),
        'wf3': p['wf'][C:2 * C].astype(jnp.bfloat16),
        'wf5': p['wf'][2 * C:].astype(jnp.bfloat16),
        'gamma': p['gamma'],
        'beta': p['beta'],
    }


def _pinned(shape):
    """Full-array BlockSpec that stays resident across the reduction grid."""
    n = len(shape)
    return pl.BlockSpec(shape, lambda k, _n=n: (0,) * _n)


def msffe_forward(x_nhwc, kp):
    """Run one MSFFE block: 5-step grid streaming the 5x5 weight in tap chunks."""
    B, H, W, C = x_nhwc.shape
    assert C % 8 == 0, "channel count must be a multiple of 8"
    r = kp['se_w1'].shape[-1]
    TKC = _TAPS_PER_CHUNK * C

    grid_spec = pltpu.PrefetchScalarGridSpec(
        num_scalar_prefetch=0,
        grid=(_NUM_CHUNKS,),
        in_specs=[
            _pinned((B, H, W, C)),                       # x
            _pinned((C, C)),                             # w1 (f32)
            _pinned((1, C)),                             # b1
            _pinned((9 * C, C)),                         # w3 (bf16, resident)
            _pinned((1, C)),                             # b3
            pl.BlockSpec((TKC, C), lambda k: (k, 0)),    # w5 (bf16, streamed chunks)
            _pinned((1, C)),                             # b5
            _pinned((3 * C, r)),                         # se_w1
            _pinned((r, 3 * C)),                         # se_w2
            _pinned((C, C)),                             # wf1
            _pinned((C, C)),                             # wf3
            _pinned((C, C)),                             # wf5
            _pinned((1, C)),                             # gamma
            _pinned((1, C)),                             # beta
        ],
        out_specs=pl.BlockSpec((B, H, W, C), lambda k: (0, 0, 0, 0)),
        scratch_shapes=[
            pltpu.VMEM((B, H + 4, W + 4, C), jnp.bfloat16),      # padded halo
            pltpu.VMEM((5, B, H + 4, W, C), jnp.bfloat16),       # dx-shifted copies
            pltpu.VMEM((_NUM_CHUNKS, B * H * W, TKC), jnp.bfloat16),  # im2col slab
            pltpu.VMEM((B * H * W, C), jnp.float32),             # c1
            pltpu.VMEM((B * H * W, C), jnp.float32),             # c3
            pltpu.VMEM((B * H * W, C), jnp.float32),             # c5 accumulator
        ],
    )
    return pl.pallas_call(
        _msffe_kernel,
        out_shape=jax.ShapeDtypeStruct((B, H, W, C), jnp.float32),
        grid_spec=grid_spec,
        compiler_params=pltpu.CompilerParams(
            dimension_semantics=("arbitrary",),          # tap-chunk reduction axis
            vmem_limit_bytes=_vmem_limit_bytes()),
    )(x_nhwc, kp['w1'], kp['b1'], kp['w3r'], kp['b3'], kp['w5r'], kp['b5'],
      kp['se_w1'], kp['se_w2'], kp['wf1'], kp['wf3'], kp['wf5'],
      kp['gamma'], kp['beta'])


def init_msffe_params(key, c):
    """Deterministic synthetic parameters matching MSFFE(c) shapes."""
    r = max(1, (3 * c) // 16)       # SE reduction = max(1, channel // 16)
    ks = jax.random.split(key, 10)

    def nrm(k, shape, scale):
        return (scale * jax.random.normal(k, shape)).astype(jnp.float32)

    fan = lambda n: 1.0 / math.sqrt(n)
    return {
        'w1': nrm(ks[0], (1, c, c), fan(c * 1)),
        'b1': nrm(ks[1], (1, c), 0.01),
        'w3': nrm(ks[2], (9, c, c), fan(c * 9)),
        'b3': nrm(ks[3], (1, c), 0.01),
        'w5': nrm(ks[4], (25, c, c), fan(c * 25)),
        'b5': nrm(ks[5], (1, c), 0.01),
        # SE linears (bias=False); kaiming_normal(fan_out, relu)-style scale
        'se_w1': nrm(ks[6], (3 * c, r), math.sqrt(2.0 / r)),
        'se_w2': nrm(ks[7], (r, 3 * c), math.sqrt(2.0 / (3 * c))),
        'wf': nrm(ks[8], (3 * c, c), fan(3 * c)),
        'bf': nrm(ks[9], (1, c), 0.01),   # cancelled by training-mode BN
        'gamma': jnp.ones((1, c), jnp.float32),
        'beta': jnp.zeros((1, c), jnp.float32),
    }


def msffe_reference(x_nhwc, p):
    """Pure-JAX f32 reference of the same MSFFE forward (correctness check)."""
    B, H, W, C = x_nhwc.shape

    def conv(w_taps, b, k):
        w = w_taps.reshape(k, k, C, C)
        y = jax.lax.conv_general_dilated(
            x_nhwc, w, window_strides=(1, 1), padding='SAME',
            dimension_numbers=('NHWC', 'HWIO', 'NHWC'))
        return y + b.reshape(1, 1, 1, C)

    c1 = conv(p['w1'], p['b1'], 1)
    c3 = conv(p['w3'], p['b3'], 3)
    c5 = conv(p['w5'], p['b5'], 5)
    fused = jnp.concatenate([c1, c3, c5], axis=-1)
    pooled = fused.mean(axis=(1, 2))
    h = pooled @ p['se_w1']
    h = h * jax.nn.sigmoid(h)
    s = jax.nn.sigmoid(h @ p['se_w2'])
    fused = fused * s[:, None, None, :]
    y = jnp.einsum('bhwc,cd->bhwd', fused, p['wf']) + p['bf'].reshape(1, 1, 1, C)
    mu = y.mean(axis=(0, 1, 2))
    var = ((y - mu) ** 2).mean(axis=(0, 1, 2))
    y = (y - mu) * jax.lax.rsqrt(var + BN_EPS)
    y = y * p['gamma'].reshape(-1) + p['beta'].reshape(-1)
    return jnp.maximum(y, 0.0)


if __name__ == "__main__":
    key = jax.random.PRNGKey(0)

    # Original MSFFE_Model uses in_channels (64, 256, 512, 1024, 2048); use a
    # proportionally scaled-down channel set so the test stays small and fast.
    channels = (16, 32, 64, 128, 256)
    B, Hsp, Wsp = 2, 8, 8

    keys = jax.random.split(key, 2 * len(channels))
    outputs_nchw = []
    for i, c in enumerate(channels):
        # PyTorch-convention NCHW input for this feature level
        x_nchw = jax.random.normal(keys[2 * i], (B, c, Hsp, Wsp), jnp.float32)
        params = init_msffe_params(keys[2 * i + 1], c)
        kparams = prepare_msffe_params(params)   # one-time weight prep, off hot path

        x_nhwc = jnp.transpose(x_nchw, (0, 2, 3, 1))
        y = msffe_forward(x_nhwc, kparams)
        y_ref = msffe_reference(x_nhwc, params)

        # bf16 matmul operands (f32 accumulation) vs an all-f32 reference:
        # check relative Frobenius error instead of a tight allclose.
        rel_err = jnp.linalg.norm(y - y_ref) / jnp.maximum(
            jnp.linalg.norm(y_ref), 1e-6)
        assert float(rel_err) < 3e-2, \
            f"Pallas/JAX mismatch at level {i} (C={c}): rel_err={float(rel_err)}"

        outputs_nchw.append(jnp.transpose(y, (0, 3, 1, 2)))  # back to NCHW

    jax.block_until_ready(outputs_nchw)
    print("KERNEL_OK")
</pallas_src>

<mosaic_0001>
module attributes {stable_mosaic.version = 11 : i64} {
  func.func @_msffe_kernel(%arg0: i32, %arg1: memref<2x8x8x16xf32, #tpu.memory_space<vmem>>, %arg2: memref<16x16xf32, #tpu.memory_space<vmem>>, %arg3: memref<1x16xf32, #tpu.memory_space<vmem>>, %arg4: memref<144x16xbf16, #tpu.memory_space<vmem>>, %arg5: memref<1x16xf32, #tpu.memory_space<vmem>>, %arg6: memref<80x16xbf16, #tpu.memory_space<vmem>>, %arg7: memref<1x16xf32, #tpu.memory_space<vmem>>, %arg8: memref<48x3xf32, #tpu.memory_space<vmem>>, %arg9: memref<3x48xf32, #tpu.memory_space<vmem>>, %arg10: memref<16x16xbf16, #tpu.memory_space<vmem>>, %arg11: memref<16x16xbf16, #tpu.memory_space<vmem>>, %arg12: memref<16x16xbf16, #tpu.memory_space<vmem>>, %arg13: memref<1x16xf32, #tpu.memory_space<vmem>>, %arg14: memref<1x16xf32, #tpu.memory_space<vmem>>, %arg15: memref<2x8x8x16xf32, #tpu.memory_space<vmem>>, %arg16: memref<2x12x12x16xbf16, #tpu.memory_space<vmem>>, %arg17: memref<5x2x12x8x16xbf16, #tpu.memory_space<vmem>>, %arg18: memref<5x128x80xbf16, #tpu.memory_space<vmem>>, %arg19: memref<128x16xf32, #tpu.memory_space<vmem>>, %arg20: memref<128x16xf32, #tpu.memory_space<vmem>>, %arg21: memref<128x16xf32, #tpu.memory_space<vmem>>) attributes {dimension_semantics = [#tpu.dimension_semantics<arbitrary>], iteration_bounds = array<i64: 5>, scalar_prefetch = 0 : i64, scratch_operands = 6 : i64, tpu.core_type = #tpu.core_type<tc>, window_params = [{pipeline_mode = #tpu.pipeline_mode<synchronous>, transform_indices = @transform_0, window_bounds = array<i64: 2, 8, 8, 16>}, {pipeline_mode = #tpu.pipeline_mode<synchronous>, transform_indices = @transform_1, window_bounds = array<i64: 16, 16>}, {pipeline_mode = #tpu.pipeline_mode<synchronous>, transform_indices = @transform_2, window_bounds = array<i64: 1, 16>}, {pipeline_mode = #tpu.pipeline_mode<synchronous>, transform_indices = @transform_3, window_bounds = array<i64: 144, 16>}, {pipeline_mode = #tpu.pipeline_mode<synchronous>, transform_indices = @transform_4, window_bounds = array<i64: 1, 16>}, {transform_indices = @transform_5, window_bounds = array<i64: 80, 16>}, {pipeline_mode = #tpu.pipeline_mode<synchronous>, transform_indices = @transform_6, window_bounds = array<i64: 1, 16>}, {pipeline_mode = #tpu.pipeline_mode<synchronous>, transform_indices = @transform_7, window_bounds = array<i64: 48, 3>}, {pipeline_mode = #tpu.pipeline_mode<synchronous>, transform_indices = @transform_8, window_bounds = array<i64: 3, 48>}, {pipeline_mode = #tpu.pipeline_mode<synchronous>, transform_indices = @transform_9, window_bounds = array<i64: 16, 16>}, {pipeline_mode = #tpu.pipeline_mode<synchronous>, transform_indices = @transform_10, window_bounds = array<i64: 16, 16>}, {pipeline_mode = #tpu.pipeline_mode<synchronous>, transform_indices = @transform_11, window_bounds = array<i64: 16, 16>}, {pipeline_mode = #tpu.pipeline_mode<synchronous>, transform_indices = @transform_12, window_bounds = array<i64: 1, 16>}, {pipeline_mode = #tpu.pipeline_mode<synchronous>, transform_indices = @transform_13, window_bounds = array<i64: 1, 16>}, {pipeline_mode = #tpu.pipeline_mode<synchronous>, transform_indices = @transform_14, window_bounds = array<i64: 2, 8, 8, 16>}]} {
    %c0_i32 = arith.constant 0 : i32
    %0 = arith.cmpi eq, %arg0, %c0_i32 : i32
    %1 = arith.extui %0 : i1 to i32
    %c0_i32_0 = arith.constant 0 : i32
    %2 = arith.cmpi ne, %1, %c0_i32_0 : i32
    scf.if %2 {
      %cst_9 = arith.constant 0.000000e+00 : bf16
      %14 = vector.broadcast %cst_9 : bf16 to vector<2x2x12x16xbf16>
      %c0_10 = arith.constant 0 : index
      %c0_11 = arith.constant 0 : index
      %c0_12 = arith.constant 0 : index
      %c0_13 = arith.constant 0 : index
      %15 = vector.load %arg16[%c0_10, %c0_11, %c0_12, %c0_13] : memref<2x12x12x16xbf16, #tpu.memory_space<vmem>>, vector<2x2x12x16xbf16>
      tpu.vector_store %arg16[%c0_10, %c0_11, %c0_12, %c0_13], %14 {strides = array<i32>} : memref<2x12x12x16xbf16, #tpu.memory_space<vmem>>, vector<2x2x12x16xbf16>,
      %cst_14 = arith.constant 0.000000e+00 : bf16
      %16 = vector.broadcast %cst_14 : bf16 to vector<2x2x12x16xbf16>
      %c0_15 = arith.constant 0 : index
      %c10 = arith.constant 10 : index
      %c0_16 = arith.constant 0 : index
      %c0_17 = arith.constant 0 : index
      %17 = vector.load %arg16[%c0_15, %c10, %c0_16, %c0_17] : memref<2x12x12x16xbf16, #tpu.memory_space<vmem>>, vector<2x2x12x16xbf16>
      tpu.vector_store %arg16[%c0_15, %c10, %c0_16, %c0_17], %16 {strides = array<i32>} : memref<2x12x12x16xbf16, #tpu.memory_space<vmem>>, vector<2x2x12x16xbf16>,
      %cst_18 = arith.constant 0.000000e+00 : bf16
      %18 = vector.broadcast %cst_18 : bf16 to vector<2x8x2x16xbf16>
      %c0_19 = arith.constant 0 : index
      %c2 = arith.constant 2 : index
      %c0_20 = arith.constant 0 : index
      %c0_21 = arith.constant 0 : index
      %19 = vector.load %arg16[%c0_19, %c2, %c0_20, %c0_21] : memref<2x12x12x16xbf16, #tpu.memory_space<vmem>>, vector<2x8x2x16xbf16>
      tpu.vector_store %arg16[%c0_19, %c2, %c0_20, %c0_21], %18 {strides = array<i32>} : memref<2x12x12x16xbf16, #tpu.memory_space<vmem>>, vector<2x8x2x16xbf16>,
      %cst_22 = arith.constant 0.000000e+00 : bf16
      %20 = vector.broadcast %cst_22 : bf16 to vector<2x8x2x16xbf16>
      %c0_23 = arith.constant 0 : index
      %c2_24 = arith.constant 2 : index
      %c10_25 = arith.constant 10 : index
      %c0_26 = arith.constant 0 : index
      %21 = vector.load %arg16[%c0_23, %c2_24, %c10_25, %c0_26] : memref<2x12x12x16xbf16, #tpu.memory_space<vmem>>, vector<2x8x2x16xbf16>
      tpu.vector_store %arg16[%c0_23, %c2_24, %c10_25, %c0_26], %20 {strides = array<i32>} : memref<2x12x12x16xbf16, #tpu.memory_space<vmem>>, vector<2x8x2x16xbf16>,
      %c0_27 = arith.constant 0 : index
      %c0_28 = arith.constant 0 : index
      %c0_29 = arith.constant 0 : index
      %c0_30 = arith.constant 0 : index
      %22 = vector.load %arg1[%c0_27, %c0_28, %c0_29, %c0_30] : memref<2x8x8x16xf32, #tpu.memory_space<vmem>>, vector<2x8x8x16xf32>
      %23 = arith.truncf %22 : vector<2x8x8x16xf32> to vector<2x8x8x16xbf16>
      %c0_31 = arith.constant 0 : index
      %c2_32 = arith.constant 2 : index
      %c2_33 = arith.constant 2 : index
      %c0_34 = arith.constant 0 : index
      %24 = vector.load %arg16[%c0_31, %c2_32, %c2_33, %c0_34] : memref<2x12x12x16xbf16, #tpu.memory_space<vmem>>, vector<2x8x8x16xbf16>
      tpu.vector_store %arg16[%c0_31, %c2_32, %c2_33, %c0_34], %23 {strides = array<i32>} : memref<2x12x12x16xbf16, #tpu.memory_space<vmem>>, vector<2x8x8x16xbf16>,
      %c0_35 = arith.constant 0 : index
      %c0_36 = arith.constant 0 : index
      %c0_37 = arith.constant 0 : index
      %c0_38 = arith.constant 0 : index
      %25 = vector.load %arg16[%c0_35, %c0_36, %c0_37, %c0_38] : memref<2x12x12x16xbf16, #tpu.memory_space<vmem>>, vector<2x12x8x16xbf16>
      %c0_39 = arith.constant 0 : index
      %c0_40 = arith.constant 0 : index
      %c0_41 = arith.constant 0 : index
      %c0_42 = arith.constant 0 : index
      %c0_43 = arith.constant 0 : index
      %26 = vector.load %arg17[%c0_39, %c0_40, %c0_41, %c0_42, %c0_43] : memref<5x2x12x8x16xbf16, #tpu.memory_space<vmem>>, vector<1x2x12x8x16xbf16>
      %27 = vector.shape_cast %26 : vector<1x2x12x8x16xbf16> to vector<2x12x8x16xbf16>
      %28 = vector.shape_cast %25 : vector<2x12x8x16xbf16> to vector<1x2x12x8x16xbf16>
      tpu.vector_store %arg17[%c0_39, %c0_40, %c0_41, %c0_42, %c0_43], %28 {strides = array<i32>} : memref<5x2x12x8x16xbf16, #tpu.memory_space<vmem>>, vector<1x2x12x8x16xbf16>,
      %c0_44 = arith.constant 0 : index
      %c0_45 = arith.constant 0 : index
      %c1 = arith.constant 1 : index
      %c0_46 = arith.constant 0 : index
      %29 = vector.load %arg16[%c0_44, %c0_45, %c1, %c0_46] : memref<2x12x12x16xbf16, #tpu.memory_space<vmem>>, vector<2x12x8x16xbf16>
      %c1_47 = arith.constant 1 : index
      %c0_48 = arith.constant 0 : index
      %c0_49 = arith.constant 0 : index
      %c0_50 = arith.constant 0 : index
      %c0_51 = arith.constant 0 : index
      %30 = vector.load %arg17[%c1_47, %c0_48, %c0_49, %c0_50, %c0_51] : memref<5x2x12x8x16xbf16, #tpu.memory_space<vmem>>, vector<1x2x12x8x16xbf16>
      %31 = vector.shape_cast %30 : vector<1x2x12x8x16xbf16> to vector<2x12x8x16xbf16>
      %32 = vector.shape_cast %29 : vector<2x12x8x16xbf16> to vector<1x2x12x8x16xbf16>
      tpu.vector_store %arg17[%c1_47, %c0_48, %c0_49, %c0_50, %c0_51], %32 {strides = array<i32>} : memref<5x2x12x8x16xbf16, #tpu.memory_space<vmem>>, vector<1x2x12x8x16xbf16>,
      %c0_52 = arith.constant 0 : index
      %c0_53 = arith.constant 0 : index
      %c2_54 = arith.constant 2 : index
      %c0_55 = arith.constant 0 : index
      %33 = vector.load %arg16[%c0_52, %c0_53, %c2_54, %c0_55] : memref<2x12x12x16xbf16, #tpu.memory_space<vmem>>, vector<2x12x8x16xbf16>
      %c2_56 = arith.constant 2 : index
      %c0_57 = arith.constant 0 : index
      %c0_58 = arith.constant 0 : index
      %c0_59 = arith.constant 0 : index
      %c0_60 = arith.constant 0 : index
      %34 = vector.load %arg17[%c2_56, %c0_57, %c0_58, %c0_59, %c0_60] : memref<5x2x12x8x16xbf16, #tpu.memory_space<vmem>>, vector<1x2x12x8x16xbf16>
      %35 = vector.shape_cast %34 : vector<1x2x12x8x16xbf16> to vector<2x12x8x16xbf16>
      %36 = vector.shape_cast %33 : vector<2x12x8x16xbf16> to vector<1x2x12x8x16xbf16>
      tpu.vector_store %arg17[%c2_56, %c0_57, %c0_58, %c0_59, %c0_60], %36 {strides = array<i32>} : memref<5x2x12x8x16xbf16, #tpu.memory_space<vmem>>, vector<1x2x12x8x16xbf16>,
      %c0_61 = arith.constant 0 : index
      %c0_62 = arith.constant 0 : index
      %c3 = arith.constant 3 : index
      %c0_63 = arith.constant 0 : index
      %37 = vector.load %arg16[%c0_61, %c0_62, %c3, %c0_63] : memref<2x12x12x16xbf16, #tpu.memory_space<vmem>>, vector<2x12x8x16xbf16>
      %c3_64 = arith.constant 3 : index
      %c0_65 = arith.constant 0 : index
      %c0_66 = arith.constant 0 : index
      %c0_67 = arith.constant 0 : index
      %c0_68 = arith.constant 0 : index
      %38 = vector.load %arg17[%c3_64, %c0_65, %c0_66, %c0_67, %c0_68] : memref<5x2x12x8x16xbf16, #tpu.memory_space<vmem>>, vector<1x2x12x8x16xbf16>
      %39 = vector.shape_cast %38 : vector<1x2x12x8x16xbf16> to vector<2x12x8x16xbf16>
      %40 = vector.shape_cast %37 : vector<2x12x8x16xbf16> to vector<1x2x12x8x16xbf16>
      tpu.vector_store %arg17[%c3_64, %c0_65, %c0_66, %c0_67, %c0_68], %40 {strides = array<i32>} : memref<5x2x12x8x16xbf16, #tpu.memory_space<vmem>>, vector<1x2x12x8x16xbf16>,
      %c0_69 = arith.constant 0 : index
      %c0_70 = arith.constant 0 : index
      %c4 = arith.constant 4 : index
      %c0_71 = arith.constant 0 : index
      %41 = vector.load %arg16[%c0_69, %c0_70, %c4, %c0_71] : memref<2x12x12x16xbf16, #tpu.memory_space<vmem>>, vector<2x12x8x16xbf16>
      %c4_72 = arith.constant 4 : index
      %c0_73 = arith.constant 0 : index
      %c0_74 = arith.constant 0 : index
      %c0_75 = arith.constant 0 : index
      %c0_76 = arith.constant 0 : index
      %42 = vector.load %arg17[%c4_72, %c0_73, %c0_74, %c0_75, %c0_76] : memref<5x2x12x8x16xbf16, #tpu.memory_space<vmem>>, vector<1x2x12x8x16xbf16>
      %43 = vector.shape_cast %42 : vector<1x2x12x8x16xbf16> to vector<2x12x8x16xbf16>
      %44 = vector.shape_cast %41 : vector<2x12x8x16xbf16> to vector<1x2x12x8x16xbf16>
      tpu.vector_store %arg17[%c4_72, %c0_73, %c0_74, %c0_75, %c0_76], %44 {strides = array<i32>} : memref<5x2x12x8x16xbf16, #tpu.memory_space<vmem>>, vector<1x2x12x8x16xbf16>,
      %c2_77 = arith.constant 2 : index
      %c0_78 = arith.constant 0 : index
      %c2_79 = arith.constant 2 : index
      %c0_80 = arith.constant 0 : index
      %c0_81 = arith.constant 0 : index
      %45 = vector.load %arg17[%c2_77, %c0_78, %c2_79, %c0_80, %c0_81] : memref<5x2x12x8x16xbf16, #tpu.memory_space<vmem>>, vector<1x2x8x8x16xbf16>
      %46 = vector.shape_cast %45 : vector<1x2x8x8x16xbf16> to vector<2x8x8x16xbf16>
      %47 = vector.shape_cast %46 : vector<2x8x8x16xbf16> to vector<128x16xbf16>
      %c0_82 = arith.constant 0 : index
      %c0_83 = arith.constant 0 : index
      %c0_84 = arith.constant 0 : index
      %48 = vector.load %arg18[%c0_82, %c0_83, %c0_84] : memref<5x128x80xbf16, #tpu.memory_space<vmem>>, vector<1x128x16xbf16>
      %49 = vector.shape_cast %48 : vector<1x128x16xbf16> to vector<128x16xbf16>
      %50 = vector.shape_cast %47 : vector<128x16xbf16> to vector<1x128x16xbf16>
      tpu.vector_store %arg18[%c0_82, %c0_83, %c0_84], %50 {strides = array<i32>} : memref<5x128x80xbf16, #tpu.memory_space<vmem>>, vector<1x128x16xbf16>,
      %c1_85 = arith.constant 1 : index
      %c0_86 = arith.constant 0 : index
      %c1_87 = arith.constant 1 : index
      %c0_88 = arith.constant 0 : index
      %c0_89 = arith.constant 0 : index
      %51 = vector.load %arg17[%c1_85, %c0_86, %c1_87, %c0_88, %c0_89] : memref<5x2x12x8x16xbf16, #tpu.memory_space<vmem>>, vector<1x2x8x8x16xbf16>
      %52 = vector.shape_cast %51 : vector<1x2x8x8x16xbf16> to vector<2x8x8x16xbf16>
      %53 = vector.shape_cast %52 : vector<2x8x8x16xbf16> to vector<128x16xbf16>
      %c0_90 = arith.constant 0 : index
      %c0_91 = arith.constant 0 : index
      %c16 = arith.constant 16 : index
      %54 = vector.load %arg18[%c0_90, %c0_91, %c16] : memref<5x128x80xbf16, #tpu.memory_space<vmem>>, vector<1x128x16xbf16>
      %55 = vector.shape_cast %54 : vector<1x128x16xbf16> to vector<128x16xbf16>
      %56 = vector.shape_cast %53 : vector<128x16xbf16> to vector<1x128x16xbf16>
      tpu.vector_store %arg18[%c0_90, %c0_91, %c16], %56 {strides = array<i32>} : memref<5x128x80xbf16, #tpu.memory_space<vmem>>, vector<1x128x16xbf16>,
      %c2_92 = arith.constant 2 : index
      %c0_93 = arith.constant 0 : index
      %c1_94 = arith.constant 1 : index
      %c0_95 = arith.constant 0 : index
      %c0_96 = arith.constant 0 : index
      %57 = vector.load %arg17[%c2_92, %c0_93, %c1_94, %c0_95, %c0_96] : memref<5x2x12x8x16xbf16, #tpu.memory_space<vmem>>, vector<1x2x8x8x16xbf16>
      %58 = vector.shape_cast %57 : vector<1x2x8x8x16xbf16> to vector<2x8x8x16xbf16>
      %59 = vector.shape_cast %58 : vector<2x8x8x16xbf16> to vector<128x16xbf16>
      %c0_97 = arith.constant 0 : index
      %c0_98 = arith.constant 0 : index
      %c32 = arith.constant 32 : index
      %60 = vector.load %arg18[%c0_97, %c0_98, %c32] : memref<5x128x80xbf16, #tpu.memory_space<vmem>>, vector<1x128x16xbf16>
      %61 = vector.shape_cast %60 : vector<1x128x16xbf16> to vector<128x16xbf16>
      %62 = vector.shape_cast %59 : vector<128x16xbf16> to vector<1x128x16xbf16>
      tpu.vector_store %arg18[%c0_97, %c0_98, %c32], %62 {strides = array<i32>} : memref<5x128x80xbf16, #tpu.memory_space<vmem>>, vector<1x128x16xbf16>,
      %c3_99 = arith.constant 3 : index
      %c0_100 = arith.constant 0 : index
      %c1_101 = arith.constant 1 : index
      %c0_102 = arith.constant 0 : index
      %c0_103 = arith.constant 0 : index
      %63 = vector.load %arg17[%c3_99, %c0_100, %c1_101, %c0_102, %c0_103] : memref<5x2x12x8x16xbf16, #tpu.memory_space<vmem>>, vector<1x2x8x8x16xbf16>
      %64 = vector.shape_cast %63 : vector<1x2x8x8x16xbf16> to vector<2x8x8x16xbf16>
      %65 = vector.shape_cast %64 : vector<2x8x8x16xbf16> to vector<128x16xbf16>
      %c0_104 = arith.constant 0 : index
      %c0_105 = arith.constant 0 : index
      %c48 = arith.constant 48 : index
      %66 = vector.load %arg18[%c0_104, %c0_105, %c48] : memref<5x128x80xbf16, #tpu.memory_space<vmem>>, vector<1x128x16xbf16>
      %67 = vector.shape_cast %66 : vector<1x128x16xbf16> to vector<128x16xbf16>
      %68 = vector.shape_cast %65 : vector<128x16xbf16> to vector<1x128x16xbf16>
      tpu.vector_store %arg18[%c0_104, %c0_105, %c48], %68 {strides = array<i32>} : memref<5x128x80xbf16, #tpu.memory_space<vmem>>, vector<1x128x16xbf16>,
      %c1_106 = arith.constant 1 : index
      %c0_107 = arith.constant 0 : index
      %c2_108 = arith.constant 2 : index
      %c0_109 = arith.constant 0 : index
      %c0_110 = arith.constant 0 : index
      %69 = vector.load %arg17[%c1_106, %c0_107, %c2_108, %c0_109, %c0_110] : memref<5x2x12x8x16xbf16, #tpu.memory_space<vmem>>, vector<1x2x8x8x16xbf16>
      %70 = vector.shape_cast %69 : vector<1x2x8x8x16xbf16> to vector<2x8x8x16xbf16>
      %71 = vector.shape_cast %70 : vector<2x8x8x16xbf16> to vector<128x16xbf16>
      %c0_111 = arith.constant 0 : index
      %c0_112 = arith.constant 0 : index
      %c64 = arith.constant 64 : index
      %72 = vector.load %arg18[%c0_111, %c0_112, %c64] : memref<5x128x80xbf16, #tpu.memory_space<vmem>>, vector<1x128x16xbf16>
      %73 = vector.shape_cast %72 : vector<1x128x16xbf16> to vector<128x16xbf16>
      %74 = vector.shape_cast %71 : vector<128x16xbf16> to vector<1x128x16xbf16>
      tpu.vector_store %arg18[%c0_111, %c0_112, %c64], %74 {strides = array<i32>} : memref<5x128x80xbf16, #tpu.memory_space<vmem>>, vector<1x128x16xbf16>,
      %c3_113 = arith.constant 3 : index
      %c0_114 = arith.constant 0 : index
      %c2_115 = arith.constant 2 : index
      %c0_116 = arith.constant 0 : index
      %c0_117 = arith.constant 0 : index
      %75 = vector.load %arg17[%c3_113, %c0_114, %c2_115, %c0_116, %c0_117] : memref<5x2x12x8x16xbf16, #tpu.memory_space<vmem>>, vector<1x2x8x8x16xbf16>
      %76 = vector.shape_cast %75 : vector<1x2x8x8x16xbf16> to vector<2x8x8x16xbf16>
      %77 = vector.shape_cast %76 : vector<2x8x8x16xbf16> to vector<128x16xbf16>
      %c1_118 = arith.constant 1 : index
      %c0_119 = arith.constant 0 : index
      %c0_120 = arith.constant 0 : index
      %78 = vector.load %arg18[%c1_118, %c0_119, %c0_120] : memref<5x128x80xbf16, #tpu.memory_space<vmem>>, vector<1x128x16xbf16>
      %79 = vector.shape_cast %78 : vector<1x128x16xbf16> to vector<128x16xbf16>
      %80 = vector.shape_cast %77 : vector<128x16xbf16> to vector<1x128x16xbf16>
      tpu.vector_store %arg18[%c1_118, %c0_119, %c0_120], %80 {strides = array<i32>} : memref<5x128x80xbf16, #tpu.memory_space<vmem>>, vector<1x128x16xbf16>,
      %c1_121 = arith.constant 1 : index
      %c0_122 = arith.constant 0 : index
      %c3_123 = arith.constant 3 : index
      %c0_124 = arith.constant 0 : index
      %c0_125 = arith.constant 0 : index
      %81 = vector.load %arg17[%c1_121, %c0_122, %c3_123, %c0_124, %c0_125] : memref<5x2x12x8x16xbf16, #tpu.memory_space<vmem>>, vector<1x2x8x8x16xbf16>
      %82 = vector.shape_cast %81 : vector<1x2x8x8x16xbf16> to vector<2x8x8x16xbf16>
      %83 = vector.shape_cast %82 : vector<2x8x8x16xbf16> to vector<128x16xbf16>
      %c1_126 = arith.constant 1 : index
      %c0_127 = arith.constant 0 : index
      %c16_128 = arith.constant 16 : index
      %84 = vector.load %arg18[%c1_126, %c0_127, %c16_128] : memref<5x128x80xbf16, #tpu.memory_space<vmem>>, vector<1x128x16xbf16>
      %85 = vector.shape_cast %84 : vector<1x128x16xbf16> to vector<128x16xbf16>
      %86 = vector.shape_cast %83 : vector<128x16xbf16> to vector<1x128x16xbf16>
      tpu.vector_store %arg18[%c1_126, %c0_127, %c16_128], %86 {strides = array<i32>} : memref<5x128x80xbf16, #tpu.memory_space<vmem>>, vector<1x128x16xbf16>,
      %c2_129 = arith.constant 2 : index
      %c0_130 = arith.constant 0 : index
      %c3_131 = arith.constant 3 : index
      %c0_132 = arith.constant 0 : index
      %c0_133 = arith.constant 0 : index
      %87 = vector.load %arg17[%c2_129, %c0_130, %c3_131, %c0_132, %c0_133] : memref<5x2x12x8x16xbf16, #tpu.memory_space<vmem>>, vector<1x2x8x8x16xbf16>
      %88 = vector.shape_cast %87 : vector<1x2x8x8x16xbf16> to vector<2x8x8x16xbf16>
      %89 = vector.shape_cast %88 : vector<2x8x8x16xbf16> to vector<128x16xbf16>
      %c1_134 = arith.constant 1 : index
      %c0_135 = arith.constant 0 : index
      %c32_136 = arith.constant 32 : index
      %90 = vector.load %arg18[%c1_134, %c0_135, %c32_136] : memref<5x128x80xbf16, #tpu.memory_space<vmem>>, vector<1x128x16xbf16>
      %91 = vector.shape_cast %90 : vector<1x128x16xbf16> to vector<128x16xbf16>
      %92 = vector.shape_cast %89 : vector<128x16xbf16> to vector<1x128x16xbf16>
      tpu.vector_store %arg18[%c1_134, %c0_135, %c32_136], %92 {strides = array<i32>} : memref<5x128x80xbf16, #tpu.memory_space<vmem>>, vector<1x128x16xbf16>,
      %c3_137 = arith.constant 3 : index
      %c0_138 = arith.constant 0 : index
      %c3_139 = arith.constant 3 : index
      %c0_140 = arith.constant 0 : index
      %c0_141 = arith.constant 0 : index
      %93 = vector.load %arg17[%c3_137, %c0_138, %c3_139, %c0_140, %c0_141] : memref<5x2x12x8x16xbf16, #tpu.memory_space<vmem>>, vector<1x2x8x8x16xbf16>
      %94 = vector.shape_cast %93 : vector<1x2x8x8x16xbf16> to vector<2x8x8x16xbf16>
      %95 = vector.shape_cast %94 : vector<2x8x8x16xbf16> to vector<128x16xbf16>
      %c1_142 = arith.constant 1 : index
      %c0_143 = arith.constant 0 : index
      %c48_144 = arith.constant 48 : index
      %96 = vector.load %arg18[%c1_142, %c0_143, %c48_144] : memref<5x128x80xbf16, #tpu.memory_space<vmem>>, vector<1x128x16xbf16>
      %97 = vector.shape_cast %96 : vector<1x128x16xbf16> to vector<128x16xbf16>
      %98 = vector.shape_cast %95 : vector<128x16xbf16> to vector<1x128x16xbf16>
      tpu.vector_store %arg18[%c1_142, %c0_143, %c48_144], %98 {strides = array<i32>} : memref<5x128x80xbf16, #tpu.memory_space<vmem>>, vector<1x128x16xbf16>,
      %c0_145 = arith.constant 0 : index
      %c0_146 = arith.constant 0 : index
      %c0_147 = arith.constant 0 : index
      %c0_148 = arith.constant 0 : index
      %c0_149 = arith.constant 0 : index
      %99 = vector.load %arg17[%c0_145, %c0_146, %c0_147, %c0_148, %c0_149] : memref<5x2x12x8x16xbf16, #tpu.memory_space<vmem>>, vector<1x2x8x8x16xbf16>
      %100 = vector.shape_cast %99 : vector<1x2x8x8x16xbf16> to vector<2x8x8x16xbf16>
      %101 = vector.shape_cast %100 : vector<2x8x8x16xbf16> to vector<128x16xbf16>
      %c1_150 = arith.constant 1 : index
      %c0_151 = arith.constant 0 : index
      %c64_152 = arith.constant 64 : index
      %102 = vector.load %arg18[%c1_150, %c0_151, %c64_152] : memref<5x128x80xbf16, #tpu.memory_space<vmem>>, vector<1x128x16xbf16>
      %103 = vector.shape_cast %102 : vector<1x128x16xbf16> to vector<128x16xbf16>
      %104 = vector.shape_cast %101 : vector<128x16xbf16> to vector<1x128x16xbf16>
      tpu.vector_store %arg18[%c1_150, %c0_151, %c64_152], %104 {strides = array<i32>} : memref<5x128x80xbf16, #tpu.memory_space<vmem>>, vector<1x128x16xbf16>,
      %c1_153 = arith.constant 1 : index
      %c0_154 = arith.constant 0 : index
      %c0_155 = arith.constant 0 : index
      %c0_156 = arith.constant 0 : index
      %c0_157 = arith.constant 0 : index
      %105 = vector.load %arg17[%c1_153, %c0_154, %c0_155, %c0_156, %c0_157] : memref<5x2x12x8x16xbf16, #tpu.memory_space<vmem>>, vector<1x2x8x8x16xbf16>
      %106 = vector.shape_cast %105 : vector<1x2x8x8x16xbf16> to vector<2x8x8x16xbf16>
      %107 = vector.shape_cast %106 : vector<2x8x8x16xbf16> to vector<128x16xbf16>
      %c2_158 = arith.constant 2 : index
      %c0_159 = arith.constant 0 : index
      %c0_160 = arith.constant 0 : index
      %108 = vector.load %arg18[%c2_158, %c0_159, %c0_160] : memref<5x128x80xbf16, #tpu.memory_space<vmem>>, vector<1x128x16xbf16>
      %109 = vector.shape_cast %108 : vector<1x128x16xbf16> to vector<128x16xbf16>
      %110 = vector.shape_cast %107 : vector<128x16xbf16> to vector<1x128x16xbf16>
      tpu.vector_store %arg18[%c2_158, %c0_159, %c0_160], %110 {strides = array<i32>} : memref<5x128x80xbf16, #tpu.memory_space<vmem>>, vector<1x128x16xbf16>,
      %c2_161 = arith.constant 2 : index
      %c0_162 = arith.constant 0 : index
      %c0_163 = arith.constant 0 : index
      %c0_164 = arith.constant 0 : index
      %c0_165 = arith.constant 0 : index
      %111 = vector.load %arg17[%c2_161, %c0_162, %c0_163, %c0_164, %c0_165] : memref<5x2x12x8x16xbf16, #tpu.memory_space<vmem>>, vector<1x2x8x8x16xbf16>
      %112 = vector.shape_cast %111 : vector<1x2x8x8x16xbf16> to vector<2x8x8x16xbf16>
      %113 = vector.shape_cast %112 : vector<2x8x8x16xbf16> to vector<128x16xbf16>
      %c2_166 = arith.constant 2 : index
      %c0_167 = arith.constant 0 : index
      %c16_168 = arith.constant 16 : index
      %114 = vector.load %arg18[%c2_166, %c0_167, %c16_168] : memref<5x128x80xbf16, #tpu.memory_space<vmem>>, vector<1x128x16xbf16>
      %115 = vector.shape_cast %114 : vector<1x128x16xbf16> to vector<128x16xbf16>
      %116 = vector.shape_cast %113 : vector<128x16xbf16> to vector<1x128x16xbf16>
      tpu.vector_store %arg18[%c2_166, %c0_167, %c16_168], %116 {strides = array<i32>} : memref<5x128x80xbf16, #tpu.memory_space<vmem>>, vector<1x128x16xbf16>,
      %c3_169 = arith.constant 3 : index
      %c0_170 = arith.constant 0 : index
      %c0_171 = arith.constant 0 : index
      %c0_172 = arith.constant 0 : index
      %c0_173 = arith.constant 0 : index
      %117 = vector.load %arg17[%c3_169, %c0_170, %c0_171, %c0_172, %c0_173] : memref<5x2x12x8x16xbf16, #tpu.memory_space<vmem>>, vector<1x2x8x8x16xbf16>
      %118 = vector.shape_cast %117 : vector<1x2x8x8x16xbf16> to vector<2x8x8x16xbf16>
      %119 = vector.shape_cast %118 : vector<2x8x8x16xbf16> to vector<128x16xbf16>
      %c2_174 = arith.constant 2 : index
      %c0_175 = arith.constant 0 : index
      %c32_176 = arith.constant 32 : index
      %120 = vector.load %arg18[%c2_174, %c0_175, %c32_176] : memref<5x128x80xbf16, #tpu.memory_space<vmem>>, vector<1x128x16xbf16>
      %121 = vector.shape_cast %120 : vector<1x128x16xbf16> to vector<128x16xbf16>
      %122 = vector.shape_cast %119 : vector<128x16xbf16> to vector<1x128x16xbf16>
      tpu.vector_store %arg18[%c2_174, %c0_175, %c32_176], %122 {strides = array<i32>} : memref<5x128x80xbf16, #tpu.memory_space<vmem>>, vector<1x128x16xbf16>,
      %c4_177 = arith.constant 4 : index
      %c0_178 = arith.constant 0 : index
      %c0_179 = arith.constant 0 : index
      %c0_180 = arith.constant 0 : index
      %c0_181 = arith.constant 0 : index
      %123 = vector.load %arg17[%c4_177, %c0_178, %c0_179, %c0_180, %c0_181] : memref<5x2x12x8x16xbf16, #tpu.memory_space<vmem>>, vector<1x2x8x8x16xbf16>
      %124 = vector.shape_cast %123 : vector<1x2x8x8x16xbf16> to vector<2x8x8x16xbf16>
      %125 = vector.shape_cast %124 : vector<2x8x8x16xbf16> to vector<128x16xbf16>
      %c2_182 = arith.constant 2 : index
      %c0_183 = arith.constant 0 : index
      %c48_184 = arith.constant 48 : index
      %126 = vector.load %arg18[%c2_182, %c0_183, %c48_184] : memref<5x128x80xbf16, #tpu.memory_space<vmem>>, vector<1x128x16xbf16>
      %127 = vector.shape_cast %126 : vector<1x128x16xbf16> to vector<128x16xbf16>
      %128 = vector.shape_cast %125 : vector<128x16xbf16> to vector<1x128x16xbf16>
      tpu.vector_store %arg18[%c2_182, %c0_183, %c48_184], %128 {strides = array<i32>} : memref<5x128x80xbf16, #tpu.memory_space<vmem>>, vector<1x128x16xbf16>,
      %c0_185 = arith.constant 0 : index
      %c0_186 = arith.constant 0 : index
      %c1_187 = arith.constant 1 : index
      %c0_188 = arith.constant 0 : index
      %c0_189 = arith.constant 0 : index
      %129 = vector.load %arg17[%c0_185, %c0_186, %c1_187, %c0_188, %c0_189] : memref<5x2x12x8x16xbf16, #tpu.memory_space<vmem>>, vector<1x2x8x8x16xbf16>
      %130 = vector.shape_cast %129 : vector<1x2x8x8x16xbf16> to vector<2x8x8x16xbf16>
      %131 = vector.shape_cast %130 : vector<2x8x8x16xbf16> to vector<128x16xbf16>
      %c2_190 = arith.constant 2 : index
      %c0_191 = arith.constant 0 : index
      %c64_192 = arith.constant 64 : index
      %132 = vector.load %arg18[%c2_190, %c0_191, %c64_192] : memref<5x128x80xbf16, #tpu.memory_space<vmem>>, vector<1x128x16xbf16>
      %133 = vector.shape_cast %132 : vector<1x128x16xbf16> to vector<128x16xbf16>
      %134 = vector.shape_cast %131 : vector<128x16xbf16> to vector<1x128x16xbf16>
      tpu.vector_store %arg18[%c2_190, %c0_191, %c64_192], %134 {strides = array<i32>} : memref<5x128x80xbf16, #tpu.memory_space<vmem>>, vector<1x128x16xbf16>,
      %c4_193 = arith.constant 4 : index
      %c0_194 = arith.constant 0 : index
      %c1_195 = arith.constant 1 : index
      %c0_196 = arith.constant 0 : index
      %c0_197 = arith.constant 0 : index
      %135 = vector.load %arg17[%c4_193, %c0_194, %c1_195, %c0_196, %c0_197] : memref<5x2x12x8x16xbf16, #tpu.memory_space<vmem>>, vector<1x2x8x8x16xbf16>
      %136 = vector.shape_cast %135 : vector<1x2x8x8x16xbf16> to vector<2x8x8x16xbf16>
      %137 = vector.shape_cast %136 : vector<2x8x8x16xbf16> to vector<128x16xbf16>
      %c3_198 = arith.constant 3 : index
      %c0_199 = arith.constant 0 : index
      %c0_200 = arith.constant 0 : index
      %138 = vector.load %arg18[%c3_198, %c0_199, %c0_200] : memref<5x128x80xbf16, #tpu.memory_space<vmem>>, vector<1x128x16xbf16>
      %139 = vector.shape_cast %138 : vector<1x128x16xbf16> to vector<128x16xbf16>
      %140 = vector.shape_cast %137 : vector<128x16xbf16> to vector<1x128x16xbf16>
      tpu.vector_store %arg18[%c3_198, %c0_199, %c0_200], %140 {strides = array<i32>} : memref<5x128x80xbf16, #tpu.memory_space<vmem>>, vector<1x128x16xbf16>,
      %c0_201 = arith.constant 0 : index
      %c0_202 = arith.constant 0 : index
      %c2_203 = arith.constant 2 : index
      %c0_204 = arith.constant 0 : index
      %c0_205 = arith.constant 0 : index
      %141 = vector.load %arg17[%c0_201, %c0_202, %c2_203, %c0_204, %c0_205] : memref<5x2x12x8x16xbf16, #tpu.memory_space<vmem>>, vector<1x2x8x8x16xbf16>
      %142 = vector.shape_cast %141 : vector<1x2x8x8x16xbf16> to vector<2x8x8x16xbf16>
      %143 = vector.shape_cast %142 : vector<2x8x8x16xbf16> to vector<128x16xbf16>
      %c3_206 = arith.constant 3 : index
      %c0_207 = arith.constant 0 : index
      %c16_208 = arith.constant 16 : index
      %144 = vector.load %arg18[%c3_206, %c0_207, %c16_208] : memref<5x128x80xbf16, #tpu.memory_space<vmem>>, vector<1x128x16xbf16>
      %145 = vector.shape_cast %144 : vector<1x128x16xbf16> to vector<128x16xbf16>
      %146 = vector.shape_cast %143 : vector<128x16xbf16> to vector<1x128x16xbf16>
      tpu.vector_store %arg18[%c3_206, %c0_207, %c16_208], %146 {strides = array<i32>} : memref<5x128x80xbf16, #tpu.memory_space<vmem>>, vector<1x128x16xbf16>,
      %c4_209 = arith.constant 4 : index
      %c0_210 = arith.constant 0 : index
      %c2_211 = arith.constant 2 : index
      %c0_212 = arith.constant 0 : index
      %c0_213 = arith.constant 0 : index
      %147 = vector.load %arg17[%c4_209, %c0_210, %c2_211, %c0_212, %c0_213] : memref<5x2x12x8x16xbf16, #tpu.memory_space<vmem>>, vector<1x2x8x8x16xbf16>
      %148 = vector.shape_cast %147 : vector<1x2x8x8x16xbf16> to vector<2x8x8x16xbf16>
      %149 = vector.shape_cast %148 : vector<2x8x8x16xbf16> to vector<128x16xbf16>
      %c3_214 = arith.constant 3 : index
      %c0_215 = arith.constant 0 : index
      %c32_216 = arith.constant 32 : index
      %150 = vector.load %arg18[%c3_214, %c0_215, %c32_216] : memref<5x128x80xbf16, #tpu.memory_space<vmem>>, vector<1x128x16xbf16>
      %151 = vector.shape_cast %150 : vector<1x128x16xbf16> to vector<128x16xbf16>
      %152 = vector.shape_cast %149 : vector<128x16xbf16> to vector<1x128x16xbf16>
      tpu.vector_store %arg18[%c3_214, %c0_215, %c32_216], %152 {strides = array<i32>} : memref<5x128x80xbf16, #tpu.memory_space<vmem>>, vector<1x128x16xbf16>,
      %c0_217 = arith.constant 0 : index
      %c0_218 = arith.constant 0 : index
      %c3_219 = arith.constant 3 : index
      %c0_220 = arith.constant 0 : index
      %c0_221 = arith.constant 0 : index
      %153 = vector.load %arg17[%c0_217, %c0_218, %c3_219, %c0_220, %c0_221] : memref<5x2x12x8x16xbf16, #tpu.memory_space<vmem>>, vector<1x2x8x8x16xbf16>
      %154 = vector.shape_cast %153 : vector<1x2x8x8x16xbf16> to vector<2x8x8x16xbf16>
      %155 = vector.shape_cast %154 : vector<2x8x8x16xbf16> to vector<128x16xbf16>
      %c3_222 = arith.constant 3 : index
      %c0_223 = arith.constant 0 : index
      %c48_224 = arith.constant 48 : index
      %156 = vector.load %arg18[%c3_222, %c0_223, %c48_224] : memref<5x128x80xbf16, #tpu.memory_space<vmem>>, vector<1x128x16xbf16>
      %157 = vector.shape_cast %156 : vector<1x128x16xbf16> to vector<128x16xbf16>
      %158 = vector.shape_cast %155 : vector<128x16xbf16> to vector<1x128x16xbf16>
      tpu.vector_store %arg18[%c3_222, %c0_223, %c48_224], %158 {strides = array<i32>} : memref<5x128x80xbf16, #tpu.memory_space<vmem>>, vector<1x128x16xbf16>,
      %c4_225 = arith.constant 4 : index
      %c0_226 = arith.constant 0 : index
      %c3_227 = arith.constant 3 : index
      %c0_228 = arith.constant 0 : index
      %c0_229 = arith.constant 0 : index
      %159 = vector.load %arg17[%c4_225, %c0_226, %c3_227, %c0_228, %c0_229] : memref<5x2x12x8x16xbf16, #tpu.memory_space<vmem>>, vector<1x2x8x8x16xbf16>
      %160 = vector.shape_cast %159 : vector<1x2x8x8x16xbf16> to vector<2x8x8x16xbf16>
      %161 = vector.shape_cast %160 : vector<2x8x8x16xbf16> to vector<128x16xbf16>
      %c3_230 = arith.constant 3 : index
      %c0_231 = arith.constant 0 : index
      %c64_232 = arith.constant 64 : index
      %162 = vector.load %arg18[%c3_230, %c0_231, %c64_232] : memref<5x128x80xbf16, #tpu.memory_space<vmem>>, vector<1x128x16xbf16>
      %163 = vector.shape_cast %162 : vector<1x128x16xbf16> to vector<128x16xbf16>
      %164 = vector.shape_cast %161 : vector<128x16xbf16> to vector<1x128x16xbf16>
      tpu.vector_store %arg18[%c3_230, %c0_231, %c64_232], %164 {strides = array<i32>} : memref<5x128x80xbf16, #tpu.memory_space<vmem>>, vector<1x128x16xbf16>,
      %c0_233 = arith.constant 0 : index
      %c0_234 = arith.constant 0 : index
      %c4_235 = arith.constant 4 : index
      %c0_236 = arith.constant 0 : index
      %c0_237 = arith.constant 0 : index
      %165 = vector.load %arg17[%c0_233, %c0_234, %c4_235, %c0_236, %c0_237] : memref<5x2x12x8x16xbf16, #tpu.memory_space<vmem>>, vector<1x2x8x8x16xbf16>
      %166 = vector.shape_cast %165 : vector<1x2x8x8x16xbf16> to vector<2x8x8x16xbf16>
      %167 = vector.shape_cast %166 : vector<2x8x8x16xbf16> to vector<128x16xbf16>
      %c4_238 = arith.constant 4 : index
      %c0_239 = arith.constant 0 : index
      %c0_240 = arith.constant 0 : index
      %168 = vector.load %arg18[%c4_238, %c0_239, %c0_240] : memref<5x128x80xbf16, #tpu.memory_space<vmem>>, vector<1x128x16xbf16>
      %169 = vector.shape_cast %168 : vector<1x128x16xbf16> to vector<128x16xbf16>
      %170 = vector.shape_cast %167 : vector<128x16xbf16> to vector<1x128x16xbf16>
      tpu.vector_store %arg18[%c4_238, %c0_239, %c0_240], %170 {strides = array<i32>} : memref<5x128x80xbf16, #tpu.memory_space<vmem>>, vector<1x128x16xbf16>,
      %c1_241 = arith.constant 1 : index
      %c0_242 = arith.constant 0 : index
      %c4_243 = arith.constant 4 : index
      %c0_244 = arith.constant 0 : index
      %c0_245 = arith.constant 0 : index
      %171 = vector.load %arg17[%c1_241, %c0_242, %c4_243, %c0_244, %c0_245] : memref<5x2x12x8x16xbf16, #tpu.memory_space<vmem>>, vector<1x2x8x8x16xbf16>
      %172 = vector.shape_cast %171 : vector<1x2x8x8x16xbf16> to vector<2x8x8x16xbf16>
      %173 = vector.shape_cast %172 : vector<2x8x8x16xbf16> to vector<128x16xbf16>
      %c4_246 = arith.constant 4 : index
      %c0_247 = arith.constant 0 : index
      %c16_248 = arith.constant 16 : index
      %174 = vector.load %arg18[%c4_246, %c0_247, %c16_248] : memref<5x128x80xbf16, #tpu.memory_space<vmem>>, vector<1x128x16xbf16>
      %175 = vector.shape_cast %174 : vector<1x128x16xbf16> to vector<128x16xbf16>
      %176 = vector.shape_cast %173 : vector<128x16xbf16> to vector<1x128x16xbf16>
      tpu.vector_store %arg18[%c4_246, %c0_247, %c16_248], %176 {strides = array<i32>} : memref<5x128x80xbf16, #tpu.memory_space<vmem>>, vector<1x128x16xbf16>,
      %c2_249 = arith.constant 2 : index
      %c0_250 = arith.constant 0 : index
      %c4_251 = arith.constant 4 : index
      %c0_252 = arith.constant 0 : index
      %c0_253 = arith.constant 0 : index
      %177 = vector.load %arg17[%c2_249, %c0_250, %c4_251, %c0_252, %c0_253] : memref<5x2x12x8x16xbf16, #tpu.memory_space<vmem>>, vector<1x2x8x8x16xbf16>
      %178 = vector.shape_cast %177 : vector<1x2x8x8x16xbf16> to vector<2x8x8x16xbf16>
      %179 = vector.shape_cast %178 : vector<2x8x8x16xbf16> to vector<128x16xbf16>
      %c4_254 = arith.constant 4 : index
      %c0_255 = arith.constant 0 : index
      %c32_256 = arith.constant 32 : index
      %180 = vector.load %arg18[%c4_254, %c0_255, %c32_256] : memref<5x128x80xbf16, #tpu.memory_space<vmem>>, vector<1x128x16xbf16>
      %181 = vector.shape_cast %180 : vector<1x128x16xbf16> to vector<128x16xbf16>
      %182 = vector.shape_cast %179 : vector<128x16xbf16> to vector<1x128x16xbf16>
      tpu.vector_store %arg18[%c4_254, %c0_255, %c32_256], %182 {strides = array<i32>} : memref<5x128x80xbf16, #tpu.memory_space<vmem>>, vector<1x128x16xbf16>,
      %c3_257 = arith.constant 3 : index
      %c0_258 = arith.constant 0 : index
      %c4_259 = arith.constant 4 : index
      %c0_260 = arith.constant 0 : index
      %c0_261 = arith.constant 0 : index
      %183 = vector.load %arg17[%c3_257, %c0_258, %c4_259, %c0_260, %c0_261] : memref<5x2x12x8x16xbf16, #tpu.memory_space<vmem>>, vector<1x2x8x8x16xbf16>
      %184 = vector.shape_cast %183 : vector<1x2x8x8x16xbf16> to vector<2x8x8x16xbf16>
      %185 = vector.shape_cast %184 : vector<2x8x8x16xbf16> to vector<128x16xbf16>
      %c4_262 = arith.constant 4 : index
      %c0_263 = arith.constant 0 : index
      %c48_264 = arith.constant 48 : index
      %186 = vector.load %arg18[%c4_262, %c0_263, %c48_264] : memref<5x128x80xbf16, #tpu.memory_space<vmem>>, vector<1x128x16xbf16>
      %187 = vector.shape_cast %186 : vector<1x128x16xbf16> to vector<128x16xbf16>
      %188 = vector.shape_cast %185 : vector<128x16xbf16> to vector<1x128x16xbf16>
      tpu.vector_store %arg18[%c4_262, %c0_263, %c48_264], %188 {strides = array<i32>} : memref<5x128x80xbf16, #tpu.memory_space<vmem>>, vector<1x128x16xbf16>,
      %c4_265 = arith.constant 4 : index
      %c0_266 = arith.constant 0 : index
      %c4_267 = arith.constant 4 : index
      %c0_268 = arith.constant 0 : index
      %c0_269 = arith.constant 0 : index
      %189 = vector.load %arg17[%c4_265, %c0_266, %c4_267, %c0_268, %c0_269] : memref<5x2x12x8x16xbf16, #tpu.memory_space<vmem>>, vector<1x2x8x8x16xbf16>
      %190 = vector.shape_cast %189 : vector<1x2x8x8x16xbf16> to vector<2x8x8x16xbf16>
      %191 = vector.shape_cast %190 : vector<2x8x8x16xbf16> to vector<128x16xbf16>
      %c4_270 = arith.constant 4 : index
      %c0_271 = arith.constant 0 : index
      %c64_272 = arith.constant 64 : index
      %192 = vector.load %arg18[%c4_270, %c0_271, %c64_272] : memref<5x128x80xbf16, #tpu.memory_space<vmem>>, vector<1x128x16xbf16>
      %193 = vector.shape_cast %192 : vector<1x128x16xbf16> to vector<128x16xbf16>
      %194 = vector.shape_cast %191 : vector<128x16xbf16> to vector<1x128x16xbf16>
      tpu.vector_store %arg18[%c4_270, %c0_271, %c64_272], %194 {strides = array<i32>} : memref<5x128x80xbf16, #tpu.memory_space<vmem>>, vector<1x128x16xbf16>,
      %c0_273 = arith.constant 0 : index
      %c0_274 = arith.constant 0 : index
      %c0_275 = arith.constant 0 : index
      %c0_276 = arith.constant 0 : index
      %195 = vector.load %arg1[%c0_273, %c0_274, %c0_275, %c0_276] : memref<2x8x8x16xf32, #tpu.memory_space<vmem>>, vector<2x8x8x16xf32>
      %196 = vector.shape_cast %195 : vector<2x8x8x16xf32> to vector<128x16xf32>
      %c0_277 = arith.constant 0 : index
      %c0_278 = arith.constant 0 : index
      %197 = vector.load %arg2[%c0_277, %c0_278] : memref<16x16xf32, #tpu.memory_space<vmem>>, vector<16x16xf32>
      %cst_279 = arith.constant dense<0.000000e+00> : vector<128x16xf32>
      %198 = tpu.matmul %196, %197, %cst_279 {dimension_numbers = #tpu.dot_dimension_numbers<[1], [0], [0], [1], [0, 0, 1, 1], [], []>} : vector<128x16xf32>, vector<16x16xf32>, vector<128x16xf32> -> vector<128x16xf32>
      %c0_280 = arith.constant 0 : index
      %c0_281 = arith.constant 0 : index
      %199 = vector.load %arg3[%c0_280, %c0_281] : memref<1x16xf32, #tpu.memory_space<vmem>>, vector<1x16xf32>
      %200 = vector.broadcast %199 : vector<1x16xf32> to vector<128x16xf32>
      %201 = arith.addf %198, %200 : vector<128x16xf32>
      %c0_282 = arith.constant 0 : index
      %c0_283 = arith.constant 0 : index
      %202 = vector.load %arg19[%c0_282, %c0_283] : memref<128x16xf32, #tpu.memory_space<vmem>>, vector<128x16xf32>
      tpu.vector_store %arg19[%c0_282, %c0_283], %201 {strides = array<i32>} : memref<128x16xf32, #tpu.memory_space<vmem>>, vector<128x16xf32>,
      %c0_284 = arith.constant 0 : index
      %c0_285 = arith.constant 0 : index
      %c0_286 = arith.constant 0 : index
      %203 = vector.load %arg18[%c0_284, %c0_285, %c0_286] : memref<5x128x80xbf16, #tpu.memory_space<vmem>>, vector<1x128x80xbf16>
      %204 = vector.shape_cast %203 : vector<1x128x80xbf16> to vector<128x80xbf16>
      %c0_287 = arith.constant 0 : index
      %c0_288 = arith.constant 0 : index
      %205 = vector.load %arg4[%c0_287, %c0_288] : memref<144x16xbf16, #tpu.memory_space<vmem>>, vector<80x16xbf16>
      %cst_289 = arith.constant dense<0.000000e+00> : vector<128x16xf32>
      %206 = tpu.matmul %204, %205, %cst_289 {dimension_numbers = #tpu.dot_dimension_numbers<[1], [0], [0], [1], [0, 0, 1, 1], [], []>} : vector<128x80xbf16>, vector<80x16xbf16>, vector<128x16xf32> -> vector<128x16xf32>
      %c1_290 = arith.constant 1 : index
      %c0_291 = arith.constant 0 : index
      %c0_292 = arith.constant 0 : index
      %207 = vector.load %arg18[%c1_290, %c0_291, %c0_292] : memref<5x128x80xbf16, #tpu.memory_space<vmem>>, vector<1x128x80xbf16>
      %208 = vector.shape_cast %207 : vector<1x128x80xbf16> to vector<128x80xbf16>
      %209 = vector.extract_strided_slice %208 {offsets = [0, 0], sizes = [128, 64], strides = [1, 1]} : vector<128x80xbf16> to vector<128x64xbf16>
      %c80 = arith.constant 80 : index
      %c0_293 = arith.constant 0 : index
      %210 = vector.load %arg4[%c80, %c0_293] : memref<144x16xbf16, #tpu.memory_space<vmem>>, vector<64x16xbf16>
      %cst_294 = arith.constant dense<0.000000e+00> : vector<128x16xf32>
      %211 = tpu.matmul %209, %210, %cst_294 {dimension_numbers = #tpu.dot_dimension_numbers<[1], [0], [0], [1], [0, 0, 1, 1], [], []>} : vector<128x64xbf16>, vector<64x16xbf16>, vector<128x16xf32> -> vector<128x16xf32>
      %212 = arith.addf %206, %211 : vector<128x16xf32>
      %c0_295 = arith.constant 0 : index
      %c0_296 = arith.constant 0 : index
      %213 = vector.load %arg5[%c0_295, %c0_296] : memref<1x16xf32, #tpu.memory_space<vmem>>, vector<1x16xf32>
      %214 = vector.broadcast %213 : vector<1x16xf32> to vector<128x16xf32>
      %215 = arith.addf %212, %214 : vector<128x16xf32>
      %c0_297 = arith.constant 0 : index
      %c0_298 = arith.constant 0 : index
      %216 = vector.load %arg20[%c0_297, %c0_298] : memref<128x16xf32, #tpu.memory_space<vmem>>, vector<128x16xf32>
      tpu.vector_store %arg20[%c0_297, %c0_298], %215 {strides = array<i32>} : memref<128x16xf32, #tpu.memory_space<vmem>>, vector<128x16xf32>,
      %cst_299 = arith.constant 0.000000e+00 : f32
      %217 = vector.broadcast %cst_299 : f32 to vector<128x16xf32>
      %c0_300 = arith.constant 0 : index
      %c0_301 = arith.constant 0 : index
      %218 = vector.load %arg21[%c0_300, %c0_301] : memref<128x16xf32, #tpu.memory_space<vmem>>, vector<128x16xf32>
      tpu.vector_store %arg21[%c0_300, %c0_301], %217 {strides = array<i32>} : memref<128x16xf32, #tpu.memory_space<vmem>>, vector<128x16xf32>,
    } else {
    }
    %c0 = arith.constant 0 : index
    %c0_1 = arith.constant 0 : index
    %3 = vector.load %arg21[%c0, %c0_1] : memref<128x16xf32, #tpu.memory_space<vmem>>, vector<128x16xf32>
    %4 = arith.index_cast %arg0 : i32 to index
    %c0_2 = arith.constant 0 : index
    %c0_3 = arith.constant 0 : index
    %5 = vector.load %arg18[%4, %c0_2, %c0_3] : memref<5x128x80xbf16, #tpu.memory_space<vmem>>, vector<1x128x80xbf16>
    %6 = vector.shape_cast %5 : vector<1x128x80xbf16> to vector<128x80xbf16>
    %c0_4 = arith.constant 0 : index
    %c0_5 = arith.constant 0 : index
    %7 = vector.load %arg6[%c0_4, %c0_5] : memref<80x16xbf16, #tpu.memory_space<vmem>>, vector<80x16xbf16>
    %cst = arith.constant dense<0.000000e+00> : vector<128x16xf32>
    %8 = tpu.matmul %6, %7, %cst {dimension_numbers = #tpu.dot_dimension_numbers<[1], [0], [0], [1], [0, 0, 1, 1], [], []>} : vector<128x80xbf16>, vector<80x16xbf16>, vector<128x16xf32> -> vector<128x16xf32>
    %9 = arith.addf %3, %8 : vector<128x16xf32>
    %c0_6 = arith.constant 0 : index
    %c0_7 = arith.constant 0 : index
    %10 = vector.load %arg21[%c0_6, %c0_7] : memref<128x16xf32, #tpu.memory_space<vmem>>, vector<128x16xf32>
    tpu.vector_store %arg21[%c0_6, %c0_7], %9 {strides = array<i32>} : memref<128x16xf32, #tpu.memory_space<vmem>>, vector<128x16xf32>,
    %c4_i32 = arith.constant 4 : i32
    %11 = arith.cmpi eq, %arg0, %c4_i32 : i32
    %12 = arith.extui %11 : i1 to i32
    %c0_i32_8 = arith.constant 0 : i32
    %13 = arith.cmpi ne, %12, %c0_i32_8 : i32
    scf.if %13 {
      %c0_9 = arith.constant 0 : index
      %c0_10 = arith.constant 0 : index
      %14 = vector.load %arg19[%c0_9, %c0_10] : memref<128x16xf32, #tpu.memory_space<vmem>>, vector<128x16xf32>
      %c0_11 = arith.constant 0 : index
      %c0_12 = arith.constant 0 : index
      %15 = vector.load %arg20[%c0_11, %c0_12] : memref<128x16xf32, #tpu.memory_space<vmem>>, vector<128x16xf32>
      %c0_13 = arith.constant 0 : index
      %c0_14 = arith.constant 0 : index
      %16 = vector.load %arg21[%c0_13, %c0_14] : memref<128x16xf32, #tpu.memory_space<vmem>>, vector<128x16xf32>
      %c0_15 = arith.constant 0 : index
      %c0_16 = arith.constant 0 : index
      %17 = vector.load %arg7[%c0_15, %c0_16] : memref<1x16xf32, #tpu.memory_space<vmem>>, vector<1x16xf32>
      %18 = vector.broadcast %17 : vector<1x16xf32> to vector<128x16xf32>
      %19 = arith.addf %16, %18 : vector<128x16xf32>
      %20 = vector.shape_cast %14 : vector<128x16xf32> to vector<2x64x16xf32>
      %cst_17 = arith.constant dense<0.000000e+00> : vector<2x16xf32>
      %21 = vector.multi_reduction <add>, %20, %cst_17 [1] : vector<2x64x16xf32> to vector<2x16xf32>
      %cst_18 = arith.constant 6.400000e+01 : f32
      %22 = vector.broadcast %cst_18 : f32 to vector<2x16xf32>
      %23 = arith.divf %21, %22 : vector<2x16xf32>
      %24 = vector.shape_cast %15 : vector<128x16xf32> to vector<2x64x16xf32>
      %cst_19 = arith.constant dense<0.000000e+00> : vector<2x16xf32>
      %25 = vector.multi_reduction <add>, %24, %cst_19 [1] : vector<2x64x16xf32> to vector<2x16xf32>
      %cst_20 = arith.constant 6.400000e+01 : f32
      %26 = vector.broadcast %cst_20 : f32 to vector<2x16xf32>
      %27 = arith.divf %25, %26 : vector<2x16xf32>
      %28 = vector.shape_cast %19 : vector<128x16xf32> to vector<2x64x16xf32>
      %cst_21 = arith.constant dense<0.000000e+00> : vector<2x16xf32>
      %29 = vector.multi_reduction <add>, %28, %cst_21 [1] : vector<2x64x16xf32> to vector<2x16xf32>
      %cst_22 = arith.constant 6.400000e+01 : f32
      %30 = vector.broadcast %cst_22 : f32 to vector<2x16xf32>
      %31 = arith.divf %29, %30 : vector<2x16xf32>
      %32 = tpu.concatenate %23, %27, %31 in 1 : vector<2x16xf32>, vector<2x16xf32>, vector<2x16xf32> -> vector<2x48xf32>
      %c0_23 = arith.constant 0 : index
      %c0_24 = arith.constant 0 : index
      %33 = vector.load %arg8[%c0_23, %c0_24] : memref<48x3xf32, #tpu.memory_space<vmem>>, vector<48x3xf32>
      %cst_25 = arith.constant dense<0.000000e+00> : vector<2x3xf32>
      %34 = tpu.matmul %32, %33, %cst_25 {dimension_numbers = #tpu.dot_dimension_numbers<[1], [0], [0], [1], [0, 0, 1, 1], [], []>} : vector<2x48xf32>, vector<48x3xf32>, vector<2x3xf32> -> vector<2x3xf32>
      %35 = arith.negf %34 : vector<2x3xf32>
      %36 = math.exp %35 : vector<2x3xf32>
      %cst_26 = arith.constant 1.000000e+00 : f32
      %37 = vector.broadcast %cst_26 : f32 to vector<2x3xf32>
      %38 = arith.addf %37, %36 : vector<2x3xf32>
      %39 = arith.divf %37, %38 : vector<2x3xf32>
      %40 = arith.mulf %34, %39 : vector<2x3xf32>
      %c0_27 = arith.constant 0 : index
      %c0_28 = arith.constant 0 : index
      %41 = vector.load %arg9[%c0_27, %c0_28] : memref<3x48xf32, #tpu.memory_space<vmem>>, vector<3x48xf32>
      %cst_29 = arith.constant dense<0.000000e+00> : vector<2x48xf32>
      %42 = tpu.matmul %40, %41, %cst_29 {dimension_numbers = #tpu.dot_dimension_numbers<[1], [0], [0], [1], [0, 0, 1, 1], [], []>} : vector<2x3xf32>, vector<3x48xf32>, vector<2x48xf32> -> vector<2x48xf32>
      %43 = arith.negf %42 : vector<2x48xf32>
      %44 = math.exp %43 : vector<2x48xf32>
      %cst_30 = arith.constant 1.000000e+00 : f32
      %45 = vector.broadcast %cst_30 : f32 to vector<2x48xf32>
      %46 = arith.addf %45, %44 : vector<2x48xf32>
      %47 = arith.divf %45, %46 : vector<2x48xf32>
      %48 = vector.extract_strided_slice %47 {offsets = [0, 0], sizes = [2, 16], strides = [1, 1]} : vector<2x48xf32> to vector<2x16xf32>
      %49 = vector.shape_cast %14 : vector<128x16xf32> to vector<2x64x16xf32>
      %50 = vector.shape_cast %48 : vector<2x16xf32> to vector<2x1x16xf32>
      %51 = vector.broadcast %50 : vector<2x1x16xf32> to vector<2x64x16xf32>
      %52 = arith.mulf %49, %51 : vector<2x64x16xf32>
      %53 = vector.shape_cast %52 : vector<2x64x16xf32> to vector<128x16xf32>
      %54 = arith.truncf %53 : vector<128x16xf32> to vector<128x16xbf16>
      %c0_31 = arith.constant 0 : index
      %c0_32 = arith.constant 0 : index
      %55 = vector.load %arg10[%c0_31, %c0_32] : memref<16x16xbf16, #tpu.memory_space<vmem>>, vector<16x16xbf16>
      %cst_33 = arith.constant dense<0.000000e+00> : vector<128x16xf32>
      %56 = tpu.matmul %54, %55, %cst_33 {dimension_numbers = #tpu.dot_dimension_numbers<[1], [0], [0], [1], [0, 0, 1, 1], [], []>} : vector<128x16xbf16>, vector<16x16xbf16>, vector<128x16xf32> -> vector<128x16xf32>
      %57 = vector.extract_strided_slice %47 {offsets = [0, 16], sizes = [2, 16], strides = [1, 1]} : vector<2x48xf32> to vector<2x16xf32>
      %58 = vector.shape_cast %15 : vector<128x16xf32> to vector<2x64x16xf32>
      %59 = vector.shape_cast %57 : vector<2x16xf32> to vector<2x1x16xf32>
      %60 = vector.broadcast %59 : vector<2x1x16xf32> to vector<2x64x16xf32>
      %61 = arith.mulf %58, %60 : vector<2x64x16xf32>
      %62 = vector.shape_cast %61 : vector<2x64x16xf32> to vector<128x16xf32>
      %63 = arith.truncf %62 : vector<128x16xf32> to vector<128x16xbf16>
      %c0_34 = arith.constant 0 : index
      %c0_35 = arith.constant 0 : index
      %64 = vector.load %arg11[%c0_34, %c0_35] : memref<16x16xbf16, #tpu.memory_space<vmem>>, vector<16x16xbf16>
      %cst_36 = arith.constant dense<0.000000e+00> : vector<128x16xf32>
      %65 = tpu.matmul %63, %64, %cst_36 {dimension_numbers = #tpu.dot_dimension_numbers<[1], [0], [0], [1], [0, 0, 1, 1], [], []>} : vector<128x16xbf16>, vector<16x16xbf16>, vector<128x16xf32> -> vector<128x16xf32>
      %66 = arith.addf %56, %65 : vector<128x16xf32>
      %67 = vector.extract_strided_slice %47 {offsets = [0, 32], sizes = [2, 16], strides = [1, 1]} : vector<2x48xf32> to vector<2x16xf32>
      %68 = vector.shape_cast %19 : vector<128x16xf32> to vector<2x64x16xf32>
      %69 = vector.shape_cast %67 : vector<2x16xf32> to vector<2x1x16xf32>
      %70 = vector.broadcast %69 : vector<2x1x16xf32> to vector<2x64x16xf32>
      %71 = arith.mulf %68, %70 : vector<2x64x16xf32>
      %72 = vector.shape_cast %71 : vector<2x64x16xf32> to vector<128x16xf32>
      %73 = arith.truncf %72 : vector<128x16xf32> to vector<128x16xbf16>
      %c0_37 = arith.constant 0 : index
      %c0_38 = arith.constant 0 : index
      %74 = vector.load %arg12[%c0_37, %c0_38] : memref<16x16xbf16, #tpu.memory_space<vmem>>, vector<16x16xbf16>
      %cst_39 = arith.constant dense<0.000000e+00> : vector<128x16xf32>
      %75 = tpu.matmul %73, %74, %cst_39 {dimension_numbers = #tpu.dot_dimension_numbers<[1], [0], [0], [1], [0, 0, 1, 1], [], []>} : vector<128x16xbf16>, vector<16x16xbf16>, vector<128x16xf32> -> vector<128x16xf32>
      %76 = arith.addf %66, %75 : vector<128x16xf32>
      %cst_40 = arith.constant dense<0.000000e+00> : vector<16xf32>
      %77 = vector.multi_reduction <add>, %76, %cst_40 [0] : vector<128x16xf32> to vector<16xf32>
      %78 = vector.shape_cast %77 : vector<16xf32> to vector<1x16xf32>
      %cst_41 = arith.constant 1.280000e+02 : f32
      %79 = vector.broadcast %cst_41 : f32 to vector<1x16xf32>
      %80 = arith.divf %78, %79 : vector<1x16xf32>
      %81 = arith.mulf %76, %76 : vector<128x16xf32>
      %cst_42 = arith.constant dense<0.000000e+00> : vector<16xf32>
      %82 = vector.multi_reduction <add>, %81, %cst_42 [0] : vector<128x16xf32> to vector<16xf32>
      %83 = vector.shape_cast %82 : vector<16xf32> to vector<1x16xf32>
      %cst_43 = arith.constant 1.280000e+02 : f32
      %84 = vector.broadcast %cst_43 : f32 to vector<1x16xf32>
      %85 = arith.divf %83, %84 : vector<1x16xf32>
      %86 = arith.mulf %80, %80 : vector<1x16xf32>
      %87 = arith.subf %85, %86 : vector<1x16xf32>
      %cst_44 = arith.constant 0.000000e+00 : f32
      %88 = vector.broadcast %cst_44 : f32 to vector<1x16xf32>
      %89 = arith.maximumf %87, %88 : vector<1x16xf32>
      %90 = vector.broadcast %80 : vector<1x16xf32> to vector<128x16xf32>
      %91 = arith.subf %76, %90 : vector<128x16xf32>
      %cst_45 = arith.constant 9.99999974E-6 : f32
      %92 = vector.broadcast %cst_45 : f32 to vector<1x16xf32>
      %93 = arith.addf %89, %92 : vector<1x16xf32>
      %94 = math.rsqrt %93 : vector<1x16xf32>
      %95 = vector.broadcast %94 : vector<1x16xf32> to vector<128x16xf32>
      %96 = arith.mulf %91, %95 : vector<128x16xf32>
      %c0_46 = arith.constant 0 : index
      %c0_47 = arith.constant 0 : index
      %97 = vector.load %arg13[%c0_46, %c0_47] : memref<1x16xf32, #tpu.memory_space<vmem>>, vector<1x16xf32>
      %98 = vector.broadcast %97 : vector<1x16xf32> to vector<128x16xf32>
      %99 = arith.mulf %96, %98 : vector<128x16xf32>
      %c0_48 = arith.constant 0 : index
      %c0_49 = arith.constant 0 : index
      %100 = vector.load %arg14[%c0_48, %c0_49] : memref<1x16xf32, #tpu.memory_space<vmem>>, vector<1x16xf32>
      %101 = vector.broadcast %100 : vector<1x16xf32> to vector<128x16xf32>
      %102 = arith.addf %99, %101 : vector<128x16xf32>
      %cst_50 = arith.constant 0.000000e+00 : f32
      %103 = vector.broadcast %cst_50 : f32 to vector<128x16xf32>
      %104 = arith.maximumf %102, %103 : vector<128x16xf32>
      %105 = vector.shape_cast %104 : vector<128x16xf32> to vector<2x8x8x16xf32>
      %c0_51 = arith.constant 0 : index
      %c0_52 = arith.constant 0 : index
      %c0_53 = arith.constant 0 : index
      %c0_54 = arith.constant 0 : index
      %106 = vector.load %arg15[%c0_51, %c0_52, %c0_53, %c0_54] : memref<2x8x8x16xf32, #tpu.memory_space<vmem>>, vector<2x8x8x16xf32>
      tpu.vector_store %arg15[%c0_51, %c0_52, %c0_53, %c0_54], %105 {strides = array<i32>} : memref<2x8x8x16xf32, #tpu.memory_space<vmem>>, vector<2x8x8x16xf32>,
    } else {
    }
    return
  }
  func.func @transform_0(%arg0: i32) -> (i32, i32, i32, i32) {
    %c0_i32 = arith.constant 0 : i32
    %c0_i32_0 = arith.constant 0 : i32
    %c0_i32_1 = arith.constant 0 : i32
    %c0_i32_2 = arith.constant 0 : i32
    %c0_i32_3 = arith.constant 0 : i32
    return %c0_i32, %c0_i32_0, %c0_i32_1, %c0_i32_2 : i32, i32, i32, i32
  }
  func.func @transform_1(%arg0: i32) -> (i32, i32) {
    %c0_i32 = arith.constant 0 : i32
    %c0_i32_0 = arith.constant 0 : i32
    %c0_i32_1 = arith.constant 0 : i32
    return %c0_i32, %c0_i32_0 : i32, i32
  }
  func.func @transform_2(%arg0: i32) -> (i32, i32) {
    %c0_i32 = arith.constant 0 : i32
    %c0_i32_0 = arith.constant 0 : i32
    %c0_i32_1 = arith.constant 0 : i32
    return %c0_i32, %c0_i32_0 : i32, i32
  }
  func.func @transform_3(%arg0: i32) -> (i32, i32) {
    %c0_i32 = arith.constant 0 : i32
    %c0_i32_0 = arith.constant 0 : i32
    %c0_i32_1 = arith.constant 0 : i32
    return %c0_i32, %c0_i32_0 : i32, i32
  }
  func.func @transform_4(%arg0: i32) -> (i32, i32) {
    %c0_i32 = arith.constant 0 : i32
    %c0_i32_0 = arith.constant 0 : i32
    %c0_i32_1 = arith.constant 0 : i32
    return %c0_i32, %c0_i32_0 : i32, i32
  }
  func.func @transform_5(%arg0: i32) -> (i32, i32) {
    %c0_i32 = arith.constant 0 : i32
    %c0_i32_0 = arith.constant 0 : i32
    return %arg0, %c0_i32 : i32, i32
  }
  func.func @transform_6(%arg0: i32) -> (i32, i32) {
    %c0_i32 = arith.constant 0 : i32
    %c0_i32_0 = arith.constant 0 : i32
    %c0_i32_1 = arith.constant 0 : i32
    return %c0_i32, %c0_i32_0 : i32, i32
  }
  func.func @transform_7(%arg0: i32) -> (i32, i32) {
    %c0_i32 = arith.constant 0 : i32
    %c0_i32_0 = arith.constant 0 : i32
    %c0_i32_1 = arith.constant 0 : i32
    return %c0_i32, %c0_i32_0 : i32, i32
  }
  func.func @transform_8(%arg0: i32) -> (i32, i32) {
    %c0_i32 = arith.constant 0 : i32
    %c0_i32_0 = arith.constant 0 : i32
    %c0_i32_1 = arith.constant 0 : i32
    return %c0_i32, %c0_i32_0 : i32, i32
  }
  func.func @transform_9(%arg0: i32) -> (i32, i32) {
    %c0_i32 = arith.constant 0 : i32
    %c0_i32_0 = arith.constant 0 : i32
    %c0_i32_1 = arith.constant 0 : i32
    return %c0_i32, %c0_i32_0 : i32, i32
  }
  func.func @transform_10(%arg0: i32) -> (i32, i32) {
    %c0_i32 = arith.constant 0 : i32
    %c0_i32_0 = arith.constant 0 : i32
    %c0_i32_1 = arith.constant 0 : i32
    return %c0_i32, %c0_i32_0 : i32, i32
  }
  func.func @transform_11(%arg0: i32) -> (i32, i32) {
    %c0_i32 = arith.constant 0 : i32
    %c0_i32_0 = arith.constant 0 : i32
    %c0_i32_1 = arith.constant 0 : i32
    return %c0_i32, %c0_i32_0 : i32, i32
  }
  func.func @transform_12(%arg0: i32) -> (i32, i32) {
    %c0_i32 = arith.constant 0 : i32
    %c0_i32_0 = arith.constant 0 : i32
    %c0_i32_1 = arith.constant 0 : i32
    return %c0_i32, %c0_i32_0 : i32, i32
  }
  func.func @transform_13(%arg0: i32) -> (i32, i32) {
    %c0_i32 = arith.constant 0 : i32
    %c0_i32_0 = arith.constant 0 : i32
    %c0_i32_1 = arith.constant 0 : i32
    return %c0_i32, %c0_i32_0 : i32, i32
  }
  func.func @transform_14(%arg0: i32) -> (i32, i32, i32, i32) {
    %c0_i32 = arith.constant 0 : i32
    %c0_i32_0 = arith.constant 0 : i32
    %c0_i32_1 = arith.constant 0 : i32
    %c0_i32_2 = arith.constant 0 : i32
    %c0_i32_3 = arith.constant 0 : i32
    return %c0_i32, %c0_i32_0, %c0_i32_1, %c0_i32_2 : i32, i32, i32, i32
  }
}

</mosaic_0001>

<bundles_post_ra>
// kernel: tpu_custom_call.1
= control target key start
LH: loop header
LB: loop body
LE: loop exit
PB: predicated region body
PF: predicated region fallthrough
CT: control target
= control target key end

     0   :  { %19 = vsyncpa [#allocation9], 0  ;;  %s7174_s29 = smov 0   ;;  %s9267_s0 = inlined_call_operand.vmem [shape: f32[2,8,8,16], index: 0, kind: input, shape index: {}]   ;;  %s9268_s1 = inlined_call_operand.vmem [shape: f32[16,16], index: 1, kind: input, shape index: {}]   ;;  %s9269_s2 = inlined_call_operand.vmem [shape: f32[1,16], index: 2, kind: input, shape index: {}]   ;;  %s9270_s3 = inlined_call_operand.vmem [shape: bf16[144,16], index: 3, kind: input, shape index: {}]   ;;  %s9271_s4 = inlined_call_operand.vmem [shape: f32[1,16], index: 4, kind: input, shape index: {}]   ;;  %s9272_s5 = inlined_call_operand.vmem [shape: bf16[400,16], index: 5, kind: input, shape index: {}]   ;;  %s9273_s6 = inlined_call_operand.vmem [shape: f32[1,16], index: 6, kind: input, shape index: {}]   ;;  %s9274_s7 = inlined_call_operand.vmem [shape: f32[48,3], index: 7, kind: input, shape index: {}]   ;;  %s9275_s8 = inlined_call_operand.vmem [shape: f32[3,48], index: 8, kind: input, shape index: {}]   ;;  %s9276_s9 = inlined_call_operand.vmem [shape: bf16[16,16], index: 9, kind: input, shape index: {}]   ;;  %s9277_s10 = inlined_call_operand.vmem [shape: bf16[16,16], index: 10, kind: input, shape index: {}]   ;;  %s9278_s11 = inlined_call_operand.vmem [shape: bf16[16,16], index: 11, kind: input, shape index: {}]   ;;  %s9279_s12 = inlined_call_operand.vmem [shape: f32[1,16], index: 12, kind: input, shape index: {}]   ;;  %s9280_s13 = inlined_call_operand.vmem [shape: f32[1,16], index: 13, kind: input, shape index: {}]   ;;  %s9281_s14 = inlined_call_operand.hbm [shape: f32[2,8,8,16], index: 14, kind: output, shape index: {}]  }
   0x1 LB: > { %s7180_s30 = sadd.s32 4294967295, %s7081_s29   ;;  %p6473_p0 = scmp.ge.s32.totalorder %s7081_s29, 1  ;;  %s7081_s29 = sphi %s7174_s29, %s25_s29  }
   0x2   : > { %p409_p1 = scmp.lt.s32.totalorder %s7081_s29, 6 }
   0x4   : > { %p410_p2 = pnand %p6473_p0, %p409_p1 }
   0x5   : > { %s450_s15 = smul.u32 (!%p410_p2), 10, %s7180_s30  ;;  %p6475_p4 = scmp.ne.s32.totalorder (!%p410_p2), %s7180_s30, 0 }
   0x6   : > { %413 = sbr.rel (%p410_p2) target bundleno = 2146 (0x862), region = 76 }
   0x7   : > { %p451_p3 = scmp.lt.s32.totalorder (!%p410_p2), %s450_s15, 49 }
   0xb   : > { %s9311_s15 = smov (!%p451_p3, %s450_s15), 49  ;;  %460 = sbr.rel (%p6475_p4) target bundleno = 847 (0x34f), region = 80 }
   0xc   : > { %s6474_s16 = sshll.u32 %s9311_s15, 2  ;;  %s7084_s22 = smov (!%p6475_p4), 16  }
   0xd   : > { %s7188_s19 = scalar_lea.vmem %s9272_s5, %s6474_s16  ;;  %s7085_s27 = smov (!%p6475_p4), 32  }
   0xe   : > { %s7086_s28 = smov (!%p6475_p4), 48   ;;  %s7087_s15 = smov (!%p6475_p4), 64  }
  0x10   : > { %vm461_vm0 = vcmask 125952   ;;  %vm481_vm1 = vcmask 122880   ;;  %v516_v0 = vld [vmem:[%s9267_s0 + $0x8] sm:$0xff]  ;;  %v7083_v1 = vmov 0   ;;  %vm463_vm2 = vcmask 123904   ;;  %v517_v3 = vld [vmem:[%s9267_s0 + $0x10] sm:$0xff] }
  0x11   : > { %483 = vst.msk [vmem:[#allocation2 + $0x18] sm:$0x1] %vm481_vm1, %v7083_v1  ;;  %v6663_v2 = vpack.c.bf16 %v516_v0, %v516_v0  ;;  %482 = vst.msk [vmem:[#allocation2 + $0x10] sm:$0x1] %vm481_vm1, %v7083_v1  ;;  %vm659_vm3 = vcmask 125953   ;;  %v6664_v4 = vpack.c.bf16 %v517_v3, %v517_v3  ;;  %v519_v5 = vld [vmem:[%s9267_s0 + $0x20] sm:$0xff] }
  0x12   : > { %462 = vst.msk [vmem:[#allocation2] sm:$0xf] %vm461_vm0, %v7083_v1  ;;  %465 = vst.msk [vmem:[#allocation2 + $0x8] sm:$0xf] %vm461_vm0, %v7083_v1  ;;  %v515_v6 = vld [vmem:[%s9267_s0] sm:$0xff]  ;;  %vm498_vm4 = vcmask 123905   ;;  %v6666_v8 = vpack.c.bf16 %v519_v5, %v519_v5 }
  0x13   : > { %467 = vst.msk [vmem:[#allocation2 + $0x60] sm:$0xf] %vm461_vm0, %v7083_v1  ;;  %469 = vst.msk [vmem:[#allocation2 + $0x68] sm:$0xf] %vm461_vm0, %v7083_v1  ;;  %v597_v7 = vrot.slane %v6663_v2, 7  ;;  %v6662_v9 = vpack.c.bf16 %v515_v6, %v515_v6  ;;  %v521_v10 = vld [vmem:[%s9267_s0 + $0x30] sm:$0xff] }
  0x14   : > { %472 = vst.msk [vmem:[#allocation2 + $0x50] sm:$0xf] %vm461_vm0, %v7083_v1  ;;  %474 = vst.msk [vmem:[#allocation2 + $0x58] sm:$0xf] %vm461_vm0, %v7083_v1  ;;  %vm788_vm5 = vsmask.f32 3328  ;;  %v6668_v14 = vpack.c.bf16 %v521_v10, %v521_v10 }
  0x15   : > { %476 = vst.msk [vmem:[#allocation2 + $0xb0] sm:$0xf] %vm461_vm0, %v7083_v1  ;;  %478 = vst.msk [vmem:[#allocation2 + $0xb8] sm:$0xf] %vm461_vm0, %v7083_v1  ;;  %vm789_vm6 = vsmask.f32 7440 }
  0x16   : > { %484 = vst.msk [vmem:[#allocation2 + $0x20] sm:$0x1] %vm481_vm1, %v7083_v1  ;;  %485 = vst.msk [vmem:[#allocation2 + $0x28] sm:$0x1] %vm481_vm1, %v7083_v1  ;;  %v518_v11 = vld [vmem:[%s9267_s0 + $0x18] sm:$0xff]  ;;  %v523_v12 = vld [vmem:[%s9267_s0 + $0x40] sm:$0xff] }
  0x17   : > { %486 = vst.msk [vmem:[#allocation2 + $0x30] sm:$0x1] %vm481_vm1, %v7083_v1  ;;  %487 = vst.msk [vmem:[#allocation2 + $0x38] sm:$0x1] %vm481_vm1, %v7083_v1  ;;  %v599_v13 = vrot.slane %v6664_v4, 7  ;;  %v6665_v15 = vpack.c.bf16 %v518_v11, %v518_v11  ;;  %v6670_v16 = vpack.c.bf16 %v523_v12, %v523_v12  ;;  %v520_v17 = vld [vmem:[%s9267_s0 + $0x28] sm:$0xff] }
  0x18   : > { %488 = vst.msk [vmem:[#allocation2 + $0x40] sm:$0x1] %vm481_vm1, %v7083_v1  ;;  %489 = vst.msk [vmem:[#allocation2 + $0x48] sm:$0x1] %vm481_vm1, %v7083_v1  ;;  %v7306_v18 = vld [vmem:[%s9267_s0 + $0x50] sm:$0xff]  ;;  %v598_v19 = vrot.slane %v597_v7, 4  ;;  %v6667_v22 = vpack.c.bf16 %v520_v17, %v520_v17 }
  0x19   : > { %490 = vst.msk [vmem:[#allocation2 + $0x70] sm:$0x1] %vm481_vm1, %v7083_v1  ;;  %491 = vst.msk [vmem:[#allocation2 + $0x78] sm:$0x1] %vm481_vm1, %v7083_v1  ;;  %v603_v20 = vrot.slane %v6666_v8, 7  ;;  %v595_v21 = vrot.slane %v6662_v9, 7  ;;  %v6672_v34 = vpack.c.bf16 %v7306_v18, %v7306_v18 }
  0x1a   : > { %492 = vst.msk [vmem:[#allocation2 + $0x80] sm:$0x1] %vm481_vm1, %v7083_v1  ;;  %493 = vst.msk [vmem:[#allocation2 + $0x88] sm:$0x1] %vm481_vm1, %v7083_v1  ;;  %v7312_v23 = vld [vmem:[%s9267_s0 + $0x48] sm:$0xff]  ;;  %v7317_v24 = vld [vmem:[%s9267_s0 + $0x60] sm:$0xff] }
  0x1b   : > { %494 = vst.msk [vmem:[#allocation2 + $0x90] sm:$0x1] %vm481_vm1, %v7083_v1  ;;  %495 = vst.msk [vmem:[#allocation2 + $0x98] sm:$0x1] %vm481_vm1, %v7083_v1  ;;  %v600_v25 = vrot.slane %v599_v13, 4  ;;  %v607_v26 = vrot.slane %v6668_v14, 7  ;;  %v6671_v39 = vpack.c.bf16 %v7312_v23, %v7312_v23  ;;  %v6674_v40 = vpack.c.bf16 %v7317_v24, %v7317_v24 }
  0x1c   : > { %496 = vst.msk [vmem:[#allocation2 + $0xa0] sm:$0x1] %vm481_vm1, %v7083_v1  ;;  %497 = vst.msk [vmem:[#allocation2 + $0xa8] sm:$0x1] %vm481_vm1, %v7083_v1  ;;  %v601_v27 = vrot.slane %v6665_v15, 7  ;;  %v611_v28 = vrot.slane %v6670_v16, 7 }
  0x1d   : > { %466 = vst.msk [vmem:[#allocation2 + $0xc] sm:$0x3] %vm463_vm2, %v7083_v1  ;;  %464 = vst.msk [vmem:[#allocation2 + $0x4] sm:$0x3] %vm463_vm2, %v7083_v1  ;;  %v7323_v29 = vld [vmem:[%s9267_s0 + $0x58] sm:$0xff]  ;;  %v7328_v30 = vld [vmem:[%s9267_s0 + $0x70] sm:$0xff] }
  0x1e   : > { %468 = vst.msk [vmem:[#allocation2 + $0x64] sm:$0x3] %vm463_vm2, %v7083_v1  ;;  %470 = vst.msk [vmem:[#allocation2 + $0x6c] sm:$0x3] %vm463_vm2, %v7083_v1  ;;  %v604_v31 = vrot.slane %v603_v20, 4  ;;  %v596_v32 = vrot.slane %v595_v21, 4  ;;  %v6673_v45 = vpack.c.bf16 %v7323_v29, %v7323_v29  ;;  %v6676_v46 = vpack.c.bf16 %v7328_v30, %v7328_v30 }
  0x1f   : > { %473 = vst.msk [vmem:[#allocation2 + $0x54] sm:$0x3] %vm463_vm2, %v7083_v1  ;;  %475 = vst.msk [vmem:[#allocation2 + $0x5c] sm:$0x3] %vm463_vm2, %v7083_v1  ;;  %v605_v33 = vrot.slane %v6667_v22, 7  ;;  %v608_v37 = vrot.slane %v607_v26, 4 }
  0x20   : > { %477 = vst.msk [vmem:[#allocation2 + $0xb4] sm:$0x3] %vm463_vm2, %v7083_v1  ;;  %479 = vst.msk [vmem:[#allocation2 + $0xbc] sm:$0x3] %vm463_vm2, %v7083_v1  ;;  %v742_v35 = vld [vmem:[#allocation2 + $0x8] sm:$0xf] }
  0x21   : > { %499 = vst.msk [vmem:[#allocation2 + $0x14] sm:$0x2] %vm498_vm4, %v7083_v1  ;;  %500 = vst.msk [vmem:[#allocation2 + $0x1c] sm:$0x2] %vm498_vm4, %v7083_v1  ;;  %v766_v36 = vld [vmem:[#allocation2 + $0x68] sm:$0xf] }
  0x22   : > { %501 = vst.msk [vmem:[#allocation2 + $0x24] sm:$0x2] %vm498_vm4, %v7083_v1  ;;  %502 = vst.msk [vmem:[#allocation2 + $0x2c] sm:$0x2] %vm498_vm4, %v7083_v1  ;;  %v602_v38 = vrot.slane %v601_v27, 4  ;;  %v806_v42 = vshrl.u32 %v742_v35, 16 }
  0x23   : > { %503 = vst.msk [vmem:[#allocation2 + $0x34] sm:$0x2] %vm498_vm4, %v7083_v1  ;;  %504 = vst.msk [vmem:[#allocation2 + $0x3c] sm:$0x2] %vm498_vm4, %v7083_v1  ;;  %v809_v43 = vshll.u32 %v742_v35, 16  ;;  %v974_v48 = vshrl.u32 %v766_v36, 16 }
  0x24   : > { %505 = vst.msk [vmem:[#allocation2 + $0x44] sm:$0x2] %vm498_vm4, %v7083_v1  ;;  %506 = vst.msk [vmem:[#allocation2 + $0x4c] sm:$0x2] %vm498_vm4, %v7083_v1  ;;  %v743_v41 = vld [vmem:[#allocation2 + $0xc] sm:$0x1] }
  0x25   : > { %507 = vst.msk [vmem:[#allocation2 + $0x74] sm:$0x2] %vm498_vm4, %v7083_v1  ;;  %508 = vst.msk [vmem:[#allocation2 + $0x7c] sm:$0x2] %vm498_vm4, %v7083_v1  ;;  %v767_v44 = vld [vmem:[#allocation2 + $0x6c] sm:$0x1] }
  0x26   : > { %509 = vst.msk [vmem:[#allocation2 + $0x84] sm:$0x2] %vm498_vm4, %v7083_v1  ;;  %510 = vst.msk [vmem:[#allocation2 + $0x8c] sm:$0x2] %vm498_vm4, %v7083_v1  ;;  %v815_v47 = vshll.u32 %v743_v41, 16  ;;  %v977_v49 = vshll.u32 %v766_v36, 16 }
  0x27   : > { %511 = vst.msk [vmem:[#allocation2 + $0x94] sm:$0x2] %vm498_vm4, %v7083_v1  ;;  %512 = vst.msk [vmem:[#allocation2 + $0x9c] sm:$0x2] %vm498_vm4, %v7083_v1  ;;  %v983_v50 = vshll.u32 %v767_v44, 16  ;;  %v808_v51 = vrot.slane %v806_v42, 4 }
  0x28   : > { %513 = vst.msk [vmem:[#allocation2 + $0xa4] sm:$0x2] %vm498_vm4, %v7083_v1  ;;  %514 = vst.msk [vmem:[#allocation2 + $0xac] sm:$0x2] %vm498_vm4, %v7083_v1  ;;  %v811_v52 = vrot.slane %v809_v43, 5  ;;  %v612_v53 = vrot.slane %v611_v28, 4 }
  0x29   : > { %662 = vst.msk [vmem:[#allocation2 + $0x18] sm:$0xe] %vm659_vm3, %v597_v7  ;;  %664 = vst.msk [vmem:[#allocation2 + $0x20] sm:$0xe] %vm659_vm3, %v599_v13  ;;  %v606_v54 = vrot.slane %v605_v33, 4  ;;  %v7355_v55 = vld [vmem:[%s9267_s0 + $0x68] sm:$0xff] }
  0x2a   : > { %663 = vst.msk [vmem:[#allocation2 + $0x1c] sm:$0x1] %vm481_vm1, %v598_v19  ;;  %665 = vst.msk [vmem:[#allocation2 + $0x24] sm:$0x1] %vm481_vm1, %v600_v25  ;;  %v817_v57 = vrot.slane %v815_v47, 5  ;;  %v976_v58 = vrot.slane %v974_v48, 4  ;;  %v812_v63 = vor.u32 %v811_v52, %v808_v51  ;;  %v6675_v8 = vpack.c.bf16 %v7355_v55, %v7355_v55 }
  0x2b   : > { %668 = vst.msk [vmem:[#allocation2 + $0x30] sm:$0xe] %vm659_vm3, %v603_v20  ;;  %660 = vst.msk [vmem:[#allocation2 + $0x10] sm:$0xe] %vm659_vm3, %v595_v21  ;;  %v979_v59 = vrot.slane %v977_v49, 5  ;;  %v985_v60 = vrot.slane %v983_v50, 5 }
  0x2c   : > { %672 = vst.msk [vmem:[#allocation2 + $0x40] sm:$0xe] %vm659_vm3, %v607_v26  ;;  %666 = vst.msk [vmem:[#allocation2 + $0x28] sm:$0xe] %vm659_vm3, %v601_v27  ;;  %v7359_v1 = vrot.slane %v6672_v34, 7  ;;  %v813_v12 = vrot.slane %v812_v63, 4 }
  0x2d   : > { %676 = vst.msk [vmem:[#allocation2 + $0x70] sm:$0xe] %vm659_vm3, %v611_v28  ;;  %670 = vst.msk [vmem:[#allocation2 + $0x38] sm:$0xe] %vm659_vm3, %v605_v33  ;;  %v980_v6 = vor.u32 %v979_v59, %v976_v58  ;;  %vm1272_vm8 = vcmask 1042432   ;;  %vm1273_vm9 = vcmask 1046532  }
  0x2e   : > { %669 = vst.msk [vmem:[#allocation2 + $0x34] sm:$0x1] %vm481_vm1, %v604_v31  ;;  %661 = vst.msk [vmem:[#allocation2 + $0x14] sm:$0x1] %vm481_vm1, %v596_v32  ;;  %v623_v24 = vrot.slane %v6676_v46, 7  ;;  %vm4329_vm14 = vcmask 130048  }
  0x2f   : > { %673 = vst.msk [vmem:[#allocation2 + $0x44] sm:$0x1] %vm481_vm1, %v608_v37  ;;  %667 = vst.msk [vmem:[#allocation2 + $0x2c] sm:$0x1] %vm481_vm1, %v602_v38  ;;  %v981_v17 = vrot.slane %v980_v6, 4  ;;  %vm2310_vm15 = vcmask 257152  }
  0x30   : > { %v746_v56 = vld [vmem:[#allocation2 + $0x18] sm:$0xf]  ;;  %v748_v0 = vld [vmem:[#allocation2 + $0x20] sm:$0xf]  ;;  %677 = vst.msk [vmem:[#allocation2 + $0x74] sm:$0x1] %vm481_vm1, %v612_v53  ;;  %vm7363_vm7 = vmor %vm788_vm5, %vm789_vm6 }
  0x31   : > { %v834_v61 = vshrl.u32 %v746_v56, 16  ;;  %v837_v62 = vshll.u32 %v746_v56, 16  ;;  %671 = vst.msk [vmem:[#allocation2 + $0x3c] sm:$0x1] %vm481_vm1, %v606_v54  ;;  %v747_v2 = vld [vmem:[#allocation2 + $0x1c] sm:$0x1]  ;;  %v818_v21 = vsel %vm7363_vm7, %v813_v12, %v817_v57  ;;  %v986_v31 = vsel %vm7363_vm7, %v981_v17, %v985_v60  ;;  %vm7434_vm10 = vmor %vm1272_vm8, %vm1273_vm9 }
  0x32   : > { %v848_v4 = vshrl.u32 %v748_v0, 16  ;;  %v851_v5 = vshll.u32 %v748_v0, 16  ;;  %v752_v7 = vld [vmem:[#allocation2 + $0x30] sm:$0xf]  ;;  %v843_v11 = vshll.u32 %v747_v2, 16  ;;  %vm2506_vm2 = vcmask 519552  }
  0x33   : > { %v836_v9 = vrot.slane %v834_v61, 4  ;;  %v839_v10 = vrot.slane %v837_v62, 5  ;;  %v749_v13 = vld [vmem:[#allocation2 + $0x24] sm:$0x1]  ;;  %680 = vst.msk [vmem:[#allocation2 + $0x80] sm:$0xe] %vm659_vm3, %v7359_v1 }
  0x34   : > { %v850_v14 = vrot.slane %v848_v4, 4  ;;  %v853_v15 = vrot.slane %v851_v5, 5  ;;  %v857_v16 = vshll.u32 %v749_v13, 16  ;;  %v845_v20 = vrot.slane %v843_v11, 5  ;;  %v744_v25 = vld [vmem:[#allocation2 + $0x10] sm:$0xf] }
  0x35   : > { %v753_v18 = vld [vmem:[#allocation2 + $0x34] sm:$0x1]  ;;  %v840_v19 = vor.u32 %v839_v10, %v836_v9  ;;  %v876_v22 = vshrl.u32 %v752_v7, 16  ;;  %1153 = vst.msk [vmem:[#allocation3 + $0x64] sm:$0xf] %vm461_vm0, %v818_v21  ;;  %v879_v32 = vshll.u32 %v752_v7, 16 }
  0x36   : > { %v745_v26 = vld [vmem:[#allocation2 + $0x14] sm:$0x1]  ;;  %v854_v27 = vor.u32 %v853_v15, %v850_v14  ;;  %v859_v28 = vrot.slane %v857_v16, 5  ;;  %v756_v33 = vld [vmem:[#allocation2 + $0x40] sm:$0xf]  ;;  %v885_v36 = vshll.u32 %v753_v18, 16 }
  0x37   : > { %v841_v34 = vrot.slane %v840_v19, 4  ;;  %1165 = vst.msk [vmem:[#allocation3 + $0x94] sm:$0xf] %vm461_vm0, %v986_v31  ;;  %v878_v35 = vrot.slane %v876_v22, 4  ;;  %v820_v37 = vshrl.u32 %v744_v25, 16  ;;  %v881_v42 = vrot.slane %v879_v32, 5 }
  0x38   : > { %v757_v38 = vld [vmem:[#allocation2 + $0x44] sm:$0x1]  ;;  %v855_v41 = vrot.slane %v854_v27, 4  ;;  %v823_v43 = vshll.u32 %v744_v25, 16  ;;  %v829_v44 = vshll.u32 %v745_v26, 16  ;;  %v887_v49 = vrot.slane %v885_v36, 5 }
  0x39   : > { %v750_v47 = vld [vmem:[#allocation2 + $0x28] sm:$0xf]  ;;  %v846_v48 = vsel %vm7363_vm7, %v841_v34, %v845_v20  ;;  %v822_v50 = vrot.slane %v820_v37, 4  ;;  %v904_v51 = vshrl.u32 %v756_v33, 16  ;;  %v751_v52 = vld [vmem:[#allocation2 + $0x2c] sm:$0x1]  ;;  %v882_v54 = vor.u32 %v881_v42, %v878_v35 }
  0x3a   : > { %1155 = vst.msk [vmem:[#allocation3 + $0x6c] sm:$0xf] %vm461_vm0, %v846_v48  ;;  %v860_v53 = vsel %vm7363_vm7, %v855_v41, %v859_v28  ;;  %v825_v56 = vrot.slane %v823_v43, 5  ;;  %v831_v57 = vrot.slane %v829_v44, 5  ;;  %v768_v58 = vld [vmem:[#allocation2 + $0x70] sm:$0xf] }
  0x3b   : > { %1156 = vst.msk [vmem:[#allocation3 + $0x70] sm:$0xf] %vm461_vm0, %v860_v53  ;;  %v906_v59 = vrot.slane %v904_v51, 4  ;;  %v907_v60 = vshll.u32 %v756_v33, 16  ;;  %v913_v61 = vshll.u32 %v757_v38, 16  ;;  %v862_v62 = vshrl.u32 %v750_v47, 16 }
  0x3c   : > { %v769_v63 = vld [vmem:[#allocation2 + $0x74] sm:$0x1]  ;;  %v883_v0 = vrot.slane %v882_v54, 4  ;;  %v826_v2 = vor.u32 %v825_v56, %v822_v50  ;;  %v865_v4 = vshll.u32 %v750_v47, 16  ;;  %v871_v5 = vshll.u32 %v751_v52, 16 }
  0x3d   : > { %v754_v6 = vld [vmem:[#allocation2 + $0x38] sm:$0xf]  ;;  %v2230_v7 = vld [vmem:[#allocation3 + $0x64] sm:$0xf]  ;;  %v909_v9 = vrot.slane %v907_v60, 5  ;;  %v915_v10 = vrot.slane %v913_v61, 5 }
  0x3e   : > { %v864_v11 = vrot.slane %v862_v62, 4  ;;  %v988_v12 = vshrl.u32 %v768_v58, 16  ;;  %2262 = vrot.lane.b32.xlu0 %v2230_v7, %s7084_s22  ;;  %v888_v13 = vsel %vm7363_vm7, %v883_v0, %v887_v49  ;;  %v827_v14 = vrot.slane %v826_v2, 4  ;;  %v755_v17 = vld [vmem:[#allocation2 + $0x3c] sm:$0x1] }
  0x3f   : > { %v867_v15 = vrot.slane %v865_v4, 5  ;;  %v873_v16 = vrot.slane %v871_v5, 5  ;;  %v2238_v18 = vld [vmem:[#allocation3 + $0x94] sm:$0xf]  ;;  %1158 = vst.msk [vmem:[#allocation3 + $0x78] sm:$0xf] %vm461_vm0, %v888_v13  ;;  %v910_v19 = vor.u32 %v909_v9, %v906_v59 }
  0x40   : > { %v990_v20 = vrot.slane %v988_v12, 4  ;;  %v991_v21 = vshll.u32 %v768_v58, 16  ;;  %v997_v22 = vshll.u32 %v769_v63, 16  ;;  %v832_v25 = vsel %vm7363_vm7, %v827_v14, %v831_v57  ;;  %v772_v31 = vld [vmem:[#allocation2 + $0x80] sm:$0xf] }
  0x41   : > { %v868_v26 = vor.u32 %v867_v15, %v864_v11  ;;  %v890_v27 = vshrl.u32 %v754_v6, 16  ;;  %v893_v28 = vshll.u32 %v754_v6, 16  ;;  %v2232_v32 = vld [vmem:[#allocation3 + $0x6c] sm:$0xf]  ;;  %1154 = vst.msk [vmem:[#allocation3 + $0x68] sm:$0xf] %vm461_vm0, %v832_v25 }
  0x42   : > { %v911_v33 = vrot.slane %v910_v19, 4  ;;  %v993_v34 = vrot.slane %v991_v21, 5  ;;  %v999_v35 = vrot.slane %v997_v22, 5  ;;  %v899_v36 = vshll.u32 %v755_v17, 16  ;;  %2266 = vrot.lane.b32.xlu1 %v2232_v32, %s7084_s22  ;;  %2278 = vrot.lane.b32.xlu0 %v2238_v18, %s7084_s22  ;;  %v2233_v43 = vld [vmem:[#allocation3 + $0x70] sm:$0xf] }
  0x43   : > { %v869_v37 = vrot.slane %v868_v26, 4  ;;  %v892_v38 = vrot.slane %v890_v27, 4  ;;  %v895_v41 = vrot.slane %v893_v28, 5  ;;  %v616_v42 = vrot.slane %v7359_v1, 4  ;;  %v1180_v53 = vld [vmem:[#allocation2 + $0x10] sm:$0xe] }
  0x44   : > { %v916_v44 = vsel %vm7363_vm7, %v911_v33, %v915_v10  ;;  %v994_v47 = vor.u32 %v993_v34, %v990_v20  ;;  %v901_v48 = vrot.slane %v899_v36, 5  ;;  %v1016_v49 = vshrl.u32 %v772_v31, 16  ;;  %v1181_v54 = vld [vmem:[#allocation2 + $0x14] sm:$0x1]  ;;  %v1178_v56 = vld [vmem:[#allocation2 + $0x8] sm:$0xe] }
  0x45   : > { %1160 = vst.msk [vmem:[#allocation3 + $0x80] sm:$0xf] %vm461_vm0, %v916_v44  ;;  %v874_v50 = vsel %vm7363_vm7, %v869_v37, %v873_v16  ;;  %v896_v51 = vor.u32 %v895_v41, %v892_v38  ;;  %v1019_v52 = vshll.u32 %v772_v31, 16  ;;  %v613_v1 = vrot.slane %v6671_v39, 7  ;;  %v1179_v57 = vld [vmem:[#allocation2 + $0xc] sm:$0x1] }
  0x46   : > { %681 = vst.msk [vmem:[#allocation2 + $0x84] sm:$0x1] %vm481_vm1, %v616_v42  ;;  %v995_v58 = vrot.slane %v994_v47, 4  ;;  %v1018_v59 = vrot.slane %v1016_v49, 4  ;;  %v619_v60 = vrot.slane %v6674_v40, 7  ;;  %v617_v61 = vrot.slane %v6673_v45, 7  ;;  %2268 = vrot.lane.b32.xlu1 %v2233_v43, %s7084_s22 }
  0x47   : > { %1157 = vst.msk [vmem:[#allocation3 + $0x74] sm:$0xf] %vm461_vm0, %v874_v50  ;;  %v1184_v62 = vld [vmem:[#allocation2 + $0x20] sm:$0xe]  ;;  %v1185_v63 = vld [vmem:[#allocation2 + $0x24] sm:$0x1] }
  0x48   : > { %v7409_v23 = vld [vmem:[#allocation2 + $0x18] sm:$0xe]  ;;  %v897_v0 = vrot.slane %v896_v51, 4  ;;  %v1021_v2 = vrot.slane %v1019_v52, 5  ;;  %v614_v4 = vrot.slane %v613_v1, 4  ;;  %v1000_v29 = vsel %vm7363_vm7, %v995_v58, %v999_v35 }
  0x49   : > { %v2235_v39 = vld [vmem:[#allocation3 + $0x78] sm:$0xf]  ;;  %678 = vst.msk [vmem:[#allocation2 + $0x78] sm:$0xe] %vm659_vm3, %v613_v1  ;;  %v1183_v40 = vld [vmem:[#allocation2 + $0x1c] sm:$0x1] }
  0x4a   : > { %v7416_v5 = vld [vmem:[#allocation2 + $0x30] sm:$0xe]  ;;  %v620_v45 = vrot.slane %v619_v60, 4  ;;  %684 = vst.msk [vmem:[#allocation2 + $0x90] sm:$0xe] %vm659_vm3, %v619_v60  ;;  %v618_v6 = vrot.slane %v617_v61, 4  ;;  %v902_v46 = vsel %vm7363_vm7, %v897_v0, %v901_v48  ;;  %v1022_v11 = vor.u32 %v1021_v2, %v1018_v59  ;;  %2272 = vrot.lane.b32.xlu1 %v2235_v39, %s7084_s22 }
  0x4b   : > { %682 = vst.msk [vmem:[#allocation2 + $0x88] sm:$0xe] %vm659_vm3, %v617_v61  ;;  %v621_v7 = vrot.slane %v6675_v8, 7  ;;  %v1189_v9 = vld [vmem:[#allocation2 + $0x34] sm:$0x1]  ;;  %v624_v12 = vrot.slane %v623_v24, 4 }
  0x4c   : > { %v7425_v10 = vld [vmem:[#allocation2 + $0x28] sm:$0xe]  ;;  %1166 = vst.msk [vmem:[#allocation3 + $0x98] sm:$0xf] %vm461_vm0, %v1000_v29  ;;  %v6494_v8 = vrot.slane %v1180_v53, 9  ;;  %v1285_v15 = vrot.slane %v1181_v54, 5 }
  0x4d   : > { %v2231_v30 = vld [vmem:[#allocation3 + $0x68] sm:$0xf]  ;;  %679 = vst.msk [vmem:[#allocation2 + $0x7c] sm:$0x1] %vm481_vm1, %v614_v4  ;;  %v1187_v13 = vld [vmem:[#allocation2 + $0x2c] sm:$0x1] }
  0x4e   : > { %688 = vst.msk [vmem:[#allocation2 + $0xa0] sm:$0xe] %vm659_vm3, %v623_v24  ;;  %2264 = vrot.lane.b32.xlu0 %v2231_v30, %s7084_s22  ;;  %v622_v14 = vrot.slane %v621_v7, 4  ;;  %686 = vst.msk [vmem:[#allocation2 + $0x98] sm:$0xe] %vm659_vm3, %v621_v7  ;;  %v6493_v16 = vrot.slane %v1178_v56, 9  ;;  %v1286_v28 = vsel %vm7434_vm10, %v6494_v8, %v1285_v15 }
  0x4f   : > { %1159 = vst.msk [vmem:[#allocation3 + $0x7c] sm:$0xf] %vm461_vm0, %v902_v46  ;;  %v1281_v17 = vrot.slane %v1179_v57, 5  ;;  %v1192_v18 = vld [vmem:[#allocation2 + $0x40] sm:$0xe]  ;;  %v1023_v19 = vrot.slane %v1022_v11, 4 }
  0x50   : > { %685 = vst.msk [vmem:[#allocation2 + $0x94] sm:$0x1] %vm481_vm1, %v620_v45  ;;  %683 = vst.msk [vmem:[#allocation2 + $0x8c] sm:$0x1] %vm481_vm1, %v618_v6  ;;  %v6496_v20 = vrot.slane %v1184_v62, 9  ;;  %v1293_v21 = vrot.slane %v1185_v63, 5 }
  0x51   : > { %689 = vst.msk [vmem:[#allocation2 + $0xa4] sm:$0x1] %vm481_vm1, %v624_v12  ;;  %v6495_v22 = vrot.slane %v7409_v23, 9  ;;  %v1193_v25 = vld [vmem:[#allocation2 + $0x44] sm:$0x1]  ;;  %v1282_v31 = vsel %vm7434_vm10, %v6493_v16, %v1281_v17  ;;  %v1289_v32 = vrot.slane %v1183_v40, 5 }
  0x52   : > { %v2237_v26 = vld [vmem:[#allocation3 + $0x80] sm:$0xf]  ;;  %v773_v27 = vld [vmem:[#allocation2 + $0x84] sm:$0x1]  ;;  %687 = vst.msk [vmem:[#allocation2 + $0x9c] sm:$0x1] %vm481_vm1, %v622_v14  ;;  %v1294_v36 = vsel %vm7434_vm10, %v6496_v20, %v1293_v21 }
  0x53   : > { %v6498_v33 = vrot.slane %v7416_v5, 9  ;;  %v2234_v34 = vld [vmem:[#allocation3 + $0x74] sm:$0xf]  ;;  %v1025_v35 = vshll.u32 %v773_v27, 16  ;;  %1398 = vst.msk [vmem:[#allocation3 + $0xc8] sm:$0xf] %vm461_vm0, %v1286_v28  ;;  %v1290_v42 = vsel %vm7434_vm10, %v6495_v22, %v1289_v32  ;;  %2276 = vrot.lane.b32.xlu1 %v2237_v26, %s7084_s22 }
  0x54   : > { %1397 = vst.msk [vmem:[#allocation3 + $0xc4] sm:$0xf] %vm461_vm0, %v1282_v31  ;;  %v1301_v37 = vrot.slane %v1189_v9, 5  ;;  %v6497_v38 = vrot.slane %v7425_v10, 9  ;;  %2270 = vrot.lane.b32.xlu0 %v2234_v34, %s7084_s22  ;;  %v770_v41 = vld [vmem:[#allocation2 + $0x78] sm:$0xf] }
  0x55   : > { %1400 = vst.msk [vmem:[#allocation3 + $0xd0] sm:$0xf] %vm461_vm0, %v1294_v36  ;;  %v1297_v43 = vrot.slane %v1187_v13, 5  ;;  %v6500_v44 = vrot.slane %v1192_v18, 9  ;;  %v1309_v47 = vrot.slane %v1193_v25, 5  ;;  %v1027_v48 = vrot.slane %v1025_v35, 5 }
  0x56   : > { %v1002_v49 = vshrl.u32 %v770_v41, 16  ;;  %v1005_v50 = vshll.u32 %v770_v41, 16  ;;  %v776_v51 = vld [vmem:[#allocation2 + $0x90] sm:$0xf]  ;;  %1399 = vst.msk [vmem:[#allocation3 + $0xcc] sm:$0xf] %vm461_vm0, %v1290_v42  ;;  %v1302_v52 = vsel %vm7434_vm10, %v6498_v33, %v1301_v37 }
  0x57   : > { %v2239_v1 = vld [vmem:[#allocation3 + $0x98] sm:$0xf]  ;;  %v771_v53 = vld [vmem:[#allocation2 + $0x7c] sm:$0x1]  ;;  %v1044_v54 = vshrl.u32 %v776_v51, 16  ;;  %v1047_v56 = vshll.u32 %v776_v51, 16  ;;  %v1298_v57 = vsel %vm7434_vm10, %v6497_v38, %v1297_v43  ;;  %v1310_v58 = vsel %vm7434_vm10, %v6500_v44, %v1309_v47 }
  0x58   : > { %1402 = vst.msk [vmem:[#allocation3 + $0xd8] sm:$0xf] %vm461_vm0, %v1302_v52  ;;  %v2236_v59 = vld [vmem:[#allocation3 + $0x7c] sm:$0xf]  ;;  %v1028_v60 = vsel %vm7363_vm7, %v1023_v19, %v1027_v48  ;;  %v1004_v61 = vrot.slane %v1002_v49, 4  ;;  %v1007_v62 = vrot.slane %v1005_v50, 5  ;;  %2280 = vrot.lane.b32.xlu1 %v2239_v1, %s7084_s22 }
  0x59   : > { %v1011_v63 = vshll.u32 %v771_v53, 16  ;;  %1401 = vst.msk [vmem:[#allocation3 + $0xd4] sm:$0xf] %vm461_vm0, %v1298_v57  ;;  %1404 = vst.msk [vmem:[#allocation3 + $0xe0] sm:$0xf] %vm461_vm0, %v1310_v58  ;;  %v522_v23 = vld [vmem:[%s9267_s0 + $0x38] sm:$0xff]  ;;  %2274 = vrot.lane.b32.xlu0 %v2236_v59, %s7084_s22 }
  0x5a   : > { %1168 = vst.msk [vmem:[#allocation3 + $0xa0] sm:$0xf] %vm461_vm0, %v1028_v60  ;;  %v777_v39 = vld [vmem:[#allocation2 + $0x94] sm:$0x1]  ;;  %v1046_v0 = vrot.slane %v1044_v54, 4  ;;  %v1049_v2 = vrot.slane %v1047_v56, 5  ;;  %v1008_v24 = vor.u32 %v1007_v62, %v1004_v61  ;;  %v6669_v46 = vpack.c.bf16 %v522_v23, %v522_v23 }
  0x5b   : > { %v774_v4 = vld [vmem:[#allocation2 + $0x88] sm:$0xf]  ;;  %v1013_v40 = vrot.slane %v1011_v63, 5  ;;  %v1053_v5 = vshll.u32 %v777_v39, 16  ;;  %v775_v29 = vld [vmem:[#allocation2 + $0x8c] sm:$0x1] }
  0x5c   : > { %v1030_v45 = vshrl.u32 %v774_v4, 16  ;;  %v1050_v6 = vor.u32 %v1049_v2, %v1046_v0  ;;  %v1033_v7 = vshll.u32 %v774_v4, 16  ;;  %v1039_v9 = vshll.u32 %v775_v29, 16  ;;  %v780_v10 = vld [vmem:[#allocation2 + $0xa0] sm:$0xf]  ;;  %v530_v32 = vld [vmem:[%s9267_s0 + $0x78] sm:$0xff] }
  0x5d   : > { %v781_v30 = vld [vmem:[#allocation2 + $0xa4] sm:$0x1]  ;;  %v1009_v11 = vrot.slane %v1008_v24, 4  ;;  %v1055_v12 = vrot.slane %v1053_v5, 5  ;;  %v1072_v13 = vshrl.u32 %v780_v10, 16  ;;  %v1075_v18 = vshll.u32 %v780_v10, 16 }
  0x5e   : > { %v1032_v8 = vrot.slane %v1030_v45, 4  ;;  %v778_v14 = vld [vmem:[#allocation2 + $0x98] sm:$0xf]  ;;  %v1051_v15 = vrot.slane %v1050_v6, 4  ;;  %v1035_v16 = vrot.slane %v1033_v7, 5  ;;  %v1041_v17 = vrot.slane %v1039_v9, 5 }
  0x5f   : > { %v779_v19 = vld [vmem:[#allocation2 + $0x9c] sm:$0x1]  ;;  %v1014_v20 = vsel %vm7363_vm7, %v1009_v11, %v1013_v40  ;;  %v1074_v21 = vrot.slane %v1072_v13, 4  ;;  %v1081_v22 = vshll.u32 %v781_v30, 16  ;;  %v1058_v25 = vshrl.u32 %v778_v14, 16 }
  0x60   : > { %1167 = vst.msk [vmem:[#allocation3 + $0x9c] sm:$0xf] %vm461_vm0, %v1014_v20  ;;  %v1056_v26 = vsel %vm7363_vm7, %v1051_v15, %v1055_v12  ;;  %v1036_v27 = vor.u32 %v1035_v16, %v1032_v8  ;;  %v1077_v28 = vrot.slane %v1075_v18, 5  ;;  %v1061_v31 = vshll.u32 %v778_v14, 16  ;;  %v1190_v51 = vld [vmem:[#allocation2 + $0x38] sm:$0xe] }
  0x61   : > { %v2241_v33 = vld [vmem:[#allocation3 + $0xa0] sm:$0xf]  ;;  %1170 = vst.msk [vmem:[#allocation3 + $0xa8] sm:$0xf] %vm461_vm0, %v1056_v26  ;;  %v1060_v34 = vrot.slane %v1058_v25, 4  ;;  %v1067_v35 = vshll.u32 %v779_v19, 16  ;;  %v6677_v44 = vpack.c.bf16 %v530_v32, %v530_v32 }
  0x62   : > { %v609_v36 = vrot.slane %v6669_v46, 7  ;;  %2284 = vrot.lane.b32.xlu1 %v2241_v33, %s7084_s22  ;;  %v1037_v37 = vrot.slane %v1036_v27, 4  ;;  %v1078_v38 = vor.u32 %v1077_v28, %v1074_v21  ;;  %v1083_v41 = vrot.slane %v1081_v22, 5  ;;  %v1191_v52 = vld [vmem:[#allocation2 + $0x3c] sm:$0x1] }
  0x63   : > { %v1063_v42 = vrot.slane %v1061_v31, 5  ;;  %v1069_v50 = vrot.slane %v1067_v35, 5  ;;  %v6499_v1 = vrot.slane %v1190_v51, 9  ;;  %v1305_v53 = vrot.slane %v1191_v52, 5  ;;  %v1204_v54 = vld [vmem:[#allocation2 + $0x70] sm:$0xe] }
  0x64   : > { %v610_v43 = vrot.slane %v609_v36, 4  ;;  %674 = vst.msk [vmem:[#allocation2 + $0x48] sm:$0xe] %vm659_vm3, %v609_v36  ;;  %v1042_v47 = vsel %vm7363_vm7, %v1037_v37, %v1041_v17  ;;  %v1079_v48 = vrot.slane %v1078_v38, 4  ;;  %v1205_v56 = vld [vmem:[#allocation2 + $0x74] sm:$0x1] }
  0x65   : > { %v1064_v49 = vor.u32 %v1063_v42, %v1060_v34  ;;  %1169 = vst.msk [vmem:[#allocation3 + $0xa4] sm:$0xf] %vm461_vm0, %v1042_v47  ;;  %v6506_v59 = vrot.slane %v1204_v54, 9  ;;  %v1333_v60 = vrot.slane %v1205_v56, 5  ;;  %v1202_v61 = vld [vmem:[#allocation2 + $0x68] sm:$0xe]  ;;  %v1306_v63 = vsel %vm7434_vm10, %v6499_v1, %v1305_v53 }
  0x66   : > { %675 = vst.msk [vmem:[#allocation2 + $0x4c] sm:$0x1] %vm481_vm1, %v610_v43  ;;  %v1084_v57 = vsel %vm7363_vm7, %v1079_v48, %v1083_v41  ;;  %v1203_v23 = vld [vmem:[#allocation2 + $0x6c] sm:$0x1]  ;;  %v6505_v39 = vrot.slane %v1202_v61, 9  ;;  %v625_v0 = vrot.slane %v6677_v44, 7 }
  0x67   : > { %v1065_v58 = vrot.slane %v1064_v49, 4  ;;  %v2240_v62 = vld [vmem:[#allocation3 + $0x9c] sm:$0xf]  ;;  %1172 = vst.msk [vmem:[#allocation3 + $0xb0] sm:$0xf] %vm461_vm0, %v1084_v57  ;;  %v1334_v24 = vsel %vm7434_vm10, %v6506_v59, %v1333_v60  ;;  %v1329_v40 = vrot.slane %v1203_v23, 5 }
  0x68   : > { %2282 = vrot.lane.b32.xlu0 %v2240_v62, %s7084_s22  ;;  %v2243_v2 = vld [vmem:[#allocation3 + $0xa8] sm:$0xf]  ;;  %1403 = vst.msk [vmem:[#allocation3 + $0xdc] sm:$0xf] %vm461_vm0, %v1306_v63  ;;  %v1208_v5 = vld [vmem:[#allocation2 + $0x80] sm:$0xe] }
  0x69   : > { %v1070_v4 = vsel %vm7363_vm7, %v1065_v58, %v1069_v50  ;;  %2288 = vrot.lane.b32.xlu1 %v2243_v2, %s7084_s22  ;;  %1410 = vst.msk [vmem:[#allocation3 + $0xf8] sm:$0xf] %vm461_vm0, %v1334_v24  ;;  %v1209_v29 = vld [vmem:[#allocation2 + $0x84] sm:$0x1]  ;;  %v6508_v45 = vrot.slane %v1208_v5, 9  ;;  %v626_v7 = vrot.slane %v625_v0, 4  ;;  %v1330_v9 = vsel %vm7434_vm10, %v6505_v39, %v1329_v40 }
  0x6a   : > { %1171 = vst.msk [vmem:[#allocation3 + $0xac] sm:$0xf] %vm461_vm0, %v1070_v4  ;;  %v1206_v6 = vld [vmem:[#allocation2 + $0x78] sm:$0xe]  ;;  %v1341_v10 = vrot.slane %v1209_v29, 5  ;;  %vm2049_vm4 = vcmask 1045508  }
  0x6b   : > { %690 = vst.msk [vmem:[#allocation2 + $0xa8] sm:$0xe] %vm659_vm3, %v625_v0  ;;  %v1207_v30 = vld [vmem:[#allocation2 + $0x7c] sm:$0x1]  ;;  %v6507_v46 = vrot.slane %v1206_v6, 9  ;;  %vm2048_vm3 = vcmask 1041408  }
  0x6c   : > { %v1212_v11 = vld [vmem:[#allocation2 + $0x90] sm:$0xe]  ;;  %1409 = vst.msk [vmem:[#allocation3 + $0xf4] sm:$0xf] %vm461_vm0, %v1330_v9  ;;  %v1337_v12 = vrot.slane %v1207_v30, 5  ;;  %v1342_v16 = vsel %vm7434_vm10, %v6508_v45, %v1341_v10  ;;  %vm7858_vm5 = vmor %vm2048_vm3, %vm2049_vm4  ;;  %vm2604_vm6 = vcmask 650752  }
  0x6d   : > { %v1213_v8 = vld [vmem:[#allocation2 + $0x94] sm:$0x1]  ;;  %v6510_v13 = vrot.slane %v1212_v11, 9  ;;  %v1210_v14 = vld [vmem:[#allocation2 + $0x88] sm:$0xe]  ;;  %vm4845_vm8 = vcmask 654336  }
  0x6e   : > { %691 = vst.msk [vmem:[#allocation2 + $0xac] sm:$0x1] %vm481_vm1, %v626_v7  ;;  %v2242_v15 = vld [vmem:[#allocation3 + $0xa4] sm:$0xf]  ;;  %v1349_v17 = vrot.slane %v1213_v8, 5  ;;  %v6509_v19 = vrot.slane %v1210_v14, 9  ;;  %v1338_v20 = vsel %vm7434_vm10, %v6507_v46, %v1337_v12 }
  0x6f   : > { %v1211_v18 = vld [vmem:[#allocation2 + $0x8c] sm:$0x1]  ;;  %2286 = vrot.lane.b32.xlu0 %v2242_v15, %s7084_s22  ;;  %1412 = vst.msk [vmem:[#allocation3 + $0x100] sm:$0xf] %vm461_vm0, %v1342_v16  ;;  %v1216_v22 = vld [vmem:[#allocation2 + $0xa0] sm:$0xe] }
  0x70   : > { %v1345_v21 = vrot.slane %v1211_v18, 5  ;;  %v1217_v25 = vld [vmem:[#allocation2 + $0xa4] sm:$0x1]  ;;  %v2245_v26 = vld [vmem:[#allocation3 + $0xb0] sm:$0xf]  ;;  %v1350_v27 = vsel %vm7434_vm10, %v6510_v13, %v1349_v17  ;;  %v6512_v28 = vrot.slane %v1216_v22, 9 }
  0x71   : > { %1411 = vst.msk [vmem:[#allocation3 + $0xfc] sm:$0xf] %vm461_vm0, %v1338_v20  ;;  %v1357_v31 = vrot.slane %v1217_v25, 5  ;;  %v1214_v32 = vld [vmem:[#allocation2 + $0x98] sm:$0xe]  ;;  %2292 = vrot.lane.b32.xlu1 %v2245_v26, %s7084_s22  ;;  %vm2408_vm1 = vcmask 388352  }
  0x72   : > { %1414 = vst.msk [vmem:[#allocation3 + $0x108] sm:$0xf] %vm461_vm0, %v1350_v27  ;;  %v1346_v33 = vsel %vm7434_vm10, %v6509_v19, %v1345_v21  ;;  %v1215_v34 = vld [vmem:[#allocation2 + $0x9c] sm:$0x1]  ;;  %v6511_v35 = vrot.slane %v1214_v32, 9  ;;  %vm4653_vm9 = vcmask 523264  }
  0x73   : > { %vm1468_vm11 = vsmask.f32 2304  ;;  %v2244_v36 = vld [vmem:[#allocation3 + $0xac] sm:$0xf]  ;;  %v2329_v37 = vld [vmem:[#allocation3 + $0xc8] sm:$0xf]  ;;  %v1358_v38 = vsel %vm7434_vm10, %v6512_v28, %v1357_v31 }
  0x74   : > { %1413 = vst.msk [vmem:[#allocation3 + $0x104] sm:$0xf] %vm461_vm0, %v1346_v33  ;;  %v1353_v41 = vrot.slane %v1215_v34, 5  ;;  %2290 = vrot.lane.b32.xlu0 %v2244_v36, %s7084_s22  ;;  %1416 = vst.msk [vmem:[#allocation3 + $0x110] sm:$0xf] %vm461_vm0, %v1358_v38 }
  0x75   : > { %v1424_v42 = vld [vmem:[#allocation2 + $0x10] sm:$0xe]  ;;  %v1425_v43 = vld [vmem:[#allocation2 + $0x14] sm:$0x3]  ;;  %vm1469_vm12 = vsmask.f32 6416  ;;  %2362 = vrot.lane.b32.xlu1 %v2329_v37, %s7085_s27 }
  0x76   : > { %v2328_v44 = vld [vmem:[#allocation3 + $0xc4] sm:$0xf]  ;;  %v1354_v47 = vsel %vm7434_vm10, %v6511_v35, %v1353_v41  ;;  %v1508_v48 = vshrl.u32 %v1424_v42, 16  ;;  %v1511_v49 = vshll.u32 %v1424_v42, 16  ;;  %v1517_v50 = vshrl.u32 %v1425_v43, 16  ;;  %vm7540_vm13 = vmor %vm1468_vm11, %vm1469_vm12 }
  0x77   : > { %1415 = vst.msk [vmem:[#allocation3 + $0x10c] sm:$0xf] %vm461_vm0, %v1354_v47  ;;  %v1520_v51 = vshll.u32 %v1425_v43, 16  ;;  %v1422_v52 = vld [vmem:[#allocation2 + $0x8] sm:$0xe] }
  0x78   : > { %v1423_v1 = vld [vmem:[#allocation2 + $0xc] sm:$0x3]  ;;  %v2331_v53 = vld [vmem:[#allocation3 + $0xd0] sm:$0xf]  ;;  %v1510_v54 = vrot.slane %v1508_v48, 5  ;;  %v1513_v56 = vrot.slane %v1511_v49, 6  ;;  %2360 = vrot.lane.b32.xlu0 %v2328_v44, %s7085_s27 }
  0x79   : > { %v1519_v57 = vrot.slane %v1517_v50, 5  ;;  %v1490_v58 = vshrl.u32 %v1422_v52, 16  ;;  %v1522_v59 = vrot.slane %v1520_v51, 6  ;;  %v1493_v60 = vshll.u32 %v1422_v52, 16  ;;  %v2330_v63 = vld [vmem:[#allocation3 + $0xcc] sm:$0xf]  ;;  %2366 = vrot.lane.b32.xlu1 %v2331_v53, %s7085_s27 }
  0x7a   : > { %v1499_v61 = vshrl.u32 %v1423_v1, 16  ;;  %v1502_v62 = vshll.u32 %v1423_v1, 16  ;;  %v1514_v23 = vor.u32 %v1513_v56, %v1510_v54  ;;  %v1428_v0 = vld [vmem:[#allocation2 + $0x20] sm:$0xe]  ;;  %v2333_v2 = vld [vmem:[#allocation3 + $0xd8] sm:$0xf] }
  0x7b   : > { %v1492_v39 = vrot.slane %v1490_v58, 5  ;;  %v1523_v24 = vor.u32 %v1522_v59, %v1519_v57  ;;  %v1495_v40 = vrot.slane %v1493_v60, 6  ;;  %v2332_v45 = vld [vmem:[#allocation3 + $0xd4] sm:$0xf]  ;;  %v1429_v7 = vld [vmem:[#allocation2 + $0x24] sm:$0x3] }
  0x7c   : > { %v1501_v5 = vrot.slane %v1499_v61, 5  ;;  %v1504_v29 = vrot.slane %v1502_v62, 6  ;;  %v1515_v6 = vrot.slane %v1514_v23, 4  ;;  %v1544_v9 = vshrl.u32 %v1428_v0, 16  ;;  %2364 = vrot.lane.b32.xlu0 %v2330_v63, %s7085_s27  ;;  %v1426_v12 = vld [vmem:[#allocation2 + $0x18] sm:$0xe] }
  0x7d   : > { %v1496_v10 = vor.u32 %v1495_v40, %v1492_v39  ;;  %v1547_v46 = vshll.u32 %v1428_v0, 16  ;;  %v1553_v11 = vshrl.u32 %v1429_v7, 16  ;;  %v1427_v8 = vld [vmem:[#allocation2 + $0x1c] sm:$0x3]  ;;  %v2335_v13 = vld [vmem:[#allocation3 + $0xe0] sm:$0xf]  ;;  %2370 = vrot.lane.b32.xlu1 %v2333_v2, %s7085_s27 }
  0x7e   : > { %v1505_v30 = vor.u32 %v1504_v29, %v1501_v5  ;;  %v1524_v14 = vsel %vm7540_vm13, %v1515_v6, %v1523_v24  ;;  %v1546_v15 = vrot.slane %v1544_v9, 5  ;;  %v1556_v16 = vshll.u32 %v1429_v7, 16  ;;  %v1432_v22 = vld [vmem:[#allocation2 + $0x30] sm:$0xe]  ;;  %v1433_v31 = vld [vmem:[#allocation2 + $0x34] sm:$0x3] }
  0x7f   : > { %v1526_v17 = vshrl.u32 %v1426_v12, 16  ;;  %1930 = vst.msk [vmem:[#allocation3 + $0x128] sm:$0xf] %vm461_vm0, %v1524_v14  ;;  %v1497_v18 = vrot.slane %v1496_v10, 4  ;;  %v1549_v19 = vrot.slane %v1547_v46, 6  ;;  %v1555_v20 = vrot.slane %v1553_v11, 5 }
  0x80   : > { %v1529_v21 = vshll.u32 %v1426_v12, 16  ;;  %v1558_v25 = vrot.slane %v1556_v16, 6  ;;  %v1535_v27 = vshrl.u32 %v1427_v8, 16  ;;  %v1538_v28 = vshll.u32 %v1427_v8, 16  ;;  %2368 = vrot.lane.b32.xlu0 %v2332_v45, %s7085_s27  ;;  %v2334_v32 = vld [vmem:[#allocation3 + $0xdc] sm:$0xf] }
  0x81   : > { %v1528_v26 = vrot.slane %v1526_v17, 5  ;;  %v1506_v33 = vsel %vm7540_vm13, %v1497_v18, %v1505_v30  ;;  %v1550_v34 = vor.u32 %v1549_v19, %v1546_v15  ;;  %v1580_v36 = vshrl.u32 %v1432_v22, 16  ;;  %v1430_v37 = vld [vmem:[#allocation2 + $0x28] sm:$0xe]  ;;  %v2337_v38 = vld [vmem:[#allocation3 + $0xf8] sm:$0xf]  ;;  %2374 = vrot.lane.b32.xlu1 %v2335_v13, %s7085_s27 }
  0x82   : > { %v1531_v35 = vrot.slane %v1529_v21, 6  ;;  %1929 = vst.msk [vmem:[#allocation3 + $0x124] sm:$0xf] %vm461_vm0, %v1506_v33  ;;  %v1559_v41 = vor.u32 %v1558_v25, %v1555_v20  ;;  %v1537_v42 = vrot.slane %v1535_v27, 5  ;;  %v1540_v43 = vrot.slane %v1538_v28, 6 }
  0x83   : > { %v1583_v44 = vshll.u32 %v1432_v22, 16  ;;  %v1551_v47 = vrot.slane %v1550_v34, 4  ;;  %v1582_v49 = vrot.slane %v1580_v36, 5  ;;  %v1589_v50 = vshrl.u32 %v1433_v31, 16  ;;  %v1431_v51 = vld [vmem:[#allocation2 + $0x2c] sm:$0x3] }
  0x84   : > { %v1532_v48 = vor.u32 %v1531_v35, %v1528_v26  ;;  %v1541_v52 = vor.u32 %v1540_v43, %v1537_v42  ;;  %v1592_v53 = vshll.u32 %v1433_v31, 16  ;;  %v1562_v54 = vshrl.u32 %v1430_v37, 16  ;;  %v1436_v56 = vld [vmem:[#allocation2 + $0x40] sm:$0xe]  ;;  %2372 = vrot.lane.b32.xlu0 %v2334_v32, %s7085_s27  ;;  %v2336_v57 = vld [vmem:[#allocation3 + $0xf4] sm:$0xf] }
  0x85   : > { %v1585_v1 = vrot.slane %v1583_v44, 6  ;;  %v1560_v58 = vsel %vm7540_vm13, %v1551_v47, %v1559_v41  ;;  %v1591_v60 = vrot.slane %v1589_v50, 5  ;;  %v1565_v61 = vshll.u32 %v1430_v37, 16  ;;  %v2339_v62 = vld [vmem:[#allocation3 + $0x100] sm:$0xf]  ;;  %2378 = vrot.lane.b32.xlu1 %v2337_v38, %s7085_s27 }
  0x86   : > { %v1533_v59 = vrot.slane %v1532_v48, 4  ;;  %1932 = vst.msk [vmem:[#allocation3 + $0x130] sm:$0xf] %vm461_vm0, %v1560_v58  ;;  %v1594_v23 = vrot.slane %v1592_v53, 6  ;;  %v1564_v39 = vrot.slane %v1562_v54, 5  ;;  %v1571_v0 = vshrl.u32 %v1431_v51, 16 }
  0x87   : > { %v1586_v63 = vor.u32 %v1585_v1, %v1582_v49  ;;  %v1437_v2 = vld [vmem:[#allocation2 + $0x44] sm:$0x3]  ;;  %v1567_v40 = vrot.slane %v1565_v61, 6  ;;  %v1574_v5 = vshll.u32 %v1431_v51, 16  ;;  %v1616_v29 = vshrl.u32 %v1436_v56, 16 }
  0x88   : > { %v1542_v24 = vsel %vm7540_vm13, %v1533_v59, %v1541_v52  ;;  %v1434_v45 = vld [vmem:[#allocation2 + $0x38] sm:$0xe]  ;;  %v2338_v6 = vld [vmem:[#allocation3 + $0xfc] sm:$0xf]  ;;  %v1595_v9 = vor.u32 %v1594_v23, %v1591_v60  ;;  %v1573_v10 = vrot.slane %v1571_v0, 5  ;;  %v1619_v30 = vshll.u32 %v1436_v56, 16  ;;  %2376 = vrot.lane.b32.xlu0 %v2336_v57, %s7085_s27 }
  0x89   : > { %1931 = vst.msk [vmem:[#allocation3 + $0x12c] sm:$0xf] %vm461_vm0, %v1542_v24  ;;  %v1587_v7 = vrot.slane %v1586_v63, 4  ;;  %v1568_v46 = vor.u32 %v1567_v40, %v1564_v39  ;;  %v1576_v11 = vrot.slane %v1574_v5, 6  ;;  %v1618_v12 = vrot.slane %v1616_v29, 5  ;;  %2382 = vrot.lane.b32.xlu1 %v2339_v62, %s7085_s27 }
  0x8a   : > { %v1625_v8 = vshrl.u32 %v1437_v2, 16  ;;  %v1435_v13 = vld [vmem:[#allocation2 + $0x3c] sm:$0x3]  ;;  %v1621_v15 = vrot.slane %v1619_v30, 6  ;;  %v1628_v16 = vshll.u32 %v1437_v2, 16  ;;  %v1598_v17 = vshrl.u32 %v1434_v45, 16 }
  0x8b   : > { %v1596_v14 = vsel %vm7540_vm13, %v1587_v7, %v1595_v9  ;;  %v1448_v18 = vld [vmem:[#allocation2 + $0x70] sm:$0xe]  ;;  %v2341_v19 = vld [vmem:[#allocation3 + $0x108] sm:$0xf]  ;;  %v1569_v20 = vrot.slane %v1568_v46, 4  ;;  %v1577_v21 = vor.u32 %v1576_v11, %v1573_v10  ;;  %v1601_v25 = vshll.u32 %v1434_v45, 16 }
  0x8c   : > { %1934 = vst.msk [vmem:[#allocation3 + $0x138] sm:$0xf] %vm461_vm0, %v1596_v14  ;;  %v1627_v22 = vrot.slane %v1625_v8, 5  ;;  %v2340_v26 = vld [vmem:[#allocation3 + $0x104] sm:$0xf]  ;;  %v1622_v27 = vor.u32 %v1621_v15, %v1618_v12  ;;  %v1630_v28 = vrot.slane %v1628_v16, 6  ;;  %2380 = vrot.lane.b32.xlu0 %v2338_v6, %s7085_s27 }
  0x8d   : > { %v1600_v31 = vrot.slane %v1598_v17, 5  ;;  %v1607_v32 = vshrl.u32 %v1435_v13, 16  ;;  %v1449_v33 = vld [vmem:[#allocation2 + $0x74] sm:$0x3]  ;;  %v1578_v34 = vsel %vm7540_vm13, %v1569_v20, %v1577_v21  ;;  %v1603_v35 = vrot.slane %v1601_v25, 6  ;;  %2386 = vrot.lane.b32.xlu1 %v2341_v19, %s7085_s27 }
  0x8e   : > { %v1610_v36 = vshll.u32 %v1435_v13, 16  ;;  %v1724_v37 = vshrl.u32 %v1448_v18, 16  ;;  %v1446_v38 = vld [vmem:[#allocation2 + $0x68] sm:$0xe]  ;;  %v2343_v41 = vld [vmem:[#allocation3 + $0x110] sm:$0xf]  ;;  %v1631_v43 = vor.u32 %v1630_v28, %v1627_v22 }
  0x8f   : > { %1933 = vst.msk [vmem:[#allocation3 + $0x134] sm:$0xf] %vm461_vm0, %v1578_v34  ;;  %v1623_v42 = vrot.slane %v1622_v27, 4  ;;  %v1609_v44 = vrot.slane %v1607_v32, 5  ;;  %v1727_v47 = vshll.u32 %v1448_v18, 16  ;;  %v1604_v48 = vor.u32 %v1603_v35, %v1600_v31 }
  0x90   : > { %v1612_v49 = vrot.slane %v1610_v36, 6  ;;  %v1726_v50 = vrot.slane %v1724_v37, 5  ;;  %v1733_v51 = vshrl.u32 %v1449_v33, 16  ;;  %v1447_v52 = vld [vmem:[#allocation2 + $0x6c] sm:$0x3]  ;;  %v1736_v54 = vshll.u32 %v1449_v33, 16  ;;  %2384 = vrot.lane.b32.xlu0 %v2340_v26, %s7085_s27 }
  0x91   : > { %v1632_v1 = vsel %vm7540_vm13, %v1623_v42, %v1631_v43  ;;  %v1729_v53 = vrot.slane %v1727_v47, 6  ;;  %v1706_v56 = vshrl.u32 %v1446_v38, 16  ;;  %v1452_v57 = vld [vmem:[#allocation2 + $0x80] sm:$0xe]  ;;  %v2342_v58 = vld [vmem:[#allocation3 + $0x10c] sm:$0xf]  ;;  %2390 = vrot.lane.b32.xlu1 %v2343_v41, %s7085_s27 }
  0x92   : > { %1936 = vst.msk [vmem:[#allocation3 + $0x140] sm:$0xf] %vm461_vm0, %v1632_v1  ;;  %v1605_v59 = vrot.slane %v1604_v48, 4  ;;  %v1613_v60 = vor.u32 %v1612_v49, %v1609_v44  ;;  %v1735_v61 = vrot.slane %v1733_v51, 5  ;;  %v1709_v62 = vshll.u32 %v1446_v38, 16 }
  0x93   : > { %v2427_v63 = vld [vmem:[#allocation3 + $0x128] sm:$0xf]  ;;  %v1730_v23 = vor.u32 %v1729_v53, %v1726_v50  ;;  %v1738_v39 = vrot.slane %v1736_v54, 6  ;;  %v1708_v0 = vrot.slane %v1706_v56, 5  ;;  %v1715_v2 = vshrl.u32 %v1447_v52, 16 }
  0x94   : > { %v1453_v24 = vld [vmem:[#allocation2 + $0x84] sm:$0x3]  ;;  %v1614_v40 = vsel %vm7540_vm13, %v1605_v59, %v1613_v60  ;;  %v1711_v5 = vrot.slane %v1709_v62, 6  ;;  %v1718_v29 = vshll.u32 %v1447_v52, 16  ;;  %v1760_v45 = vshrl.u32 %v1452_v57, 16  ;;  %2388 = vrot.lane.b32.xlu0 %v2342_v58, %s7085_s27 }
  0x95   : > { %v1450_v6 = vld [vmem:[#allocation2 + $0x78] sm:$0xe]  ;;  %v2426_v7 = vld [vmem:[#allocation3 + $0x124] sm:$0xf]  ;;  %1935 = vst.msk [vmem:[#allocation3 + $0x13c] sm:$0xf] %vm461_vm0, %v1614_v40  ;;  %v1739_v10 = vor.u32 %v1738_v39, %v1735_v61  ;;  %2460 = vrot.lane.b32.xlu1 %v2427_v63, %s7086_s28 }
  0x96   : > { %v1731_v9 = vrot.slane %v1730_v23, 4  ;;  %v1717_v30 = vrot.slane %v1715_v2, 5  ;;  %v1763_v46 = vshll.u32 %v1452_v57, 16  ;;  %v1712_v11 = vor.u32 %v1711_v5, %v1708_v0  ;;  %v1451_v14 = vld [vmem:[#allocation2 + $0x7c] sm:$0x3] }
  0x97   : > { %v1720_v12 = vrot.slane %v1718_v29, 6  ;;  %v1762_v8 = vrot.slane %v1760_v45, 5  ;;  %v1769_v13 = vshrl.u32 %v1453_v24, 16  ;;  %v1772_v17 = vshll.u32 %v1453_v24, 16  ;;  %v1456_v19 = vld [vmem:[#allocation2 + $0x90] sm:$0xe] }
  0x98   : > { %v1740_v15 = vsel %vm7540_vm13, %v1731_v9, %v1739_v10  ;;  %v1765_v16 = vrot.slane %v1763_v46, 6  ;;  %v1742_v18 = vshrl.u32 %v1450_v6, 16  ;;  %v2429_v20 = vld [vmem:[#allocation3 + $0x130] sm:$0xf]  ;;  %v1713_v21 = vrot.slane %v1712_v11, 4  ;;  %2458 = vrot.lane.b32.xlu0 %v2426_v7, %s7086_s28  ;;  %v4321_v7 = vld [vmem:[%s9268_s1 + $0x8] sm:$0xff] }
  0x99   : > { %1942 = vst.msk [vmem:[#allocation3 + $0x158] sm:$0xf] %vm461_vm0, %v1740_v15  ;;  %v1721_v22 = vor.u32 %v1720_v12, %v1717_v30  ;;  %v1771_v25 = vrot.slane %v1769_v13, 5  ;;  %v1745_v26 = vshll.u32 %v1450_v6, 16  ;;  %v2428_v27 = vld [vmem:[#allocation3 + $0x12c] sm:$0xf]  ;;  %2464 = vrot.lane.b32.xlu1 %v2429_v20, %s7086_s28  ;;  %6771 = vmatprep.subr.mxu0 %v4321_v7 }
  0x9a   : > { %v1766_v28 = vor.u32 %v1765_v16, %v1762_v8  ;;  %v1774_v31 = vrot.slane %v1772_v17, 6  ;;  %v1744_v32 = vrot.slane %v1742_v18, 5  ;;  %v1751_v33 = vshrl.u32 %v1451_v14, 16  ;;  %v1457_v34 = vld [vmem:[#allocation2 + $0x94] sm:$0x3]  ;;  %6949 = vmatprep.subr.mxu1 %v4321_v7  ;;  %6772 = vmatpush3.msra.mxu0 %v4321_v7  ;;  %v4320_v16 = vld [vmem:[%s9268_s1] sm:$0xff] }
  0x9b   : > { %v1722_v35 = vsel %vm7540_vm13, %v1713_v21, %v1721_v22  ;;  %v1747_v36 = vrot.slane %v1745_v26, 6  ;;  %v1754_v37 = vshll.u32 %v1451_v14, 16  ;;  %v1796_v38 = vshrl.u32 %v1456_v19, 16  ;;  %v1454_v41 = vld [vmem:[#allocation2 + $0x88] sm:$0xe]  ;;  %6773 = vmatprep.subr.mxu0 %v4320_v16  ;;  %6951 = vmatpush3.msra.mxu1 %v4321_v7  ;;  %v4307_v7 = vld [vmem:[%s9267_s0 + $0x18] sm:$0xff] }
  0x9c   : > { %v2431_v42 = vld [vmem:[#allocation3 + $0x138] sm:$0xf]  ;;  %1941 = vst.msk [vmem:[#allocation3 + $0x154] sm:$0xf] %vm461_vm0, %v1722_v35  ;;  %v1767_v43 = vrot.slane %v1766_v28, 4  ;;  %v1775_v44 = vor.u32 %v1774_v31, %v1771_v25  ;;  %v1753_v47 = vrot.slane %v1751_v33, 5  ;;  %2462 = vrot.lane.b32.xlu0 %v2428_v27, %s7086_s28  ;;  %6774 = vmatpush3.msra.mxu0 %v4320_v16 }
  0x9d   : > { %v1799_v48 = vshll.u32 %v1456_v19, 16  ;;  %v1748_v49 = vor.u32 %v1747_v36, %v1744_v32  ;;  %v1756_v50 = vrot.slane %v1754_v37, 6  ;;  %v1798_v51 = vrot.slane %v1796_v38, 5  ;;  %v1455_v1 = vld [vmem:[#allocation2 + $0x8c] sm:$0x3]  ;;  %2468 = vrot.lane.b32.xlu1 %v2431_v42, %s7086_s28  ;;  %v6995_v35 = vld [vmem:[%s9270_s3 + $0x20] sm:$0xff]   ;;  %6950 = vmatprep.subr.mxu1 %v4320_v16 }
  0x9e   : > { %v1805_v52 = vshrl.u32 %v1457_v34, 16  ;;  %v1776_v53 = vsel %vm7540_vm13, %v1767_v43, %v1775_v44  ;;  %v1808_v56 = vshll.u32 %v1457_v34, 16  ;;  %v1778_v57 = vshrl.u32 %v1454_v41, 16  ;;  %v1460_v58 = vld [vmem:[#allocation2 + $0xa0] sm:$0xe]  ;;  %6952 = vmatpush3.msra.mxu1 %v4320_v16  ;;  %6823 = vmatprep.subr.bf16.mxu0 %v6995_v35 }
  0x9f   : > { %v1801_v54 = vrot.slane %v1799_v48, 6  ;;  %v2430_v59 = vld [vmem:[#allocation3 + $0x134] sm:$0xf]  ;;  %1944 = vst.msk [vmem:[#allocation3 + $0x160] sm:$0xf] %vm461_vm0, %v1776_v53  ;;  %v1749_v60 = vrot.slane %v1748_v49, 4  ;;  %v1757_v61 = vor.u32 %v1756_v50, %v1753_v47 }
  0xa0   : > { %v1807_v62 = vrot.slane %v1805_v52, 5  ;;  %v1781_v63 = vshll.u32 %v1454_v41, 16  ;;  %v1810_v39 = vrot.slane %v1808_v56, 6  ;;  %v1780_v0 = vrot.slane %v1778_v57, 5  ;;  %v1461_v24 = vld [vmem:[#allocation2 + $0xa4] sm:$0x3]  ;;  %2466 = vrot.lane.b32.xlu0 %v2430_v59, %s7086_s28 }
  0xa1   : > { %v1802_v23 = vor.u32 %v1801_v54, %v1798_v51  ;;  %v1787_v2 = vshrl.u32 %v1455_v1, 16  ;;  %v1758_v40 = vsel %vm7540_vm13, %v1749_v60, %v1757_v61  ;;  %v1790_v29 = vshll.u32 %v1455_v1, 16  ;;  %v1458_v6 = vld [vmem:[#allocation2 + $0x98] sm:$0xe]  ;;  %v2433_v9 = vld [vmem:[#allocation3 + $0x140] sm:$0xf] }
  0xa2   : > { %v1783_v5 = vrot.slane %v1781_v63, 6  ;;  %v1832_v45 = vshrl.u32 %v1460_v58, 16  ;;  %1943 = vst.msk [vmem:[#allocation3 + $0x15c] sm:$0xf] %vm461_vm0, %v1758_v40  ;;  %v1811_v30 = vor.u32 %v1810_v39, %v1807_v62  ;;  %v1835_v11 = vshll.u32 %v1460_v58, 16  ;;  %2472 = vrot.lane.b32.xlu1 %v2433_v9, %s7086_s28  ;;  %v4304_v56 = vld [vmem:[%s9267_s0] sm:$0xff] }
  0xa3   : > { %v1803_v10 = vrot.slane %v1802_v23, 4  ;;  %v1789_v46 = vrot.slane %v1787_v2, 5  ;;  %v1792_v8 = vrot.slane %v1790_v29, 6  ;;  %v1841_v14 = vshrl.u32 %v1461_v24, 16  ;;  %v1459_v15 = vld [vmem:[#allocation2 + $0x9c] sm:$0x3]  ;;  %6775 = vmatprep.mubr.msk.f32.mxu0 %vm4329_vm14, %v4304_v56 }
  0xa4   : > { %v1784_v12 = vor.u32 %v1783_v5, %v1780_v0  ;;  %v1834_v13 = vrot.slane %v1832_v45, 5  ;;  %v2432_v17 = vld [vmem:[#allocation3 + $0x13c] sm:$0xf]  ;;  %v1837_v19 = vrot.slane %v1835_v11, 6  ;;  %v1844_v20 = vshll.u32 %v1461_v24, 16  ;;  %v4305_v61 = vld [vmem:[%s9267_s0 + $0x8] sm:$0xff] }
  0xa5   : > { %v1812_v18 = vsel %vm7540_vm13, %v1803_v10, %v1811_v30  ;;  %v1814_v21 = vshrl.u32 %v1458_v6, 16  ;;  %v1793_v25 = vor.u32 %v1792_v8, %v1789_v46  ;;  %v1843_v26 = vrot.slane %v1841_v14, 5  ;;  %v2435_v28 = vld [vmem:[#allocation3 + $0x158] sm:$0xf]  ;;  %2470 = vrot.lane.b32.xlu0 %v2432_v17, %s7086_s28  ;;  %v2434_v36 = vld [vmem:[#allocation3 + $0x154] sm:$0xf]  ;;  %6776 = vmatmul.mubr.msk.f32.vlgmr.msra.gmra.mxu0 %vm4329_vm14, %v4305_v61 }
  0xa6   : > { %1946 = vst.msk [vmem:[#allocation3 + $0x168] sm:$0xf] %vm461_vm0, %v1812_v18  ;;  %v1785_v22 = vrot.slane %v1784_v12, 4  ;;  %v1817_v27 = vshll.u32 %v1458_v6, 16  ;;  %v1838_v31 = vor.u32 %v1837_v19, %v1834_v13  ;;  %v1846_v32 = vrot.slane %v1844_v20, 6  ;;  %2476 = vrot.lane.b32.xlu1 %v2435_v28, %s7086_s28  ;;  %v4306_v24 = vld [vmem:[%s9267_s0 + $0x10] sm:$0xff]  ;;  %6824 = vmatpush3.bf16.msra.mxu0 %v6995_v35 }
  0xa7   : > { %v1816_v33 = vrot.slane %v1814_v21, 5  ;;  %v1823_v34 = vshrl.u32 %v1459_v15, 16  ;;  %v1826_v41 = vshll.u32 %v1459_v15, 16  ;;  %v758_v47 = vld [vmem:[#allocation2 + $0x48] sm:$0xf]  ;;  %v6996_v9 = vld [vmem:[%s9270_s3 + $0x18] sm:$0xff]   ;;  %6778 = vmatprep.mubr.msk.f32.mxu0 %vm4329_vm14, %v4306_v24 }
  0xa8   : > { %v1794_v37 = vsel %vm7540_vm13, %v1785_v22, %v1793_v25  ;;  %v1819_v38 = vrot.slane %v1817_v27, 6  ;;  %v1839_v42 = vrot.slane %v1838_v31, 4  ;;  %v1847_v43 = vor.u32 %v1846_v32, %v1843_v26  ;;  %v759_v48 = vld [vmem:[#allocation2 + $0x4c] sm:$0x1]  ;;  %v2437_v1 = vld [vmem:[#allocation3 + $0x160] sm:$0xf]  ;;  %6825 = vmatprep.subr.bf16.mxu0 %v6996_v9 }
  0xa9   : > { %1945 = vst.msk [vmem:[#allocation3 + $0x164] sm:$0xf] %vm461_vm0, %v1794_v37  ;;  %v1825_v44 = vrot.slane %v1823_v34, 5  ;;  %v1828_v50 = vrot.slane %v1826_v41, 6  ;;  %v918_v51 = vshrl.u32 %v758_v47, 16  ;;  %v921_v52 = vshll.u32 %v758_v47, 16  ;;  %2474 = vrot.lane.b32.xlu0 %v2434_v36, %s7086_s28  ;;  %6779 = vmatmul.mubr.msk.f32.gmra.mxu0 %vm4329_vm14, %v4307_v7 }
  0xaa   : > { %v1820_v49 = vor.u32 %v1819_v38, %v1816_v33  ;;  %v1848_v53 = vsel %vm7540_vm13, %v1839_v42, %v1847_v43  ;;  %v927_v54 = vshll.u32 %v759_v48, 16  ;;  %v2436_v62 = vld [vmem:[#allocation3 + $0x15c] sm:$0xf]  ;;  %v2199_v63 = vld [vmem:[#allocation3 + $0xd0] sm:$0xf]  ;;  %2480 = vrot.lane.b32.xlu1 %v2437_v1, %s7086_s28  ;;  %6826 = vmatpush3.bf16.msra.mxu0 %v6996_v9  ;;  %v4308_v21 = vld [vmem:[%s9267_s0 + $0x20] sm:$0xff] }
  0xab   : > { %1948 = vst.msk [vmem:[#allocation3 + $0x170] sm:$0xf] %vm461_vm0, %v1848_v53  ;;  %v1829_v58 = vor.u32 %v1828_v50, %v1825_v44  ;;  %v920_v59 = vrot.slane %v918_v51, 4  ;;  %v923_v60 = vrot.slane %v921_v52, 5  ;;  %2215 = vst.msk [vmem:[#allocation4 + $0x8] sm:$0xf] %vm461_vm0, %v2199_v63  ;;  %6781 = vmatprep.mubr.msk.f32.mxu0 %vm4329_vm14, %v4308_v21 }
  0xac   : > { %v1821_v57 = vrot.slane %v1820_v49, 4  ;;  %v929_v0 = vrot.slane %v927_v54, 5  ;;  %v2197_v2 = vld [vmem:[#allocation3 + $0xc8] sm:$0xf]  ;;  %v2200_v5 = vld [vmem:[#allocation3 + $0xd4] sm:$0xf] }
  0xad   : > { %v924_v39 = vor.u32 %v923_v60, %v920_v59  ;;  %v2439_v40 = vld [vmem:[#allocation3 + $0x168] sm:$0xf]  ;;  %2213 = vst.msk [vmem:[#allocation4] sm:$0xf] %vm461_vm0, %v2197_v2  ;;  %v2205_v29 = vld [vmem:[#allocation3 + $0xf8] sm:$0xf]  ;;  %2478 = vrot.lane.b32.xlu0 %v2436_v62, %s7086_s28 }
  0xae   : > { %v1830_v23 = vsel %vm7540_vm13, %v1821_v57, %v1829_v58  ;;  %2216 = vst.msk [vmem:[#allocation4 + $0xc] sm:$0xf] %vm461_vm0, %v2200_v5  ;;  %2221 = vst.msk [vmem:[#allocation4 + $0x20] sm:$0xf] %vm461_vm0, %v2205_v29  ;;  %v2202_v10 = vld [vmem:[#allocation3 + $0xdc] sm:$0xf]  ;;  %2484 = vrot.lane.b32.xlu1 %v2439_v40, %s7086_s28 }
  0xaf   : > { %1947 = vst.msk [vmem:[#allocation3 + $0x16c] sm:$0xf] %vm461_vm0, %v1830_v23  ;;  %v925_v6 = vrot.slane %v924_v39, 4  ;;  %v2198_v30 = vld [vmem:[#allocation3 + $0xcc] sm:$0xf]  ;;  %v6997_v56 = vld [vmem:[%s9270_s3 + $0x10] sm:$0xff]  }
  0xb0   : > { %v2438_v45 = vld [vmem:[#allocation3 + $0x164] sm:$0xf]  ;;  %v782_v46 = vld [vmem:[#allocation2 + $0xa8] sm:$0xf]  ;;  %2218 = vst.msk [vmem:[#allocation4 + $0x14] sm:$0xf] %vm461_vm0, %v2202_v10  ;;  %6827 = vmatprep.subr.bf16.mxu0 %v6997_v56  ;;  %v2263_v40 = vpop.permute.xlu0 %2262 }
  0xb1   : > { %v930_v11 = vsel %vm7363_vm7, %v925_v6, %v929_v0  ;;  %2214 = vst.msk [vmem:[#allocation4 + $0x4] sm:$0xf] %vm461_vm0, %v2198_v30  ;;  %v783_v12 = vld [vmem:[#allocation2 + $0xac] sm:$0x1]  ;;  %v1086_v8 = vshrl.u32 %v782_v46, 16  ;;  %v1089_v13 = vshll.u32 %v782_v46, 16  ;;  %2482 = vrot.lane.b32.xlu0 %v2438_v45, %s7086_s28  ;;  %6828 = vmatpush3.bf16.msra.mxu0 %v6997_v56 }
  0xb2   : > { %v2441_v14 = vld [vmem:[#allocation3 + $0x170] sm:$0xf]  ;;  %1161 = vst.msk [vmem:[#allocation3 + $0x84] sm:$0xf] %vm461_vm0, %v930_v11  ;;  %v1095_v15 = vshll.u32 %v783_v12, 16  ;;  %v4309_v38 = vld [vmem:[%s9267_s0 + $0x28] sm:$0xff] }
  0xb3   : > { %v1194_v16 = vld [vmem:[#allocation2 + $0x48] sm:$0xe]  ;;  %v1088_v17 = vrot.slane %v1086_v8, 4  ;;  %v1091_v18 = vrot.slane %v1089_v13, 5  ;;  %v1195_v19 = vld [vmem:[#allocation2 + $0x4c] sm:$0x1]  ;;  %2488 = vrot.lane.b32.xlu1 %v2441_v14, %s7086_s28  ;;  %6782 = vmatmul.mubr.msk.f32.gmra.mxu0 %vm4329_vm14, %v4309_v38 }
  0xb4   : > { %v6501_v20 = vrot.slane %v1194_v16, 9  ;;  %v1313_v22 = vrot.slane %v1195_v19, 5  ;;  %v2201_v25 = vld [vmem:[#allocation3 + $0xd8] sm:$0xf]  ;;  %v1097_v28 = vrot.slane %v1095_v15, 5  ;;  %v4310_v62 = vld [vmem:[%s9267_s0 + $0x30] sm:$0xff]  ;;  %v2267_v14 = vpop.permute.xlu1 %2266  ;;  %v2279_v15 = vpop.permute.xlu0 %2278 }
  0xb5   : > { %v1092_v27 = vor.u32 %v1091_v18, %v1088_v17  ;;  %2217 = vst.msk [vmem:[#allocation4 + $0x10] sm:$0xf] %vm461_vm0, %v2201_v25  ;;  %v2206_v31 = vld [vmem:[#allocation3 + $0xfc] sm:$0xf]  ;;  %v2525_v32 = vld [vmem:[#allocation3 + $0x6c] sm:$0xf]  ;;  %6784 = vmatprep.mubr.msk.f32.mxu0 %vm4329_vm14, %v4310_v62 }
  0xb6   : > { %v2440_v26 = vld [vmem:[#allocation3 + $0x16c] sm:$0xf]  ;;  %v1314_v33 = vsel %vm7434_vm10, %v6501_v20, %v1313_v22  ;;  %2222 = vst.msk [vmem:[#allocation4 + $0x24] sm:$0xf] %vm461_vm0, %v2206_v31  ;;  %v2203_v34 = vld [vmem:[#allocation3 + $0xe0] sm:$0xf] }
  0xb7   : > { %2486 = vrot.lane.b32.xlu0 %v2440_v26, %s7086_s28  ;;  %v1093_v35 = vrot.slane %v1092_v27, 4  ;;  %1405 = vst.msk [vmem:[#allocation3 + $0xe4] sm:$0xf] %vm461_vm0, %v1314_v33  ;;  %2219 = vst.msk [vmem:[#allocation4 + $0x18] sm:$0xf] %vm461_vm0, %v2203_v34  ;;  %2558 = vrot.lane.b32.xlu1 %v2525_v32, %s7087_s15  ;;  %v7020_v29 = vld [vmem:[%s9267_s0 + $0x38] sm:$0xff] }
  0xb8   : > { %v2208_v36 = vld [vmem:[#allocation3 + $0x104] sm:$0xf]  ;;  %v2207_v37 = vld [vmem:[#allocation3 + $0x100] sm:$0xf]  ;;  %v2524_v41 = vld [vmem:[#allocation3 + $0x68] sm:$0xf]  ;;  %6785 = vmatmul.mubr.msk.f32.gmra.mxu0 %vm4329_vm14, %v7020_v29  ;;  %v2269_v32 = vpop.permute.xlu1 %2268 }
  0xb9   : > { %2224 = vst.msk [vmem:[#allocation4 + $0x2c] sm:$0xf] %vm461_vm0, %v2208_v36  ;;  %2223 = vst.msk [vmem:[#allocation4 + $0x28] sm:$0xf] %vm461_vm0, %v2207_v37  ;;  %v2210_v42 = vld [vmem:[#allocation3 + $0x10c] sm:$0xf]  ;;  %v1098_v44 = vsel %vm7363_vm7, %v1093_v35, %v1097_v28 }
  0xba   : > { %v2527_v43 = vld [vmem:[#allocation3 + $0x74] sm:$0xf]  ;;  %2226 = vst.msk [vmem:[#allocation4 + $0x34] sm:$0xf] %vm461_vm0, %v2210_v42  ;;  %v2209_v47 = vld [vmem:[#allocation3 + $0x108] sm:$0xf] }
  0xbb   : > { %v760_v48 = vld [vmem:[#allocation2 + $0x50] sm:$0xf]  ;;  %1173 = vst.msk [vmem:[#allocation3 + $0xb4] sm:$0xf] %vm461_vm0, %v1098_v44  ;;  %2225 = vst.msk [vmem:[#allocation4 + $0x30] sm:$0xf] %vm461_vm0, %v2209_v47  ;;  %2556 = vrot.lane.b32.xlu0 %v2524_v41, %s7087_s15  ;;  %2562 = vrot.lane.b32.xlu1 %v2527_v43, %s7087_s15 }
  0xbc   : > { %v2526_v49 = vld [vmem:[#allocation3 + $0x70] sm:$0xf]  ;;  %v761_v50 = vld [vmem:[#allocation2 + $0x54] sm:$0x1]  ;;  %v932_v51 = vshrl.u32 %v760_v48, 16  ;;  %v935_v52 = vshll.u32 %v760_v48, 16  ;;  %v2273_v44 = vpop.permute.xlu1 %2272 }
  0xbd   : > { %v941_v1 = vshll.u32 %v761_v50, 16  ;;  %v1218_v53 = vld [vmem:[#allocation2 + $0xa8] sm:$0xe]  ;;  %v1219_v54 = vld [vmem:[#allocation2 + $0xac] sm:$0x1]  ;;  %v4312_v46 = vld [vmem:[%s9267_s0 + $0x40] sm:$0xff] }
  0xbe   : > { %v934_v57 = vrot.slane %v932_v51, 4  ;;  %v937_v58 = vrot.slane %v935_v52, 5  ;;  %v6513_v59 = vrot.slane %v1218_v53, 9  ;;  %v1361_v60 = vrot.slane %v1219_v54, 5  ;;  %v2211_v61 = vld [vmem:[#allocation3 + $0x110] sm:$0xf]  ;;  %6787 = vmatprep.mubr.msk.f32.mxu0 %vm4329_vm14, %v4312_v46 }
  0xbf   : > { %2227 = vst.msk [vmem:[#allocation4 + $0x38] sm:$0xf] %vm461_vm0, %v2211_v61  ;;  %v2529_v63 = vld [vmem:[#allocation3 + $0x7c] sm:$0xf]  ;;  %v2204_v23 = vld [vmem:[#allocation3 + $0xe4] sm:$0xf]  ;;  %2560 = vrot.lane.b32.xlu0 %v2526_v49, %s7087_s15 }
  0xc0   : > { %v938_v39 = vor.u32 %v937_v58, %v934_v57  ;;  %v943_v0 = vrot.slane %v941_v1, 5  ;;  %v1362_v2 = vsel %vm7434_vm10, %v6513_v59, %v1361_v60  ;;  %v2528_v24 = vld [vmem:[#allocation3 + $0x78] sm:$0xf]  ;;  %2220 = vst.msk [vmem:[#allocation4 + $0x1c] sm:$0xf] %vm461_vm0, %v2204_v23  ;;  %v6998_v10 = vld [vmem:[%s9270_s3 + $0x8] sm:$0xff]   ;;  %2566 = vrot.lane.b32.xlu1 %v2529_v63, %s7087_s15  ;;  %v2265_v42 = vpop.permute.xlu0 %2264 }
  0xc1   : > { %1417 = vst.msk [vmem:[#allocation3 + $0x114] sm:$0xf] %vm461_vm0, %v1362_v2  ;;  %v784_v5 = vld [vmem:[#allocation2 + $0xb0] sm:$0xf]  ;;  %v785_v6 = vld [vmem:[#allocation2 + $0xb4] sm:$0x1]  ;;  %6829 = vmatprep.subr.bf16.mxu0 %v6998_v10 }
  0xc2   : > { %2311 = vst.msk [vmem:[#allocation4] sm:$0xf] %vm2310_vm15, %v2263_v40  ;;  %v939_v45 = vrot.slane %v938_v39, 4  ;;  %v1100_v7 = vshrl.u32 %v784_v5, 16  ;;  %v1103_v9 = vshll.u32 %v784_v5, 16  ;;  %v1109_v30 = vshll.u32 %v785_v6, 16  ;;  %6830 = vmatpush3.bf16.msra.mxu0 %v6998_v10 }
  0xc3   : > { %v2531_v11 = vld [vmem:[#allocation3 + $0x84] sm:$0xf]  ;;  %2564 = vrot.lane.b32.xlu0 %v2528_v24, %s7087_s15  ;;  %v4313_v16 = vld [vmem:[%s9267_s0 + $0x48] sm:$0xff]  ;;  %v2530_v17 = vld [vmem:[#allocation3 + $0x80] sm:$0xf] }
  0xc4   : > { %v944_v12 = vsel %vm7363_vm7, %v939_v45, %v943_v0  ;;  %v1102_v8 = vrot.slane %v1100_v7, 4  ;;  %v1105_v13 = vrot.slane %v1103_v9, 5  ;;  %2313 = vst.msk [vmem:[#allocation4 + $0x8] sm:$0xf] %vm2310_vm15, %v2267_v14  ;;  %2319 = vst.msk [vmem:[#allocation4 + $0x20] sm:$0xf] %vm2310_vm15, %v2279_v15  ;;  %6788 = vmatmul.mubr.msk.f32.gmra.mxu0 %vm4329_vm14, %v4313_v16  ;;  %2570 = vrot.lane.b32.xlu1 %v2531_v11, %s7087_s15 }
  0xc5   : > { %1162 = vst.msk [vmem:[#allocation3 + $0x88] sm:$0xf] %vm461_vm0, %v944_v12  ;;  %v1111_v19 = vrot.slane %v1109_v30, 5  ;;  %v1196_v20 = vld [vmem:[#allocation2 + $0x50] sm:$0xe]  ;;  %v6999_v25 = vld [vmem:[%s9270_s3] sm:$0xff]   ;;  %v2277_v61 = vpop.permute.xlu1 %2276 }
  0xc6   : > { %v1106_v18 = vor.u32 %v1105_v13, %v1102_v8  ;;  %v1197_v21 = vld [vmem:[#allocation2 + $0x54] sm:$0x1]  ;;  %v6502_v22 = vrot.slane %v1196_v20, 9  ;;  %v2533_v26 = vld [vmem:[#allocation3 + $0x9c] sm:$0xf]  ;;  %6831 = vmatprep.subr.bf16.mxu0 %v6999_v25  ;;  %v2271_v54 = vpop.permute.xlu0 %2270 }
  0xc7   : > { %v1317_v31 = vrot.slane %v1197_v21, 5  ;;  %2568 = vrot.lane.b32.xlu0 %v2530_v17, %s7087_s15  ;;  %v2532_v33 = vld [vmem:[#allocation3 + $0x98] sm:$0xf]  ;;  %2314 = vst.msk [vmem:[#allocation4 + $0xc] sm:$0xf] %vm2310_vm15, %v2269_v32  ;;  %6832 = vmatpush3.bf16.msra.mxu0 %v6999_v25 }
  0xc8   : > { %v2212_v27 = vld [vmem:[#allocation3 + $0x114] sm:$0xf]  ;;  %v1107_v28 = vrot.slane %v1106_v18, 4  ;;  %v1220_v36 = vld [vmem:[#allocation2 + $0xb0] sm:$0xe]  ;;  %2574 = vrot.lane.b32.xlu1 %v2533_v26, %s7087_s15 }
  0xc9   : > { %2228 = vst.msk [vmem:[#allocation4 + $0x3c] sm:$0xf] %vm461_vm0, %v2212_v27  ;;  %v1318_v35 = vsel %vm7434_vm10, %v6502_v22, %v1317_v31  ;;  %v1221_v37 = vld [vmem:[#allocation2 + $0xb4] sm:$0x1]  ;;  %v6514_v38 = vrot.slane %v1220_v36, 9 }
  0xca   : > { %v1112_v34 = vsel %vm7363_vm7, %v1107_v28, %v1111_v19  ;;  %1406 = vst.msk [vmem:[#allocation3 + $0xe8] sm:$0xf] %vm461_vm0, %v1318_v35  ;;  %v2535_v41 = vld [vmem:[#allocation3 + $0xa4] sm:$0xf]  ;;  %v1365_v43 = vrot.slane %v1221_v37, 5  ;;  %v2281_v30 = vpop.permute.xlu1 %2280 }
  0xcb   : > { %1174 = vst.msk [vmem:[#allocation3 + $0xb8] sm:$0xf] %vm461_vm0, %v1112_v34  ;;  %2572 = vrot.lane.b32.xlu0 %v2532_v33, %s7087_s15  ;;  %v2534_v47 = vld [vmem:[#allocation3 + $0xa0] sm:$0xf]  ;;  %v2537_v48 = vld [vmem:[#allocation3 + $0xac] sm:$0xf]  ;;  %v2275_v7 = vpop.permute.xlu0 %2274 }
  0xcc   : > { %2312 = vst.msk [vmem:[#allocation4 + $0x4] sm:$0xf] %vm2310_vm15, %v2265_v42  ;;  %2316 = vst.msk [vmem:[#allocation4 + $0x14] sm:$0xf] %vm2310_vm15, %v2273_v44  ;;  %v1366_v49 = vsel %vm7434_vm10, %v6514_v38, %v1365_v43  ;;  %v1440_v50 = vld [vmem:[#allocation2 + $0x50] sm:$0xe]  ;;  %2578 = vrot.lane.b32.xlu1 %v2535_v41, %s7087_s15 }
  0xcd   : > { %1418 = vst.msk [vmem:[#allocation3 + $0x118] sm:$0xf] %vm461_vm0, %v1366_v49  ;;  %v1441_v51 = vld [vmem:[#allocation2 + $0x54] sm:$0x3]  ;;  %v1652_v52 = vshrl.u32 %v1440_v50, 16  ;;  %v1655_v1 = vshll.u32 %v1440_v50, 16 }
  0xce   : > { %v1438_v53 = vld [vmem:[#allocation2 + $0x48] sm:$0xe]  ;;  %v1661_v56 = vshrl.u32 %v1441_v51, 16  ;;  %v1664_v57 = vshll.u32 %v1441_v51, 16  ;;  %v1439_v58 = vld [vmem:[#allocation2 + $0x4c] sm:$0x3] }
  0xcf   : > { %v1634_v59 = vshrl.u32 %v1438_v53, 16  ;;  %v1637_v60 = vshll.u32 %v1438_v53, 16  ;;  %2576 = vrot.lane.b32.xlu0 %v2534_v47, %s7087_s15  ;;  %2315 = vst.msk [vmem:[#allocation4 + $0x10] sm:$0xf] %vm2310_vm15, %v2271_v54  ;;  %v1654_v62 = vrot.slane %v1652_v52, 5  ;;  %v1657_v63 = vrot.slane %v1655_v1, 6 }
  0xd0   : > { %v1643_v23 = vshrl.u32 %v1439_v58, 16  ;;  %v1646_v39 = vshll.u32 %v1439_v58, 16  ;;  %v2536_v0 = vld [vmem:[#allocation3 + $0xa8] sm:$0xf]  ;;  %2318 = vst.msk [vmem:[#allocation4 + $0x1c] sm:$0xf] %vm2310_vm15, %v2277_v61  ;;  %2582 = vrot.lane.b32.xlu1 %v2537_v48, %s7087_s15 }
  0xd1   : > { %v1663_v2 = vrot.slane %v1661_v56, 5  ;;  %v1666_v24 = vrot.slane %v1664_v57, 6  ;;  %v1658_v40 = vor.u32 %v1657_v63, %v1654_v62  ;;  %v1636_v5 = vrot.slane %v1634_v59, 5  ;;  %v2539_v6 = vld [vmem:[#allocation3 + $0xb4] sm:$0xf] }
  0xd2   : > { %v1639_v29 = vrot.slane %v1637_v60, 6  ;;  %v1645_v45 = vrot.slane %v1643_v23, 5  ;;  %v1648_v10 = vrot.slane %v1646_v39, 6  ;;  %2317 = vst.msk [vmem:[#allocation4 + $0x18] sm:$0xf] %vm2310_vm15, %v2275_v7 }
  0xd3   : > { %v1667_v9 = vor.u32 %v1666_v24, %v1663_v2  ;;  %2580 = vrot.lane.b32.xlu0 %v2536_v0, %s7087_s15  ;;  %v1659_v46 = vrot.slane %v1658_v40, 4  ;;  %v2538_v12 = vld [vmem:[#allocation3 + $0xb0] sm:$0xf]  ;;  %2320 = vst.msk [vmem:[#allocation4 + $0x24] sm:$0xf] %vm2310_vm15, %v2281_v30 }
  0xd4   : > { %v1640_v11 = vor.u32 %v1639_v29, %v1636_v5  ;;  %v1649_v8 = vor.u32 %v1648_v10, %v1645_v45  ;;  %2586 = vrot.lane.b32.xlu1 %v2539_v6, %s7087_s15  ;;  %v2657_v13 = vld [vmem:[#allocation3 + $0x70] sm:$0xf]  ;;  %v2656_v16 = vld [vmem:[#allocation3 + $0x6c] sm:$0xf]  ;;  %v1465_v19 = vld [vmem:[#allocation2 + $0xb4] sm:$0x3]  ;;  %v2285_v36 = vpop.permute.xlu1 %2284 }
  0xd5   : > { %v1668_v14 = vsel %vm7540_vm13, %v1659_v46, %v1667_v9  ;;  %v1464_v18 = vld [vmem:[#allocation2 + $0xb0] sm:$0xe]  ;;  %v1462_v20 = vld [vmem:[#allocation2 + $0xa8] sm:$0xe]  ;;  %v2659_v21 = vld [vmem:[#allocation3 + $0x78] sm:$0xf] }
  0xd6   : > { %v1641_v15 = vrot.slane %v1640_v11, 4  ;;  %1938 = vst.msk [vmem:[#allocation3 + $0x148] sm:$0xf] %vm461_vm0, %v1668_v14  ;;  %v1868_v22 = vshrl.u32 %v1464_v18, 16  ;;  %v1871_v25 = vshll.u32 %v1464_v18, 16  ;;  %v1877_v26 = vshrl.u32 %v1465_v19, 16 }
  0xd7   : > { %2584 = vrot.lane.b32.xlu0 %v2538_v12, %s7087_s15  ;;  %v1880_v27 = vshll.u32 %v1465_v19, 16  ;;  %v1463_v28 = vld [vmem:[#allocation2 + $0xac] sm:$0x3]  ;;  %v1850_v31 = vshrl.u32 %v1462_v20, 16  ;;  %v1853_v32 = vshll.u32 %v1462_v20, 16 }
  0xd8   : > { %v1650_v17 = vsel %vm7540_vm13, %v1641_v15, %v1649_v8  ;;  %2690 = vrot.lane.b32.xlu1 %v2657_v13, %s7084_s22  ;;  %v1859_v33 = vshrl.u32 %v1463_v28, 16  ;;  %v1862_v34 = vshll.u32 %v1463_v28, 16  ;;  %v2658_v35 = vld [vmem:[#allocation3 + $0x74] sm:$0xf]  ;;  %v1870_v37 = vrot.slane %v1868_v22, 5 }
  0xd9   : > { %1937 = vst.msk [vmem:[#allocation3 + $0x144] sm:$0xf] %vm461_vm0, %v1650_v17  ;;  %v1873_v38 = vrot.slane %v1871_v25, 6  ;;  %v1879_v41 = vrot.slane %v1877_v26, 5  ;;  %v1882_v42 = vrot.slane %v1880_v27, 6  ;;  %v1852_v43 = vrot.slane %v1850_v31, 5 }
  0xda   : > { %2322 = vst.msk [vmem:[#allocation4 + $0x2c] sm:$0xf] %vm2310_vm15, %v2285_v36  ;;  %v1855_v44 = vrot.slane %v1853_v32, 6  ;;  %v1861_v47 = vrot.slane %v1859_v33, 5  ;;  %v1864_v48 = vrot.slane %v1862_v34, 6  ;;  %v2283_v0 = vpop.permute.xlu0 %2282 }
  0xdb   : > { %2688 = vrot.lane.b32.xlu0 %v2656_v16, %s7084_s22  ;;  %v693_v49 = vld [vmem:[#allocation2 + $0x8] sm:$0xf]  ;;  %v1874_v50 = vor.u32 %v1873_v38, %v1870_v37  ;;  %v1883_v51 = vor.u32 %v1882_v42, %v1879_v41  ;;  %v692_v52 = vld [vmem:[#allocation2] sm:$0xf]  ;;  %v695_v1 = vld [vmem:[#allocation2 + $0x18] sm:$0xf]  ;;  %v2289_v45 = vpop.permute.xlu1 %2288 }
  0xdc   : > { %717 = vst.msk [vmem:[#allocation3 + $0x4] sm:$0xf] %vm461_vm0, %v693_v49  ;;  %v694_v53 = vld [vmem:[#allocation2 + $0x10] sm:$0xf]  ;;  %2694 = vrot.lane.b32.xlu1 %v2659_v21, %s7084_s22  ;;  %v2661_v54 = vld [vmem:[#allocation3 + $0x80] sm:$0xf]  ;;  %v1856_v56 = vor.u32 %v1855_v44, %v1852_v43  ;;  %v1865_v57 = vor.u32 %v1864_v48, %v1861_v47 }
  0xdd   : > { %716 = vst.msk [vmem:[#allocation3] sm:$0xf] %vm461_vm0, %v692_v52  ;;  %719 = vst.msk [vmem:[#allocation3 + $0xc] sm:$0xf] %vm461_vm0, %v695_v1  ;;  %v697_v58 = vld [vmem:[#allocation2 + $0x28] sm:$0xf] }
  0xde   : > { %718 = vst.msk [vmem:[#allocation3 + $0x8] sm:$0xf] %vm461_vm0, %v694_v53  ;;  %v696_v59 = vld [vmem:[#allocation2 + $0x20] sm:$0xf]  ;;  %v1875_v60 = vrot.slane %v1874_v50, 4  ;;  %v1857_v23 = vrot.slane %v1856_v56, 4 }
  0xdf   : > { %721 = vst.msk [vmem:[#allocation3 + $0x14] sm:$0xf] %vm461_vm0, %v697_v58  ;;  %720 = vst.msk [vmem:[#allocation3 + $0x10] sm:$0xf] %vm461_vm0, %v696_v59  ;;  %v699_v61 = vld [vmem:[#allocation2 + $0x38] sm:$0xf]  ;;  %2692 = vrot.lane.b32.xlu0 %v2658_v35, %s7084_s22 }
  0xe0   : > { %v698_v62 = vld [vmem:[#allocation2 + $0x30] sm:$0xf]  ;;  %v2660_v63 = vld [vmem:[#allocation3 + $0x7c] sm:$0xf]  ;;  %723 = vst.msk [vmem:[#allocation3 + $0x1c] sm:$0xf] %vm461_vm0, %v699_v61  ;;  %v1884_v24 = vsel %vm7540_vm13, %v1875_v60, %v1883_v51  ;;  %2698 = vrot.lane.b32.xlu1 %v2661_v54, %s7084_s22  ;;  %v1866_v6 = vsel %vm7540_vm13, %v1857_v23, %v1865_v57 }
  0xe1   : > { %722 = vst.msk [vmem:[#allocation3 + $0x18] sm:$0xf] %vm461_vm0, %v698_v62  ;;  %v705_v39 = vld [vmem:[#allocation2 + $0x68] sm:$0xf]  ;;  %v704_v40 = vld [vmem:[#allocation2 + $0x60] sm:$0xf]  ;;  %v2287_v14 = vpop.permute.xlu0 %2286 }
  0xe2   : > { %v2663_v2 = vld [vmem:[#allocation3 + $0x88] sm:$0xf]  ;;  %729 = vst.msk [vmem:[#allocation3 + $0x34] sm:$0xf] %vm461_vm0, %v705_v39  ;;  %v2623_v5 = vld [vmem:[#allocation3 + $0x12c] sm:$0xf] }
  0xe3   : > { %v2622_v29 = vld [vmem:[#allocation3 + $0x128] sm:$0xf]  ;;  %2321 = vst.msk [vmem:[#allocation4 + $0x28] sm:$0xf] %vm2310_vm15, %v2283_v0  ;;  %v707_v7 = vld [vmem:[#allocation2 + $0x78] sm:$0xf]  ;;  %2696 = vrot.lane.b32.xlu0 %v2660_v63, %s7084_s22  ;;  %v2293_v18 = vpop.permute.xlu1 %2292 }
  0xe4   : > { %1950 = vst.msk [vmem:[#allocation3 + $0x178] sm:$0xf] %vm461_vm0, %v1884_v24  ;;  %728 = vst.msk [vmem:[#allocation3 + $0x30] sm:$0xf] %vm461_vm0, %v704_v40  ;;  %v706_v9 = vld [vmem:[#allocation2 + $0x70] sm:$0xf]  ;;  %2702 = vrot.lane.b32.xlu1 %v2663_v2, %s7084_s22 }
  0xe5   : > { %2640 = vst.msk [vmem:[#allocation4 + $0x44] sm:$0xf] %vm461_vm0, %v2623_v5  ;;  %2639 = vst.msk [vmem:[#allocation4 + $0x40] sm:$0xf] %vm461_vm0, %v2622_v29  ;;  %v2625_v10 = vld [vmem:[#allocation3 + $0x134] sm:$0xf] }
  0xe6   : > { %2324 = vst.msk [vmem:[#allocation4 + $0x34] sm:$0xf] %vm2310_vm15, %v2289_v45  ;;  %v2624_v30 = vld [vmem:[#allocation3 + $0x130] sm:$0xf]  ;;  %v709_v46 = vld [vmem:[#allocation2 + $0x88] sm:$0xf]  ;;  %v2291_v22 = vpop.permute.xlu0 %2290 }
  0xe7   : > { %1949 = vst.msk [vmem:[#allocation3 + $0x174] sm:$0xf] %vm461_vm0, %v1866_v6  ;;  %731 = vst.msk [vmem:[#allocation3 + $0x3c] sm:$0xf] %vm461_vm0, %v707_v7  ;;  %v708_v11 = vld [vmem:[#allocation2 + $0x80] sm:$0xf]  ;;  %v2363_v27 = vpop.permute.xlu1 %2362 }
  0xe8   : > { %730 = vst.msk [vmem:[#allocation3 + $0x38] sm:$0xf] %vm461_vm0, %v706_v9  ;;  %2642 = vst.msk [vmem:[#allocation4 + $0x4c] sm:$0xf] %vm461_vm0, %v2625_v10  ;;  %v2627_v12 = vld [vmem:[#allocation3 + $0x13c] sm:$0xf] }
  0xe9   : > { %2641 = vst.msk [vmem:[#allocation4 + $0x48] sm:$0xf] %vm461_vm0, %v2624_v30  ;;  %733 = vst.msk [vmem:[#allocation3 + $0x44] sm:$0xf] %vm461_vm0, %v709_v46  ;;  %v2626_v8 = vld [vmem:[#allocation3 + $0x138] sm:$0xf] }
  0xea   : > { %732 = vst.msk [vmem:[#allocation3 + $0x40] sm:$0xf] %vm461_vm0, %v708_v11  ;;  %v2662_v13 = vld [vmem:[#allocation3 + $0x84] sm:$0xf]  ;;  %2644 = vst.msk [vmem:[#allocation4 + $0x54] sm:$0xf] %vm461_vm0, %v2627_v12  ;;  %v2361_v36 = vpop.permute.xlu0 %2360 }
  0xeb   : > { %2643 = vst.msk [vmem:[#allocation4 + $0x50] sm:$0xf] %vm461_vm0, %v2626_v8  ;;  %v711_v15 = vld [vmem:[#allocation2 + $0x98] sm:$0xf]  ;;  %v2665_v16 = vld [vmem:[#allocation3 + $0xa0] sm:$0xf]  ;;  %2700 = vrot.lane.b32.xlu0 %v2662_v13, %s7084_s22  ;;  %v2367_v43 = vpop.permute.xlu1 %2366 }
  0xec   : > { %2323 = vst.msk [vmem:[#allocation4 + $0x30] sm:$0xf] %vm2310_vm15, %v2287_v14  ;;  %v710_v17 = vld [vmem:[#allocation2 + $0x90] sm:$0xf]  ;;  %v2629_v19 = vld [vmem:[#allocation3 + $0x144] sm:$0xf]  ;;  %2706 = vrot.lane.b32.xlu1 %v2665_v16, %s7084_s22 }
  0xed   : > { %735 = vst.msk [vmem:[#allocation3 + $0x4c] sm:$0xf] %vm461_vm0, %v711_v15  ;;  %734 = vst.msk [vmem:[#allocation3 + $0x48] sm:$0xf] %vm461_vm0, %v710_v17  ;;  %v2628_v20 = vld [vmem:[#allocation3 + $0x140] sm:$0xf] }
  0xee   : > { %2326 = vst.msk [vmem:[#allocation4 + $0x3c] sm:$0xf] %vm2310_vm15, %v2293_v18  ;;  %v2664_v21 = vld [vmem:[#allocation3 + $0x9c] sm:$0xf]  ;;  %2325 = vst.msk [vmem:[#allocation4 + $0x38] sm:$0xf] %vm2310_vm15, %v2291_v22  ;;  %v2365_v50 = vpop.permute.xlu0 %2364 }
  0xef   : > { %2646 = vst.msk [vmem:[#allocation4 + $0x5c] sm:$0xf] %vm461_vm0, %v2629_v19  ;;  %2645 = vst.msk [vmem:[#allocation4 + $0x58] sm:$0xf] %vm461_vm0, %v2628_v20  ;;  %v2667_v25 = vld [vmem:[#allocation3 + $0xa8] sm:$0xf]  ;;  %2704 = vrot.lane.b32.xlu0 %v2664_v21, %s7084_s22  ;;  %v2371_v56 = vpop.permute.xlu1 %2370 }
  0xf0   : > { %v1176_v26 = vld [vmem:[#allocation2] sm:$0xe]  ;;  %v1177_v28 = vld [vmem:[#allocation2 + $0x4] sm:$0x1]  ;;  %v2631_v32 = vld [vmem:[#allocation3 + $0x15c] sm:$0xf]  ;;  %2710 = vrot.lane.b32.xlu1 %v2667_v25, %s7084_s22 }
  0xf1   : > { %v6492_v31 = vrot.slane %v1176_v26, 9  ;;  %2410 = vst.msk [vmem:[#allocation4 + $0x4] sm:$0xf] %vm2408_vm1, %v2363_v27  ;;  %v2666_v33 = vld [vmem:[#allocation3 + $0xa4] sm:$0xf]  ;;  %v1277_v34 = vrot.slane %v1177_v28, 5 }
  0xf2   : > { %2648 = vst.msk [vmem:[#allocation4 + $0x64] sm:$0xf] %vm461_vm0, %v2631_v32  ;;  %v2630_v35 = vld [vmem:[#allocation3 + $0x158] sm:$0xf]  ;;  %v2633_v37 = vld [vmem:[#allocation3 + $0x164] sm:$0xf]  ;;  %v2369_v61 = vpop.permute.xlu0 %2368 }
  0xf3   : > { %2647 = vst.msk [vmem:[#allocation4 + $0x60] sm:$0xf] %vm461_vm0, %v2630_v35  ;;  %v2669_v38 = vld [vmem:[#allocation3 + $0xb0] sm:$0xf]  ;;  %v1278_v41 = vsel %vm7434_vm10, %v6492_v31, %v1277_v34  ;;  %2650 = vst.msk [vmem:[#allocation4 + $0x6c] sm:$0xf] %vm461_vm0, %v2633_v37  ;;  %2708 = vrot.lane.b32.xlu0 %v2666_v33, %s7084_s22  ;;  %v2375_v24 = vpop.permute.xlu1 %2374 }
  0xf4   : > { %2409 = vst.msk [vmem:[#allocation4] sm:$0xf] %vm2408_vm1, %v2361_v36  ;;  %v2632_v42 = vld [vmem:[#allocation3 + $0x160] sm:$0xf]  ;;  %v2635_v44 = vld [vmem:[#allocation3 + $0x16c] sm:$0xf]  ;;  %2714 = vrot.lane.b32.xlu1 %v2669_v38, %s7084_s22 }
  0xf5   : > { %1396 = vst.msk [vmem:[#allocation3 + $0xc0] sm:$0xf] %vm461_vm0, %v1278_v41  ;;  %2649 = vst.msk [vmem:[#allocation4 + $0x68] sm:$0xf] %vm461_vm0, %v2632_v42  ;;  %v2634_v47 = vld [vmem:[#allocation3 + $0x168] sm:$0xf] }
  0xf6   : > { %2412 = vst.msk [vmem:[#allocation4 + $0xc] sm:$0xf] %vm2408_vm1, %v2367_v43  ;;  %v2668_v48 = vld [vmem:[#allocation3 + $0xac] sm:$0xf]  ;;  %v2637_v49 = vld [vmem:[#allocation3 + $0x174] sm:$0xf]  ;;  %v2373_v6 = vpop.permute.xlu0 %2372 }
  0xf7   : > { %2652 = vst.msk [vmem:[#allocation4 + $0x74] sm:$0xf] %vm461_vm0, %v2635_v44  ;;  %2651 = vst.msk [vmem:[#allocation4 + $0x70] sm:$0xf] %vm461_vm0, %v2634_v47  ;;  %v2636_v51 = vld [vmem:[#allocation3 + $0x170] sm:$0xf]  ;;  %2712 = vrot.lane.b32.xlu0 %v2668_v48, %s7084_s22  ;;  %v2379_v12 = vpop.permute.xlu1 %2378 }
  0xf8   : > { %2654 = vst.msk [vmem:[#allocation4 + $0x7c] sm:$0xf] %vm461_vm0, %v2637_v49  ;;  %v1200_v52 = vld [vmem:[#allocation2 + $0x60] sm:$0xe]  ;;  %v2671_v1 = vld [vmem:[#allocation3 + $0xb8] sm:$0xf] }
  0xf9   : > { %2411 = vst.msk [vmem:[#allocation4 + $0x8] sm:$0xf] %vm2408_vm1, %v2365_v50  ;;  %v1201_v53 = vld [vmem:[#allocation2 + $0x64] sm:$0x1]  ;;  %v6504_v54 = vrot.slane %v1200_v52, 9  ;;  %2718 = vrot.lane.b32.xlu1 %v2671_v1, %s7084_s22 }
  0xfa   : > { %2653 = vst.msk [vmem:[#allocation4 + $0x78] sm:$0xf] %vm461_vm0, %v2636_v51  ;;  %v1325_v57 = vrot.slane %v1201_v53, 5  ;;  %v2670_v58 = vld [vmem:[#allocation3 + $0xb4] sm:$0xf]  ;;  %v2377_v20 = vpop.permute.xlu0 %2376 }
  0xfb   : > { %2414 = vst.msk [vmem:[#allocation4 + $0x14] sm:$0xf] %vm2408_vm1, %v2371_v56  ;;  %v1420_v59 = vld [vmem:[#allocation2] sm:$0xe]  ;;  %v1421_v60 = vld [vmem:[#allocation2 + $0x4] sm:$0x3]  ;;  %2716 = vrot.lane.b32.xlu0 %v2670_v58, %s7084_s22  ;;  %v2383_v28 = vpop.permute.xlu1 %2382 }
  0xfc   : > { %v1326_v62 = vsel %vm7434_vm10, %v6504_v54, %v1325_v57  ;;  %v1472_v63 = vshrl.u32 %v1420_v59, 16  ;;  %v1475_v23 = vshll.u32 %v1420_v59, 16  ;;  %v1481_v39 = vshrl.u32 %v1421_v60, 16  ;;  %2413 = vst.msk [vmem:[#allocation4 + $0x10] sm:$0xf] %vm2408_vm1, %v2369_v61 }
  0xfd   : > { %v2754_v0 = vld [vmem:[#allocation3 + $0xd0] sm:$0xf]  ;;  %v2753_v2 = vld [vmem:[#allocation3 + $0xcc] sm:$0xf]  ;;  %1408 = vst.msk [vmem:[#allocation3 + $0xf0] sm:$0xf] %vm461_vm0, %v1326_v62 }
  0xfe   : > { %v1474_v40 = vrot.slane %v1472_v63, 5  ;;  %v1477_v5 = vrot.slane %v1475_v23, 6  ;;  %v1483_v29 = vrot.slane %v1481_v39, 5  ;;  %v1484_v45 = vshll.u32 %v1421_v60, 16  ;;  %2416 = vst.msk [vmem:[#allocation4 + $0x1c] sm:$0xf] %vm2408_vm1, %v2375_v24  ;;  %2787 = vrot.lane.b32.xlu1 %v2754_v0, %s7085_s27  ;;  %v2381_v34 = vpop.permute.xlu0 %2380 }
  0xff   : > { %v1444_v10 = vld [vmem:[#allocation2 + $0x60] sm:$0xe]  ;;  %2415 = vst.msk [vmem:[#allocation4 + $0x18] sm:$0xf] %vm2408_vm1, %v2373_v6  ;;  %v2756_v30 = vld [vmem:[#allocation3 + $0xd8] sm:$0xf]  ;;  %2785 = vrot.lane.b32.xlu0 %v2753_v2, %s7085_s27  ;;  %v2387_v37 = vpop.permute.xlu1 %2386 }
 0x100   : > { %v1478_v7 = vor.u32 %v1477_v5, %v1474_v40  ;;  %v1486_v9 = vrot.slane %v1484_v45, 6  ;;  %v1688_v46 = vshrl.u32 %v1444_v10, 16  ;;  %v1691_v11 = vshll.u32 %v1444_v10, 16  ;;  %v1445_v14 = vld [vmem:[#allocation2 + $0x64] sm:$0x3] }
 0x101   : > { %2418 = vst.msk [vmem:[#allocation4 + $0x24] sm:$0xf] %vm2408_vm1, %v2379_v12  ;;  %v2755_v15 = vld [vmem:[#allocation3 + $0xd4] sm:$0xf]  ;;  %v1697_v18 = vshrl.u32 %v1445_v14, 16  ;;  %v1700_v19 = vshll.u32 %v1445_v14, 16 }
 0x102   : > { %v1479_v8 = vrot.slane %v1478_v7, 4  ;;  %v1487_v13 = vor.u32 %v1486_v9, %v1483_v29  ;;  %v1690_v16 = vrot.slane %v1688_v46, 5  ;;  %v1693_v17 = vrot.slane %v1691_v11, 6  ;;  %2791 = vrot.lane.b32.xlu1 %v2756_v30, %s7085_s27  ;;  %2417 = vst.msk [vmem:[#allocation4 + $0x20] sm:$0xf] %vm2408_vm1, %v2377_v20  ;;  %v2385_v41 = vpop.permute.xlu0 %2384 }
 0x103   : > { %v2758_v22 = vld [vmem:[#allocation3 + $0xe0] sm:$0xf]  ;;  %v1699_v26 = vrot.slane %v1697_v18, 5  ;;  %v1702_v27 = vrot.slane %v1700_v19, 6  ;;  %2789 = vrot.lane.b32.xlu0 %v2755_v15, %s7085_s27  ;;  %2420 = vst.msk [vmem:[#allocation4 + $0x2c] sm:$0xf] %vm2408_vm1, %v2383_v28  ;;  %v2391_v43 = vpop.permute.xlu1 %2390 }
 0x104   : > { %v1488_v21 = vsel %vm7540_vm13, %v1479_v8, %v1487_v13  ;;  %v1694_v25 = vor.u32 %v1693_v17, %v1690_v16  ;;  %v2757_v31 = vld [vmem:[#allocation3 + $0xdc] sm:$0xf]  ;;  %2419 = vst.msk [vmem:[#allocation4 + $0x28] sm:$0xf] %vm2408_vm1, %v2381_v34  ;;  %v2760_v35 = vld [vmem:[#allocation3 + $0xe8] sm:$0xf] }
 0x105   : > { %1928 = vst.msk [vmem:[#allocation3 + $0x120] sm:$0xf] %vm461_vm0, %v1488_v21  ;;  %v1703_v33 = vor.u32 %v1702_v27, %v1699_v26  ;;  %v2759_v38 = vld [vmem:[#allocation3 + $0xe4] sm:$0xf]  ;;  %v2762_v42 = vld [vmem:[#allocation3 + $0x100] sm:$0xf] }
 0x106   : > { %v1695_v32 = vrot.slane %v1694_v25, 4  ;;  %2795 = vrot.lane.b32.xlu1 %v2758_v22, %s7085_s27  ;;  %2422 = vst.msk [vmem:[#allocation4 + $0x34] sm:$0xf] %vm2408_vm1, %v2387_v37  ;;  %2421 = vst.msk [vmem:[#allocation4 + $0x30] sm:$0xf] %vm2408_vm1, %v2385_v41  ;;  %v2389_v47 = vpop.permute.xlu0 %2388 }
 0x107   : > { %2793 = vrot.lane.b32.xlu0 %v2757_v31, %s7085_s27  ;;  %2424 = vst.msk [vmem:[#allocation4 + $0x3c] sm:$0xf] %vm2408_vm1, %v2391_v43  ;;  %v2761_v44 = vld [vmem:[#allocation3 + $0xfc] sm:$0xf]  ;;  %2423 = vst.msk [vmem:[#allocation4 + $0x38] sm:$0xf] %vm2408_vm1, %v2389_v47  ;;  %v2461_v49 = vpop.permute.xlu1 %2460 }
 0x108   : > { %v1704_v36 = vsel %vm7540_vm13, %v1695_v32, %v1703_v33  ;;  %v2764_v48 = vld [vmem:[#allocation3 + $0x108] sm:$0xf]  ;;  %2508 = vst.msk [vmem:[#allocation4 + $0x4] sm:$0xf] %vm2506_vm2, %v2461_v49  ;;  %v2763_v50 = vld [vmem:[#allocation3 + $0x104] sm:$0xf] }
 0x109   : > { %1940 = vst.msk [vmem:[#allocation3 + $0x150] sm:$0xf] %vm461_vm0, %v1704_v36  ;;  %v2766_v52 = vld [vmem:[#allocation3 + $0x110] sm:$0xf]  ;;  %v2765_v1 = vld [vmem:[#allocation3 + $0x10c] sm:$0xf] }
 0x10a   : > { %2799 = vrot.lane.b32.xlu1 %v2760_v35, %s7085_s27  ;;  %v2459_v51 = vpop.permute.xlu0 %2458  ;;  %v1954_v54 = vld [vmem:[#allocation2 + $0x8] sm:$0xc]  ;;  %v1955_v56 = vld [vmem:[#allocation2 + $0xc] sm:$0x3]  ;;  %v1952_v57 = vld [vmem:[#allocation2] sm:$0xc] }
 0x10b   : > { %2797 = vrot.lane.b32.xlu0 %v2759_v38, %s7085_s27  ;;  %2507 = vst.msk [vmem:[#allocation4] sm:$0xf] %vm2506_vm2, %v2459_v51  ;;  %v2465_v53 = vpop.permute.xlu1 %2464  ;;  %v6517_v58 = vrot.slane %v1954_v54, 10  ;;  %v2057_v59 = vrot.slane %v1955_v56, 6  ;;  %v1953_v60 = vld [vmem:[#allocation2 + $0x4] sm:$0x3] }
 0x10c   : > { %2510 = vst.msk [vmem:[#allocation4 + $0xc] sm:$0xf] %vm2506_vm2, %v2465_v53  ;;  %v6516_v63 = vrot.slane %v1952_v57, 10  ;;  %v2053_v23 = vrot.slane %v1953_v60, 6  ;;  %v2768_v39 = vld [vmem:[#allocation3 + $0x118] sm:$0xf] }
 0x10d   : > { %v2767_v0 = vld [vmem:[#allocation3 + $0x114] sm:$0xf]  ;;  %v2058_v2 = vsel %vm7858_vm5, %v6517_v58, %v2057_v59  ;;  %v1958_v5 = vld [vmem:[#allocation2 + $0x18] sm:$0xc]  ;;  %v1959_v29 = vld [vmem:[#allocation2 + $0x1c] sm:$0x3] }
 0x10e   : > { %2803 = vrot.lane.b32.xlu1 %v2762_v42, %s7085_s27  ;;  %v2463_v61 = vpop.permute.xlu0 %2462  ;;  %2173 = vst.msk [vmem:[#allocation3 + $0x184] sm:$0xf] %vm461_vm0, %v2058_v2  ;;  %v2054_v40 = vsel %vm7858_vm5, %v6516_v63, %v2053_v23  ;;  %v1956_v45 = vld [vmem:[#allocation2 + $0x10] sm:$0xc]  ;;  %v6519_v6 = vrot.slane %v1958_v5, 10  ;;  %v2065_v7 = vrot.slane %v1959_v29, 6 }
 0x10f   : > { %2801 = vrot.lane.b32.xlu0 %v2761_v44, %s7085_s27  ;;  %2509 = vst.msk [vmem:[#allocation4 + $0x8] sm:$0xf] %vm2506_vm2, %v2463_v61  ;;  %v2469_v24 = vpop.permute.xlu1 %2468  ;;  %v1957_v9 = vld [vmem:[#allocation2 + $0x14] sm:$0x3]  ;;  %v6518_v10 = vrot.slane %v1956_v45, 10 }
 0x110   : > { %2512 = vst.msk [vmem:[#allocation4 + $0x14] sm:$0xf] %vm2506_vm2, %v2469_v24  ;;  %v2061_v46 = vrot.slane %v1957_v9, 6  ;;  %v2851_v11 = vld [vmem:[#allocation3 + $0x130] sm:$0xf]  ;;  %v2066_v8 = vsel %vm7858_vm5, %v6519_v6, %v2065_v7 }
 0x111   : > { %2172 = vst.msk [vmem:[#allocation3 + $0x180] sm:$0xf] %vm461_vm0, %v2054_v40  ;;  %v2850_v12 = vld [vmem:[#allocation3 + $0x12c] sm:$0xf]  ;;  %2175 = vst.msk [vmem:[#allocation3 + $0x18c] sm:$0xf] %vm461_vm0, %v2066_v8 }
 0x112   : > { %2807 = vrot.lane.b32.xlu1 %v2764_v48, %s7085_s27  ;;  %v2467_v30 = vpop.permute.xlu0 %2466  ;;  %v2062_v14 = vsel %vm7858_vm5, %v6518_v10, %v2061_v46  ;;  %v1962_v15 = vld [vmem:[#allocation2 + $0x28] sm:$0xc]  ;;  %v1963_v16 = vld [vmem:[#allocation2 + $0x2c] sm:$0x3]  ;;  %v1960_v17 = vld [vmem:[#allocation2 + $0x20] sm:$0xc] }
 0x113   : > { %2805 = vrot.lane.b32.xlu0 %v2763_v50, %s7085_s27  ;;  %2511 = vst.msk [vmem:[#allocation4 + $0x10] sm:$0xf] %vm2506_vm2, %v2467_v30  ;;  %v6521_v18 = vrot.slane %v1962_v15, 10  ;;  %v2073_v19 = vrot.slane %v1963_v16, 6  ;;  %v1961_v20 = vld [vmem:[#allocation2 + $0x24] sm:$0x3] }
 0x114   : > { %v2473_v13 = vpop.permute.xlu1 %2472  ;;  %2174 = vst.msk [vmem:[#allocation3 + $0x188] sm:$0xf] %vm461_vm0, %v2062_v14  ;;  %v6520_v21 = vrot.slane %v1960_v17, 10  ;;  %v2069_v25 = vrot.slane %v1961_v20, 6  ;;  %v2853_v26 = vld [vmem:[#allocation3 + $0x138] sm:$0xf] }
 0x115   : > { %2514 = vst.msk [vmem:[#allocation4 + $0x1c] sm:$0xf] %vm2506_vm2, %v2473_v13  ;;  %v2074_v27 = vsel %vm7858_vm5, %v6521_v18, %v2073_v19  ;;  %v2852_v31 = vld [vmem:[#allocation3 + $0x134] sm:$0xf]  ;;  %v1966_v33 = vld [vmem:[#allocation2 + $0x38] sm:$0xc] }
 0x116   : > { %2811 = vrot.lane.b32.xlu1 %v2766_v52, %s7085_s27  ;;  %2177 = vst.msk [vmem:[#allocation3 + $0x194] sm:$0xf] %vm461_vm0, %v2074_v27  ;;  %v2070_v32 = vsel %vm7858_vm5, %v6520_v21, %v2069_v25  ;;  %v1967_v34 = vld [vmem:[#allocation2 + $0x3c] sm:$0x3]  ;;  %v6523_v35 = vrot.slane %v1966_v33, 10  ;;  %v7008_v18 = vld [vmem:[%s9270_s3 + $0x40] sm:$0xff]  }
 0x117   : > { %2809 = vrot.lane.b32.xlu0 %v2765_v1, %s7085_s27  ;;  %v2471_v22 = vpop.permute.xlu0 %2470  ;;  %2176 = vst.msk [vmem:[#allocation3 + $0x190] sm:$0xf] %vm461_vm0, %v2070_v32  ;;  %v2081_v36 = vrot.slane %v1967_v34, 6  ;;  %v1964_v37 = vld [vmem:[#allocation2 + $0x30] sm:$0xc]  ;;  %6799 = vmatprep.subr.bf16.mxu1 %v7008_v18 }
 0x118   : > { %2513 = vst.msk [vmem:[#allocation4 + $0x18] sm:$0xf] %vm2506_vm2, %v2471_v22  ;;  %v2477_v28 = vpop.permute.xlu1 %2476  ;;  %v1965_v38 = vld [vmem:[#allocation2 + $0x34] sm:$0x3]  ;;  %v6522_v42 = vrot.slane %v1964_v37, 10  ;;  %v7009_v37 = vld [vmem:[%s9270_s3 + $0x38] sm:$0xff]  }
 0x119   : > { %2516 = vst.msk [vmem:[#allocation4 + $0x24] sm:$0xf] %vm2506_vm2, %v2477_v28  ;;  %v2077_v43 = vrot.slane %v1965_v38, 6  ;;  %v2855_v44 = vld [vmem:[#allocation3 + $0x140] sm:$0xf]  ;;  %v2082_v47 = vsel %vm7858_vm5, %v6523_v35, %v2081_v36  ;;  %v4314_v22 = vld [vmem:[%s9267_s0 + $0x50] sm:$0xff] }
 0x11a   : > { %2815 = vrot.lane.b32.xlu1 %v2768_v39, %s7085_s27  ;;  %v2854_v49 = vld [vmem:[#allocation3 + $0x13c] sm:$0xf]  ;;  %2179 = vst.msk [vmem:[#allocation3 + $0x19c] sm:$0xf] %vm461_vm0, %v2082_v47  ;;  %v1978_v51 = vld [vmem:[#allocation2 + $0x68] sm:$0xc]  ;;  %6790 = vmatprep.mubr.msk.f32.mxu1 %vm4329_vm14, %v4314_v22 }
 0x11b   : > { %2813 = vrot.lane.b32.xlu0 %v2767_v0, %s7085_s27  ;;  %v2475_v41 = vpop.permute.xlu0 %2474  ;;  %v2078_v50 = vsel %vm7858_vm5, %v6522_v42, %v2077_v43  ;;  %v1979_v52 = vld [vmem:[#allocation2 + $0x6c] sm:$0x3]  ;;  %v6529_v1 = vrot.slane %v1978_v51, 10  ;;  %v1976_v54 = vld [vmem:[#allocation2 + $0x60] sm:$0xc]  ;;  %v4315_v28 = vld [vmem:[%s9267_s0 + $0x58] sm:$0xff] }
 0x11c   : > { %2515 = vst.msk [vmem:[#allocation4 + $0x20] sm:$0xf] %vm2506_vm2, %v2475_v41  ;;  %v2481_v48 = vpop.permute.xlu1 %2480  ;;  %v2105_v53 = vrot.slane %v1979_v52, 6  ;;  %v1977_v56 = vld [vmem:[#allocation2 + $0x64] sm:$0x3]  ;;  %v6528_v58 = vrot.slane %v1976_v54, 10  ;;  %6791 = vmatmul.mubr.msk.f32.vlgmr.msra.gmra.mxu1 %vm4329_vm14, %v4315_v28 }
 0x11d   : > { %2518 = vst.msk [vmem:[#allocation4 + $0x2c] sm:$0xf] %vm2506_vm2, %v2481_v48  ;;  %v2101_v59 = vrot.slane %v1977_v56, 6  ;;  %v2857_v60 = vld [vmem:[#allocation3 + $0x148] sm:$0xf]  ;;  %6800 = vmatpush3.bf16.msra.mxu1 %v7008_v18 }
 0x11e   : > { %2884 = vrot.lane.b32.xlu1 %v2851_v11, %s7086_s28  ;;  %2178 = vst.msk [vmem:[#allocation3 + $0x198] sm:$0xf] %vm461_vm0, %v2078_v50  ;;  %v2106_v61 = vsel %vm7858_vm5, %v6529_v1, %v2105_v53  ;;  %v2856_v23 = vld [vmem:[#allocation3 + $0x144] sm:$0xf]  ;;  %v1982_v0 = vld [vmem:[#allocation2 + $0x78] sm:$0xc]  ;;  %6801 = vmatprep.subr.bf16.mxu1 %v7009_v37 }
 0x11f   : > { %2882 = vrot.lane.b32.xlu0 %v2850_v12, %s7086_s28  ;;  %v2479_v57 = vpop.permute.xlu0 %2478  ;;  %2185 = vst.msk [vmem:[#allocation3 + $0x1b4] sm:$0xf] %vm461_vm0, %v2106_v61  ;;  %v2102_v39 = vsel %vm7858_vm5, %v6528_v58, %v2101_v59  ;;  %v1983_v2 = vld [vmem:[#allocation2 + $0x7c] sm:$0x3]  ;;  %v6531_v24 = vrot.slane %v1982_v0, 10  ;;  %v4316_v50 = vld [vmem:[%s9267_s0 + $0x60] sm:$0xff] }
 0x120   : > { %2517 = vst.msk [vmem:[#allocation4 + $0x28] sm:$0xf] %vm2506_vm2, %v2479_v57  ;;  %v2485_v63 = vpop.permute.xlu1 %2484  ;;  %v2113_v40 = vrot.slane %v1983_v2, 6  ;;  %v1980_v5 = vld [vmem:[#allocation2 + $0x70] sm:$0xc]  ;;  %v4317_v1 = vld [vmem:[%s9267_s0 + $0x68] sm:$0xff]  ;;  %6793 = vmatprep.mubr.msk.f32.mxu1 %vm4329_vm14, %v4316_v50 }
 0x121   : > { %2520 = vst.msk [vmem:[#allocation4 + $0x34] sm:$0xf] %vm2506_vm2, %v2485_v63  ;;  %v1981_v29 = vld [vmem:[#allocation2 + $0x74] sm:$0x3]  ;;  %v6530_v6 = vrot.slane %v1980_v5, 10  ;;  %6802 = vmatpush3.bf16.msra.mxu1 %v7009_v37  ;;  %v4319_v61 = vld [vmem:[%s9267_s0 + $0x78] sm:$0xff] }
 0x122   : > { %2888 = vrot.lane.b32.xlu1 %v2853_v26, %s7086_s28  ;;  %2184 = vst.msk [vmem:[#allocation3 + $0x1b0] sm:$0xf] %vm461_vm0, %v2102_v39  ;;  %v2109_v7 = vrot.slane %v1981_v29, 6  ;;  %v2859_v9 = vld [vmem:[#allocation3 + $0x160] sm:$0xf]  ;;  %v2114_v10 = vsel %vm7858_vm5, %v6531_v24, %v2113_v40  ;;  %v7010_v53 = vld [vmem:[%s9270_s3 + $0x30] sm:$0xff]   ;;  %6794 = vmatmul.mubr.msk.f32.gmra.mxu1 %vm4329_vm14, %v4317_v1 }
 0x123   : > { %2886 = vrot.lane.b32.xlu0 %v2852_v31, %s7086_s28  ;;  %v2483_v45 = vpop.permute.xlu0 %2482  ;;  %v2858_v46 = vld [vmem:[#allocation3 + $0x15c] sm:$0xf]  ;;  %2187 = vst.msk [vmem:[#allocation3 + $0x1bc] sm:$0xf] %vm461_vm0, %v2114_v10  ;;  %v1986_v12 = vld [vmem:[#allocation2 + $0x88] sm:$0xc]  ;;  %6803 = vmatprep.subr.bf16.mxu1 %v7010_v53 }
 0x124   : > { %2519 = vst.msk [vmem:[#allocation4 + $0x30] sm:$0xf] %vm2506_vm2, %v2483_v45  ;;  %v2110_v11 = vsel %vm7858_vm5, %v6530_v6, %v2109_v7  ;;  %v1987_v8 = vld [vmem:[#allocation2 + $0x8c] sm:$0x3]  ;;  %v6533_v13 = vrot.slane %v1986_v12, 10  ;;  %v4318_v58 = vld [vmem:[%s9267_s0 + $0x70] sm:$0xff] }
 0x125   : > { %v2489_v30 = vpop.permute.xlu1 %2488  ;;  %2186 = vst.msk [vmem:[#allocation3 + $0x1b8] sm:$0xf] %vm461_vm0, %v2110_v11  ;;  %v2121_v14 = vrot.slane %v1987_v8, 6  ;;  %v1984_v15 = vld [vmem:[#allocation2 + $0x80] sm:$0xc]  ;;  %6804 = vmatpush3.bf16.msra.mxu1 %v7010_v53  ;;  %6796 = vmatprep.mubr.msk.f32.mxu1 %vm4329_vm14, %v4318_v58 }
 0x126   : > { %2892 = vrot.lane.b32.xlu1 %v2855_v44, %s7086_s28  ;;  %2522 = vst.msk [vmem:[#allocation4 + $0x3c] sm:$0xf] %vm2506_vm2, %v2489_v30  ;;  %v1985_v16 = vld [vmem:[#allocation2 + $0x84] sm:$0x3]  ;;  %v6532_v19 = vrot.slane %v1984_v15, 10  ;;  %6797 = vmatmul.mubr.msk.f32.gmra.mxu1 %vm4329_vm14, %v4319_v61 }
 0x127   : > { %2890 = vrot.lane.b32.xlu0 %v2854_v49, %s7086_s28  ;;  %v2117_v20 = vrot.slane %v1985_v16, 6  ;;  %v2861_v21 = vld [vmem:[#allocation3 + $0x168] sm:$0xf]  ;;  %v2122_v25 = vsel %vm7858_vm5, %v6533_v13, %v2121_v14  ;;  %v2860_v27 = vld [vmem:[#allocation3 + $0x164] sm:$0xf] }
 0x128   : > { %2189 = vst.msk [vmem:[#allocation3 + $0x1c4] sm:$0xf] %vm461_vm0, %v2122_v25  ;;  %v1990_v32 = vld [vmem:[#allocation2 + $0x98] sm:$0xc]  ;;  %v1991_v33 = vld [vmem:[#allocation2 + $0x9c] sm:$0x3] }
 0x129   : > { %v2487_v17 = vpop.permute.xlu0 %2486  ;;  %v2559_v26 = vpop.permute.xlu1 %2558  ;;  %v2118_v31 = vsel %vm7858_vm5, %v6532_v19, %v2117_v20  ;;  %v6535_v34 = vrot.slane %v1990_v32, 10  ;;  %v1988_v35 = vld [vmem:[#allocation2 + $0x90] sm:$0xc]  ;;  %v2129_v38 = vrot.slane %v1991_v33, 6  ;;  %v1989_v41 = vld [vmem:[#allocation2 + $0x94] sm:$0x3] }
 0x12a   : > { %2896 = vrot.lane.b32.xlu1 %v2857_v60, %s7086_s28  ;;  %2521 = vst.msk [vmem:[#allocation4 + $0x38] sm:$0xf] %vm2506_vm2, %v2487_v17  ;;  %v6534_v42 = vrot.slane %v1988_v35, 10  ;;  %v2863_v43 = vld [vmem:[#allocation3 + $0x170] sm:$0xf]  ;;  %v2125_v44 = vrot.slane %v1989_v41, 6 }
 0x12b   : > { %2894 = vrot.lane.b32.xlu0 %v2856_v23, %s7086_s28  ;;  %2606 = vst.msk [vmem:[#allocation4 + $0x4] sm:$0xf] %vm2604_vm6, %v2559_v26  ;;  %v2130_v48 = vsel %vm7858_vm5, %v6535_v34, %v2129_v38  ;;  %v2862_v49 = vld [vmem:[#allocation3 + $0x16c] sm:$0xf]  ;;  %v2865_v54 = vld [vmem:[#allocation3 + $0x178] sm:$0xf] }
 0x12c   : > { %2188 = vst.msk [vmem:[#allocation3 + $0x1c0] sm:$0xf] %vm461_vm0, %v2118_v31  ;;  %2191 = vst.msk [vmem:[#allocation3 + $0x1cc] sm:$0xf] %vm461_vm0, %v2130_v48  ;;  %v2126_v51 = vsel %vm7858_vm5, %v6534_v42, %v2125_v44  ;;  %v2864_v57 = vld [vmem:[#allocation3 + $0x174] sm:$0xf] }
 0x12d   : > { %v2557_v36 = vpop.permute.xlu0 %2556  ;;  %v2563_v47 = vpop.permute.xlu1 %2562  ;;  %2190 = vst.msk [vmem:[#allocation3 + $0x1c8] sm:$0xf] %vm461_vm0, %v2126_v51  ;;  %v2947_v63 = vld [vmem:[#allocation3 + $0x4] sm:$0xf]  ;;  %v7011_v23 = vld [vmem:[%s9270_s3 + $0x28] sm:$0xff]  }
 0x12e   : > { %2900 = vrot.lane.b32.xlu1 %v2859_v9, %s7086_s28  ;;  %2605 = vst.msk [vmem:[#allocation4] sm:$0xf] %vm2604_vm6, %v2557_v36  ;;  %2608 = vst.msk [vmem:[#allocation4 + $0xc] sm:$0xf] %vm2604_vm6, %v2563_v47  ;;  %v2946_v0 = vld [vmem:[#allocation3] sm:$0xf]  ;;  %6805 = vmatprep.subr.bf16.mxu1 %v7011_v23 }
 0x12f   : > { %2898 = vrot.lane.b32.xlu0 %v2858_v46, %s7086_s28  ;;  %6806 = vmatpush3.bf16.msra.mxu1 %v7011_v23  ;;  %v2949_v40 = vld [vmem:[#allocation3 + $0xc] sm:$0xf]  ;;  %v740_v29 = vld [vmem:[#allocation2] sm:$0xf]  ;;  %v2948_v45 = vld [vmem:[#allocation3 + $0x8] sm:$0xf] }
 0x130   : > { %v792_v6 = vshrl.u32 %v740_v29, 16  ;;  %v795_v7 = vshll.u32 %v740_v29, 16  ;;  %v2951_v30 = vld [vmem:[#allocation3 + $0x14] sm:$0xf]  ;;  %v700_v46 = vld [vmem:[#allocation2 + $0x40] sm:$0xf] }
 0x131   : > { %v2561_v52 = vpop.permute.xlu0 %2560  ;;  %724 = vst.msk [vmem:[#allocation3 + $0x20] sm:$0xf] %vm461_vm0, %v700_v46  ;;  %v741_v12 = vld [vmem:[#allocation2 + $0x4] sm:$0x1]  ;;  %v2950_v14 = vld [vmem:[#allocation3 + $0x10] sm:$0xf] }
 0x132   : > { %2904 = vrot.lane.b32.xlu1 %v2861_v21, %s7086_s28  ;;  %2607 = vst.msk [vmem:[#allocation4 + $0x8] sm:$0xf] %vm2604_vm6, %v2561_v52  ;;  %v2567_v56 = vpop.permute.xlu1 %2566  ;;  %v794_v8 = vrot.slane %v792_v6, 4  ;;  %v797_v13 = vrot.slane %v795_v7, 5  ;;  %v801_v15 = vshll.u32 %v741_v12, 16 }
 0x133   : > { %2902 = vrot.lane.b32.xlu0 %v2860_v27, %s7086_s28  ;;  %2610 = vst.msk [vmem:[#allocation4 + $0x14] sm:$0xf] %vm2604_vm6, %v2567_v56  ;;  %v2953_v19 = vld [vmem:[#allocation3 + $0x1c] sm:$0xf]  ;;  %v2952_v25 = vld [vmem:[#allocation3 + $0x18] sm:$0xf] }
 0x134   : > { %v798_v18 = vor.u32 %v797_v13, %v794_v8  ;;  %v803_v20 = vrot.slane %v801_v15, 5  ;;  %v2955_v31 = vld [vmem:[#allocation3 + $0x34] sm:$0xf]  ;;  %v2954_v33 = vld [vmem:[#allocation3 + $0x30] sm:$0xf] }
 0x135   : > { %v2565_v59 = vpop.permute.xlu0 %2564  ;;  %v7000_v60 = vld [vmem:[#allocation4] sm:$0xff]   ;;  %v2957_v36 = vld [vmem:[#allocation3 + $0x3c] sm:$0xf]  ;;  %v2956_v42 = vld [vmem:[#allocation3 + $0x38] sm:$0xf] }
 0x136   : > { %2908 = vrot.lane.b32.xlu1 %v2863_v43, %s7086_s28  ;;  %2609 = vst.msk [vmem:[#allocation4 + $0x10] sm:$0xf] %vm2604_vm6, %v2565_v59  ;;  %6833 = vmatprep.mubr.msk.bf16.mxu0 %vm4845_vm8, %v7000_v60  ;;  %v2571_v39 = vpop.permute.xlu1 %2570  ;;  %v799_v22 = vrot.slane %v798_v18, 4  ;;  %v3043_v38 = vld [vmem:[#allocation3 + $0x64] sm:$0xf] }
 0x137   : > { %2906 = vrot.lane.b32.xlu0 %v2862_v49, %s7086_s28  ;;  %2612 = vst.msk [vmem:[#allocation4 + $0x1c] sm:$0xf] %vm2604_vm6, %v2571_v39  ;;  %v764_v41 = vld [vmem:[#allocation2 + $0x60] sm:$0xf]  ;;  %v2959_v50 = vld [vmem:[#allocation3 + $0x44] sm:$0xf] }
 0x138   : > { %v804_v28 = vsel %vm7363_vm7, %v799_v22, %v803_v20  ;;  %3060 = vst.msk [vmem:[#allocation4 + $0x84] sm:$0xf] %vm461_vm0, %v3043_v38  ;;  %v960_v43 = vshrl.u32 %v764_v41, 16  ;;  %v963_v44 = vshll.u32 %v764_v41, 16  ;;  %v2958_v51 = vld [vmem:[#allocation3 + $0x40] sm:$0xf] }
 0x139   : > { %v2569_v2 = vpop.permute.xlu0 %2568  ;;  %v7001_v24 = vld [vmem:[#allocation4 + $0x8] sm:$0xff]   ;;  %1152 = vst.msk [vmem:[#allocation3 + $0x60] sm:$0xf] %vm461_vm0, %v804_v28  ;;  %v712_v52 = vld [vmem:[#allocation2 + $0xa0] sm:$0xf] }
 0x13a   : > { %2912 = vrot.lane.b32.xlu1 %v2865_v54, %s7086_s28  ;;  %2611 = vst.msk [vmem:[#allocation4 + $0x18] sm:$0xf] %vm2604_vm6, %v2569_v2  ;;  %6834 = vmatmul.mubr.msk.bf16.vlgmr.msra.gmra.mxu0 %vm4845_vm8, %v7001_v24  ;;  %v2575_v5 = vpop.permute.xlu1 %2574  ;;  %v3045_v53 = vld [vmem:[#allocation3 + $0x6c] sm:$0xf]  ;;  %v765_v54 = vld [vmem:[#allocation2 + $0x64] sm:$0x1] }
 0x13b   : > { %2910 = vrot.lane.b32.xlu0 %v2864_v57, %s7086_s28  ;;  %2614 = vst.msk [vmem:[#allocation4 + $0x24] sm:$0xf] %vm2604_vm6, %v2575_v5  ;;  %v3044_v56 = vld [vmem:[#allocation3 + $0x68] sm:$0xf]  ;;  %v962_v57 = vrot.slane %v960_v43, 4  ;;  %v965_v58 = vrot.slane %v963_v44, 5 }
 0x13c   : > { %736 = vst.msk [vmem:[#allocation3 + $0x50] sm:$0xf] %vm461_vm0, %v712_v52  ;;  %3062 = vst.msk [vmem:[#allocation4 + $0x8c] sm:$0xf] %vm461_vm0, %v3045_v53  ;;  %v969_v59 = vshll.u32 %v765_v54, 16 }
 0x13d   : > { %v2573_v9 = vpop.permute.xlu0 %2572  ;;  %v7002_v10 = vld [vmem:[#allocation4 + $0x10] sm:$0xff]   ;;  %3061 = vst.msk [vmem:[#allocation4 + $0x88] sm:$0xf] %vm461_vm0, %v3044_v56  ;;  %v966_v23 = vor.u32 %v965_v58, %v962_v57  ;;  %v2960_v24 = vld [vmem:[#allocation3 + $0x48] sm:$0xf] }
 0x13e   : > { %2980 = vrot.lane.b32.xlu1 %v2947_v63, %s7087_s15  ;;  %2613 = vst.msk [vmem:[#allocation4 + $0x20] sm:$0xf] %vm2604_vm6, %v2573_v9  ;;  %6837 = vmatprep.mubr.msk.bf16.mxu0 %vm4845_vm8, %v7002_v10  ;;  %v2579_v11 = vpop.permute.xlu1 %2578  ;;  %v2961_v63 = vld [vmem:[#allocation3 + $0x4c] sm:$0xf]  ;;  %v971_v39 = vrot.slane %v969_v59, 5 }
 0x13f   : > { %2978 = vrot.lane.b32.xlu0 %v2946_v0, %s7087_s15  ;;  %2616 = vst.msk [vmem:[#allocation4 + $0x2c] sm:$0xf] %vm2604_vm6, %v2579_v11  ;;  %v3047_v2 = vld [vmem:[#allocation3 + $0x74] sm:$0xf]  ;;  %v967_v5 = vrot.slane %v966_v23, 4 }
 0x140   : > { %v3042_v49 = vld [vmem:[#allocation3 + $0x60] sm:$0xf]  ;;  %3064 = vst.msk [vmem:[#allocation4 + $0x94] sm:$0xf] %vm461_vm0, %v3047_v2  ;;  %v3049_v9 = vld [vmem:[#allocation3 + $0x7c] sm:$0xf] }
 0x141   : > { %v2577_v16 = vpop.permute.xlu0 %2576  ;;  %v7003_v17 = vld [vmem:[#allocation4 + $0x18] sm:$0xff]   ;;  %3059 = vst.msk [vmem:[#allocation4 + $0x80] sm:$0xf] %vm461_vm0, %v3042_v49  ;;  %v972_v6 = vsel %vm7363_vm7, %v967_v5, %v971_v39  ;;  %v3075_v10 = vld [vmem:[#allocation3 + $0xc0] sm:$0xf] }
 0x142   : > { %2984 = vrot.lane.b32.xlu1 %v2949_v40, %s7087_s15  ;;  %2615 = vst.msk [vmem:[#allocation4 + $0x28] sm:$0xf] %vm2604_vm6, %v2577_v16  ;;  %6838 = vmatmul.mubr.msk.bf16.gmra.mxu0 %vm4845_vm8, %v7003_v17  ;;  %v2583_v21 = vpop.permute.xlu1 %2582  ;;  %v3046_v40 = vld [vmem:[#allocation3 + $0x70] sm:$0xf]  ;;  %v3078_v11 = vld [vmem:[#allocation3 + $0xcc] sm:$0xf] }
 0x143   : > { %2982 = vrot.lane.b32.xlu0 %v2948_v45, %s7087_s15  ;;  %2618 = vst.msk [vmem:[#allocation4 + $0x34] sm:$0xf] %vm2604_vm6, %v2583_v21  ;;  %v3076_v45 = vld [vmem:[#allocation3 + $0xc4] sm:$0xf]  ;;  %v3051_v8 = vld [vmem:[#allocation3 + $0x94] sm:$0xf] }
 0x144   : > { %3063 = vst.msk [vmem:[#allocation4 + $0x90] sm:$0xf] %vm461_vm0, %v3046_v40  ;;  %1164 = vst.msk [vmem:[#allocation3 + $0x90] sm:$0xf] %vm461_vm0, %v972_v6  ;;  %v3077_v13 = vld [vmem:[#allocation3 + $0xc8] sm:$0xf] }
 0x145   : > { %v2581_v26 = vpop.permute.xlu0 %2580  ;;  %v7004_v27 = vld [vmem:[#allocation4 + $0x20] sm:$0xff]   ;;  %3066 = vst.msk [vmem:[#allocation4 + $0x9c] sm:$0xf] %vm461_vm0, %v3049_v9  ;;  %3068 = vst.msk [vmem:[#allocation4 + $0xa4] sm:$0xf] %vm461_vm0, %v3051_v8 }
 0x146   : > { %2988 = vrot.lane.b32.xlu1 %v2951_v30, %s7087_s15  ;;  %2617 = vst.msk [vmem:[#allocation4 + $0x30] sm:$0xf] %vm2604_vm6, %v2581_v26  ;;  %6841 = vmatprep.mubr.msk.bf16.mxu0 %vm4845_vm8, %v7004_v27  ;;  %v2587_v32 = vpop.permute.xlu1 %2586  ;;  %v3048_v30 = vld [vmem:[#allocation3 + $0x78] sm:$0xf]  ;;  %v3080_v15 = vld [vmem:[#allocation3 + $0xd4] sm:$0xf] }
 0x147   : > { %2986 = vrot.lane.b32.xlu0 %v2950_v14, %s7087_s15  ;;  %2620 = vst.msk [vmem:[#allocation4 + $0x3c] sm:$0xf] %vm2604_vm6, %v2587_v32  ;;  %v3053_v18 = vld [vmem:[#allocation3 + $0x9c] sm:$0xf]  ;;  %v3079_v20 = vld [vmem:[#allocation3 + $0xd0] sm:$0xf] }
 0x148   : > { %3065 = vst.msk [vmem:[#allocation4 + $0x98] sm:$0xf] %vm461_vm0, %v3048_v30  ;;  %3070 = vst.msk [vmem:[#allocation4 + $0xac] sm:$0xf] %vm461_vm0, %v3053_v18  ;;  %v3052_v21 = vld [vmem:[#allocation3 + $0x98] sm:$0xf] }
 0x149   : > { %v2585_v34 = vpop.permute.xlu0 %2584  ;;  %v7005_v35 = vld [vmem:[#allocation4 + $0x28] sm:$0xff]   ;;  %3069 = vst.msk [vmem:[#allocation4 + $0xa8] sm:$0xf] %vm461_vm0, %v3052_v21  ;;  %v3055_v27 = vld [vmem:[#allocation3 + $0xa4] sm:$0xf] }
 0x14a   : > { %2992 = vrot.lane.b32.xlu1 %v2953_v19, %s7087_s15  ;;  %2619 = vst.msk [vmem:[#allocation4 + $0x38] sm:$0xf] %vm2604_vm6, %v2585_v34  ;;  %6842 = vmatmul.mubr.msk.bf16.gmra.mxu0 %vm4845_vm8, %v7005_v35  ;;  %v2691_v37 = vpop.permute.xlu1 %2690  ;;  %v701_v19 = vld [vmem:[#allocation2 + $0x48] sm:$0xf]  ;;  %v3081_v28 = vld [vmem:[#allocation3 + $0xd8] sm:$0xf] }
 0x14b   : > { %2990 = vrot.lane.b32.xlu0 %v2952_v25, %s7087_s15  ;;  %2737 = vst.msk [vmem:[#allocation4 + $0x44] sm:$0xf] %vm2310_vm15, %v2691_v37  ;;  %v3050_v16 = vld [vmem:[#allocation3 + $0x90] sm:$0xf]  ;;  %v3082_v25 = vld [vmem:[#allocation3 + $0xdc] sm:$0xf] }
 0x14c   : > { %3067 = vst.msk [vmem:[#allocation4 + $0xa0] sm:$0xf] %vm461_vm0, %v3050_v16  ;;  %725 = vst.msk [vmem:[#allocation3 + $0x24] sm:$0xf] %vm461_vm0, %v701_v19  ;;  %v3057_v35 = vld [vmem:[#allocation3 + $0xac] sm:$0xf] }
 0x14d   : > { %v2689_v47 = vpop.permute.xlu0 %2688  ;;  %v7006_v48 = vld [vmem:[#allocation4 + $0x30] sm:$0xff]   ;;  %3072 = vst.msk [vmem:[#allocation4 + $0xb4] sm:$0xf] %vm461_vm0, %v3055_v27  ;;  %3074 = vst.msk [vmem:[#allocation4 + $0xbc] sm:$0xf] %vm461_vm0, %v3057_v35 }
 0x14e   : > { %2996 = vrot.lane.b32.xlu1 %v2955_v31, %s7087_s15  ;;  %2736 = vst.msk [vmem:[#allocation4 + $0x40] sm:$0xf] %vm2310_vm15, %v2689_v47  ;;  %6845 = vmatprep.mubr.msk.bf16.mxu0 %vm4845_vm8, %v7006_v48  ;;  %v2695_v1 = vpop.permute.xlu1 %2694  ;;  %v3054_v31 = vld [vmem:[#allocation3 + $0xa0] sm:$0xf]  ;;  %v3056_v37 = vld [vmem:[#allocation3 + $0xa8] sm:$0xf] }
 0x14f   : > { %2994 = vrot.lane.b32.xlu0 %v2954_v33, %s7087_s15  ;;  %2739 = vst.msk [vmem:[#allocation4 + $0x4c] sm:$0xf] %vm2310_vm15, %v2695_v1  ;;  %v3084_v33 = vld [vmem:[#allocation3 + $0xf4] sm:$0xf]  ;;  %v3086_v41 = vld [vmem:[#allocation3 + $0xfc] sm:$0xf] }
 0x150   : > { %3071 = vst.msk [vmem:[#allocation4 + $0xb0] sm:$0xf] %vm461_vm0, %v3054_v31  ;;  %3073 = vst.msk [vmem:[#allocation4 + $0xb8] sm:$0xf] %vm461_vm0, %v3056_v37  ;;  %v3085_v43 = vld [vmem:[#allocation3 + $0xf8] sm:$0xf] }
 0x151   : > { %v2693_v60 = vpop.permute.xlu0 %2692  ;;  %v7007_v61 = vld [vmem:[#allocation4 + $0x38] sm:$0xff]   ;;  %v8073_v44 = vld [vmem:[%s9269_s2] ss:$0 sm:$0xff]  ;;  %v3088_v48 = vld [vmem:[#allocation3 + $0x104] sm:$0xf] }
 0x152   : > { %3000 = vrot.lane.b32.xlu1 %v2957_v36, %s7087_s15  ;;  %2738 = vst.msk [vmem:[#allocation4 + $0x48] sm:$0xf] %vm2310_vm15, %v2693_v60  ;;  %6846 = vmatmul.mubr.msk.bf16.gmra.mxu0 %vm4845_vm8, %v7007_v61  ;;  %v2699_v0 = vpop.permute.xlu1 %2698  ;;  %v3083_v36 = vld [vmem:[#allocation3 + $0xf0] sm:$0xf]  ;;  %v3087_v1 = vld [vmem:[#allocation3 + $0x100] sm:$0xf] }
 0x153   : > { %2998 = vrot.lane.b32.xlu0 %v2956_v42, %s7087_s15  ;;  %2741 = vst.msk [vmem:[#allocation4 + $0x54] sm:$0xf] %vm2310_vm15, %v2699_v0  ;;  %v3090_v57 = vld [vmem:[#allocation3 + $0x10c] sm:$0xf]  ;;  %v3089_v61 = vld [vmem:[#allocation3 + $0x108] sm:$0xf] }
 0x154   : > { %v3172_v0 = vld [vmem:[#allocation3 + $0x124] sm:$0xf]  ;;  %v3173_v6 = vld [vmem:[#allocation3 + $0x128] sm:$0xf]  ;;  %v3180_v37 = vld [vmem:[#allocation3 + $0x154] sm:$0xf] }
 0x155   : > { %v2697_v29 = vpop.permute.xlu0 %2696  ;;  %v1970_v30 = vld [vmem:[#allocation2 + $0x48] sm:$0xc] }
 0x156   : > { %3004 = vrot.lane.b32.xlu1 %v2959_v50, %s7087_s15  ;;  %2740 = vst.msk [vmem:[#allocation4 + $0x50] sm:$0xf] %vm2310_vm15, %v2697_v29  ;;  %v2703_v7 = vpop.permute.xlu1 %2702  ;;  %v713_v50 = vld [vmem:[#allocation2 + $0xa8] sm:$0xf] }
 0x157   : > { %3002 = vrot.lane.b32.xlu0 %v2958_v51, %s7087_s15  ;;  %2743 = vst.msk [vmem:[#allocation4 + $0x5c] sm:$0xf] %vm2310_vm15, %v2703_v7 }
 0x158   : > { %737 = vst.msk [vmem:[#allocation3 + $0x54] sm:$0xf] %vm461_vm0, %v713_v50 }
 0x15a   : > { %3008 = vrot.lane.b32.xlu1 %v2961_v63, %s7087_s15 }
 0x15b   : > { %3006 = vrot.lane.b32.xlu0 %v2960_v24, %s7087_s15  ;;  %v3171_v24 = vld [vmem:[#allocation3 + $0x120] sm:$0xf] }
 0x15d   : > { %v2701_v46 = vpop.permute.xlu0 %2700 }
 0x15e   : > { %3109 = vrot.lane.b32.xlu1 %v3076_v45, %s7084_s22  ;;  %2742 = vst.msk [vmem:[#allocation4 + $0x58] sm:$0xf] %vm2310_vm15, %v2701_v46  ;;  %v2707_v12 = vpop.permute.xlu1 %2706  ;;  %v3174_v45 = vld [vmem:[#allocation3 + $0x12c] sm:$0xf] }
 0x15f   : > { %3107 = vrot.lane.b32.xlu0 %v3075_v10, %s7084_s22  ;;  %2745 = vst.msk [vmem:[#allocation4 + $0x64] sm:$0xf] %vm2310_vm15, %v2707_v12  ;;  %v1971_v46 = vld [vmem:[#allocation2 + $0x4c] sm:$0x3]  ;;  %v6525_v12 = vrot.slane %v1970_v30, 10 }
 0x160   : > { %v2089_v8 = vrot.slane %v1971_v46, 6  ;;  %v3269_v30 = vld [vmem:[#allocation3 + $0x188] sm:$0xf]  ;;  %v3703_v4 = vld [vmem:[#allocation3 + $0x54] sm:$0xf] }
 0x161   : > { %v2705_v14 = vpop.permute.xlu0 %2704 }
 0x162   : > { %3113 = vrot.lane.b32.xlu1 %v3078_v11, %s7084_s22  ;;  %2744 = vst.msk [vmem:[#allocation4 + $0x60] sm:$0xf] %vm2310_vm15, %v2705_v14  ;;  %v2711_v17 = vpop.permute.xlu1 %2710  ;;  %v1968_v11 = vld [vmem:[#allocation2 + $0x40] sm:$0xc]  ;;  %v2090_v18 = vsel %vm7858_vm5, %v6525_v12, %v2089_v8  ;;  %v702_v12 = vld [vmem:[#allocation2 + $0x50] sm:$0xf] }
 0x163   : > { %3111 = vrot.lane.b32.xlu0 %v3077_v13, %s7084_s22  ;;  %2747 = vst.msk [vmem:[#allocation4 + $0x6c] sm:$0xf] %vm2310_vm15, %v2711_v17  ;;  %v1969_v13 = vld [vmem:[#allocation2 + $0x44] sm:$0x3]  ;;  %v6524_v14 = vrot.slane %v1968_v11, 10 }
 0x164   : > { %v2085_v16 = vrot.slane %v1969_v13, 6  ;;  %v3176_v17 = vld [vmem:[#allocation3 + $0x134] sm:$0xf]  ;;  %2181 = vst.msk [vmem:[#allocation3 + $0x1a4] sm:$0xf] %vm461_vm0, %v2090_v18 }
 0x165   : > { %v2709_v22 = vpop.permute.xlu0 %2708  ;;  %v6777_v49 = vpop.f32.mrf.mxu0  ;;  %v3272_v11 = vld [vmem:[#allocation3 + $0x194] sm:$0xf]  ;;  %726 = vst.msk [vmem:[#allocation3 + $0x28] sm:$0xf] %vm461_vm0, %v702_v12  ;;  %v3271_v13 = vld [vmem:[#allocation3 + $0x190] sm:$0xf] }
 0x166   : > { %3117 = vrot.lane.b32.xlu1 %v3080_v15, %s7084_s22  ;;  %2746 = vst.msk [vmem:[#allocation4 + $0x68] sm:$0xf] %vm2310_vm15, %v2709_v22  ;;  %v2715_v26 = vpop.permute.xlu1 %2714  ;;  %v4450_v52 = vadd.f32 %v6777_v49, %v8073_v44  ;;  %v2086_v21 = vsel %vm7858_vm5, %v6524_v14, %v2085_v16  ;;  %v3175_v22 = vld [vmem:[#allocation3 + $0x130] sm:$0xf]  ;;  %v3181_v49 = vld [vmem:[#allocation3 + $0x158] sm:$0xf] }
 0x167   : > { %3115 = vrot.lane.b32.xlu0 %v3079_v20, %s7084_s22  ;;  %2749 = vst.msk [vmem:[#allocation4 + $0x74] sm:$0xf] %vm2310_vm15, %v2715_v26  ;;  %v4444_v53 = vpop.f32.mrf.mxu0  ;;  %v3462_v12 = vld [vmem:[#allocation3 + $0x188] sm:$0xf] }
 0x168   : > { %4524 = vst.msk [vmem:[#allocation5 + $0x8] sm:$0xff] %vm4329_vm14, %v4450_v52  ;;  %v4445_v56 = vadd.f32 %v8073_v44, %v4444_v53  ;;  %v1995_v52 = vld [vmem:[#allocation2 + $0xac] sm:$0x3] }
 0x169   : > { %v2713_v32 = vpop.permute.xlu0 %2712  ;;  %v6780_v58 = vpop.f32.mrf.mxu0  ;;  %2180 = vst.msk [vmem:[#allocation3 + $0x1a0] sm:$0xf] %vm461_vm0, %v2086_v21  ;;  %v3275_v21 = vld [vmem:[#allocation3 + $0x1b0] sm:$0xf]  ;;  %3479 = vst.msk [vmem:[#allocation4 + $0xc4] sm:$0xf] %vm461_vm0, %v3462_v12 }
 0x16a   : > { %3121 = vrot.lane.b32.xlu1 %v3082_v25, %s7084_s22  ;;  %2748 = vst.msk [vmem:[#allocation4 + $0x70] sm:$0xf] %vm2310_vm15, %v2713_v32  ;;  %v4460_v60 = vadd.f32 %v6780_v58, %v8073_v44 }
 0x16b   : > { %3119 = vrot.lane.b32.xlu0 %v3081_v28, %s7084_s22  ;;  %v2719_v34 = vpop.permute.xlu1 %2718  ;;  %4523 = vst.msk [vmem:[#allocation5] sm:$0xff] %vm4329_vm14, %v4445_v56  ;;  %v4454_v63 = vpop.f32.mrf.mxu0  ;;  %v3178_v28 = vld [vmem:[#allocation3 + $0x13c] sm:$0xf]  ;;  %v1993_v56 = vld [vmem:[#allocation2 + $0xa4] sm:$0x3] }
 0x16c   : > { %2751 = vst.msk [vmem:[#allocation4 + $0x7c] sm:$0xf] %vm2310_vm15, %v2719_v34  ;;  %v4455_v39 = vadd.f32 %v8073_v44, %v4454_v63 }
 0x16d   : > { %v2717_v38 = vpop.permute.xlu0 %2716  ;;  %4526 = vst.msk [vmem:[#allocation5 + $0x18] sm:$0xff] %vm4329_vm14, %v4460_v60  ;;  %v3184_v60 = vld [vmem:[#allocation3 + $0x164] sm:$0xf] }
 0x16e   : > { %3125 = vrot.lane.b32.xlu1 %v3084_v33, %s7084_s22  ;;  %2750 = vst.msk [vmem:[#allocation4 + $0x78] sm:$0xf] %vm2310_vm15, %v2717_v38  ;;  %v3177_v33 = vld [vmem:[#allocation3 + $0x138] sm:$0xf] }
 0x16f   : > { %3123 = vrot.lane.b32.xlu0 %v3083_v36, %s7084_s22  ;;  %4525 = vst.msk [vmem:[#allocation5 + $0x10] sm:$0xff] %vm4329_vm14, %v4455_v39  ;;  %v3183_v39 = vld [vmem:[#allocation3 + $0x160] sm:$0xf] }
 0x170   : > { %v2788_v42 = vpop.permute.xlu1 %2787 }
 0x171   : > { %2834 = vst.msk [vmem:[#allocation4 + $0x44] sm:$0xf] %vm2408_vm1, %v2788_v42  ;;  %v2786_v47 = vpop.permute.xlu0 %2785 }
 0x172   : > { %3129 = vrot.lane.b32.xlu1 %v3086_v41, %s7084_s22  ;;  %2833 = vst.msk [vmem:[#allocation4 + $0x40] sm:$0xf] %vm2408_vm1, %v2786_v47 }
 0x173   : > { %3127 = vrot.lane.b32.xlu0 %v3085_v43, %s7084_s22  ;;  %v6783_v40 = vpop.f32.mrf.mxu0  ;;  %v3179_v43 = vld [vmem:[#allocation3 + $0x150] sm:$0xf] }
 0x174   : > { %v2792_v51 = vpop.permute.xlu1 %2791  ;;  %v4470_v29 = vadd.f32 %v6783_v40, %v8073_v44  ;;  %v3185_v40 = vld [vmem:[#allocation3 + $0x168] sm:$0xf] }
 0x175   : > { %2836 = vst.msk [vmem:[#allocation4 + $0x4c] sm:$0xf] %vm2408_vm1, %v2792_v51  ;;  %v2790_v54 = vpop.permute.xlu0 %2789  ;;  %v4464_v7 = vpop.f32.mrf.mxu0  ;;  %v1994_v51 = vld [vmem:[#allocation2 + $0xa8] sm:$0xc] }
 0x176   : > { %3133 = vrot.lane.b32.xlu1 %v3088_v48, %s7084_s22  ;;  %2835 = vst.msk [vmem:[#allocation4 + $0x48] sm:$0xf] %vm2408_vm1, %v2790_v54  ;;  %v4465_v10 = vadd.f32 %v8073_v44, %v4464_v7  ;;  %v3182_v48 = vld [vmem:[#allocation3 + $0x15c] sm:$0xf]  ;;  %v6537_v53 = vrot.slane %v1994_v51, 10  ;;  %v2137_v54 = vrot.slane %v1995_v52, 6 }
 0x177   : > { %3131 = vrot.lane.b32.xlu0 %v3087_v1, %s7084_s22  ;;  %4528 = vst.msk [vmem:[#allocation5 + $0x28] sm:$0xff] %vm4329_vm14, %v4470_v29  ;;  %v1992_v1 = vld [vmem:[#allocation2 + $0xa0] sm:$0xc]  ;;  %v3268_v29 = vld [vmem:[#allocation3 + $0x184] sm:$0xf] }
 0x178   : > { %v2796_v59 = vpop.permute.xlu1 %2795  ;;  %4527 = vst.msk [vmem:[#allocation5 + $0x20] sm:$0xff] %vm4329_vm14, %v4465_v10  ;;  %v6786_v20 = vpop.f32.mrf.mxu0  ;;  %v3367_v51 = vld [vmem:[#allocation3 + $0x10] sm:$0xf] }
 0x179   : > { %2838 = vst.msk [vmem:[#allocation4 + $0x54] sm:$0xf] %vm2408_vm1, %v2796_v59  ;;  %v2794_v23 = vpop.permute.xlu0 %2793  ;;  %v4480_v25 = vadd.f32 %v6786_v20, %v8073_v44  ;;  %v2133_v59 = vrot.slane %v1993_v56, 6 }
 0x17a   : > { %3137 = vrot.lane.b32.xlu1 %v3090_v57, %s7084_s22  ;;  %2837 = vst.msk [vmem:[#allocation4 + $0x50] sm:$0xf] %vm2408_vm1, %v2794_v23  ;;  %v4474_v27 = vpop.f32.mrf.mxu0  ;;  %v6536_v57 = vrot.slane %v1992_v1, 10  ;;  %v1972_v1 = vld [vmem:[#allocation2 + $0x50] sm:$0xc] }
 0x17b   : > { %3135 = vrot.lane.b32.xlu0 %v3089_v61, %s7084_s22  ;;  %4530 = vst.msk [vmem:[#allocation5 + $0x38] sm:$0xff] %vm4329_vm14, %v4480_v25  ;;  %v4475_v31 = vadd.f32 %v8073_v44, %v4474_v27  ;;  %v2138_v61 = vsel %vm7858_vm5, %v6537_v53, %v2137_v54  ;;  %v3278_v25 = vld [vmem:[#allocation3 + $0x1bc] sm:$0xf]  ;;  %v3277_v27 = vld [vmem:[#allocation3 + $0x1b8] sm:$0xf]  ;;  %v6526_v56 = vrot.slane %v1972_v1, 10 }
 0x17c   : > { %v2800_v2 = vpop.permute.xlu1 %2799  ;;  %2193 = vst.msk [vmem:[#allocation3 + $0x1d4] sm:$0xf] %vm461_vm0, %v2138_v61  ;;  %v2134_v23 = vsel %vm7858_vm5, %v6536_v57, %v2133_v59  ;;  %v1973_v53 = vld [vmem:[#allocation2 + $0x54] sm:$0x3]  ;;  %v3366_v54 = vld [vmem:[#allocation3 + $0xc] sm:$0xf] }
 0x17d   : > { %2840 = vst.msk [vmem:[#allocation4 + $0x5c] sm:$0xf] %vm2408_vm1, %v2800_v2  ;;  %v2798_v5 = vpop.permute.xlu0 %2797  ;;  %v3186_v2 = vld [vmem:[#allocation3 + $0x16c] sm:$0xf]  ;;  %v2093_v57 = vrot.slane %v1973_v53, 6 }
 0x17e   : > { %3205 = vrot.lane.b32.xlu1 %v3172_v0, %s7085_s27  ;;  %2839 = vst.msk [vmem:[#allocation4 + $0x58] sm:$0xf] %vm2408_vm1, %v2798_v5  ;;  %v763_v1 = vld [vmem:[#allocation2 + $0x5c] sm:$0x1]  ;;  %v3498_v53 = vld [vmem:[#allocation3 + $0x14] sm:$0xf] }
 0x17f   : > { %3203 = vrot.lane.b32.xlu0 %v3171_v24, %s7085_s27  ;;  %4529 = vst.msk [vmem:[#allocation5 + $0x30] sm:$0xff] %vm4329_vm14, %v4475_v31  ;;  %v3280_v31 = vld [vmem:[#allocation3 + $0x1c4] sm:$0xf]  ;;  %v2094_v61 = vsel %vm7858_vm5, %v6526_v56, %v2093_v57  ;;  %v955_v56 = vshll.u32 %v763_v1, 16  ;;  %v3593_v1 = vld [vmem:[#allocation3 + $0x18c] sm:$0xf] }
 0x180   : > { %v2804_v9 = vpop.permute.xlu1 %2803  ;;  %2192 = vst.msk [vmem:[#allocation3 + $0x1d0] sm:$0xf] %vm461_vm0, %v2134_v23  ;;  %2182 = vst.msk [vmem:[#allocation3 + $0x1a8] sm:$0xf] %vm461_vm0, %v2094_v61  ;;  %v3368_v23 = vld [vmem:[#allocation3 + $0x14] sm:$0xf] }
 0x181   : > { %2842 = vst.msk [vmem:[#allocation4 + $0x64] sm:$0xf] %vm2408_vm1, %v2804_v9  ;;  %v2802_v15 = vpop.permute.xlu0 %2801  ;;  %v3270_v9 = vld [vmem:[#allocation3 + $0x18c] sm:$0xf] }
 0x182   : > { %3209 = vrot.lane.b32.xlu1 %v3174_v45, %s7085_s27  ;;  %2841 = vst.msk [vmem:[#allocation4 + $0x60] sm:$0xf] %vm2408_vm1, %v2802_v15  ;;  %v3274_v15 = vld [vmem:[#allocation3 + $0x19c] sm:$0xf] }
 0x183   : > { %3207 = vrot.lane.b32.xlu0 %v3173_v6, %s7085_s27  ;;  %v3267_v6 = vld [vmem:[#allocation3 + $0x180] sm:$0xf] }
 0x184   : > { %v2808_v19 = vpop.permute.xlu1 %2807  ;;  %v6789_v34 = vpop.f32.mrf.mxu0 }
 0x185   : > { %2844 = vst.msk [vmem:[#allocation4 + $0x6c] sm:$0xf] %vm2408_vm1, %v2808_v19  ;;  %v2806_v26 = vpop.permute.xlu0 %2805  ;;  %v4490_v36 = vadd.f32 %v6789_v34, %v8073_v44  ;;  %v3276_v19 = vld [vmem:[#allocation3 + $0x1b4] sm:$0xf]  ;;  %v3279_v34 = vld [vmem:[#allocation3 + $0x1c0] sm:$0xf] }
 0x186   : > { %3213 = vrot.lane.b32.xlu1 %v3176_v17, %s7085_s27  ;;  %2843 = vst.msk [vmem:[#allocation4 + $0x68] sm:$0xf] %vm2408_vm1, %v2806_v26  ;;  %v4484_v38 = vpop.f32.mrf.mxu0  ;;  %v3273_v17 = vld [vmem:[#allocation3 + $0x198] sm:$0xf] }
 0x187   : > { %3211 = vrot.lane.b32.xlu0 %v3175_v22, %s7085_s27  ;;  %4532 = vst.msk [vmem:[#allocation5 + $0x48] sm:$0xff] %vm4329_vm14, %v4490_v36  ;;  %v4485_v42 = vadd.f32 %v8073_v44, %v4484_v38  ;;  %v3282_v36 = vld [vmem:[#allocation3 + $0x1cc] sm:$0xf]  ;;  %v3281_v38 = vld [vmem:[#allocation3 + $0x1c8] sm:$0xf] }
 0x188   : > { %v2812_v32 = vpop.permute.xlu1 %2811  ;;  %v3606_v55 = vld [vmem:[#allocation3 + $0x1d0] sm:$0xf] }
 0x189   : > { %2846 = vst.msk [vmem:[#allocation4 + $0x74] sm:$0xf] %vm2408_vm1, %v2812_v32  ;;  %v2810_v35 = vpop.permute.xlu0 %2809  ;;  %v714_v32 = vld [vmem:[#allocation2 + $0xb0] sm:$0xf] }
 0x18a   : > { %3217 = vrot.lane.b32.xlu1 %v3178_v28, %s7085_s27  ;;  %2845 = vst.msk [vmem:[#allocation4 + $0x70] sm:$0xf] %vm2408_vm1, %v2810_v35 }
 0x18b   : > { %3215 = vrot.lane.b32.xlu0 %v3177_v33, %s7085_s27  ;;  %4531 = vst.msk [vmem:[#allocation5 + $0x40] sm:$0xff] %vm4329_vm14, %v4485_v42 }
 0x18c   : > { %v2816_v41 = vpop.permute.xlu1 %2815  ;;  %738 = vst.msk [vmem:[#allocation3 + $0x58] sm:$0xf] %vm461_vm0, %v714_v32 }
 0x18d   : > { %2848 = vst.msk [vmem:[#allocation4 + $0x7c] sm:$0xf] %vm2408_vm1, %v2816_v41  ;;  %v2814_v47 = vpop.permute.xlu0 %2813 }
 0x18e   : > { %3221 = vrot.lane.b32.xlu1 %v3180_v37, %s7085_s27  ;;  %2847 = vst.msk [vmem:[#allocation4 + $0x78] sm:$0xf] %vm2408_vm1, %v2814_v47 }
 0x18f   : > { %3219 = vrot.lane.b32.xlu0 %v3179_v43, %s7085_s27  ;;  %v3365_v43 = vld [vmem:[#allocation3 + $0x8] sm:$0xf] }
 0x190   : > { %v2885_v50 = vpop.permute.xlu1 %2884 }
 0x191   : > { %2931 = vst.msk [vmem:[#allocation4 + $0x44] sm:$0xf] %vm2506_vm2, %v2885_v50  ;;  %v2883_v58 = vpop.permute.xlu0 %2882 }
 0x192   : > { %3225 = vrot.lane.b32.xlu1 %v3182_v48, %s7085_s27  ;;  %2930 = vst.msk [vmem:[#allocation4 + $0x40] sm:$0xf] %vm2506_vm2, %v2883_v58  ;;  %v3364_v48 = vld [vmem:[#allocation3 + $0x4] sm:$0xf] }
 0x193   : > { %3223 = vrot.lane.b32.xlu0 %v3181_v49, %s7085_s27 }
 0x194   : > { %v2889_v63 = vpop.permute.xlu1 %2888 }
 0x195   : > { %2933 = vst.msk [vmem:[#allocation4 + $0x4c] sm:$0xf] %vm2506_vm2, %v2889_v63  ;;  %v2887_v0 = vpop.permute.xlu0 %2886 }
 0x196   : > { %3229 = vrot.lane.b32.xlu1 %v3184_v60, %s7085_s27  ;;  %2932 = vst.msk [vmem:[#allocation4 + $0x48] sm:$0xf] %vm2506_vm2, %v2887_v0  ;;  %v3369_v60 = vld [vmem:[#allocation3 + $0x18] sm:$0xf] }
 0x197   : > { %3227 = vrot.lane.b32.xlu0 %v3183_v39, %s7085_s27 }
 0x198   : > { %v2893_v24 = vpop.permute.xlu1 %2892 }
 0x199   : > { %2935 = vst.msk [vmem:[#allocation4 + $0x54] sm:$0xf] %vm2506_vm2, %v2893_v24  ;;  %v2891_v5 = vpop.permute.xlu0 %2890 }
 0x19a   : > { %3233 = vrot.lane.b32.xlu1 %v3186_v2, %s7085_s27  ;;  %2934 = vst.msk [vmem:[#allocation4 + $0x50] sm:$0xf] %vm2506_vm2, %v2891_v5  ;;  %v3371_v2 = vld [vmem:[#allocation3 + $0x20] sm:$0xf] }
 0x19b   : > { %3231 = vrot.lane.b32.xlu0 %v3185_v40, %s7085_s27  ;;  %v3370_v40 = vld [vmem:[#allocation3 + $0x1c] sm:$0xf] }
 0x19c   : > { %v2897_v45 = vpop.permute.xlu1 %2896 }
 0x19d   : > { %2937 = vst.msk [vmem:[#allocation4 + $0x5c] sm:$0xf] %vm2506_vm2, %v2897_v45  ;;  %v2895_v7 = vpop.permute.xlu0 %2894  ;;  %v3373_v45 = vld [vmem:[#allocation3 + $0x38] sm:$0xf] }
 0x19e   : > { %3301 = vrot.lane.b32.xlu1 %v3268_v29, %s7086_s28  ;;  %2936 = vst.msk [vmem:[#allocation4 + $0x58] sm:$0xf] %vm2506_vm2, %v2895_v7  ;;  %v3372_v7 = vld [vmem:[#allocation3 + $0x34] sm:$0xf] }
 0x19f   : > { %3299 = vrot.lane.b32.xlu0 %v3267_v6, %s7086_s28 }
 0x1a0   : > { %v2901_v10 = vpop.permute.xlu1 %2900 }
 0x1a1   : > { %2939 = vst.msk [vmem:[#allocation4 + $0x64] sm:$0xf] %vm2506_vm2, %v2901_v10  ;;  %v2899_v46 = vpop.permute.xlu0 %2898 }
 0x1a2   : > { %3305 = vrot.lane.b32.xlu1 %v3270_v9, %s7086_s28  ;;  %2938 = vst.msk [vmem:[#allocation4 + $0x60] sm:$0xf] %vm2506_vm2, %v2899_v46  ;;  %v3374_v46 = vld [vmem:[#allocation3 + $0x3c] sm:$0xf] }
 0x1a3   : > { %3303 = vrot.lane.b32.xlu0 %v3269_v30, %s7086_s28  ;;  %v3375_v30 = vld [vmem:[#allocation3 + $0x40] sm:$0xf] }
 0x1a4   : > { %v2905_v8 = vpop.permute.xlu1 %2904 }
 0x1a5   : > { %2941 = vst.msk [vmem:[#allocation4 + $0x6c] sm:$0xf] %vm2506_vm2, %v2905_v8  ;;  %v2903_v14 = vpop.permute.xlu0 %2902  ;;  %v1996_v8 = vld [vmem:[#allocation2 + $0xb0] sm:$0xc] }
 0x1a6   : > { %3309 = vrot.lane.b32.xlu1 %v3272_v11, %s7086_s28  ;;  %2940 = vst.msk [vmem:[#allocation4 + $0x68] sm:$0xf] %vm2506_vm2, %v2903_v14  ;;  %v1997_v14 = vld [vmem:[#allocation2 + $0xb4] sm:$0x3] }
 0x1a7   : > { %3307 = vrot.lane.b32.xlu0 %v3271_v13, %s7086_s28  ;;  %v3461_v13 = vld [vmem:[#allocation3 + $0x184] sm:$0xf] }
 0x1a8   : > { %v2909_v16 = vpop.permute.xlu1 %2908  ;;  %3478 = vst.msk [vmem:[#allocation4 + $0xc0] sm:$0xf] %vm461_vm0, %v3461_v13 }
 0x1a9   : > { %2943 = vst.msk [vmem:[#allocation4 + $0x74] sm:$0xf] %vm2506_vm2, %v2909_v16  ;;  %v2907_v18 = vpop.permute.xlu0 %2906 }
 0x1aa   : > { %3313 = vrot.lane.b32.xlu1 %v3274_v15, %s7086_s28  ;;  %2942 = vst.msk [vmem:[#allocation4 + $0x70] sm:$0xf] %vm2506_vm2, %v2907_v18  ;;  %v6538_v15 = vrot.slane %v1996_v8, 10  ;;  %v2141_v18 = vrot.slane %v1997_v14, 6  ;;  %v3476_v14 = vld [vmem:[#allocation3 + $0x1d0] sm:$0xf] }
 0x1ab   : > { %3311 = vrot.lane.b32.xlu0 %v3273_v17, %s7086_s28  ;;  %3493 = vst.msk [vmem:[#allocation4 + $0xfc] sm:$0xf] %vm461_vm0, %v3476_v14  ;;  %v3603_v14 = vld [vmem:[#allocation3 + $0x1c4] sm:$0xf] }
 0x1ac   : > { %v2913_v20 = vpop.permute.xlu1 %2912 }
 0x1ad   : > { %2945 = vst.msk [vmem:[#allocation4 + $0x7c] sm:$0xf] %vm2506_vm2, %v2913_v20  ;;  %v2911_v22 = vpop.permute.xlu0 %2910 }
 0x1ae   : > { %3317 = vrot.lane.b32.xlu1 %v3276_v19, %s7086_s28  ;;  %2944 = vst.msk [vmem:[#allocation4 + $0x78] sm:$0xf] %vm2506_vm2, %v2911_v22  ;;  %v3377_v19 = vld [vmem:[#allocation3 + $0x48] sm:$0xf]  ;;  %v2142_v22 = vsel %vm7858_vm5, %v6538_v15, %v2141_v18  ;;  %v3503_v15 = vld [vmem:[#allocation3 + $0x38] sm:$0xf] }
 0x1af   : > { %3315 = vrot.lane.b32.xlu0 %v3275_v21, %s7086_s28  ;;  %v3464_v21 = vld [vmem:[#allocation3 + $0x190] sm:$0xf]  ;;  %2194 = vst.msk [vmem:[#allocation3 + $0x1d8] sm:$0xf] %vm461_vm0, %v2142_v22 }
 0x1b0   : > { %v2981_v26 = vpop.permute.xlu1 %2980  ;;  %3481 = vst.msk [vmem:[#allocation4 + $0xcc] sm:$0xf] %vm461_vm0, %v3464_v21  ;;  %v3506_v21 = vld [vmem:[#allocation3 + $0x44] sm:$0xf] }
 0x1b1   : > { %3027 = vst.msk [vmem:[#allocation4 + $0x44] sm:$0xf] %vm2604_vm6, %v2981_v26  ;;  %v2979_v28 = vpop.permute.xlu0 %2978  ;;  %v3463_v26 = vld [vmem:[#allocation3 + $0x18c] sm:$0xf] }
 0x1b2   : > { %3321 = vrot.lane.b32.xlu1 %v3278_v25, %s7086_s28  ;;  %3026 = vst.msk [vmem:[#allocation4 + $0x40] sm:$0xf] %vm2604_vm6, %v2979_v28  ;;  %v3376_v25 = vld [vmem:[#allocation3 + $0x44] sm:$0xf] }
 0x1b3   : > { %3319 = vrot.lane.b32.xlu0 %v3277_v27, %s7086_s28  ;;  %3480 = vst.msk [vmem:[#allocation4 + $0xc8] sm:$0xf] %vm461_vm0, %v3463_v26 }
 0x1b4   : > { %v2985_v33 = vpop.permute.xlu1 %2984 }
 0x1b5   : > { %3029 = vst.msk [vmem:[#allocation4 + $0x4c] sm:$0xf] %vm2604_vm6, %v2985_v33  ;;  %v2983_v35 = vpop.permute.xlu0 %2982  ;;  %v3466_v33 = vld [vmem:[#allocation3 + $0x198] sm:$0xf] }
 0x1b6   : > { %3325 = vrot.lane.b32.xlu1 %v3280_v31, %s7086_s28  ;;  %3028 = vst.msk [vmem:[#allocation4 + $0x48] sm:$0xf] %vm2604_vm6, %v2983_v35  ;;  %v3379_v31 = vld [vmem:[#allocation3 + $0x50] sm:$0xf]  ;;  %v3465_v35 = vld [vmem:[#allocation3 + $0x194] sm:$0xf] }
 0x1b7   : > { %3323 = vrot.lane.b32.xlu0 %v3279_v34, %s7086_s28  ;;  %v3378_v34 = vld [vmem:[#allocation3 + $0x4c] sm:$0xf]  ;;  %3483 = vst.msk [vmem:[#allocation4 + $0xd4] sm:$0xf] %vm461_vm0, %v3466_v33  ;;  %3482 = vst.msk [vmem:[#allocation4 + $0xd0] sm:$0xf] %vm461_vm0, %v3465_v35 }
 0x1b8   : > { %v2989_v37 = vpop.permute.xlu1 %2988  ;;  %v3508_v33 = vld [vmem:[#allocation3 + $0x4c] sm:$0xf]  ;;  %v3801_v62 = vld [vmem:[#allocation3 + $0x1d8] sm:$0xf] }
 0x1b9   : > { %3031 = vst.msk [vmem:[#allocation4 + $0x54] sm:$0xf] %vm2604_vm6, %v2989_v37  ;;  %v2987_v41 = vpop.permute.xlu0 %2986  ;;  %v7012_v42 = vld [vmem:[#allocation4 + $0x40] sm:$0xff]   ;;  %v762_v37 = vld [vmem:[#allocation2 + $0x58] sm:$0xf] }
 0x1ba   : > { %3329 = vrot.lane.b32.xlu1 %v3282_v36, %s7086_s28  ;;  %3030 = vst.msk [vmem:[#allocation4 + $0x50] sm:$0xf] %vm2604_vm6, %v2987_v41  ;;  %6807 = vmatprep.mubr.msk.bf16.mxu1 %vm4653_vm9, %v7012_v42  ;;  %v946_v41 = vshrl.u32 %v762_v37, 16  ;;  %v949_v42 = vshll.u32 %v762_v37, 16  ;;  %v3507_v37 = vld [vmem:[#allocation3 + $0x48] sm:$0xf] }
 0x1bb   : > { %3327 = vrot.lane.b32.xlu0 %v3281_v38, %s7086_s28  ;;  %v3496_v38 = vld [vmem:[#allocation3 + $0xc] sm:$0xf] }
 0x1bc   : > { %v2993_v47 = vpop.permute.xlu1 %2992 }
 0x1bd   : > { %3033 = vst.msk [vmem:[#allocation4 + $0x5c] sm:$0xf] %vm2604_vm6, %v2993_v47  ;;  %v2991_v49 = vpop.permute.xlu0 %2990  ;;  %v7013_v50 = vld [vmem:[#allocation4 + $0x48] sm:$0xff]   ;;  %v3468_v47 = vld [vmem:[#allocation3 + $0x1a0] sm:$0xf] }
 0x1be   : > { %3398 = vrot.lane.b32.xlu1 %v3365_v43, %s7087_s15  ;;  %3032 = vst.msk [vmem:[#allocation4 + $0x58] sm:$0xf] %vm2604_vm6, %v2991_v49  ;;  %6808 = vmatmul.mubr.msk.bf16.vlgmr.msra.gmra.mxu1 %vm4653_vm9, %v7013_v50  ;;  %v3467_v49 = vld [vmem:[#allocation3 + $0x19c] sm:$0xf]  ;;  %v948_v50 = vrot.slane %v946_v41, 4 }
 0x1bf   : > { %3396 = vrot.lane.b32.xlu0 %v3364_v48, %s7087_s15  ;;  %v3495_v48 = vld [vmem:[#allocation3 + $0x8] sm:$0xf]  ;;  %3485 = vst.msk [vmem:[#allocation4 + $0xdc] sm:$0xf] %vm461_vm0, %v3468_v47  ;;  %3484 = vst.msk [vmem:[#allocation4 + $0xd8] sm:$0xf] %vm461_vm0, %v3467_v49 }
 0x1c0   : > { %v2997_v52 = vpop.permute.xlu1 %2996  ;;  %v3509_v49 = vld [vmem:[#allocation3 + $0x50] sm:$0xf] }
 0x1c1   : > { %3035 = vst.msk [vmem:[#allocation4 + $0x64] sm:$0xf] %vm2604_vm6, %v2997_v52  ;;  %v2995_v58 = vpop.permute.xlu0 %2994  ;;  %v7014_v59 = vld [vmem:[#allocation4 + $0x50] sm:$0xff]  }
 0x1c2   : > { %3402 = vrot.lane.b32.xlu1 %v3367_v51, %s7087_s15  ;;  %3034 = vst.msk [vmem:[#allocation4 + $0x60] sm:$0xf] %vm2604_vm6, %v2995_v58  ;;  %6811 = vmatprep.mubr.msk.bf16.mxu1 %vm4653_vm9, %v7014_v59  ;;  %v951_v51 = vrot.slane %v949_v42, 5  ;;  %v3470_v58 = vld [vmem:[#allocation3 + $0x1b8] sm:$0xf] }
 0x1c3   : > { %3400 = vrot.lane.b32.xlu0 %v3366_v54, %s7087_s15  ;;  %v3497_v59 = vld [vmem:[#allocation3 + $0x10] sm:$0xf]  ;;  %3487 = vst.msk [vmem:[#allocation4 + $0xe4] sm:$0xf] %vm461_vm0, %v3470_v58 }
 0x1c4   : > { %v3001_v63 = vpop.permute.xlu1 %3000  ;;  %v952_v54 = vor.u32 %v951_v51, %v948_v50 }
 0x1c5   : > { %3037 = vst.msk [vmem:[#allocation4 + $0x6c] sm:$0xf] %vm2604_vm6, %v3001_v63  ;;  %v2999_v39 = vpop.permute.xlu0 %2998  ;;  %v7015_v0 = vld [vmem:[#allocation4 + $0x58] sm:$0xff]   ;;  %v957_v63 = vrot.slane %v955_v56, 5  ;;  %v3592_v56 = vld [vmem:[#allocation3 + $0x188] sm:$0xf] }
 0x1c6   : > { %3406 = vrot.lane.b32.xlu1 %v3369_v60, %s7087_s15  ;;  %3036 = vst.msk [vmem:[#allocation4 + $0x68] sm:$0xf] %vm2604_vm6, %v2999_v39  ;;  %6812 = vmatmul.mubr.msk.bf16.gmra.mxu1 %vm4653_vm9, %v7015_v0  ;;  %v3469_v60 = vld [vmem:[#allocation3 + $0x1b4] sm:$0xf]  ;;  %v953_v61 = vrot.slane %v952_v54, 4 }
 0x1c7   : > { %3404 = vrot.lane.b32.xlu0 %v3368_v23, %s7087_s15  ;;  %3486 = vst.msk [vmem:[#allocation4 + $0xe0] sm:$0xf] %vm461_vm0, %v3469_v60  ;;  %v3500_v39 = vld [vmem:[#allocation3 + $0x1c] sm:$0xf]  ;;  %v3595_v60 = vld [vmem:[#allocation3 + $0x194] sm:$0xf] }
 0x1c8   : > { %v3005_v24 = vpop.permute.xlu1 %3004  ;;  %v958_v0 = vsel %vm7363_vm7, %v953_v61, %v957_v63 }
 0x1c9   : > { %3039 = vst.msk [vmem:[#allocation4 + $0x74] sm:$0xf] %vm2604_vm6, %v3005_v24  ;;  %v3003_v5 = vpop.permute.xlu0 %3002  ;;  %v7016_v29 = vld [vmem:[#allocation4 + $0x60] sm:$0xff]  }
 0x1ca   : > { %3410 = vrot.lane.b32.xlu1 %v3371_v2, %s7087_s15  ;;  %3038 = vst.msk [vmem:[#allocation4 + $0x70] sm:$0xf] %vm2604_vm6, %v3003_v5  ;;  %6815 = vmatprep.mubr.msk.bf16.mxu1 %vm4653_vm9, %v7016_v29  ;;  %v3472_v24 = vld [vmem:[#allocation3 + $0x1c0] sm:$0xf]  ;;  %v3471_v5 = vld [vmem:[#allocation3 + $0x1bc] sm:$0xf] }
 0x1cb   : > { %3408 = vrot.lane.b32.xlu0 %v3370_v40, %s7087_s15  ;;  %1163 = vst.msk [vmem:[#allocation3 + $0x8c] sm:$0xf] %vm461_vm0, %v958_v0  ;;  %v3499_v40 = vld [vmem:[#allocation3 + $0x18] sm:$0xf]  ;;  %3489 = vst.msk [vmem:[#allocation4 + $0xec] sm:$0xf] %vm461_vm0, %v3472_v24 }
 0x1cc   : > { %v3009_v6 = vpop.permute.xlu1 %3008  ;;  %3488 = vst.msk [vmem:[#allocation4 + $0xe8] sm:$0xf] %vm461_vm0, %v3471_v5  ;;  %v1199_v0 = vld [vmem:[#allocation2 + $0x5c] sm:$0x1] }
 0x1cd   : > { %3041 = vst.msk [vmem:[#allocation4 + $0x7c] sm:$0xf] %vm2604_vm6, %v3009_v6  ;;  %v3007_v9 = vpop.permute.xlu0 %3006  ;;  %v7017_v10 = vld [vmem:[#allocation4 + $0x68] sm:$0xff]  }
 0x1ce   : > { %3414 = vrot.lane.b32.xlu1 %v3373_v45, %s7087_s15  ;;  %3040 = vst.msk [vmem:[#allocation4 + $0x78] sm:$0xf] %vm2604_vm6, %v3007_v9  ;;  %6816 = vmatmul.mubr.msk.bf16.gmra.mxu1 %vm4653_vm9, %v7017_v10  ;;  %v3502_v45 = vld [vmem:[#allocation3 + $0x24] sm:$0xf]  ;;  %v3501_v9 = vld [vmem:[#allocation3 + $0x20] sm:$0xf] }
 0x1cf   : > { %3412 = vrot.lane.b32.xlu0 %v3372_v7, %s7087_s15  ;;  %v3474_v7 = vld [vmem:[#allocation3 + $0x1c8] sm:$0xf]  ;;  %v3473_v10 = vld [vmem:[#allocation3 + $0x1c4] sm:$0xf] }
 0x1d0   : > { %v3110_v11 = vpop.permute.xlu1 %3109  ;;  %3491 = vst.msk [vmem:[#allocation4 + $0xf4] sm:$0xf] %vm461_vm0, %v3474_v7  ;;  %3490 = vst.msk [vmem:[#allocation4 + $0xf0] sm:$0xf] %vm461_vm0, %v3473_v10 }
 0x1d1   : > { %3156 = vst.msk [vmem:[#allocation4 + $0x84] sm:$0xf] %vm2310_vm15, %v3110_v11  ;;  %v3108_v16 = vpop.permute.xlu0 %3107  ;;  %v7018_v17 = vld [vmem:[#allocation4 + $0x70] sm:$0xff]   ;;  %v3504_v11 = vld [vmem:[#allocation3 + $0x3c] sm:$0xf] }
 0x1d2   : > { %3418 = vrot.lane.b32.xlu1 %v3375_v30, %s7087_s15  ;;  %3155 = vst.msk [vmem:[#allocation4 + $0x80] sm:$0xf] %vm2310_vm15, %v3108_v16  ;;  %6819 = vmatprep.mubr.msk.bf16.mxu1 %vm4653_vm9, %v7018_v17  ;;  %v3475_v16 = vld [vmem:[#allocation3 + $0x1cc] sm:$0xf] }
 0x1d3   : > { %3416 = vrot.lane.b32.xlu0 %v3374_v46, %s7087_s15  ;;  %v786_v46 = vld [vmem:[#allocation2 + $0xb8] sm:$0xf]  ;;  %3492 = vst.msk [vmem:[#allocation4 + $0xf8] sm:$0xf] %vm461_vm0, %v3475_v16 }
 0x1d4   : > { %v3114_v20 = vpop.permute.xlu1 %3113  ;;  %v1114_v12 = vshrl.u32 %v786_v46, 16  ;;  %v1117_v8 = vshll.u32 %v786_v46, 16  ;;  %v1222_v16 = vld [vmem:[#allocation2 + $0xb8] sm:$0xe] }
 0x1d5   : > { %3158 = vst.msk [vmem:[#allocation4 + $0x8c] sm:$0xf] %vm2310_vm15, %v3114_v20  ;;  %v3112_v27 = vpop.permute.xlu0 %3111  ;;  %v7019_v28 = vld [vmem:[#allocation4 + $0x78] sm:$0xff]  }
 0x1d6   : > { %3422 = vrot.lane.b32.xlu1 %v3377_v19, %s7087_s15  ;;  %3157 = vst.msk [vmem:[#allocation4 + $0x88] sm:$0xf] %vm2310_vm15, %v3112_v27  ;;  %6820 = vmatmul.mubr.msk.bf16.gmra.mxu1 %vm4653_vm9, %v7019_v28  ;;  %v1116_v17 = vrot.slane %v1114_v12, 4  ;;  %v1119_v18 = vrot.slane %v1117_v8, 5  ;;  %v787_v20 = vld [vmem:[#allocation2 + $0xbc] sm:$0x1] }
 0x1d7   : > { %3420 = vrot.lane.b32.xlu0 %v3376_v25, %s7087_s15  ;;  %v1123_v25 = vshll.u32 %v787_v20, 16  ;;  %v3505_v27 = vld [vmem:[#allocation3 + $0x40] sm:$0xf]  ;;  %v3600_v8 = vld [vmem:[#allocation3 + $0x1b8] sm:$0xf] }
 0x1d8   : > { %v3118_v32 = vpop.permute.xlu1 %3117  ;;  %v1120_v22 = vor.u32 %v1119_v18, %v1116_v17  ;;  %v1223_v17 = vld [vmem:[#allocation2 + $0xbc] sm:$0x1]  ;;  %v3602_v18 = vld [vmem:[#allocation3 + $0x1c0] sm:$0xf] }
 0x1d9   : > { %3160 = vst.msk [vmem:[#allocation4 + $0x94] sm:$0xf] %vm2310_vm15, %v3118_v32  ;;  %v3116_v36 = vpop.permute.xlu0 %3115  ;;  %v1369_v20 = vrot.slane %v1223_v17, 5 }
 0x1da   : > { %3426 = vrot.lane.b32.xlu1 %v3379_v31, %s7087_s15  ;;  %3159 = vst.msk [vmem:[#allocation4 + $0x90] sm:$0xf] %vm2310_vm15, %v3116_v36  ;;  %v1121_v28 = vrot.slane %v1120_v22, 4  ;;  %v1125_v31 = vrot.slane %v1123_v25, 5  ;;  %v3605_v22 = vld [vmem:[#allocation3 + $0x1cc] sm:$0xf] }
 0x1db   : > { %3424 = vrot.lane.b32.xlu0 %v3378_v34, %s7087_s15 }
 0x1dc   : > { %v3122_v43 = vpop.permute.xlu1 %3121  ;;  %v1126_v34 = vsel %vm7363_vm7, %v1121_v28, %v1125_v31  ;;  %v6792_v36 = vpop.f32.mrf.mxu1  ;;  %v3607_v31 = vld [vmem:[#allocation3 + $0x1d4] sm:$0xf] }
 0x1dd   : > { %3162 = vst.msk [vmem:[#allocation4 + $0x9c] sm:$0xf] %vm2310_vm15, %v3122_v43  ;;  %v3120_v52 = vpop.permute.xlu0 %3119  ;;  %v3510_v43 = vld [vmem:[#allocation3 + $0x54] sm:$0xf] }
 0x1de   : > { %3529 = vrot.lane.b32.xlu1 %v3496_v38, %s7084_s22  ;;  %3161 = vst.msk [vmem:[#allocation4 + $0x98] sm:$0xf] %vm2310_vm15, %v3120_v52  ;;  %v4500_v38 = vadd.f32 %v6792_v36, %v8073_v44  ;;  %v4494_v42 = vpop.f32.mrf.mxu1 }
 0x1df   : > { %3527 = vrot.lane.b32.xlu0 %v3495_v48, %s7084_s22  ;;  %1175 = vst.msk [vmem:[#allocation3 + $0xbc] sm:$0xf] %vm461_vm0, %v1126_v34  ;;  %v4495_v3 = vadd.f32 %v8073_v44, %v4494_v42  ;;  %v1442_v34 = vld [vmem:[#allocation2 + $0x58] sm:$0xe]  ;;  %v3689_v42 = vld [vmem:[#allocation3 + $0xc] sm:$0xf] }
 0x1e0   : > { %v3126_v57 = vpop.permute.xlu1 %3125  ;;  %4534 = vst.msk [vmem:[#allocation5 + $0x58] sm:$0xff] %vm4329_vm14, %v4500_v38  ;;  %v1670_v36 = vshrl.u32 %v1442_v34, 16 }
 0x1e1   : > { %3164 = vst.msk [vmem:[#allocation4 + $0xa4] sm:$0xf] %vm2310_vm15, %v3126_v57  ;;  %v3124_v23 = vpop.permute.xlu0 %3123 }
 0x1e2   : > { %3533 = vrot.lane.b32.xlu1 %v3498_v53, %s7084_s22  ;;  %3163 = vst.msk [vmem:[#allocation4 + $0xa0] sm:$0xf] %vm2310_vm15, %v3124_v23  ;;  %v6795_v48 = vpop.f32.mrf.mxu1 }
 0x1e3   : > { %3531 = vrot.lane.b32.xlu0 %v3497_v59, %s7084_s22  ;;  %4533 = vst.msk [vmem:[#allocation5 + $0x50] sm:$0xff] %vm4329_vm14, %v4495_v3  ;;  %v4510_v50 = vadd.f32 %v6795_v48, %v8073_v44 }
 0x1e4   : > { %v3130_v2 = vpop.permute.xlu1 %3129  ;;  %v4504_v52 = vpop.f32.mrf.mxu1 }
 0x1e5   : > { %3166 = vst.msk [vmem:[#allocation4 + $0xac] sm:$0xf] %vm2310_vm15, %v3130_v2  ;;  %v3128_v29 = vpop.permute.xlu0 %3127  ;;  %v4505_v53 = vadd.f32 %v8073_v44, %v4504_v52  ;;  %v3594_v2 = vld [vmem:[#allocation3 + $0x190] sm:$0xf] }
 0x1e6   : > { %3537 = vrot.lane.b32.xlu1 %v3500_v39, %s7084_s22  ;;  %3165 = vst.msk [vmem:[#allocation4 + $0xa8] sm:$0xf] %vm2310_vm15, %v3128_v29  ;;  %v6798_v57 = vpop.f32.mrf.mxu1  ;;  %v1198_v39 = vld [vmem:[#allocation2 + $0x58] sm:$0xe]  ;;  %v3597_v29 = vld [vmem:[#allocation3 + $0x19c] sm:$0xf] }
 0x1e7   : > { %3535 = vrot.lane.b32.xlu0 %v3499_v40, %s7084_s22  ;;  %4536 = vst.msk [vmem:[#allocation5 + $0x68] sm:$0xff] %vm4329_vm14, %v4510_v50  ;;  %4535 = vst.msk [vmem:[#allocation5 + $0x60] sm:$0xff] %vm4329_vm14, %v4505_v53  ;;  %v4520_v59 = vadd.f32 %v6798_v57, %v8073_v44  ;;  %v6503_v24 = vrot.slane %v1198_v39, 9  ;;  %v1321_v40 = vrot.slane %v1199_v0, 5  ;;  %v3692_v50 = vld [vmem:[#allocation3 + $0x18] sm:$0xf] }
 0x1e8   : > { %v3134_v6 = vpop.permute.xlu1 %3133  ;;  %v4514_v61 = vpop.f32.mrf.mxu1  ;;  %v3696_v39 = vld [vmem:[#allocation3 + $0x28] sm:$0xf] }
 0x1e9   : > { %3168 = vst.msk [vmem:[#allocation4 + $0xb4] sm:$0xf] %vm2310_vm15, %v3134_v6  ;;  %v3132_v30 = vpop.permute.xlu0 %3131  ;;  %v4515_v23 = vadd.f32 %v8073_v44, %v4514_v61  ;;  %v3596_v6 = vld [vmem:[#allocation3 + $0x198] sm:$0xf] }
 0x1ea   : > { %3541 = vrot.lane.b32.xlu1 %v3502_v45, %s7084_s22  ;;  %3167 = vst.msk [vmem:[#allocation4 + $0xb0] sm:$0xf] %vm2310_vm15, %v3132_v30  ;;  %v1322_v45 = vsel %vm7434_vm10, %v6503_v24, %v1321_v40  ;;  %v3598_v30 = vld [vmem:[#allocation3 + $0x1a0] sm:$0xf]  ;;  %v1466_v40 = vld [vmem:[#allocation2 + $0xb8] sm:$0xe] }
 0x1eb   : > { %3539 = vrot.lane.b32.xlu0 %v3501_v9, %s7084_s22  ;;  %4538 = vst.msk [vmem:[#allocation5 + $0x78] sm:$0xff] %vm4329_vm14, %v4520_v59  ;;  %4537 = vst.msk [vmem:[#allocation5 + $0x70] sm:$0xff] %vm4329_vm14, %v4515_v23  ;;  %v3599_v9 = vld [vmem:[#allocation3 + $0x1a4] sm:$0xf]  ;;  %v3694_v59 = vld [vmem:[#allocation3 + $0x20] sm:$0xf] }
 0x1ec   : > { %v3138_v13 = vpop.permute.xlu1 %3137  ;;  %1407 = vst.msk [vmem:[#allocation3 + $0xec] sm:$0xf] %vm461_vm0, %v1322_v45  ;;  %v1889_v45 = vshll.u32 %v1466_v40, 16 }
 0x1ed   : > { %3170 = vst.msk [vmem:[#allocation4 + $0xbc] sm:$0xf] %vm2310_vm15, %v3138_v13  ;;  %v3136_v19 = vpop.permute.xlu0 %3135 }
 0x1ee   : > { %3545 = vrot.lane.b32.xlu1 %v3504_v11, %s7084_s22  ;;  %3169 = vst.msk [vmem:[#allocation4 + $0xb8] sm:$0xf] %vm2310_vm15, %v3136_v19  ;;  %v3601_v11 = vld [vmem:[#allocation3 + $0x1bc] sm:$0xf]  ;;  %v6515_v19 = vrot.slane %v1222_v16, 9 }
 0x1ef   : > { %3543 = vrot.lane.b32.xlu0 %v3503_v15, %s7084_s22  ;;  %v3699_v16 = vld [vmem:[#allocation3 + $0x44] sm:$0xf] }
 0x1f0   : > { %v3206_v26 = vpop.permute.xlu1 %3205  ;;  %v1370_v25 = vsel %vm7434_vm10, %v6515_v19, %v1369_v20  ;;  %v3702_v20 = vld [vmem:[#allocation3 + $0x50] sm:$0xf] }
 0x1f1   : > { %3252 = vst.msk [vmem:[#allocation4 + $0x84] sm:$0xf] %vm2408_vm1, %v3206_v26  ;;  %v3204_v32 = vpop.permute.xlu0 %3203 }
 0x1f2   : > { %3549 = vrot.lane.b32.xlu1 %v3506_v21, %s7084_s22  ;;  %3251 = vst.msk [vmem:[#allocation4 + $0x80] sm:$0xf] %vm2408_vm1, %v3204_v32 }
 0x1f3   : > { %3547 = vrot.lane.b32.xlu0 %v3505_v27, %s7084_s22  ;;  %1419 = vst.msk [vmem:[#allocation3 + $0x11c] sm:$0xf] %vm461_vm0, %v1370_v25  ;;  %v3604_v27 = vld [vmem:[#allocation3 + $0x1c8] sm:$0xf]  ;;  %v3701_v25 = vld [vmem:[#allocation3 + $0x4c] sm:$0xf] }
 0x1f4   : > { %v3210_v35 = vpop.permute.xlu1 %3209 }
 0x1f5   : > { %3254 = vst.msk [vmem:[#allocation4 + $0x8c] sm:$0xf] %vm2408_vm1, %v3210_v35  ;;  %v3208_v41 = vpop.permute.xlu0 %3207  ;;  %v3690_v35 = vld [vmem:[#allocation3 + $0x10] sm:$0xf] }
 0x1f6   : > { %3553 = vrot.lane.b32.xlu1 %v3508_v33, %s7084_s22  ;;  %3253 = vst.msk [vmem:[#allocation4 + $0x88] sm:$0xf] %vm2408_vm1, %v3208_v41  ;;  %v1443_v41 = vld [vmem:[#allocation2 + $0x5c] sm:$0x3] }
 0x1f7   : > { %3551 = vrot.lane.b32.xlu0 %v3507_v37, %s7084_s22  ;;  %v1673_v37 = vshll.u32 %v1442_v34, 16  ;;  %v1682_v48 = vshll.u32 %v1443_v41, 16 }
 0x1f8   : > { %v3214_v47 = vpop.permute.xlu1 %3213 }
 0x1f9   : > { %3256 = vst.msk [vmem:[#allocation4 + $0x94] sm:$0xf] %vm2408_vm1, %v3214_v47  ;;  %v3212_v51 = vpop.permute.xlu0 %3211  ;;  %v1675_v3 = vrot.slane %v1673_v37, 6  ;;  %v1679_v47 = vshrl.u32 %v1443_v41, 16  ;;  %v1974_v37 = vld [vmem:[#allocation2 + $0x58] sm:$0xc] }
 0x1fa   : > { %3557 = vrot.lane.b32.xlu1 %v3510_v43, %s7084_s22  ;;  %3255 = vst.msk [vmem:[#allocation4 + $0x90] sm:$0xf] %vm2408_vm1, %v3212_v51  ;;  %v1672_v43 = vrot.slane %v1670_v36, 5  ;;  %v3788_v41 = vld [vmem:[#allocation3 + $0x194] sm:$0xf] }
 0x1fb   : > { %3555 = vrot.lane.b32.xlu0 %v3509_v49, %s7084_s22  ;;  %v1681_v52 = vrot.slane %v1679_v47, 5  ;;  %v3791_v47 = vld [vmem:[#allocation3 + $0x1a0] sm:$0xf] }
 0x1fc   : > { %v3218_v54 = vpop.permute.xlu1 %3217  ;;  %v1676_v51 = vor.u32 %v1675_v3, %v1672_v43 }
 0x1fd   : > { %3258 = vst.msk [vmem:[#allocation4 + $0x9c] sm:$0xf] %vm2408_vm1, %v3218_v54  ;;  %v3216_v58 = vpop.permute.xlu0 %3215  ;;  %v3691_v54 = vld [vmem:[#allocation3 + $0x14] sm:$0xf] }
 0x1fe   : > { %3626 = vrot.lane.b32.xlu1 %v3593_v1, %s7085_s27  ;;  %3257 = vst.msk [vmem:[#allocation4 + $0x98] sm:$0xf] %vm2408_vm1, %v3216_v58  ;;  %v1684_v1 = vrot.slane %v1682_v48, 6 }
 0x1ff   : > { %3624 = vrot.lane.b32.xlu0 %v3592_v56, %s7085_s27  ;;  %v1677_v56 = vrot.slane %v1676_v51, 4 }
 0x200   : > { %v3222_v63 = vpop.permute.xlu1 %3221  ;;  %v1685_v57 = vor.u32 %v1684_v1, %v1681_v52  ;;  %v3793_v52 = vld [vmem:[#allocation3 + $0x1a8] sm:$0xf] }
 0x201   : > { %3260 = vst.msk [vmem:[#allocation4 + $0xa4] sm:$0xf] %vm2408_vm1, %v3222_v63  ;;  %v3220_v5 = vpop.permute.xlu0 %3219  ;;  %v3693_v63 = vld [vmem:[#allocation3 + $0x1c] sm:$0xf] }
 0x202   : > { %3630 = vrot.lane.b32.xlu1 %v3595_v60, %s7085_s27  ;;  %3259 = vst.msk [vmem:[#allocation4 + $0xa0] sm:$0xf] %vm2408_vm1, %v3220_v5  ;;  %v1686_v60 = vsel %vm7540_vm13, %v1677_v56, %v1685_v57  ;;  %v3698_v5 = vld [vmem:[#allocation3 + $0x40] sm:$0xf] }
 0x203   : > { %3628 = vrot.lane.b32.xlu0 %v3594_v2, %s7085_s27  ;;  %1939 = vst.msk [vmem:[#allocation3 + $0x14c] sm:$0xf] %vm461_vm0, %v1686_v60  ;;  %v3695_v2 = vld [vmem:[#allocation3 + $0x24] sm:$0xf]  ;;  %v3795_v56 = vld [vmem:[#allocation3 + $0x1c0] sm:$0xf] }
 0x204   : > { %v3226_v44 = vpop.permute.xlu1 %3225  ;;  %v3797_v60 = vld [vmem:[#allocation3 + $0x1c8] sm:$0xf] }
 0x205   : > { %3262 = vst.msk [vmem:[#allocation4 + $0xac] sm:$0xf] %vm2408_vm1, %v3226_v44  ;;  %v3224_v7 = vpop.permute.xlu0 %3223 }
 0x206   : > { %3634 = vrot.lane.b32.xlu1 %v3597_v29, %s7085_s27  ;;  %3261 = vst.msk [vmem:[#allocation4 + $0xa8] sm:$0xf] %vm2408_vm1, %v3224_v7  ;;  %v1886_v29 = vshrl.u32 %v1466_v40, 16  ;;  %v3697_v7 = vld [vmem:[#allocation3 + $0x3c] sm:$0xf] }
 0x207   : > { %3632 = vrot.lane.b32.xlu0 %v3596_v6, %s7085_s27  ;;  %v1467_v6 = vld [vmem:[#allocation2 + $0xbc] sm:$0x3] }
 0x208   : > { %v3230_v10 = vpop.permute.xlu1 %3229 }
 0x209   : > { %3264 = vst.msk [vmem:[#allocation4 + $0xb4] sm:$0xf] %vm2408_vm1, %v3230_v10  ;;  %v3228_v46 = vpop.permute.xlu0 %3227  ;;  %v1891_v10 = vrot.slane %v1889_v45, 6 }
 0x20a   : > { %3638 = vrot.lane.b32.xlu1 %v3599_v9, %s7085_s27  ;;  %3263 = vst.msk [vmem:[#allocation4 + $0xb0] sm:$0xf] %vm2408_vm1, %v3228_v46  ;;  %v1888_v9 = vrot.slane %v1886_v29, 5  ;;  %v1898_v46 = vshll.u32 %v1467_v6, 16  ;;  %v3799_v29 = vld [vmem:[#allocation3 + $0x1d0] sm:$0xf] }
 0x20b   : > { %3636 = vrot.lane.b32.xlu0 %v3598_v30, %s7085_s27  ;;  %v1895_v30 = vshrl.u32 %v1467_v6, 16  ;;  %v3886_v6 = vld [vmem:[#allocation3 + $0x1c] sm:$0xf] }
 0x20c   : > { %v3234_v12 = vpop.permute.xlu1 %3233  ;;  %3903 = vst.msk [vmem:[#allocation4 + $0x10c] sm:$0xf] %vm461_vm0, %v3886_v6  ;;  %v4014_v6 = vld [vmem:[#allocation3 + $0xd0] sm:$0xf] }
 0x20d   : > { %3266 = vst.msk [vmem:[#allocation4 + $0xbc] sm:$0xf] %vm2408_vm1, %v3234_v12  ;;  %v3232_v13 = vpop.permute.xlu0 %3231  ;;  %v3700_v12 = vld [vmem:[#allocation3 + $0x48] sm:$0xf] }
 0x20e   : > { %3642 = vrot.lane.b32.xlu1 %v3601_v11, %s7085_s27  ;;  %3265 = vst.msk [vmem:[#allocation4 + $0xb8] sm:$0xf] %vm2408_vm1, %v3232_v13  ;;  %v1897_v13 = vrot.slane %v1895_v30, 5 }
 0x20f   : > { %3640 = vrot.lane.b32.xlu0 %v3600_v8, %s7085_s27  ;;  %v1892_v8 = vor.u32 %v1891_v10, %v1888_v9  ;;  %v3885_v9 = vld [vmem:[#allocation3 + $0x18] sm:$0xf] }
 0x210   : > { %v3302_v15 = vpop.permute.xlu1 %3301  ;;  %v703_v10 = vld [vmem:[#allocation2 + $0x58] sm:$0xf]  ;;  %3902 = vst.msk [vmem:[#allocation4 + $0x108] sm:$0xf] %vm461_vm0, %v3885_v9  ;;  %v4017_v9 = vld [vmem:[#allocation3 + $0xdc] sm:$0xf] }
 0x211   : > { %3348 = vst.msk [vmem:[#allocation4 + $0x84] sm:$0xf] %vm2506_vm2, %v3302_v15  ;;  %v3300_v21 = vpop.permute.xlu0 %3299  ;;  %v1893_v17 = vrot.slane %v1892_v8, 4  ;;  %v3887_v8 = vld [vmem:[#allocation3 + $0x20] sm:$0xf] }
 0x212   : > { %3646 = vrot.lane.b32.xlu1 %v3603_v14, %s7085_s27  ;;  %3347 = vst.msk [vmem:[#allocation4 + $0x80] sm:$0xf] %vm2506_vm2, %v3300_v21  ;;  %v1900_v14 = vrot.slane %v1898_v46, 6 }
 0x213   : > { %3644 = vrot.lane.b32.xlu0 %v3602_v18, %s7085_s27  ;;  %727 = vst.msk [vmem:[#allocation3 + $0x2c] sm:$0xf] %vm461_vm0, %v703_v10  ;;  %3904 = vst.msk [vmem:[#allocation4 + $0x110] sm:$0xf] %vm461_vm0, %v3887_v8 }
 0x214   : > { %v3306_v26 = vpop.permute.xlu1 %3305  ;;  %v1901_v18 = vor.u32 %v1900_v14, %v1897_v13  ;;  %v3918_v14 = vld [vmem:[#allocation3 + $0x74] sm:$0xf] }
 0x215   : > { %3350 = vst.msk [vmem:[#allocation4 + $0x8c] sm:$0xf] %vm2506_vm2, %v3306_v26  ;;  %v3304_v28 = vpop.permute.xlu0 %3303 }
 0x216   : > { %3650 = vrot.lane.b32.xlu1 %v3605_v22, %s7085_s27  ;;  %3349 = vst.msk [vmem:[#allocation4 + $0x88] sm:$0xf] %vm2506_vm2, %v3304_v28  ;;  %v1902_v21 = vsel %vm7540_vm13, %v1893_v17, %v1901_v18  ;;  %v3889_v18 = vld [vmem:[#allocation3 + $0x28] sm:$0xf] }
 0x217   : > { %3648 = vrot.lane.b32.xlu0 %v3604_v27, %s7085_s27  ;;  %1951 = vst.msk [vmem:[#allocation3 + $0x17c] sm:$0xf] %vm461_vm0, %v1902_v21  ;;  %v3704_v27 = vld [vmem:[#allocation3 + $0x58] sm:$0xf]  ;;  %3906 = vst.msk [vmem:[#allocation4 + $0x118] sm:$0xf] %vm461_vm0, %v3889_v18 }
 0x218   : > { %v3310_v32 = vpop.permute.xlu1 %3309  ;;  %v3892_v21 = vld [vmem:[#allocation3 + $0x44] sm:$0xf] }
 0x219   : > { %3352 = vst.msk [vmem:[#allocation4 + $0x94] sm:$0xf] %vm2506_vm2, %v3310_v32  ;;  %v3308_v33 = vpop.permute.xlu0 %3307  ;;  %v3787_v32 = vld [vmem:[#allocation3 + $0x190] sm:$0xf] }
 0x21a   : > { %3654 = vrot.lane.b32.xlu1 %v3607_v31, %s7085_s27  ;;  %3351 = vst.msk [vmem:[#allocation4 + $0x90] sm:$0xf] %vm2506_vm2, %v3308_v33  ;;  %v3786_v33 = vld [vmem:[#allocation3 + $0x18c] sm:$0xf] }
 0x21b   : > { %3652 = vrot.lane.b32.xlu0 %v3606_v55, %s7085_s27  ;;  %v3890_v17 = vld [vmem:[#allocation3 + $0x2c] sm:$0xf]  ;;  %3909 = vst.msk [vmem:[#allocation4 + $0x124] sm:$0xf] %vm461_vm0, %v3892_v21 }
 0x21c   : > { %v3314_v38 = vpop.permute.xlu1 %3313  ;;  %3907 = vst.msk [vmem:[#allocation4 + $0x11c] sm:$0xf] %vm461_vm0, %v3890_v17 }
 0x21d   : > { %3354 = vst.msk [vmem:[#allocation4 + $0x9c] sm:$0xf] %vm2506_vm2, %v3314_v38  ;;  %v3312_v49 = vpop.permute.xlu0 %3311  ;;  %v1975_v38 = vld [vmem:[#allocation2 + $0x5c] sm:$0x3] }
 0x21e   : > { %3723 = vrot.lane.b32.xlu1 %v3690_v35, %s7086_s28  ;;  %3353 = vst.msk [vmem:[#allocation4 + $0x98] sm:$0xf] %vm2506_vm2, %v3312_v49  ;;  %v3789_v35 = vld [vmem:[#allocation3 + $0x198] sm:$0xf]  ;;  %v2097_v43 = vrot.slane %v1975_v38, 6 }
 0x21f   : > { %3721 = vrot.lane.b32.xlu0 %v3689_v42, %s7086_s28  ;;  %v6527_v42 = vrot.slane %v1974_v37, 10  ;;  %v3924_v37 = vld [vmem:[#allocation3 + $0x8c] sm:$0xf]  ;;  %v3896_v38 = vld [vmem:[#allocation3 + $0x54] sm:$0xf] }
 0x220   : > { %v3318_v53 = vpop.permute.xlu1 %3317  ;;  %3913 = vst.msk [vmem:[#allocation4 + $0x134] sm:$0xf] %vm461_vm0, %v3896_v38 }
 0x221   : > { %3356 = vst.msk [vmem:[#allocation4 + $0xa4] sm:$0xf] %vm2506_vm2, %v3318_v53  ;;  %v3316_v58 = vpop.permute.xlu0 %3315  ;;  %v2098_v48 = vsel %vm7858_vm5, %v6527_v42, %v2097_v43  ;;  %v3792_v53 = vld [vmem:[#allocation3 + $0x1a4] sm:$0xf]  ;;  %v3923_v43 = vld [vmem:[#allocation3 + $0x88] sm:$0xf] }
 0x222   : > { %3727 = vrot.lane.b32.xlu1 %v3692_v50, %s7086_s28  ;;  %3355 = vst.msk [vmem:[#allocation4 + $0xa0] sm:$0xf] %vm2506_vm2, %v3316_v58  ;;  %v3790_v50 = vld [vmem:[#allocation3 + $0x19c] sm:$0xf] }
 0x223   : > { %3725 = vrot.lane.b32.xlu0 %v3691_v54, %s7086_s28  ;;  %2183 = vst.msk [vmem:[#allocation3 + $0x1ac] sm:$0xf] %vm461_vm0, %v2098_v48  ;;  %v3794_v58 = vld [vmem:[#allocation3 + $0x1bc] sm:$0xf]  ;;  %v3926_v48 = vld [vmem:[#allocation3 + $0xa4] sm:$0xf] }
 0x224   : > { %v3322_v61 = vpop.permute.xlu1 %3321 }
 0x225   : > { %3358 = vst.msk [vmem:[#allocation4 + $0xac] sm:$0xf] %vm2506_vm2, %v3322_v61  ;;  %v3320_v23 = vpop.permute.xlu0 %3319 }
 0x226   : > { %3731 = vrot.lane.b32.xlu1 %v3694_v59, %s7086_s28  ;;  %3357 = vst.msk [vmem:[#allocation4 + $0xa8] sm:$0xf] %vm2506_vm2, %v3320_v23  ;;  %v1998_v23 = vld [vmem:[#allocation2 + $0xb8] sm:$0xc] }
 0x227   : > { %3729 = vrot.lane.b32.xlu0 %v3693_v63, %s7086_s28  ;;  %v3884_v63 = vld [vmem:[#allocation3 + $0x14] sm:$0xf] }
 0x228   : > { %v3326_v0 = vpop.permute.xlu1 %3325  ;;  %3901 = vst.msk [vmem:[#allocation4 + $0x104] sm:$0xf] %vm461_vm0, %v3884_v63 }
 0x229   : > { %3360 = vst.msk [vmem:[#allocation4 + $0xb4] sm:$0xf] %vm2506_vm2, %v3326_v0  ;;  %v3324_v24 = vpop.permute.xlu0 %3323  ;;  %v3796_v0 = vld [vmem:[#allocation3 + $0x1c4] sm:$0xf] }
 0x22a   : > { %3735 = vrot.lane.b32.xlu1 %v3696_v39, %s7086_s28  ;;  %3359 = vst.msk [vmem:[#allocation4 + $0xb0] sm:$0xf] %vm2506_vm2, %v3324_v24  ;;  %v1999_v39 = vld [vmem:[#allocation2 + $0xbc] sm:$0x3]  ;;  %v6539_v24 = vrot.slane %v1998_v23, 10 }
 0x22b   : > { %3733 = vrot.lane.b32.xlu0 %v3695_v2, %s7086_s28  ;;  %v3883_v2 = vld [vmem:[#allocation3 + $0x10] sm:$0xf]  ;;  %v2145_v40 = vrot.slane %v1999_v39, 6 }
 0x22c   : > { %v3330_v44 = vpop.permute.xlu1 %3329  ;;  %3900 = vst.msk [vmem:[#allocation4 + $0x100] sm:$0xf] %vm461_vm0, %v3883_v2  ;;  %v3929_v23 = vld [vmem:[#allocation3 + $0xb0] sm:$0xf] }
 0x22d   : > { %3362 = vst.msk [vmem:[#allocation4 + $0xbc] sm:$0xf] %vm2506_vm2, %v3330_v44  ;;  %v3328_v11 = vpop.permute.xlu0 %3327  ;;  %v2146_v45 = vsel %vm7858_vm5, %v6539_v24, %v2145_v40  ;;  %v3931_v40 = vld [vmem:[#allocation3 + $0xb8] sm:$0xf] }
 0x22e   : > { %3739 = vrot.lane.b32.xlu1 %v3698_v5, %s7086_s28  ;;  %3361 = vst.msk [vmem:[#allocation4 + $0xb8] sm:$0xf] %vm2506_vm2, %v3328_v11  ;;  %v3888_v11 = vld [vmem:[#allocation3 + $0x24] sm:$0xf] }
 0x22f   : > { %3737 = vrot.lane.b32.xlu0 %v3697_v7, %s7086_s28  ;;  %2195 = vst.msk [vmem:[#allocation3 + $0x1dc] sm:$0xf] %vm461_vm0, %v2146_v45  ;;  %v3798_v7 = vld [vmem:[#allocation3 + $0x1cc] sm:$0xf]  ;;  %3905 = vst.msk [vmem:[#allocation4 + $0x114] sm:$0xf] %vm461_vm0, %v3888_v11 }
 0x230   : > { %v3399_v15 = vpop.permute.xlu1 %3398 }
 0x231   : > { %3445 = vst.msk [vmem:[#allocation4 + $0x84] sm:$0xf] %vm2604_vm6, %v3399_v15  ;;  %v3397_v19 = vpop.permute.xlu0 %3396 }
 0x232   : > { %3743 = vrot.lane.b32.xlu1 %v3700_v12, %s7086_s28  ;;  %3444 = vst.msk [vmem:[#allocation4 + $0x80] sm:$0xf] %vm2604_vm6, %v3397_v19  ;;  %v3800_v12 = vld [vmem:[#allocation3 + $0x1d4] sm:$0xf] }
 0x233   : > { %3741 = vrot.lane.b32.xlu0 %v3699_v16, %s7086_s28  ;;  %v3917_v16 = vld [vmem:[#allocation3 + $0x70] sm:$0xf] }
 0x234   : > { %v3403_v22 = vpop.permute.xlu1 %3402 }
 0x235   : > { %3447 = vst.msk [vmem:[#allocation4 + $0x8c] sm:$0xf] %vm2604_vm6, %v3403_v22  ;;  %v3401_v26 = vpop.permute.xlu0 %3400 }
 0x236   : > { %3747 = vrot.lane.b32.xlu1 %v3702_v20, %s7086_s28  ;;  %3446 = vst.msk [vmem:[#allocation4 + $0x88] sm:$0xf] %vm2604_vm6, %v3401_v26  ;;  %v3920_v20 = vld [vmem:[#allocation3 + $0x7c] sm:$0xf]  ;;  %v3919_v26 = vld [vmem:[#allocation3 + $0x78] sm:$0xf] }
 0x237   : > { %3745 = vrot.lane.b32.xlu0 %v3701_v25, %s7086_s28  ;;  %v8425_v25 = vpop.f32.mrf.mxu0 }
 0x238   : > { %v3407_v28 = vpop.permute.xlu1 %3406 }
 0x239   : > { %3449 = vst.msk [vmem:[#allocation4 + $0x94] sm:$0xf] %vm2604_vm6, %v3407_v28  ;;  %v3405_v31 = vpop.permute.xlu0 %3404 }
 0x23a   : > { %3751 = vrot.lane.b32.xlu1 %v3704_v27, %s7086_s28  ;;  %3448 = vst.msk [vmem:[#allocation4 + $0x90] sm:$0xf] %vm2604_vm6, %v3405_v31  ;;  %v3891_v27 = vld [vmem:[#allocation3 + $0x40] sm:$0xf]  ;;  %v3894_v31 = vld [vmem:[#allocation3 + $0x4c] sm:$0xf] }
 0x23b   : > { %3749 = vrot.lane.b32.xlu0 %v3703_v4, %s7086_s28  ;;  %3908 = vst.msk [vmem:[#allocation4 + $0x120] sm:$0xf] %vm461_vm0, %v3891_v27  ;;  %v3922_v4 = vld [vmem:[#allocation3 + $0x84] sm:$0xf]  ;;  %3911 = vst.msk [vmem:[#allocation4 + $0x12c] sm:$0xf] %vm461_vm0, %v3894_v31 }
 0x23c   : > { %v3411_v55 = vpop.permute.xlu1 %3410 }
 0x23d   : > { %3451 = vst.msk [vmem:[#allocation4 + $0x9c] sm:$0xf] %vm2604_vm6, %v3411_v55  ;;  %v3409_v34 = vpop.permute.xlu0 %3408  ;;  %v8433_v55 = vpop.f32.mrf.mxu0 }
 0x23e   : > { %3820 = vrot.lane.b32.xlu1 %v3787_v32, %s7087_s15  ;;  %3450 = vst.msk [vmem:[#allocation4 + $0x98] sm:$0xf] %vm2604_vm6, %v3409_v34  ;;  %v3893_v34 = vld [vmem:[#allocation3 + $0x48] sm:$0xf] }
 0x23f   : > { %3818 = vrot.lane.b32.xlu0 %v3786_v33, %s7087_s15  ;;  %v3921_v33 = vld [vmem:[#allocation3 + $0x80] sm:$0xf]  ;;  %3910 = vst.msk [vmem:[#allocation4 + $0x128] sm:$0xf] %vm461_vm0, %v3893_v34  ;;  %v8442_v42 = vpop.f32.mrf.mxu0 }
 0x240   : > { %v3415_v36 = vpop.permute.xlu1 %3414 }
 0x241   : > { %3453 = vst.msk [vmem:[#allocation4 + $0xa4] sm:$0xf] %vm2604_vm6, %v3415_v36  ;;  %v3413_v3 = vpop.permute.xlu0 %3412 }
 0x242   : > { %3824 = vrot.lane.b32.xlu1 %v3789_v35, %s7087_s15  ;;  %3452 = vst.msk [vmem:[#allocation4 + $0xa0] sm:$0xf] %vm2604_vm6, %v3413_v3  ;;  %v715_v35 = vld [vmem:[#allocation2 + $0xb8] sm:$0xf]  ;;  %v3895_v3 = vld [vmem:[#allocation3 + $0x50] sm:$0xf] }
 0x243   : > { %3822 = vrot.lane.b32.xlu0 %v3788_v41, %s7087_s15  ;;  %739 = vst.msk [vmem:[#allocation3 + $0x5c] sm:$0xf] %vm461_vm0, %v715_v35  ;;  %3912 = vst.msk [vmem:[#allocation4 + $0x130] sm:$0xf] %vm461_vm0, %v3895_v3  ;;  %v4020_v35 = vld [vmem:[#allocation3 + $0xe8] sm:$0xf] }
 0x244   : > { %v3419_v49 = vpop.permute.xlu1 %3418 }
 0x245   : > { %3455 = vst.msk [vmem:[#allocation4 + $0xac] sm:$0xf] %vm2604_vm6, %v3419_v49  ;;  %v3417_v51 = vpop.permute.xlu0 %3416 }
 0x246   : > { %3828 = vrot.lane.b32.xlu1 %v3791_v47, %s7087_s15  ;;  %3454 = vst.msk [vmem:[#allocation4 + $0xa8] sm:$0xf] %vm2604_vm6, %v3417_v51  ;;  %v3925_v51 = vld [vmem:[#allocation3 + $0xa0] sm:$0xf] }
 0x247   : > { %3826 = vrot.lane.b32.xlu0 %v3790_v50, %s7087_s15  ;;  %v8449_v50 = vpop.f32.mrf.mxu0 }
 0x248   : > { %v3423_v1 = vpop.permute.xlu1 %3422 }
 0x249   : > { %3457 = vst.msk [vmem:[#allocation4 + $0xb4] sm:$0xf] %vm2604_vm6, %v3423_v1  ;;  %v3421_v54 = vpop.permute.xlu0 %3420  ;;  %v3897_v1 = vld [vmem:[#allocation3 + $0x58] sm:$0xf] }
 0x24a   : > { %3832 = vrot.lane.b32.xlu1 %v3793_v52, %s7087_s15  ;;  %3456 = vst.msk [vmem:[#allocation4 + $0xb0] sm:$0xf] %vm2604_vm6, %v3421_v54  ;;  %v3898_v52 = vld [vmem:[#allocation3 + $0x5c] sm:$0xf]  ;;  %v3928_v54 = vld [vmem:[#allocation3 + $0xac] sm:$0xf] }
 0x24b   : > { %3830 = vrot.lane.b32.xlu0 %v3792_v53, %s7087_s15  ;;  %3915 = vst.msk [vmem:[#allocation4 + $0x13c] sm:$0xf] %vm461_vm0, %v3898_v52  ;;  %3914 = vst.msk [vmem:[#allocation4 + $0x138] sm:$0xf] %vm461_vm0, %v3897_v1 }
 0x24c   : > { %v3427_v57 = vpop.permute.xlu1 %3426 }
 0x24d   : > { %3459 = vst.msk [vmem:[#allocation4 + $0xbc] sm:$0xf] %vm2604_vm6, %v3427_v57  ;;  %v3425_v59 = vpop.permute.xlu0 %3424  ;;  %v8457_v57 = vpop.f32.mrf.mxu0 }
 0x24e   : > { %3836 = vrot.lane.b32.xlu1 %v3795_v56, %s7087_s15  ;;  %3458 = vst.msk [vmem:[#allocation4 + $0xb8] sm:$0xf] %vm2604_vm6, %v3425_v59 }
 0x24f   : > { %3834 = vrot.lane.b32.xlu0 %v3794_v58, %s7087_s15  ;;  %v3927_v58 = vld [vmem:[#allocation3 + $0xa8] sm:$0xf]  ;;  %v8463_v63 = vpop.f32.mrf.mxu0 }
 0x250   : > { %v3530_v61 = vpop.permute.xlu1 %3529 }
 0x251   : > { %3576 = vst.msk [vmem:[#allocation4 + $0xc4] sm:$0xf] %vm2310_vm15, %v3530_v61  ;;  %v3528_v5 = vpop.permute.xlu0 %3527  ;;  %v8469_v24 = vpop.f32.mrf.mxu0 }
 0x252   : > { %3840 = vrot.lane.b32.xlu1 %v3797_v60, %s7087_s15  ;;  %3575 = vst.msk [vmem:[#allocation4 + $0xc0] sm:$0xf] %vm2310_vm15, %v3528_v5  ;;  %v3930_v60 = vld [vmem:[#allocation3 + $0xb4] sm:$0xf] }
 0x253   : > { %3838 = vrot.lane.b32.xlu0 %v3796_v0, %s7087_s15  ;;  %v3932_v0 = vld [vmem:[#allocation3 + $0xbc] sm:$0xf] }
 0x254   : > { %v3534_v44 = vpop.permute.xlu1 %3533 }
 0x255   : > { %3578 = vst.msk [vmem:[#allocation4 + $0xcc] sm:$0xf] %vm2310_vm15, %v3534_v44  ;;  %v3532_v30 = vpop.permute.xlu0 %3531  ;;  %v8475_v44 = vpop.f32.mrf.mxu0 }
 0x256   : > { %3844 = vrot.lane.b32.xlu1 %v3799_v29, %s7087_s15  ;;  %3577 = vst.msk [vmem:[#allocation4 + $0xc8] sm:$0xf] %vm2310_vm15, %v3532_v30  ;;  %v4015_v29 = vld [vmem:[#allocation3 + $0xd4] sm:$0xf]  ;;  %v8484_v30 = vld [vmem:[%s9271_s4] ss:$0 sm:$0xff] }
 0x257   : > { %3842 = vrot.lane.b32.xlu0 %v3798_v7, %s7087_s15 }
 0x258   : > { %v3538_v46 = vpop.permute.xlu1 %3537 }
 0x259   : > { %3580 = vst.msk [vmem:[#allocation4 + $0xd4] sm:$0xf] %vm2310_vm15, %v3538_v46  ;;  %v3536_v13 = vpop.permute.xlu0 %3535  ;;  %v8486_v46 = vpop.f32.mrf.mxu0 }
 0x25a   : > { %3848 = vrot.lane.b32.xlu1 %v3801_v62, %s7087_s15  ;;  %3579 = vst.msk [vmem:[#allocation4 + $0xd0] sm:$0xf] %vm2310_vm15, %v3536_v13 }
 0x25b   : > { %3846 = vrot.lane.b32.xlu0 %v3800_v12, %s7087_s15  ;;  %v4016_v12 = vld [vmem:[#allocation3 + $0xd8] sm:$0xf] }
 0x25c   : > { %v3542_v15 = vpop.permute.xlu1 %3541 }
 0x25d   : > { %3582 = vst.msk [vmem:[#allocation4 + $0xdc] sm:$0xf] %vm2310_vm15, %v3542_v15  ;;  %v3540_v19 = vpop.permute.xlu0 %3539 }
 0x25e   : > { %3951 = vrot.lane.b32.xlu1 %v3918_v14, %s7084_s22  ;;  %3581 = vst.msk [vmem:[#allocation4 + $0xd8] sm:$0xf] %vm2310_vm15, %v3540_v19  ;;  %v8495_v19 = vpop.f32.mrf.mxu0 }
 0x25f   : > { %3949 = vrot.lane.b32.xlu0 %v3917_v16, %s7084_s22  ;;  %v4019_v16 = vld [vmem:[#allocation3 + $0xe4] sm:$0xf] }
 0x260   : > { %v3546_v22 = vpop.permute.xlu1 %3545 }
 0x261   : > { %3584 = vst.msk [vmem:[#allocation4 + $0xe4] sm:$0xf] %vm2310_vm15, %v3546_v22  ;;  %v3544_v28 = vpop.permute.xlu0 %3543  ;;  %v4018_v22 = vld [vmem:[#allocation3 + $0xe0] sm:$0xf] }
 0x262   : > { %3955 = vrot.lane.b32.xlu1 %v3920_v20, %s7084_s22  ;;  %3583 = vst.msk [vmem:[#allocation4 + $0xe0] sm:$0xf] %vm2310_vm15, %v3544_v28 }
 0x263   : > { %3953 = vrot.lane.b32.xlu0 %v3919_v26, %s7084_s22 }
 0x264   : > { %v3550_v32 = vpop.permute.xlu1 %3549 }
 0x265   : > { %3586 = vst.msk [vmem:[#allocation4 + $0xec] sm:$0xf] %vm2310_vm15, %v3550_v32  ;;  %v3548_v36 = vpop.permute.xlu0 %3547 }
 0x266   : > { %3959 = vrot.lane.b32.xlu1 %v3922_v4, %s7084_s22  ;;  %3585 = vst.msk [vmem:[#allocation4 + $0xe8] sm:$0xf] %vm2310_vm15, %v3548_v36  ;;  %v4021_v4 = vld [vmem:[#allocation3 + $0xec] sm:$0xf] }
 0x267   : > { %3957 = vrot.lane.b32.xlu0 %v3921_v33, %s7084_s22 }
 0x268   : > { %v3554_v41 = vpop.permute.xlu1 %3553 }
 0x269   : > { %3588 = vst.msk [vmem:[#allocation4 + $0xf4] sm:$0xf] %vm2310_vm15, %v3554_v41  ;;  %v3552_v47 = vpop.permute.xlu0 %3551 }
 0x26a   : > { %3963 = vrot.lane.b32.xlu1 %v3924_v37, %s7084_s22  ;;  %3587 = vst.msk [vmem:[#allocation4 + $0xf0] sm:$0xf] %vm2310_vm15, %v3552_v47 }
 0x26b   : > { %3961 = vrot.lane.b32.xlu0 %v3923_v43, %s7084_s22 }
 0x26c   : > { %v3558_v49 = vpop.permute.xlu1 %3557 }
 0x26d   : > { %3590 = vst.msk [vmem:[#allocation4 + $0xfc] sm:$0xf] %vm2310_vm15, %v3558_v49  ;;  %v3556_v53 = vpop.permute.xlu0 %3555 }
 0x26e   : > { %3967 = vrot.lane.b32.xlu1 %v3926_v48, %s7084_s22  ;;  %3589 = vst.msk [vmem:[#allocation4 + $0xf8] sm:$0xf] %vm2310_vm15, %v3556_v53 }
 0x26f   : > { %3965 = vrot.lane.b32.xlu0 %v3925_v51, %s7084_s22 }
 0x270   : > { %v3627_v56 = vpop.permute.xlu1 %3626 }
 0x271   : > { %3673 = vst.msk [vmem:[#allocation4 + $0xc4] sm:$0xf] %vm2408_vm1, %v3627_v56  ;;  %v3625_v59 = vpop.permute.xlu0 %3624 }
 0x272   : > { %3971 = vrot.lane.b32.xlu1 %v3928_v54, %s7084_s22  ;;  %3672 = vst.msk [vmem:[#allocation4 + $0xc0] sm:$0xf] %vm2408_vm1, %v3625_v59  ;;  %v4025_v54 = vld [vmem:[#allocation3 + $0x10c] sm:$0xf] }
 0x273   : > { %3969 = vrot.lane.b32.xlu0 %v3927_v58, %s7084_s22 }
 0x274   : > { %v3631_v61 = vpop.permute.xlu1 %3630 }
 0x275   : > { %3675 = vst.msk [vmem:[#allocation4 + $0xcc] sm:$0xf] %vm2408_vm1, %v3631_v61  ;;  %v3629_v39 = vpop.permute.xlu0 %3628  ;;  %v4024_v61 = vld [vmem:[#allocation3 + $0x108] sm:$0xf] }
 0x276   : > { %3975 = vrot.lane.b32.xlu1 %v3930_v60, %s7084_s22  ;;  %3674 = vst.msk [vmem:[#allocation4 + $0xc8] sm:$0xf] %vm2408_vm1, %v3629_v39 }
 0x277   : > { %3973 = vrot.lane.b32.xlu0 %v3929_v23, %s7084_s22 }
 0x278   : > { %v3635_v2 = vpop.permute.xlu1 %3634 }
 0x279   : > { %3677 = vst.msk [vmem:[#allocation4 + $0xd4] sm:$0xf] %vm2408_vm1, %v3635_v2  ;;  %v3633_v5 = vpop.permute.xlu0 %3632  ;;  %v4027_v2 = vld [vmem:[#allocation3 + $0x114] sm:$0xf] }
 0x27a   : > { %3979 = vrot.lane.b32.xlu1 %v3932_v0, %s7084_s22  ;;  %3676 = vst.msk [vmem:[#allocation4 + $0xd0] sm:$0xf] %vm2408_vm1, %v3633_v5 }
 0x27b   : > { %3977 = vrot.lane.b32.xlu0 %v3931_v40, %s7084_s22 }
 0x27c   : > { %v3639_v45 = vpop.permute.xlu1 %3638 }
 0x27d   : > { %3679 = vst.msk [vmem:[#allocation4 + $0xdc] sm:$0xf] %vm2408_vm1, %v3639_v45  ;;  %v3637_v7 = vpop.permute.xlu0 %3636 }
 0x27e   : > { %4048 = vrot.lane.b32.xlu1 %v4015_v29, %s7085_s27  ;;  %3678 = vst.msk [vmem:[#allocation4 + $0xd8] sm:$0xf] %vm2408_vm1, %v3637_v7  ;;  %v6809_v10 = vpop.f32.mrf.mxu1 }
 0x27f   : > { %4046 = vrot.lane.b32.xlu0 %v4014_v6, %s7085_s27  ;;  %v4913_v11 = vadd.f32 %v8425_v25, %v6809_v10 }
 0x280   : > { %v3643_v62 = vpop.permute.xlu1 %3642  ;;  %v4712_v13 = vpop.f32.mrf.mxu1 }
 0x281   : > { %3681 = vst.msk [vmem:[#allocation4 + $0xe4] sm:$0xf] %vm2408_vm1, %v3643_v62  ;;  %v3641_v8 = vpop.permute.xlu0 %3640  ;;  %v4976_v14 = vadd.f32 %v8484_v30, %v4913_v11  ;;  %v4905_v15 = vadd.f32 %v8433_v55, %v4712_v13  ;;  %v6844_v55 = vpop.f32.mrf.mxu0  ;;  %v4029_v62 = vld [vmem:[#allocation3 + $0x11c] sm:$0xf] }
 0x282   : > { %4052 = vrot.lane.b32.xlu1 %v4017_v9, %s7085_s27  ;;  %3680 = vst.msk [vmem:[#allocation4 + $0xe0] sm:$0xf] %vm2408_vm1, %v3641_v8  ;;  %v6810_v17 = vpop.f32.mrf.mxu1 }
 0x283   : > { %4050 = vrot.lane.b32.xlu0 %v4016_v12, %s7085_s27  ;;  %4992 = vst.msk [vmem:[#allocation6 + $0x10] sm:$0xff] %vm4329_vm14, %v4976_v14  ;;  %v4974_v20 = vadd.f32 %v8484_v30, %v4905_v15  ;;  %v4916_v21 = vadd.f32 %v8442_v42, %v6810_v17  ;;  %v4023_v42 = vld [vmem:[#allocation3 + $0x104] sm:$0xf]  ;;  %v4939_v47 = vpop.f32.mrf.mxu0  ;;  %v4028_v14 = vld [vmem:[#allocation3 + $0x118] sm:$0xf] }
 0x284   : > { %v3647_v18 = vpop.permute.xlu1 %3646  ;;  %v4715_v26 = vpop.f32.mrf.mxu1 }
 0x285   : > { %3683 = vst.msk [vmem:[#allocation4 + $0xec] sm:$0xf] %vm2408_vm1, %v3647_v18  ;;  %v3645_v25 = vpop.permute.xlu0 %3644  ;;  %v4977_v27 = vadd.f32 %v8484_v30, %v4916_v21  ;;  %v4908_v28 = vadd.f32 %v8449_v50, %v4715_v26  ;;  %v4022_v50 = vld [vmem:[#allocation3 + $0x100] sm:$0xf]  ;;  %v6847_v58 = vpop.f32.mrf.mxu0 }
 0x286   : > { %4056 = vrot.lane.b32.xlu1 %v4019_v16, %s7085_s27  ;;  %4990 = vst.msk [vmem:[#allocation6] sm:$0xff] %vm4329_vm14, %v4974_v20  ;;  %v6813_v31 = vpop.f32.mrf.mxu1 }
 0x287   : > { %3682 = vst.msk [vmem:[#allocation4 + $0xe8] sm:$0xf] %vm2408_vm1, %v3645_v25  ;;  %4054 = vrot.lane.b32.xlu0 %v4018_v22, %s7085_s27  ;;  %v4975_v33 = vadd.f32 %v8484_v30, %v4908_v28  ;;  %v4929_v34 = vadd.f32 %v8457_v57, %v6813_v31  ;;  %v4952_v5 = vpop.f32.mrf.mxu0 }
 0x288   : > { %v3651_v32 = vpop.permute.xlu1 %3650  ;;  %4993 = vst.msk [vmem:[#allocation6 + $0x18] sm:$0xff] %vm4329_vm14, %v4977_v27  ;;  %v4728_v37 = vpop.f32.mrf.mxu1  ;;  %v4111_v27 = vld [vmem:[#allocation3 + $0x130] sm:$0xf] }
 0x289   : > { %3685 = vst.msk [vmem:[#allocation4 + $0xf4] sm:$0xf] %vm2408_vm1, %v3651_v32  ;;  %v3649_v36 = vpop.permute.xlu0 %3648  ;;  %v4980_v38 = vadd.f32 %v8484_v30, %v4929_v34  ;;  %v4921_v41 = vadd.f32 %v8463_v63, %v4728_v37  ;;  %v6848_v12 = vpop.f32.mrf.mxu0  ;;  %v4116_v37 = vld [vmem:[#allocation3 + $0x144] sm:$0xf] }
 0x28a   : > { %4060 = vrot.lane.b32.xlu1 %v4021_v4, %s7085_s27  ;;  %4991 = vst.msk [vmem:[#allocation6 + $0x8] sm:$0xff] %vm4329_vm14, %v4975_v33  ;;  %v6814_v43 = vpop.f32.mrf.mxu1 }
 0x28b   : > { %3684 = vst.msk [vmem:[#allocation4 + $0xf0] sm:$0xf] %vm2408_vm1, %v3649_v36  ;;  %4058 = vrot.lane.b32.xlu0 %v4020_v35, %s7085_s27  ;;  %v4978_v48 = vadd.f32 %v8484_v30, %v4921_v41  ;;  %v4932_v49 = vadd.f32 %v8469_v24, %v6814_v43  ;;  %v4955_v22 = vpop.f32.mrf.mxu0  ;;  %v4113_v35 = vld [vmem:[#allocation3 + $0x138] sm:$0xf]  ;;  %v4115_v41 = vld [vmem:[#allocation3 + $0x140] sm:$0xf] }
 0x28c   : > { %v3655_v3 = vpop.permute.xlu1 %3654  ;;  %4996 = vst.msk [vmem:[#allocation6 + $0x30] sm:$0xff] %vm4329_vm14, %v4980_v38  ;;  %v4731_v52 = vpop.f32.mrf.mxu1 }
 0x28d   : > { %3687 = vst.msk [vmem:[#allocation4 + $0xfc] sm:$0xf] %vm2408_vm1, %v3655_v3  ;;  %v3653_v51 = vpop.permute.xlu0 %3652  ;;  %v4981_v1 = vadd.f32 %v8484_v30, %v4932_v49  ;;  %v4924_v53 = vadd.f32 %v8475_v44, %v4731_v52  ;;  %v4026_v44 = vld [vmem:[#allocation3 + $0x110] sm:$0xf]  ;;  %v4117_v3 = vld [vmem:[#allocation3 + $0x148] sm:$0xf] }
 0x28e   : > { %4064 = vrot.lane.b32.xlu1 %v4023_v42, %s7085_s27  ;;  %4994 = vst.msk [vmem:[#allocation6 + $0x20] sm:$0xff] %vm4329_vm14, %v4978_v48  ;;  %v6817_v56 = vpop.f32.mrf.mxu1  ;;  %v4120_v48 = vld [vmem:[#allocation3 + $0x164] sm:$0xf]  ;;  %v4122_v52 = vld [vmem:[#allocation3 + $0x16c] sm:$0xf] }
 0x28f   : > { %3686 = vst.msk [vmem:[#allocation4 + $0xf8] sm:$0xf] %vm2408_vm1, %v3653_v51  ;;  %4062 = vrot.lane.b32.xlu0 %v4022_v50, %s7085_s27  ;;  %v4979_v59 = vadd.f32 %v8484_v30, %v4924_v53  ;;  %v4945_v60 = vadd.f32 %v8486_v46, %v6817_v56  ;;  %v4119_v50 = vld [vmem:[#allocation3 + $0x160] sm:$0xf]  ;;  %v4121_v53 = vld [vmem:[#allocation3 + $0x168] sm:$0xf] }
 0x290   : > { %v3724_v57 = vpop.permute.xlu1 %3723  ;;  %4997 = vst.msk [vmem:[#allocation6 + $0x38] sm:$0xff] %vm4329_vm14, %v4981_v1  ;;  %v4744_v23 = vpop.f32.mrf.mxu1  ;;  %v4124_v56 = vld [vmem:[#allocation3 + $0x174] sm:$0xf] }
 0x291   : > { %3770 = vst.msk [vmem:[#allocation4 + $0xc4] sm:$0xf] %vm2506_vm2, %v3724_v57  ;;  %v3722_v63 = vpop.permute.xlu0 %3721  ;;  %v4984_v39 = vadd.f32 %v8484_v30, %v4945_v60  ;;  %v4937_v0 = vadd.f32 %v8495_v19, %v4744_v23  ;;  %v4112_v19 = vld [vmem:[#allocation3 + $0x134] sm:$0xf]  ;;  %v4126_v60 = vld [vmem:[#allocation3 + $0x17c] sm:$0xf] }
 0x292   : > { %4068 = vrot.lane.b32.xlu1 %v4025_v54, %s7085_s27  ;;  %4995 = vst.msk [vmem:[#allocation6 + $0x28] sm:$0xff] %vm4329_vm14, %v4979_v59  ;;  %v6818_v24 = vpop.f32.mrf.mxu1 }
 0x293   : > { %3769 = vst.msk [vmem:[#allocation4 + $0xc0] sm:$0xf] %vm2506_vm2, %v3722_v63  ;;  %4066 = vrot.lane.b32.xlu0 %v4024_v61, %s7085_s27  ;;  %v4982_v29 = vadd.f32 %v8484_v30, %v4937_v0  ;;  %v4948_v45 = vadd.f32 %v6844_v55, %v6818_v24  ;;  %v4114_v55 = vld [vmem:[#allocation3 + $0x13c] sm:$0xf]  ;;  %v4125_v63 = vld [vmem:[#allocation3 + $0x178] sm:$0xf] }
 0x294   : > { %v3728_v40 = vpop.permute.xlu1 %3727  ;;  %5000 = vst.msk [vmem:[#allocation6 + $0x50] sm:$0xff] %vm4329_vm14, %v4984_v39  ;;  %v4747_v7 = vpop.f32.mrf.mxu1  ;;  %v4209_v39 = vld [vmem:[#allocation3 + $0x194] sm:$0xf] }
 0x295   : > { %3772 = vst.msk [vmem:[#allocation4 + $0xcc] sm:$0xf] %vm2506_vm2, %v3728_v40  ;;  %v3726_v6 = vpop.permute.xlu0 %3725  ;;  %v4985_v9 = vadd.f32 %v8484_v30, %v4948_v45  ;;  %v4940_v10 = vadd.f32 %v4939_v47, %v4747_v7  ;;  %v4211_v40 = vld [vmem:[#allocation3 + $0x19c] sm:$0xf]  ;;  %v4212_v7 = vld [vmem:[#allocation3 + $0x1a0] sm:$0xf] }
 0x296   : > { %4072 = vrot.lane.b32.xlu1 %v4027_v2, %s7085_s27  ;;  %4998 = vst.msk [vmem:[#allocation6 + $0x40] sm:$0xff] %vm4329_vm14, %v4982_v29  ;;  %v6821_v46 = vpop.f32.mrf.mxu1  ;;  %v4208_v2 = vld [vmem:[#allocation3 + $0x190] sm:$0xf]  ;;  %v4210_v29 = vld [vmem:[#allocation3 + $0x198] sm:$0xf] }
 0x297   : > { %3771 = vst.msk [vmem:[#allocation4 + $0xc8] sm:$0xf] %vm2506_vm2, %v3726_v6  ;;  %4070 = vrot.lane.b32.xlu0 %v4026_v44, %s7085_s27  ;;  %v4983_v8 = vadd.f32 %v8484_v30, %v4940_v10  ;;  %v4961_v13 = vadd.f32 %v6847_v58, %v6821_v46  ;;  %v4123_v58 = vld [vmem:[#allocation3 + $0x170] sm:$0xf]  ;;  %v4213_v44 = vld [vmem:[#allocation3 + $0x1a4] sm:$0xf] }
 0x298   : > { %v3732_v11 = vpop.permute.xlu1 %3731  ;;  %5001 = vst.msk [vmem:[#allocation6 + $0x58] sm:$0xff] %vm4329_vm14, %v4985_v9  ;;  %v4760_v16 = vpop.f32.mrf.mxu1  ;;  %v4215_v10 = vld [vmem:[#allocation3 + $0x1ac] sm:$0xf]  ;;  %v4214_v46 = vld [vmem:[#allocation3 + $0x1a8] sm:$0xf] }
 0x299   : > { %3774 = vst.msk [vmem:[#allocation4 + $0xd4] sm:$0xf] %vm2506_vm2, %v3732_v11  ;;  %v3730_v15 = vpop.permute.xlu0 %3729  ;;  %v4988_v17 = vadd.f32 %v8484_v30, %v4961_v13  ;;  %v4953_v18 = vadd.f32 %v4952_v5, %v4760_v16  ;;  %v4216_v13 = vld [vmem:[#allocation3 + $0x1c0] sm:$0xf]  ;;  %v7088_v16 = vmov 0.0  }
 0x29a   : > { %4076 = vrot.lane.b32.xlu1 %v4029_v62, %s7085_s27  ;;  %4999 = vst.msk [vmem:[#allocation6 + $0x48] sm:$0xff] %vm4329_vm14, %v4983_v8  ;;  %v6822_v20 = vpop.f32.mrf.mxu1  ;;  %5006 = vst.msk [vmem:[#allocation7] sm:$0xff] %vm4329_vm14, %v7088_v16 }
 0x29b   : > { %3773 = vst.msk [vmem:[#allocation4 + $0xd0] sm:$0xf] %vm2506_vm2, %v3730_v15  ;;  %4074 = vrot.lane.b32.xlu0 %v4028_v14, %s7085_s27  ;;  %v4986_v25 = vadd.f32 %v8484_v30, %v4953_v18  ;;  %v4964_v26 = vadd.f32 %v6848_v12, %v6822_v20  ;;  %v4217_v12 = vld [vmem:[#allocation3 + $0x1c4] sm:$0xf]  ;;  %v4219_v15 = vld [vmem:[#allocation3 + $0x1cc] sm:$0xf] }
 0x29c   : > { %v3736_v21 = vpop.permute.xlu1 %3735  ;;  %5004 = vst.msk [vmem:[#allocation6 + $0x70] sm:$0xff] %vm4329_vm14, %v4988_v17  ;;  %v4763_v4 = vpop.f32.mrf.mxu1  ;;  %5007 = vst.msk [vmem:[#allocation7 + $0x8] sm:$0xff] %vm4329_vm14, %v7088_v16  ;;  %v4218_v18 = vld [vmem:[#allocation3 + $0x1c8] sm:$0xf]  ;;  %v4221_v20 = vld [vmem:[#allocation3 + $0x1d4] sm:$0xf] }
 0x29d   : > { %3776 = vst.msk [vmem:[#allocation4 + $0xdc] sm:$0xf] %vm2506_vm2, %v3736_v21  ;;  %v3734_v28 = vpop.permute.xlu0 %3733  ;;  %v4989_v31 = vadd.f32 %v8484_v30, %v4964_v26  ;;  %v4956_v32 = vadd.f32 %v4955_v22, %v4763_v4  ;;  %v4220_v22 = vld [vmem:[#allocation3 + $0x1d0] sm:$0xf]  ;;  %v4223_v26 = vld [vmem:[#allocation3 + $0x1dc] sm:$0xf] }
 0x29e   : > { %4145 = vrot.lane.b32.xlu1 %v4112_v19, %s7086_s28  ;;  %5002 = vst.msk [vmem:[#allocation6 + $0x60] sm:$0xff] %vm4329_vm14, %v4986_v25  ;;  %5008 = vst.msk [vmem:[#allocation7 + $0x10] sm:$0xff] %vm4329_vm14, %v7088_v16 }
 0x29f   : > { %3775 = vst.msk [vmem:[#allocation4 + $0xd8] sm:$0xf] %vm2506_vm2, %v3734_v28  ;;  %4143 = vrot.lane.b32.xlu0 %v4111_v27, %s7086_s28  ;;  %v4987_v34 = vadd.f32 %v8484_v30, %v4956_v32  ;;  %v4118_v30 = vld [vmem:[#allocation3 + $0x14c] sm:$0xf]  ;;  %v4222_v28 = vld [vmem:[#allocation3 + $0x1d8] sm:$0xf] }
 0x2a0   : > { %v3740_v33 = vpop.permute.xlu1 %3739  ;;  %5005 = vst.msk [vmem:[#allocation6 + $0x78] sm:$0xff] %vm4329_vm14, %v4989_v31  ;;  %5009 = vst.msk [vmem:[#allocation7 + $0x18] sm:$0xff] %vm4329_vm14, %v7088_v16 }
 0x2a1   : > { %3778 = vst.msk [vmem:[#allocation4 + $0xe4] sm:$0xf] %vm2506_vm2, %v3740_v33  ;;  %v3738_v36 = vpop.permute.xlu0 %3737 }
 0x2a2   : > { %4149 = vrot.lane.b32.xlu1 %v4114_v55, %s7086_s28  ;;  %5003 = vst.msk [vmem:[#allocation6 + $0x68] sm:$0xff] %vm4329_vm14, %v4987_v34  ;;  %5010 = vst.msk [vmem:[#allocation7 + $0x20] sm:$0xff] %vm4329_vm14, %v7088_v16 }
 0x2a3   : > { %3777 = vst.msk [vmem:[#allocation4 + $0xe0] sm:$0xf] %vm2506_vm2, %v3738_v36  ;;  %4147 = vrot.lane.b32.xlu0 %v4113_v35, %s7086_s28 }
 0x2a4   : > { %v3744_v38 = vpop.permute.xlu1 %3743  ;;  %5011 = vst.msk [vmem:[#allocation7 + $0x28] sm:$0xff] %vm4329_vm14, %v7088_v16  ;;  %5012 = vst.msk [vmem:[#allocation7 + $0x30] sm:$0xff] %vm4329_vm14, %v7088_v16 }
 0x2a5   : > { %3780 = vst.msk [vmem:[#allocation4 + $0xec] sm:$0xf] %vm2506_vm2, %v3744_v38  ;;  %v3742_v42 = vpop.permute.xlu0 %3741 }
 0x2a6   : > { %4153 = vrot.lane.b32.xlu1 %v4116_v37, %s7086_s28  ;;  %3779 = vst.msk [vmem:[#allocation4 + $0xe8] sm:$0xf] %vm2506_vm2, %v3742_v42 }
 0x2a7   : > { %4151 = vrot.lane.b32.xlu0 %v4115_v41, %s7086_s28  ;;  %5013 = vst.msk [vmem:[#allocation7 + $0x38] sm:$0xff] %vm4329_vm14, %v7088_v16  ;;  %5014 = vst.msk [vmem:[#allocation7 + $0x40] sm:$0xff] %vm4329_vm14, %v7088_v16 }
 0x2a8   : > { %v3748_v43 = vpop.permute.xlu1 %3747  ;;  %5015 = vst.msk [vmem:[#allocation7 + $0x48] sm:$0xff] %vm4329_vm14, %v7088_v16  ;;  %5016 = vst.msk [vmem:[#allocation7 + $0x50] sm:$0xff] %vm4329_vm14, %v7088_v16 }
 0x2a9   : > { %3782 = vst.msk [vmem:[#allocation4 + $0xf4] sm:$0xf] %vm2506_vm2, %v3748_v43  ;;  %v3746_v47 = vpop.permute.xlu0 %3745 }
 0x2aa   : > { %4157 = vrot.lane.b32.xlu1 %v4118_v30, %s7086_s28  ;;  %3781 = vst.msk [vmem:[#allocation4 + $0xf0] sm:$0xf] %vm2506_vm2, %v3746_v47 }
 0x2ab   : > { %4155 = vrot.lane.b32.xlu0 %v4117_v3, %s7086_s28  ;;  %5017 = vst.msk [vmem:[#allocation7 + $0x58] sm:$0xff] %vm4329_vm14, %v7088_v16  ;;  %5018 = vst.msk [vmem:[#allocation7 + $0x60] sm:$0xff] %vm4329_vm14, %v7088_v16 }
 0x2ac   : > { %v3752_v49 = vpop.permute.xlu1 %3751  ;;  %5019 = vst.msk [vmem:[#allocation7 + $0x68] sm:$0xff] %vm4329_vm14, %v7088_v16  ;;  %5020 = vst.msk [vmem:[#allocation7 + $0x70] sm:$0xff] %vm4329_vm14, %v7088_v16 }
 0x2ad   : > { %3784 = vst.msk [vmem:[#allocation4 + $0xfc] sm:$0xf] %vm2506_vm2, %v3752_v49  ;;  %v3750_v51 = vpop.permute.xlu0 %3749 }
 0x2ae   : > { %4161 = vrot.lane.b32.xlu1 %v4120_v48, %s7086_s28  ;;  %3783 = vst.msk [vmem:[#allocation4 + $0xf8] sm:$0xf] %vm2506_vm2, %v3750_v51 }
 0x2af   : > { %4159 = vrot.lane.b32.xlu0 %v4119_v50, %s7086_s28  ;;  %5021 = vst.msk [vmem:[#allocation7 + $0x78] sm:$0xff] %vm4329_vm14, %v7088_v16 }
 0x2b0   : > { %v3821_v1 = vpop.permute.xlu1 %3820 }
 0x2b1   : > { %3867 = vst.msk [vmem:[#allocation4 + $0xc4] sm:$0xf] %vm2604_vm6, %v3821_v1  ;;  %v3819_v54 = vpop.permute.xlu0 %3818 }
 0x2b2   : > { %4165 = vrot.lane.b32.xlu1 %v4122_v52, %s7086_s28  ;;  %3866 = vst.msk [vmem:[#allocation4 + $0xc0] sm:$0xf] %vm2604_vm6, %v3819_v54 }
 0x2b3   : > { %4163 = vrot.lane.b32.xlu0 %v4121_v53, %s7086_s28 }
 0x2b4   : > { %v3825_v57 = vpop.permute.xlu1 %3824 }
 0x2b5   : > { %3869 = vst.msk [vmem:[#allocation4 + $0xcc] sm:$0xf] %vm2604_vm6, %v3825_v57  ;;  %v3823_v59 = vpop.permute.xlu0 %3822 }
 0x2b6   : > { %4169 = vrot.lane.b32.xlu1 %v4124_v56, %s7086_s28  ;;  %3868 = vst.msk [vmem:[#allocation4 + $0xc8] sm:$0xf] %vm2604_vm6, %v3823_v59 }
 0x2b7   : > { %4167 = vrot.lane.b32.xlu0 %v4123_v58, %s7086_s28 }
 0x2b8   : > { %v3829_v61 = vpop.permute.xlu1 %3828 }
 0x2b9   : > { %3871 = vst.msk [vmem:[#allocation4 + $0xd4] sm:$0xf] %vm2604_vm6, %v3829_v61  ;;  %v3827_v23 = vpop.permute.xlu0 %3826 }
 0x2ba   : > { %4173 = vrot.lane.b32.xlu1 %v4126_v60, %s7086_s28  ;;  %3870 = vst.msk [vmem:[#allocation4 + $0xd0] sm:$0xf] %vm2604_vm6, %v3827_v23 }
 0x2bb   : > { %4171 = vrot.lane.b32.xlu0 %v4125_v63, %s7086_s28 }
 0x2bc   : > { %v3833_v0 = vpop.permute.xlu1 %3832 }
 0x2bd   : > { %3873 = vst.msk [vmem:[#allocation4 + $0xdc] sm:$0xf] %vm2604_vm6, %v3833_v0  ;;  %v3831_v24 = vpop.permute.xlu0 %3830 }
 0x2be   : > { %4242 = vrot.lane.b32.xlu1 %v4209_v39, %s7087_s15  ;;  %3872 = vst.msk [vmem:[#allocation4 + $0xd8] sm:$0xf] %vm2604_vm6, %v3831_v24 }
 0x2bf   : > { %4240 = vrot.lane.b32.xlu0 %v4208_v2, %s7087_s15 }
 0x2c0   : > { %v3837_v5 = vpop.permute.xlu1 %3836 }
 0x2c1   : > { %3875 = vst.msk [vmem:[#allocation4 + $0xe4] sm:$0xf] %vm2604_vm6, %v3837_v5  ;;  %v3835_v45 = vpop.permute.xlu0 %3834 }
 0x2c2   : > { %4246 = vrot.lane.b32.xlu1 %v4211_v40, %s7087_s15  ;;  %3874 = vst.msk [vmem:[#allocation4 + $0xe0] sm:$0xf] %vm2604_vm6, %v3835_v45 }
 0x2c3   : > { %4244 = vrot.lane.b32.xlu0 %v4210_v29, %s7087_s15 }
 0x2c4   : > { %v3841_v6 = vpop.permute.xlu1 %3840 }
 0x2c5   : > { %3877 = vst.msk [vmem:[#allocation4 + $0xec] sm:$0xf] %vm2604_vm6, %v3841_v6  ;;  %v3839_v9 = vpop.permute.xlu0 %3838 }
 0x2c6   : > { %4250 = vrot.lane.b32.xlu1 %v4213_v44, %s7087_s15  ;;  %3876 = vst.msk [vmem:[#allocation4 + $0xe8] sm:$0xf] %vm2604_vm6, %v3839_v9 }
 0x2c7   : > { %4248 = vrot.lane.b32.xlu0 %v4212_v7, %s7087_s15 }
 0x2c8   : > { %v3845_v62 = vpop.permute.xlu1 %3844 }
 0x2c9   : > { %3879 = vst.msk [vmem:[#allocation4 + $0xf4] sm:$0xf] %vm2604_vm6, %v3845_v62  ;;  %v3843_v11 = vpop.permute.xlu0 %3842 }
 0x2ca   : > { %4254 = vrot.lane.b32.xlu1 %v4215_v10, %s7087_s15  ;;  %3878 = vst.msk [vmem:[#allocation4 + $0xf0] sm:$0xf] %vm2604_vm6, %v3843_v11 }
 0x2cb   : > { %4252 = vrot.lane.b32.xlu0 %v4214_v46, %s7087_s15 }
 0x2cc   : > { %v3849_v8 = vpop.permute.xlu1 %3848 }
 0x2cd   : > { %3881 = vst.msk [vmem:[#allocation4 + $0xfc] sm:$0xf] %vm2604_vm6, %v3849_v8  ;;  %v3847_v14 = vpop.permute.xlu0 %3846 }
 0x2ce   : > { %4258 = vrot.lane.b32.xlu1 %v4217_v12, %s7087_s15  ;;  %3880 = vst.msk [vmem:[#allocation4 + $0xf8] sm:$0xf] %vm2604_vm6, %v3847_v14 }
 0x2cf   : > { %4256 = vrot.lane.b32.xlu0 %v4216_v13, %s7087_s15 }
 0x2d0   : > { %v3952_v17 = vpop.permute.xlu1 %3951 }
 0x2d1   : > { %3998 = vst.msk [vmem:[#allocation4 + $0x104] sm:$0xf] %vm2310_vm15, %v3952_v17  ;;  %v3950_v19 = vpop.permute.xlu0 %3949 }
 0x2d2   : > { %4262 = vrot.lane.b32.xlu1 %v4219_v15, %s7087_s15  ;;  %3997 = vst.msk [vmem:[#allocation4 + $0x100] sm:$0xf] %vm2310_vm15, %v3950_v19 }
 0x2d3   : > { %4260 = vrot.lane.b32.xlu0 %v4218_v18, %s7087_s15 }
 0x2d4   : > { %v3956_v21 = vpop.permute.xlu1 %3955 }
 0x2d5   : > { %4000 = vst.msk [vmem:[#allocation4 + $0x10c] sm:$0xf] %vm2310_vm15, %v3956_v21  ;;  %v3954_v25 = vpop.permute.xlu0 %3953 }
 0x2d6   : > { %4266 = vrot.lane.b32.xlu1 %v4221_v20, %s7087_s15  ;;  %3999 = vst.msk [vmem:[#allocation4 + $0x108] sm:$0xf] %vm2310_vm15, %v3954_v25 }
 0x2d7   : > { %4264 = vrot.lane.b32.xlu0 %v4220_v22, %s7087_s15 }
 0x2d8   : > { %v3960_v27 = vpop.permute.xlu1 %3959 }
 0x2d9   : > { %4002 = vst.msk [vmem:[#allocation4 + $0x114] sm:$0xf] %vm2310_vm15, %v3960_v27  ;;  %v3958_v4 = vpop.permute.xlu0 %3957 }
 0x2da   : > { %4270 = vrot.lane.b32.xlu1 %v4223_v26, %s7087_s15  ;;  %4001 = vst.msk [vmem:[#allocation4 + $0x110] sm:$0xf] %vm2310_vm15, %v3958_v4 }
 0x2db   : > { %4268 = vrot.lane.b32.xlu0 %v4222_v28, %s7087_s15 }
 0x2dc   : > { %v3964_v31 = vpop.permute.xlu1 %3963 }
 0x2dd   : > { %4004 = vst.msk [vmem:[#allocation4 + $0x11c] sm:$0xf] %vm2310_vm15, %v3964_v31  ;;  %v3962_v32 = vpop.permute.xlu0 %3961 }
 0x2de   : > { %4003 = vst.msk [vmem:[#allocation4 + $0x118] sm:$0xf] %vm2310_vm15, %v3962_v32 }
 0x2e0   : > { %v3968_v55 = vpop.permute.xlu1 %3967 }
 0x2e1   : > { %4006 = vst.msk [vmem:[#allocation4 + $0x124] sm:$0xf] %vm2310_vm15, %v3968_v55  ;;  %v3966_v33 = vpop.permute.xlu0 %3965 }
 0x2e2   : > { %4005 = vst.msk [vmem:[#allocation4 + $0x120] sm:$0xf] %vm2310_vm15, %v3966_v33 }
 0x2e4   : > { %v3972_v34 = vpop.permute.xlu1 %3971 }
 0x2e5   : > { %4008 = vst.msk [vmem:[#allocation4 + $0x12c] sm:$0xf] %vm2310_vm15, %v3972_v34  ;;  %v3970_v35 = vpop.permute.xlu0 %3969 }
 0x2e6   : > { %4007 = vst.msk [vmem:[#allocation4 + $0x128] sm:$0xf] %vm2310_vm15, %v3970_v35 }
 0x2e8   : > { %v3976_v36 = vpop.permute.xlu1 %3975 }
 0x2e9   : > { %4010 = vst.msk [vmem:[#allocation4 + $0x134] sm:$0xf] %vm2310_vm15, %v3976_v36  ;;  %v3974_v37 = vpop.permute.xlu0 %3973 }
 0x2ea   : > { %4009 = vst.msk [vmem:[#allocation4 + $0x130] sm:$0xf] %vm2310_vm15, %v3974_v37 }
 0x2ec   : > { %v3980_v38 = vpop.permute.xlu1 %3979 }
 0x2ed   : > { %4012 = vst.msk [vmem:[#allocation4 + $0x13c] sm:$0xf] %vm2310_vm15, %v3980_v38  ;;  %v3978_v41 = vpop.permute.xlu0 %3977 }
 0x2ee   : > { %4011 = vst.msk [vmem:[#allocation4 + $0x138] sm:$0xf] %vm2310_vm15, %v3978_v41 }
 0x2f0   : > { %v4049_v42 = vpop.permute.xlu1 %4048 }
 0x2f1   : > { %4095 = vst.msk [vmem:[#allocation4 + $0x104] sm:$0xf] %vm2408_vm1, %v4049_v42  ;;  %v4047_v30 = vpop.permute.xlu0 %4046 }
 0x2f2   : > { %4094 = vst.msk [vmem:[#allocation4 + $0x100] sm:$0xf] %vm2408_vm1, %v4047_v30 }
 0x2f4   : > { %v4053_v43 = vpop.permute.xlu1 %4052 }
 0x2f5   : > { %4097 = vst.msk [vmem:[#allocation4 + $0x10c] sm:$0xf] %vm2408_vm1, %v4053_v43  ;;  %v4051_v3 = vpop.permute.xlu0 %4050 }
 0x2f6   : > { %4096 = vst.msk [vmem:[#allocation4 + $0x108] sm:$0xf] %vm2408_vm1, %v4051_v3 }
 0x2f8   : > { %v4057_v47 = vpop.permute.xlu1 %4056 }
 0x2f9   : > { %4099 = vst.msk [vmem:[#allocation4 + $0x114] sm:$0xf] %vm2408_vm1, %v4057_v47  ;;  %v4055_v48 = vpop.permute.xlu0 %4054 }
 0x2fa   : > { %4098 = vst.msk [vmem:[#allocation4 + $0x110] sm:$0xf] %vm2408_vm1, %v4055_v48 }
 0x2fc   : > { %v4061_v49 = vpop.permute.xlu1 %4060 }
 0x2fd   : > { %4101 = vst.msk [vmem:[#allocation4 + $0x11c] sm:$0xf] %vm2408_vm1, %v4061_v49  ;;  %v4059_v50 = vpop.permute.xlu0 %4058 }
 0x2fe   : > { %4100 = vst.msk [vmem:[#allocation4 + $0x118] sm:$0xf] %vm2408_vm1, %v4059_v50 }
 0x300   : > { %v4065_v51 = vpop.permute.xlu1 %4064 }
 0x301   : > { %4103 = vst.msk [vmem:[#allocation4 + $0x124] sm:$0xf] %vm2408_vm1, %v4065_v51  ;;  %v4063_v52 = vpop.permute.xlu0 %4062 }
 0x302   : > { %4102 = vst.msk [vmem:[#allocation4 + $0x120] sm:$0xf] %vm2408_vm1, %v4063_v52 }
 0x304   : > { %v4069_v1 = vpop.permute.xlu1 %4068 }
 0x305   : > { %4105 = vst.msk [vmem:[#allocation4 + $0x12c] sm:$0xf] %vm2408_vm1, %v4069_v1  ;;  %v4067_v53 = vpop.permute.xlu0 %4066 }
 0x306   : > { %4104 = vst.msk [vmem:[#allocation4 + $0x128] sm:$0xf] %vm2408_vm1, %v4067_v53 }
 0x308   : > { %v4073_v54 = vpop.permute.xlu1 %4072 }
 0x309   : > { %4107 = vst.msk [vmem:[#allocation4 + $0x134] sm:$0xf] %vm2408_vm1, %v4073_v54  ;;  %v4071_v56 = vpop.permute.xlu0 %4070 }
 0x30a   : > { %4106 = vst.msk [vmem:[#allocation4 + $0x130] sm:$0xf] %vm2408_vm1, %v4071_v56 }
 0x30c   : > { %v4077_v57 = vpop.permute.xlu1 %4076 }
 0x30d   : > { %4109 = vst.msk [vmem:[#allocation4 + $0x13c] sm:$0xf] %vm2408_vm1, %v4077_v57  ;;  %v4075_v58 = vpop.permute.xlu0 %4074 }
 0x30e   : > { %4108 = vst.msk [vmem:[#allocation4 + $0x138] sm:$0xf] %vm2408_vm1, %v4075_v58 }
 0x310   : > { %v4146_v59 = vpop.permute.xlu1 %4145 }
 0x311   : > { %4192 = vst.msk [vmem:[#allocation4 + $0x104] sm:$0xf] %vm2506_vm2, %v4146_v59  ;;  %v4144_v60 = vpop.permute.xlu0 %4143 }
 0x312   : > { %4191 = vst.msk [vmem:[#allocation4 + $0x100] sm:$0xf] %vm2506_vm2, %v4144_v60 }
 0x314   : > { %v4150_v61 = vpop.permute.xlu1 %4149 }
 0x315   : > { %4194 = vst.msk [vmem:[#allocation4 + $0x10c] sm:$0xf] %vm2506_vm2, %v4150_v61  ;;  %v4148_v63 = vpop.permute.xlu0 %4147 }
 0x316   : > { %4193 = vst.msk [vmem:[#allocation4 + $0x108] sm:$0xf] %vm2506_vm2, %v4148_v63 }
 0x318   : > { %v4154_v23 = vpop.permute.xlu1 %4153 }
 0x319   : > { %4196 = vst.msk [vmem:[#allocation4 + $0x114] sm:$0xf] %vm2506_vm2, %v4154_v23  ;;  %v4152_v39 = vpop.permute.xlu0 %4151 }
 0x31a   : > { %4195 = vst.msk [vmem:[#allocation4 + $0x110] sm:$0xf] %vm2506_vm2, %v4152_v39 }
 0x31c   : > { %v4158_v0 = vpop.permute.xlu1 %4157 }
 0x31d   : > { %4198 = vst.msk [vmem:[#allocation4 + $0x11c] sm:$0xf] %vm2506_vm2, %v4158_v0  ;;  %v4156_v2 = vpop.permute.xlu0 %4155 }
 0x31e   : > { %4197 = vst.msk [vmem:[#allocation4 + $0x118] sm:$0xf] %vm2506_vm2, %v4156_v2 }
 0x320   : > { %v4162_v24 = vpop.permute.xlu1 %4161 }
 0x321   : > { %4200 = vst.msk [vmem:[#allocation4 + $0x124] sm:$0xf] %vm2506_vm2, %v4162_v24  ;;  %v4160_v40 = vpop.permute.xlu0 %4159 }
 0x322   : > { %4199 = vst.msk [vmem:[#allocation4 + $0x120] sm:$0xf] %vm2506_vm2, %v4160_v40 }
 0x324   : > { %v4166_v5 = vpop.permute.xlu1 %4165 }
 0x325   : > { %4202 = vst.msk [vmem:[#allocation4 + $0x12c] sm:$0xf] %vm2506_vm2, %v4166_v5  ;;  %v4164_v29 = vpop.permute.xlu0 %4163 }
 0x326   : > { %4201 = vst.msk [vmem:[#allocation4 + $0x128] sm:$0xf] %vm2506_vm2, %v4164_v29 }
 0x328   : > { %v4170_v45 = vpop.permute.xlu1 %4169 }
 0x329   : > { %4204 = vst.msk [vmem:[#allocation4 + $0x134] sm:$0xf] %vm2506_vm2, %v4170_v45  ;;  %v4168_v44 = vpop.permute.xlu0 %4167 }
 0x32a   : > { %4203 = vst.msk [vmem:[#allocation4 + $0x130] sm:$0xf] %vm2506_vm2, %v4168_v44 }
 0x32c   : > { %v4174_v6 = vpop.permute.xlu1 %4173 }
 0x32d   : > { %4206 = vst.msk [vmem:[#allocation4 + $0x13c] sm:$0xf] %vm2506_vm2, %v4174_v6  ;;  %v4172_v7 = vpop.permute.xlu0 %4171 }
 0x32e   : > { %4205 = vst.msk [vmem:[#allocation4 + $0x138] sm:$0xf] %vm2506_vm2, %v4172_v7 }
 0x330   : > { %v4243_v9 = vpop.permute.xlu1 %4242 }
 0x331   : > { %4289 = vst.msk [vmem:[#allocation4 + $0x104] sm:$0xf] %vm2604_vm6, %v4243_v9  ;;  %v4241_v10 = vpop.permute.xlu0 %4240 }
 0x332   : > { %4288 = vst.msk [vmem:[#allocation4 + $0x100] sm:$0xf] %vm2604_vm6, %v4241_v10 }
 0x334   : > { %v4247_v62 = vpop.permute.xlu1 %4246 }
 0x335   : > { %4291 = vst.msk [vmem:[#allocation4 + $0x10c] sm:$0xf] %vm2604_vm6, %v4247_v62  ;;  %v4245_v46 = vpop.permute.xlu0 %4244 }
 0x336   : > { %4290 = vst.msk [vmem:[#allocation4 + $0x108] sm:$0xf] %vm2604_vm6, %v4245_v46 }
 0x338   : > { %v4251_v11 = vpop.permute.xlu1 %4250 }
 0x339   : > { %4293 = vst.msk [vmem:[#allocation4 + $0x114] sm:$0xf] %vm2604_vm6, %v4251_v11  ;;  %v4249_v12 = vpop.permute.xlu0 %4248 }
 0x33a   : > { %4292 = vst.msk [vmem:[#allocation4 + $0x110] sm:$0xf] %vm2604_vm6, %v4249_v12 }
 0x33c   : > { %v4255_v8 = vpop.permute.xlu1 %4254 }
 0x33d   : > { %4295 = vst.msk [vmem:[#allocation4 + $0x11c] sm:$0xf] %vm2604_vm6, %v4255_v8  ;;  %v4253_v13 = vpop.permute.xlu0 %4252 }
 0x33e   : > { %4294 = vst.msk [vmem:[#allocation4 + $0x118] sm:$0xf] %vm2604_vm6, %v4253_v13 }
 0x340   : > { %v4259_v14 = vpop.permute.xlu1 %4258 }
 0x341   : > { %4297 = vst.msk [vmem:[#allocation4 + $0x124] sm:$0xf] %vm2604_vm6, %v4259_v14  ;;  %v4257_v15 = vpop.permute.xlu0 %4256 }
 0x342   : > { %4296 = vst.msk [vmem:[#allocation4 + $0x120] sm:$0xf] %vm2604_vm6, %v4257_v15 }
 0x344   : > { %v4263_v16 = vpop.permute.xlu1 %4262 }
 0x345   : > { %4299 = vst.msk [vmem:[#allocation4 + $0x12c] sm:$0xf] %vm2604_vm6, %v4263_v16  ;;  %v4261_v17 = vpop.permute.xlu0 %4260 }
 0x346   : > { %4298 = vst.msk [vmem:[#allocation4 + $0x128] sm:$0xf] %vm2604_vm6, %v4261_v17 }
 0x348   : > { %v4267_v18 = vpop.permute.xlu1 %4266 }
 0x349   : > { %4301 = vst.msk [vmem:[#allocation4 + $0x134] sm:$0xf] %vm2604_vm6, %v4267_v18  ;;  %v4265_v19 = vpop.permute.xlu0 %4264 }
 0x34a   : > { %4300 = vst.msk [vmem:[#allocation4 + $0x130] sm:$0xf] %vm2604_vm6, %v4265_v19 }
 0x34c   : > { %v4271_v20 = vpop.permute.xlu1 %4270 }
 0x34d   : > { %4303 = vst.msk [vmem:[#allocation4 + $0x13c] sm:$0xf] %vm2604_vm6, %v4271_v20  ;;  %v4269_v21 = vpop.permute.xlu0 %4268 }
 0x34e   : > { %4302 = vst.msk [vmem:[#allocation4 + $0x138] sm:$0xf] %vm2604_vm6, %v4269_v21 }
 0x34f PF: > { %v7021_v22 = vld [vmem:[%s7188_s19 + $0x20] sm:$0xff]   ;;  %s6678_s22 = sshll.u32 %s7180_s30, 6  ;;  %v7022_v25 = vld [vmem:[%s7188_s19 + $0x18] sm:$0xff]   ;;  %v7023_v26 = vld [vmem:[%s7188_s19 + $0x10] sm:$0xff]   ;;  %vm5137_vm0 = vcmask 654336   ;;  %vm5275_vm7 = vcmask 130048  }
 0x350   : > { %6849 = vmatprep.subr.bf16.mxu0 %v7021_v22  ;;  %6953 = vmatprep.subr.bf16.mxu1 %v7021_v22  ;;  %s8702_s27 = scalar_lea.vmem [#allocation4], %s6678_s22  ;;  %v7024_v4 = vld [vmem:[%s7188_s19 + $0x8] sm:$0xff]   ;;  %v7025_v31 = vld [vmem:[%s7188_s19] sm:$0xff]   ;;  %v5024_v37 = vld [vmem:[#allocation7 + $0x10] sm:$0xff]  ;;  %p6622_p5 = scmp.ne.s32.totalorder %s7180_s30, 4 }
 0x351   : > { %6850 = vmatpush3.bf16.msra.mxu0 %v7021_v22  ;;  %6958 = vmatpush3.bf16.msra.mxu1 %v7021_v22  ;;  %v5032_v38 = vld [vmem:[#allocation7 + $0x50] sm:$0xff]  ;;  %v5022_v30 = vld [vmem:[#allocation7] sm:$0xff]  ;;  %v5025_v50 = vld [vmem:[#allocation7 + $0x18] sm:$0xff] }
 0x352   : > { %6851 = vmatprep.subr.bf16.mxu0 %v7022_v25  ;;  %6954 = vmatprep.subr.bf16.mxu1 %v7022_v25  ;;  %v5030_v43 = vld [vmem:[#allocation7 + $0x40] sm:$0xff]  ;;  %v5033_v51 = vld [vmem:[#allocation7 + $0x58] sm:$0xff]  ;;  %v5023_v56 = vld [vmem:[#allocation7 + $0x8] sm:$0xff] }
 0x353   : > { %v5031_v57 = vld [vmem:[#allocation7 + $0x48] sm:$0xff]  ;;  %v5028_v63 = vld [vmem:[#allocation7 + $0x30] sm:$0xff]  ;;  %v5026_v40 = vld [vmem:[#allocation7 + $0x20] sm:$0xff] }
 0x354   : > { %v5036_v23 = vld [vmem:[#allocation7 + $0x70] sm:$0xff]  ;;  %v5034_v5 = vld [vmem:[#allocation7 + $0x60] sm:$0xff]  ;;  %v5029_v7 = vld [vmem:[#allocation7 + $0x38] sm:$0xff] }
 0x355   : > { %v7026_v27 = vld [vmem:[%s8702_s27] sm:$0xff]   ;;  %6852 = vmatpush3.bf16.msra.mxu0 %v7022_v25  ;;  %6959 = vmatpush3.bf16.msra.mxu1 %v7022_v25  ;;  %v7028_v32 = vld [vmem:[%s8702_s27 + $0x8] sm:$0xff]   ;;  %v7030_v33 = vld [vmem:[%s8702_s27 + $0x10] sm:$0xff]  }
 0x356   : > { %v7027_v28 = vld [vmem:[%s8702_s27 + $0x20] sm:$0xff]   ;;  %6853 = vmatprep.subr.bf16.mxu0 %v7023_v26  ;;  %6955 = vmatprep.subr.bf16.mxu1 %v7023_v26  ;;  %v7029_v55 = vld [vmem:[%s8702_s27 + $0x28] sm:$0xff]   ;;  %v7031_v34 = vld [vmem:[%s8702_s27 + $0x30] sm:$0xff]  }
 0x357   : > { %6859 = vmatprep.mubr.msk.bf16.mxu0 %vm5137_vm0, %v7026_v27  ;;  %6867 = vmatprep.mubr.msk.bf16.mxu1 %vm5137_vm0, %v7027_v28  ;;  %v7032_v35 = vld [vmem:[%s8702_s27 + $0x18] sm:$0xff]   ;;  %v5027_v12 = vld [vmem:[#allocation7 + $0x28] sm:$0xff] }
 0x358   : > { %v7033_v36 = vld [vmem:[%s8702_s27 + $0x38] sm:$0xff]   ;;  %v5035_v8 = vld [vmem:[#allocation7 + $0x68] sm:$0xff] }
 0x359   : > { %6854 = vmatpush3.bf16.msra.mxu0 %v7023_v26  ;;  %6960 = vmatpush3.bf16.msra.mxu1 %v7023_v26  ;;  %v5037_v9 = vld [vmem:[#allocation7 + $0x78] sm:$0xff] }
 0x35a   : > { %6855 = vmatprep.subr.bf16.mxu0 %v7024_v4  ;;  %6956 = vmatprep.subr.bf16.mxu1 %v7024_v4 }
 0x35d   : > { %6856 = vmatpush3.bf16.msra.mxu0 %v7024_v4  ;;  %6961 = vmatpush3.bf16.msra.mxu1 %v7024_v4 }
 0x35e   : > { %6857 = vmatprep.subr.bf16.mxu0 %v7025_v31  ;;  %6957 = vmatprep.subr.bf16.mxu1 %v7025_v31 }
 0x361   : > { %6858 = vmatpush3.bf16.msra.mxu0 %v7025_v31  ;;  %6962 = vmatpush3.bf16.msra.mxu1 %v7025_v31 }
 0x364   : > { %6860 = vmatmul.mubr.msk.bf16.vlgmr.msra.gmra.mxu0 %vm5137_vm0, %v7028_v32  ;;  %6868 = vmatmul.mubr.msk.bf16.vlgmr.msra.gmra.mxu1 %vm5137_vm0, %v7029_v55 }
 0x365   : > { %6863 = vmatprep.mubr.msk.bf16.mxu0 %vm5137_vm0, %v7030_v33  ;;  %6871 = vmatprep.mubr.msk.bf16.mxu1 %vm5137_vm0, %v7031_v34 }
 0x36c   : > { %6864 = vmatmul.mubr.msk.bf16.gmra.mxu0 %vm5137_vm0, %v7032_v35  ;;  %6872 = vmatmul.mubr.msk.bf16.gmra.mxu1 %vm5137_vm0, %v7033_v36 }
 0x424   : > { %v6861_v41 = vpop.f32.mrf.mxu0  ;;  %v6869_v42 = vpop.f32.mrf.mxu1 }
 0x425   : > { %v5261_v3 = vadd.f32 %v6861_v41, %v5024_v37  ;;  %v5269_v47 = vadd.f32 %v6869_v42, %v5032_v38 }
 0x426   : > { %v5196_v48 = vpop.f32.mrf.mxu0  ;;  %v5228_v49 = vpop.f32.mrf.mxu1 }
 0x427   : > { %5278 = vst.msk [vmem:[#allocation7 + $0x10] sm:$0xff] %vm5275_vm7, %v5261_v3  ;;  %5286 = vst.msk [vmem:[#allocation7 + $0x50] sm:$0xff] %vm5275_vm7, %v5269_v47  ;;  %v5259_v52 = vadd.f32 %v5196_v48, %v5022_v30  ;;  %v5267_v1 = vadd.f32 %v5228_v49, %v5030_v43 }
 0x428   : > { %v6862_v53 = vpop.f32.mrf.mxu0  ;;  %v6870_v54 = vpop.f32.mrf.mxu1 }
 0x429   : > { %5276 = vst.msk [vmem:[#allocation7] sm:$0xff] %vm5275_vm7, %v5259_v52  ;;  %5284 = vst.msk [vmem:[#allocation7 + $0x40] sm:$0xff] %vm5275_vm7, %v5267_v1  ;;  %v5262_v58 = vadd.f32 %v6862_v53, %v5025_v50  ;;  %v5270_v59 = vadd.f32 %v6870_v54, %v5033_v51 }
 0x42a   : > { %v5199_v60 = vpop.f32.mrf.mxu0  ;;  %v5231_v61 = vpop.f32.mrf.mxu1 }
 0x42b   : > { %5279 = vst.msk [vmem:[#allocation7 + $0x18] sm:$0xff] %vm5275_vm7, %v5262_v58  ;;  %5287 = vst.msk [vmem:[#allocation7 + $0x58] sm:$0xff] %vm5275_vm7, %v5270_v59  ;;  %v5260_v39 = vadd.f32 %v5199_v60, %v5023_v56  ;;  %v5268_v0 = vadd.f32 %v5231_v61, %v5031_v57 }
 0x42c   : > { %v6865_v2 = vpop.f32.mrf.mxu0  ;;  %v6873_v24 = vpop.f32.mrf.mxu1 }
 0x42d   : > { %5277 = vst.msk [vmem:[#allocation7 + $0x8] sm:$0xff] %vm5275_vm7, %v5260_v39  ;;  %5285 = vst.msk [vmem:[#allocation7 + $0x48] sm:$0xff] %vm5275_vm7, %v5268_v0  ;;  %v5265_v29 = vadd.f32 %v6865_v2, %v5028_v63  ;;  %v5273_v45 = vadd.f32 %v6873_v24, %v5036_v23 }
 0x42e   : > { %v5212_v44 = vpop.f32.mrf.mxu0  ;;  %v5244_v6 = vpop.f32.mrf.mxu1 }
 0x42f   : > { %5282 = vst.msk [vmem:[#allocation7 + $0x30] sm:$0xff] %vm5275_vm7, %v5265_v29  ;;  %5290 = vst.msk [vmem:[#allocation7 + $0x70] sm:$0xff] %vm5275_vm7, %v5273_v45  ;;  %v5263_v10 = vadd.f32 %v5212_v44, %v5026_v40  ;;  %v5271_v62 = vadd.f32 %v5244_v6, %v5034_v5 }
 0x430   : > { %v6866_v46 = vpop.f32.mrf.mxu0  ;;  %v6874_v11 = vpop.f32.mrf.mxu1 }
 0x431   : > { %5280 = vst.msk [vmem:[#allocation7 + $0x20] sm:$0xff] %vm5275_vm7, %v5263_v10  ;;  %5288 = vst.msk [vmem:[#allocation7 + $0x60] sm:$0xff] %vm5275_vm7, %v5271_v62  ;;  %v5266_v13 = vadd.f32 %v6866_v46, %v5029_v7  ;;  %v5274_v14 = vadd.f32 %v6874_v11, %v5037_v9  ;;  %5295 = sbr.rel (%p6622_p5) target bundleno = 2130 (0x852), region = 84 }
 0x432   : > { %v5215_v15 = vpop.f32.mrf.mxu0  ;;  %v5247_v16 = vpop.f32.mrf.mxu1 }
 0x433   : > { %5283 = vst.msk [vmem:[#allocation7 + $0x38] sm:$0xff] %vm5275_vm7, %v5266_v13  ;;  %5291 = vst.msk [vmem:[#allocation7 + $0x78] sm:$0xff] %vm5275_vm7, %v5274_v14  ;;  %v5264_v17 = vadd.f32 %v5215_v15, %v5027_v12  ;;  %v5272_v18 = vadd.f32 %v5247_v16, %v5035_v8 }
 0x435   : > { %5281 = vst.msk [vmem:[#allocation7 + $0x28] sm:$0xff] %vm5275_vm7, %v5264_v17  ;;  %5289 = vst.msk [vmem:[#allocation7 + $0x68] sm:$0xff] %vm5275_vm7, %v5272_v18 }
 0x436   : > { %v8739_v19 = vld [vmem:[#allocation6] sm:$0xff]  ;;  %v8741_v20 = vld [vmem:[#allocation6 + $0x8] sm:$0xff]  ;;  %v8743_v21 = vld [vmem:[#allocation6 + $0x10] sm:$0xff]  ;;  %v9282_v52 = vmov 0.0   ;;  %vm5502_vm10 = vcmask 1041409   ;;  %s7090_s22 = smov 16  }
 0x437   : > { %v8745_v22 = vld [vmem:[#allocation6 + $0x18] sm:$0xff]  ;;  %v5412_v25 = vsel %vm5275_vm7, %v8739_v19, 0.0  ;;  %v5413_v26 = vsel %vm5275_vm7, %v8741_v20, 0.0  ;;  %v5415_v27 = vsel %vm5275_vm7, %v8743_v21, 0.0  ;;  %v8753_v28 = vld [vmem:[#allocation6 + $0x20] sm:$0xff]  ;;  %v8757_v32 = vld [vmem:[#allocation6 + $0x48] sm:$0xff]  ;;  %6875 = vmatprep.subr.mxu0 %v9282_v52 }
 0x438   : > { %v8755_v4 = vld [vmem:[#allocation6 + $0x40] sm:$0xff]  ;;  %v5414_v31 = vadd.f32 %v5413_v26, %v5412_v25  ;;  %v8759_v55 = vld [vmem:[#allocation6 + $0x50] sm:$0xff]  ;;  %v8761_v33 = vld [vmem:[#allocation6 + $0x58] sm:$0xff]  ;;  %v5417_v34 = vsel %vm5275_vm7, %v8745_v22, 0.0  ;;  %v5434_v38 = vsel %vm5275_vm7, %v8757_v32, 0.0  ;;  %v5419_v30 = vsel %vm5275_vm7, %v8753_v28, 0.0 }
 0x439   : > { %v5433_v35 = vsel %vm5275_vm7, %v8755_v4, 0.0  ;;  %v8767_v36 = vld [vmem:[#allocation6 + $0x28] sm:$0xff]  ;;  %v5436_v41 = vsel %vm5275_vm7, %v8759_v55, 0.0  ;;  %v8773_v42 = vld [vmem:[#allocation6 + $0x60] sm:$0xff]  ;;  %v8777_v3 = vld [vmem:[#allocation6 + $0x30] sm:$0xff]  ;;  %v5438_v48 = vsel %vm5275_vm7, %v8761_v33, 0.0 }
 0x43a   : > { %v5416_v37 = vadd.f32 %v5415_v27, %v5414_v31  ;;  %v5435_v43 = vadd.f32 %v5434_v38, %v5433_v35  ;;  %v8781_v49 = vld [vmem:[#allocation6 + $0x68] sm:$0xff]  ;;  %v5421_v50 = vsel %vm5275_vm7, %v8767_v36, 0.0  ;;  %v8786_v1 = vld [vmem:[#allocation6 + $0x38] sm:$0xff]  ;;  %v5440_v54 = vsel %vm5275_vm7, %v8773_v42, 0.0  ;;  %v8790_v56 = vld [vmem:[#allocation6 + $0x70] sm:$0xff]  ;;  %s7092_s28 = smov 32  }
 0x43b   : > { %v5423_v57 = vsel %vm5275_vm7, %v8777_v3, 0.0  ;;  %v5328_v59 = vld [vmem:[#allocation7] sm:$0xff]  ;;  %v5329_v60 = vld [vmem:[#allocation7 + $0x8] sm:$0xff]  ;;  %v8794_v61 = vld [vmem:[#allocation6 + $0x78] sm:$0xff]  ;;  %v5442_v23 = vsel %vm5275_vm7, %v8781_v49, 0.0  ;;  %v5425_v2 = vsel %vm5275_vm7, %v8786_v1, 0.0 }
 0x43c   : > { %v5418_v47 = vadd.f32 %v5417_v34, %v5416_v37  ;;  %v5437_v51 = vadd.f32 %v5436_v41, %v5435_v43  ;;  %v5330_v39 = vld [vmem:[#allocation7 + $0x10] sm:$0xff]  ;;  %v8801_v0 = vld [vmem:[%s9273_s6] ss:$0 sm:$0xff]  ;;  %v5331_v40 = vld [vmem:[#allocation7 + $0x18] sm:$0xff]  ;;  %v5444_v44 = vsel %vm5275_vm7, %v8790_v56, 0.0  ;;  %v5446_v14 = vsel %vm5275_vm7, %v8794_v61, 0.0 }
 0x43d   : > { %v5525_v5 = vld [vmem:[%s9274_s7 + $0x28] sm:$0xff]  ;;  %v5524_v29 = vld [vmem:[%s9274_s7 + $0x20] sm:$0xff]  ;;  %v8814_v10 = vadd.f32 %v8801_v0, %v5328_v59  ;;  %v8817_v62 = vadd.f32 %v8801_v0, %v5329_v60  ;;  %v5338_v11 = vld [vmem:[#allocation7 + $0x50] sm:$0xff]  ;;  %v8820_v12 = vadd.f32 %v8801_v0, %v5330_v39  ;;  %v8829_v16 = vadd.f32 %v8801_v0, %v5331_v40  ;;  %s7094_s16 = smov 96   ;;  %s7095_s17 = smov 112  }
 0x43e   : > { %v5420_v53 = vadd.f32 %v5419_v30, %v5418_v47  ;;  %v5439_v58 = vadd.f32 %v5438_v48, %v5437_v51  ;;  %v5332_v6 = vld [vmem:[#allocation7 + $0x20] sm:$0xff]  ;;  %v5337_v9 = vld [vmem:[#allocation7 + $0x48] sm:$0xff]  ;;  %6876 = vmatpush3.msra.mxu0 %v5525_v5  ;;  %v5523_v8 = vld [vmem:[%s9274_s7 + $0x18] sm:$0xff]  ;;  %v8842_v37 = vadd.f32 %v8801_v0, %v5338_v11  ;;  %vm7091_vm11 = vmmov 0  }
 0x43f   : > { %v5336_v7 = vld [vmem:[#allocation7 + $0x40] sm:$0xff]  ;;  %6877 = vmatprep.subr.mxu0 %v9282_v52  ;;  %v5333_v15 = vld [vmem:[#allocation7 + $0x28] sm:$0xff]  ;;  %v5334_v18 = vld [vmem:[#allocation7 + $0x30] sm:$0xff]  ;;  %v8832_v26 = vadd.f32 %v8801_v0, %v5332_v6  ;;  %v8838_v31 = vadd.f32 %v8801_v0, %v5337_v9  ;;  %v5456_v38 = vsel %vm5275_vm7, %v8814_v10, 0.0  ;;  %v5457_v41 = vsel %vm5275_vm7, %v8817_v62, 0.0  ;;  %6887 = vmatprep.mubr.msk.f32.mxu0 %vm7091_vm11, %v9282_v52 }
 0x440   : > { %v5422_v63 = vadd.f32 %v5421_v50, %v5420_v53  ;;  %v5441_v24 = vadd.f32 %v5440_v54, %v5439_v58  ;;  %6878 = vmatpush3.msra.mxu0 %v5524_v29  ;;  %v5339_v25 = vld [vmem:[#allocation7 + $0x58] sm:$0xff]  ;;  %v8835_v27 = vadd.f32 %v8801_v0, %v5336_v7  ;;  %v5340_v35 = vld [vmem:[#allocation7 + $0x60] sm:$0xff]  ;;  %9297 = vst [vmem:[#allocation11_spill] sm:$0xff] %v8842_v37  ;;  %v5459_v48 = vsel %vm5275_vm7, %v8820_v12, 0.0  ;;  %v5341_v59 = vld [vmem:[#allocation7 + $0x68] sm:$0xff] }
 0x441   : > { %6879 = vmatprep.subr.mxu0 %v9282_v52  ;;  %v8849_v43 = vadd.f32 %v8801_v0, %v5333_v15  ;;  %v5458_v47 = vadd.f32 %v5457_v41, %v5456_v38  ;;  %v5335_v51 = vld [vmem:[#allocation7 + $0x38] sm:$0xff]  ;;  %v8855_v53 = vadd.f32 %v8801_v0, %v5334_v18  ;;  %v8858_v54 = vadd.f32 %v8801_v0, %v5339_v25  ;;  %v5342_v60 = vld [vmem:[#allocation7 + $0x70] sm:$0xff]  ;;  %v5521_v9 = vld [vmem:[%s9274_s7 + $0x8] sm:$0xff] }
 0x442   : > { %v5424_v45 = vadd.f32 %v5423_v57, %v5422_v63  ;;  %v5443_v46 = vadd.f32 %v5442_v23, %v5441_v24  ;;  %6880 = vmatpush3.msra.mxu0 %v5523_v8  ;;  %v5461_v57 = vsel %vm5275_vm7, %v8829_v16, 0.0  ;;  %v8863_v63 = vadd.f32 %v8801_v0, %v5340_v35  ;;  %v5522_v7 = vld [vmem:[%s9274_s7 + $0x10] sm:$0xff]  ;;  %v5343_v15 = vld [vmem:[#allocation7 + $0x78] sm:$0xff] }
 0x443   : > { %6881 = vmatprep.subr.mxu0 %v9282_v52  ;;  %9298 = vst [vmem:[#allocation12_spill] sm:$0xff] %v8858_v54  ;;  %v5460_v23 = vadd.f32 %v5459_v48, %v5458_v47  ;;  %v5477_v39 = vsel %vm5275_vm7, %v8835_v27, 0.0  ;;  %v5463_v24 = vsel %vm5275_vm7, %v8832_v26, 0.0  ;;  %v5478_v40 = vsel %vm5275_vm7, %v8838_v31, 0.0 }
 0x444   : > { %v5426_v13 = vadd.f32 %v5425_v2, %v5424_v45  ;;  %v5445_v17 = vadd.f32 %v5444_v44, %v5443_v46  ;;  %9299 = vst [vmem:[#allocation13_spill] sm:$0xff] %v8863_v63  ;;  %v5480_v5 = vsel %vm5275_vm7, %v8842_v37, 0.0  ;;  %v8874_v45 = vadd.f32 %v8801_v0, %v5335_v51  ;;  %6882 = vmatpush3.msra.mxu0 %v5522_v7 }
 0x445   : > { %v5462_v44 = vadd.f32 %v5461_v57, %v5460_v23  ;;  %v5479_v6 = vadd.f32 %v5478_v40, %v5477_v39  ;;  %v8883_v11 = vadd.f32 %v8801_v0, %v5341_v59  ;;  %v5465_v8 = vsel %vm5275_vm7, %v8849_v43, 0.0  ;;  %6883 = vmatprep.subr.mxu0 %v9282_v52 }
 0x446   : > { %v5427_v34 = vrot.slane %v5426_v13, 4  ;;  %v5447_v30 = vadd.f32 %v5446_v14, %v5445_v17  ;;  %v5467_v35 = vsel %vm5275_vm7, %v8855_v53, 0.0  ;;  %v5484_v38 = vsel %vm5275_vm7, %v8863_v63, 0.0  ;;  %6884 = vmatpush3.msra.mxu0 %v5521_v9 }
 0x447   : > { %9300 = vst [vmem:[#allocation14_spill] sm:$0xff] %v8883_v11  ;;  %v5464_v17 = vadd.f32 %v5463_v24, %v5462_v44  ;;  %v5481_v18 = vadd.f32 %v5480_v5, %v5479_v6  ;;  %6885 = vmatprep.subr.mxu0 %v9282_v52  ;;  %v5469_v51 = vsel %vm5275_vm7, %v8874_v45, 0.0  ;;  %v5486_v57 = vsel %vm5275_vm7, %v8883_v11, 0.0 }
 0x448   : > { %v5428_v50 = vadd.f32 %v5427_v34, %v5426_v13  ;;  %v5448_v58 = vrot.slane %v5447_v30, 4  ;;  %v5482_v13 = vsel %vm5275_vm7, %v8858_v54, 0.0  ;;  %v8891_v34 = vadd.f32 %v8801_v0, %v5342_v60 }
 0x449   : > { %v5483_v47 = vadd.f32 %v5482_v13, %v5481_v18  ;;  %v5520_v13 = vld [vmem:[%s9274_s7] sm:$0xff]  ;;  %vm5518_vm12 = vcmask 261120   ;;  %vm5526_vm13 = vcmask 392192   ;;  %vm5612_vm14 = vcmask 1042432  }
 0x44a   : > { %v5429_v2 = vrot.slane %v5428_v50, 2  ;;  %v5449_v29 = vadd.f32 %v5448_v58, %v5447_v30  ;;  %9301 = vst [vmem:[#allocation15_spill] sm:$0xff] %v8891_v34  ;;  %v5466_v30 = vadd.f32 %v5465_v8, %v5464_v17  ;;  %v5488_v23 = vsel %vm5275_vm7, %v8891_v34, 0.0  ;;  %6886 = vmatpush3.msra.mxu0 %v5520_v13 }
 0x44b   : > { %v5485_v60 = vadd.f32 %v5484_v38, %v5483_v47  ;;  %6890 = vmatprep.subr.mxu0 %v9282_v52  ;;  %vm5608_vm15 = vcmask 23552  }
 0x44c   : > { %v5430_v46 = vadd.f32 %v5429_v2, %v5428_v50  ;;  %v5450_v14 = vrot.slane %v5449_v29, 2  ;;  %v8899_v50 = vadd.f32 %v8801_v0, %v5343_v15  ;;  %v5468_v59 = vadd.f32 %v5467_v35, %v5466_v30 }
 0x44d   : > { %v5487_v40 = vadd.f32 %v5486_v57, %v5485_v60  ;;  %v8919_v57 = vld [vmem:[#allocation5 + $0x8] sm:$0xff] }
 0x44e   : > { %v5431_v25 = vrot.slane %v5430_v46, 1  ;;  %v5451_v41 = vadd.f32 %v5450_v14, %v5449_v29  ;;  %9302 = vst [vmem:[#allocation16_spill] sm:$0xff] %v8899_v50  ;;  %v5470_v24 = vadd.f32 %v5469_v51, %v5468_v59  ;;  %v5490_v0 = vsel %vm5275_vm7, %v8899_v50, 0.0  ;;  %v8917_v51 = vld [vmem:[#allocation5] sm:$0xff]  ;;  %v8923_v59 = vld [vmem:[#allocation5 + $0x48] sm:$0xff] }
 0x44f   : > { %v5489_v44 = vadd.f32 %v5488_v23, %v5487_v40  ;;  %v5367_v60 = vsel %vm5275_vm7, %v8917_v51, 0.0  ;;  %v5368_v23 = vsel %vm5275_vm7, %v8919_v57, 0.0  ;;  %v8935_v40 = vld [vmem:[#allocation5 + $0x50] sm:$0xff] }
 0x450   : > { %v5432_v48 = vadd.f32 %v5431_v25, %v5430_v46  ;;  %v5452_v58 = vrot.slane %v5451_v41, 1  ;;  %v5471_v29 = vrot.slane %v5470_v24, 4 }
 0x451   : > { %v5491_v9 = vadd.f32 %v5490_v0, %v5489_v44  ;;  %v5369_v0 = vadd.f32 %v5368_v23, %v5367_v60  ;;  %v5391_v44 = vsel %vm5275_vm7, %v8935_v40, 0.0  ;;  %v8965_v23 = vld [vmem:[#allocation5 + $0x30] sm:$0xff] }
 0x452   : > { %v5453_v39 = vadd.f32 %v5452_v58, %v5451_v41  ;;  %v5454_v2 = vmul.f32 0.015625, %v5432_v48  ;;  %v5472_v7 = vadd.f32 %v5471_v29, %v5470_v24  ;;  %v8921_v58 = vld [vmem:[#allocation5 + $0x40] sm:$0xff]  ;;  %v8933_v24 = vld [vmem:[#allocation5 + $0x10] sm:$0xff] }
 0x453   : > { %v5492_v8 = vrot.slane %v5491_v9, 4  ;;  %v5370_v29 = vsel %vm5275_vm7, %v8933_v24, 0.0 }
 0x454   : > { %v5455_v5 = vmul.f32 0.015625, %v5453_v39  ;;  %v5473_v46 = vrot.slane %v5472_v7, 2  ;;  %v5388_v39 = vsel %vm5275_vm7, %v8921_v58, 0.0 }
 0x455   : > { %v5493_v15 = vadd.f32 %v5492_v8, %v5491_v9  ;;  %v5371_v9 = vadd.f32 %v5370_v29, %v5369_v0 }
 0x456   : > { %v5507_v6 = vsel %vm5502_vm10, %v5455_v5, %v5454_v2  ;;  %v5474_v14 = vadd.f32 %v5473_v46, %v5472_v7  ;;  %v5389_v2 = vsel %vm5275_vm7, %v8923_v59, 0.0  ;;  %v8943_v7 = vld [vmem:[#allocation5 + $0x58] sm:$0xff] }
 0x457   : > { %5508 = vrot.lane.b32.xlu0 %v5507_v6, %s7090_s22  ;;  %v5494_v18 = vrot.slane %v5493_v15, 2  ;;  %v5390_v5 = vadd.f32 %v5389_v2, %v5388_v39  ;;  %v8941_v6 = vld [vmem:[#allocation5 + $0x18] sm:$0xff]  ;;  %v5393_v13 = vsel %vm5275_vm7, %v8943_v7, 0.0  ;;  %v8967_v39 = vld [vmem:[#allocation5 + $0x70] sm:$0xff] }
 0x458   : > { %v5475_v17 = vrot.slane %v5474_v14, 1  ;;  %v5372_v8 = vsel %vm5275_vm7, %v8941_v6, 0.0  ;;  %v5399_v29 = vsel %vm5275_vm7, %v8967_v39, 0.0 }
 0x459   : > { %v5495_v35 = vadd.f32 %v5494_v18, %v5493_v15  ;;  %v5392_v46 = vadd.f32 %v5391_v44, %v5390_v5  ;;  %v8951_v15 = vld [vmem:[#allocation5 + $0x60] sm:$0xff]  ;;  %v5378_v5 = vsel %vm5275_vm7, %v8965_v23, 0.0  ;;  %v8973_v44 = vld [vmem:[#allocation5 + $0x38] sm:$0xff] }
 0x45a   : > { %v5476_v25 = vadd.f32 %v5475_v17, %v5474_v14  ;;  %v8949_v14 = vld [vmem:[#allocation5 + $0x20] sm:$0xff]  ;;  %v5373_v17 = vadd.f32 %v5372_v8, %v5371_v9  ;;  %v8975_v9 = vld [vmem:[#allocation5 + $0x78] sm:$0xff] }
 0x45b   : > { %v5496_v38 = vrot.slane %v5495_v35, 1  ;;  %v5394_v18 = vadd.f32 %v5393_v13, %v5392_v46  ;;  %v5380_v13 = vsel %vm5275_vm7, %v8973_v44, 0.0 }
 0x45c   : > { %v5498_v30 = vmul.f32 0.015625, %v5476_v25  ;;  %v5374_v25 = vsel %vm5275_vm7, %v8949_v14, 0.0 }
 0x45d   : > { %v5497_v41 = vadd.f32 %v5496_v38, %v5495_v35  ;;  %v5395_v35 = vsel %vm5275_vm7, %v8951_v15, 0.0  ;;  %v8957_v38 = vld [vmem:[#allocation5 + $0x28] sm:$0xff] }
 0x45f   : > { %v5499_v47 = vmul.f32 0.015625, %v5497_v41  ;;  %v8959_v41 = vld [vmem:[#allocation5 + $0x68] sm:$0xff] }
 0x460   : > { %v5397_v60 = vsel %vm5275_vm7, %v8959_v41, 0.0 }
 0x461   : > { %v5513_v48 = vsel %vm5502_vm10, %v5499_v47, %v5498_v30  ;;  %v5375_v30 = vadd.f32 %v5374_v25, %v5373_v17  ;;  %v5396_v47 = vadd.f32 %v5395_v35, %v5394_v18  ;;  %v5401_v17 = vsel %vm5275_vm7, %v8975_v9, 0.0 }
 0x462   : > { %5514 = vrot.lane.b32.xlu0 %v5513_v48, %s7092_s28  ;;  %v5376_v48 = vsel %vm5275_vm7, %v8957_v38, 0.0 }
 0x463   : > { %v5377_v2 = vadd.f32 %v5376_v48, %v5375_v30  ;;  %v5398_v0 = vadd.f32 %v5397_v60, %v5396_v47 }
 0x465   : > { %v5379_v46 = vadd.f32 %v5378_v5, %v5377_v2  ;;  %v5400_v8 = vadd.f32 %v5399_v29, %v5398_v0 }
 0x467   : > { %v5381_v18 = vadd.f32 %v5380_v13, %v5379_v46  ;;  %v5402_v25 = vadd.f32 %v5401_v17, %v5400_v8  ;;  %v9303_v17 = vmov 0.0  }
 0x469   : > { %v5382_v35 = vrot.slane %v5381_v18, 4  ;;  %v5403_v30 = vrot.slane %v5402_v25, 4 }
 0x46b   : > { %v5383_v47 = vadd.f32 %v5382_v35, %v5381_v18  ;;  %v5404_v48 = vadd.f32 %v5403_v30, %v5402_v25 }
 0x46d   : > { %v5384_v60 = vrot.slane %v5383_v47, 2  ;;  %v5405_v52 = vrot.slane %v5404_v48, 2 }
 0x46f   : > { %v5385_v50 = vadd.f32 %v5384_v60, %v5383_v47  ;;  %v5406_v34 = vadd.f32 %v5405_v52, %v5404_v48  ;;  %v5607_v52 = vld [vmem:[%s9275_s8] sm:$0x7]  ;;  %v7093_v60 = vmov 1966171168  }
 0x471   : > { %v5386_v11 = vrot.slane %v5385_v50, 1  ;;  %v5407_v63 = vrot.slane %v5406_v34, 1 }
 0x473   : > { %v5387_v2 = vadd.f32 %v5386_v11, %v5385_v50  ;;  %v5408_v0 = vadd.f32 %v5407_v63, %v5406_v34 }
 0x475   : > { %v5410_v5 = vmul.f32 0.015625, %v5387_v2  ;;  %v5411_v29 = vmul.f32 0.015625, %v5408_v0  ;;  %v5694_v2 = vunpack.c.l.s4 %v7093_v60  ;;  %v5696_v0 = vlaneseq }
 0x477   : > { %v5503_v37 = vsel %vm5502_vm10, %v5411_v29, %v5410_v5  ;;  %v5695_v5 = vunpack.c.0.s8 %v5694_v2  ;;  %v5697_v29 = vshrl.u32 %v5696_v0, 7 }
 0x4c9   : > { %v5509_v54 = vpop.permute.xlu0 %5508 }
 0x4ca   : > { %v5517_v46 = vsel %vm5275_vm7, %v5503_v37, %v5509_v54 }
 0x4d4   : > { %v5515_v8 = vpop.permute.xlu0 %5514 }
 0x4d5   : > { %v5519_v13 = vsel %vm5518_vm12, %v5517_v46, %v5515_v8  ;;  %v7034_v46 = vld [vmem:[%s9277_s10] sm:$0xff]   ;;  %v5698_v8 = vsub.s32 %v5695_v5, %v5697_v29 }
 0x4d6   : > { %6888 = vmatmul.mubr.msk.f32.vlgmr.msra.gmra.mxu0 %vm5526_vm13, %v5519_v13  ;;  %6963 = vmatprep.subr.bf16.mxu1 %v7034_v46  ;;  %v7035_v13 = vld [vmem:[%s9278_s11] sm:$0xff]  }
 0x4d7   : > { %6892 = vmatprep.mubr.msk.f32.mxu0 %vm7091_vm11, %v9303_v17  ;;  %6891 = vmatpush3.msk.msra.mxu0 %vm5612_vm14, %v5607_v52 }
 0x4d8   : > { %6895 = vmatprep.subr.bf16.mxu0 %v7034_v46  ;;  %6964 = vmatpush3.bf16.msra.mxu1 %v7034_v46 }
 0x4d9   : > { %6931 = vmatprep.subr.bf16.mxu1 %v7035_v13 }
 0x596   : > { %v5596_v63 = vpop.f32.mrf.mxu0 }
 0x597   : > { %v6625_v11 = vmul.f32 -1.442695, %v5596_v63 }
 0x598   : > { %v6889_v34 = vpop.f32.mrf.mxu0 }
 0x599   : > { %7037 = vpow2.f32 %v6625_v11  ;;  %v7036_v11 = vld [vmem:[%s9276_s9] sm:$0xff]  }
 0x5a6   : > { %v7038_v50 = vpop.eup %7037 }
 0x5a7   : > { %v5603_v18 = vadd.f32 1.0, %v7038_v50 }
 0x5a9   : > { %7039 = vrcp.f32 %v5603_v18 }
 0x5b6   : > { %v7040_v37 = vpop.eup %7039 }
 0x5b7   : > { %v5606_v54 = vmul.f32 %v7040_v37, %v5596_v63  ;;  %v5717_v63 = vsub.s32 0, %v5697_v29 }
 0x5b9   : > { %6893 = vmatmul.mubr.msk.f32.vlgmr.msra.gmra.mxu0 %vm5608_vm15, %v5606_v54 }
 0x5ba   : > { %6896 = vmatpush3.bf16.msra.mxu0 %v7034_v46 }
 0x5bb   : > { %6913 = vmatprep.subr.bf16.mxu0 %v7036_v11 }
 0x679   : > { %v5682_v25 = vpop.f32.mrf.mxu0 }
 0x67a   : > { %v6628_v35 = vmul.f32 -1.442695, %v5682_v25 }
 0x67b   : > { %v6894_v30 = vpop.f32.mrf.mxu0 }
 0x67c   : > { %7041 = vpow2.f32 %v6628_v35 }
 0x689   : > { %v7042_v47 = vpop.eup %7041 }
 0x68a   : > { %v5689_v48 = vadd.f32 1.0, %v7042_v47 }
 0x68c   : > { %7043 = vrcp.f32 %v5689_v48 }
 0x699   : > { %v7044_v17 = vpop.eup %7043 }
 0x69a   : > { %v5699_v52 = vrot.slane %v7044_v17, %v5698_v8 }
 0x69c   : > { %v5700_v34 = vcombine.high %v5699_v52, %v5699_v52  ;;  %v5707_v50 = vrot.slane %v5699_v52, %v5698_v8 }
 0x69e   : > { %v5714_v18 = vrot.slane %v5700_v34, %v5698_v8  ;;  %v5718_v37 = vrot.slane %v5707_v50, %v5717_v63 }
 0x6a0   : > { %6037 = vrot.lane.b32.xlu0 %v5718_v37, %s7094_s16  ;;  %5751 = vrot.lane.b32.xlu1 %v5718_v37, %s7095_s17  ;;  %v8997_v54 = vrot.slane %v5714_v18, %v5717_v63  ;;  %v5725_v35 = vmul.f32 %v5718_v37, %v8917_v51  ;;  %v5726_v30 = vmul.f32 %v5718_v37, %v8919_v57 }
 0x6a1   : > { %v5730_v63 = vmul.f32 %v5718_v37, %v8957_v38 }
 0x6a4   : > { %5753 = vrot.lane.b32.xlu1 %v8997_v54, %s7095_s17 }
 0x6a8   : > { %6039 = vrot.lane.b32.xlu1 %v8997_v54, %s7094_s16 }
 0x712   : > { %v5752_v25 = vpop.permute.xlu1 %5751  ;;  %v6038_v18 = vpop.permute.xlu0 %6037 }
 0x713   : > { %v5757_v47 = vmul.f32 %v5752_v25, %v8739_v19  ;;  %v5758_v48 = vmul.f32 %v5752_v25, %v8741_v20  ;;  %v5761_v60 = vmul.f32 %v5752_v25, %v8753_v28  ;;  %v5762_v2 = vmul.f32 %v5752_v25, %v8767_v36 }
 0x714   : > { %v5759_v0 = vmul.f32 %v5752_v25, %v8743_v21  ;;  %v5760_v5 = vmul.f32 %v5752_v25, %v8745_v22  ;;  %v5763_v29 = vmul.f32 %v5752_v25, %v8777_v3  ;;  %v5764_v46 = vmul.f32 %v5752_v25, %v8786_v1 }
 0x715   : > { %v5773_v8 = vpack.c.bf16 %v5758_v48, %v5757_v47  ;;  %v5775_v51 = vpack.c.bf16 %v5762_v2, %v5761_v60  ;;  %v5741_v19 = vpack.c.bf16 %v5726_v30, %v5725_v35  ;;  %v5727_v3 = vmul.f32 %v5718_v37, %v8933_v24 }
 0x716   : > { %v5754_v17 = vpop.permute.xlu1 %5753  ;;  %v5774_v57 = vpack.c.bf16 %v5760_v5, %v5759_v0  ;;  %v5776_v52 = vpack.c.bf16 %v5764_v46, %v5763_v29  ;;  %v5728_v1 = vmul.f32 %v5718_v37, %v8941_v6  ;;  %v5732_v24 = vmul.f32 %v5718_v37, %v8973_v44 }
 0x717   : > { %6897 = vmatprep.mubr.msk.bf16.mxu0 %vm5275_vm7, %v5773_v8  ;;  %6901 = vmatprep.mubr.msk.bf16.mxu1 %vm5275_vm7, %v5775_v51  ;;  %v5765_v20 = vmul.f32 %v5754_v17, %v8755_v4  ;;  %v5766_v21 = vmul.f32 %v5754_v17, %v8757_v32  ;;  %v5767_v28 = vmul.f32 %v5754_v17, %v8759_v55 }
 0x718   : > { %6898 = vmatmul.mubr.msk.bf16.vlgmr.msra.gmra.mxu0 %vm5275_vm7, %v5774_v57  ;;  %6902 = vmatmul.mubr.msk.bf16.vlgmr.msra.gmra.mxu1 %vm5275_vm7, %v5776_v52  ;;  %v5768_v36 = vmul.f32 %v5754_v17, %v8761_v33  ;;  %v5769_v4 = vmul.f32 %v5754_v17, %v8773_v42  ;;  %v5770_v32 = vmul.f32 %v5754_v17, %v8781_v49  ;;  %v9309_v52 = vld [vmem:[#allocation16_spill] sm:$0xff] }
 0x719   : > { %6932 = vmatpush3.bf16.msra.mxu1 %v7035_v13  ;;  %6915 = vmatprep.mubr.msk.bf16.mxu0 %vm5275_vm7, %v5741_v19  ;;  %v5777_v22 = vpack.c.bf16 %v5766_v21, %v5765_v20  ;;  %v5729_v13 = vmul.f32 %v5718_v37, %v8949_v14  ;;  %v5771_v33 = vmul.f32 %v5754_v17, %v8790_v56 }
 0x71a   : > { %6914 = vmatpush3.bf16.msra.mxu0 %v7036_v11  ;;  %v5778_v34 = vpack.c.bf16 %v5768_v36, %v5767_v28  ;;  %v5742_v11 = vpack.c.bf16 %v5728_v1, %v5727_v3  ;;  %v5779_v50 = vpack.c.bf16 %v5770_v32, %v5769_v4  ;;  %v5772_v42 = vmul.f32 %v5754_v17, %v8794_v61  ;;  %v6040_v0 = vpop.permute.xlu1 %6039 }
 0x71b   : > { %6905 = vmatprep.mubr.msk.bf16.mxu1 %vm5275_vm7, %v5777_v22  ;;  %v5743_v55 = vpack.c.bf16 %v5730_v63, %v5729_v13  ;;  %v5731_v49 = vmul.f32 %v5718_v37, %v8965_v23  ;;  %v5733_v6 = vmul.f32 %v8997_v54, %v8921_v58  ;;  %v5734_v14 = vmul.f32 %v8997_v54, %v8923_v59 }
 0x71c   : > { %v6043_v38 = vmul.f32 %v6038_v18, %v8814_v10  ;;  %v6044_v25 = vmul.f32 %v6038_v18, %v8817_v62  ;;  %v5780_v35 = vpack.c.bf16 %v5772_v42, %v5771_v33  ;;  %v5735_v61 = vmul.f32 %v8997_v54, %v8935_v40 }
 0x71d   : > { %v5744_v30 = vpack.c.bf16 %v5732_v24, %v5731_v49  ;;  %v5745_v47 = vpack.c.bf16 %v5734_v14, %v5733_v6  ;;  %v5736_v10 = vmul.f32 %v8997_v54, %v8943_v7  ;;  %v6045_v62 = vmul.f32 %v6038_v18, %v8820_v12 }
 0x71e   : > { %v6059_v56 = vpack.c.bf16 %v6044_v25, %v6043_v38  ;;  %v6046_v58 = vmul.f32 %v6038_v18, %v8829_v16  ;;  %v5737_v59 = vmul.f32 %v8997_v54, %v8951_v15  ;;  %v5738_v23 = vmul.f32 %v8997_v54, %v8959_v41 }
 0x71f   : > { %v6047_v44 = vmul.f32 %v6038_v18, %v8832_v26  ;;  %v6048_v37 = vmul.f32 %v6038_v18, %v8849_v43  ;;  %v5746_v48 = vpack.c.bf16 %v5736_v10, %v5735_v61  ;;  %v5739_v12 = vmul.f32 %v8997_v54, %v8967_v39  ;;  %v9304_v39 = vld [vmem:[#allocation11_spill] sm:$0xff] }
 0x720   : > { %6906 = vmatmul.mubr.msk.bf16.gmra.mxu1 %vm5275_vm7, %v5778_v34  ;;  %6916 = vmatmul.mubr.msk.bf16.vlgmr.msra.gmra.mxu0 %vm5275_vm7, %v5742_v11  ;;  %v6060_v60 = vpack.c.bf16 %v6046_v58, %v6045_v62  ;;  %v5747_v40 = vpack.c.bf16 %v5738_v23, %v5737_v59  ;;  %v5740_v16 = vmul.f32 %v8997_v54, %v8975_v9  ;;  %v9305_v9 = vld [vmem:[#allocation12_spill] sm:$0xff] }
 0x721   : > { %6909 = vmatprep.mubr.msk.bf16.mxu1 %vm5275_vm7, %v5779_v50  ;;  %6919 = vmatprep.mubr.msk.bf16.mxu0 %vm5275_vm7, %v5743_v55  ;;  %v6061_v2 = vpack.c.bf16 %v6048_v37, %v6047_v44  ;;  %v6049_v26 = vmul.f32 %v6038_v18, %v8855_v53  ;;  %v6050_v43 = vmul.f32 %v6038_v18, %v8874_v45  ;;  %v9306_v53 = vld [vmem:[#allocation13_spill] sm:$0xff]  ;;  %v9307_v45 = vld [vmem:[#allocation14_spill] sm:$0xff] }
 0x722   : > { %v6051_v7 = vmul.f32 %v6040_v0, %v8835_v27  ;;  %v6052_v15 = vmul.f32 %v6040_v0, %v8838_v31  ;;  %v5748_v41 = vpack.c.bf16 %v5740_v16, %v5739_v12  ;;  %v6053_v46 = vmul.f32 %v6040_v0, %v9304_v39  ;;  %v9308_v31 = vld [vmem:[#allocation15_spill] sm:$0xff] }
 0x723   : > { %v6062_v5 = vpack.c.bf16 %v6050_v43, %v6049_v26  ;;  %v6054_v54 = vmul.f32 %v6040_v0, %v9305_v9  ;;  %v6055_v8 = vmul.f32 %v6040_v0, %v9306_v53  ;;  %v6056_v51 = vmul.f32 %v6040_v0, %v9307_v45 }
 0x724   : > { %v6063_v29 = vpack.c.bf16 %v6052_v15, %v6051_v7  ;;  %v6057_v57 = vmul.f32 %v6040_v0, %v9308_v31  ;;  %v6058_v19 = vmul.f32 %v6040_v0, %v9309_v52 }
 0x725   : > { %v6064_v27 = vpack.c.bf16 %v6054_v54, %v6053_v46  ;;  %v6065_v17 = vpack.c.bf16 %v6056_v51, %v6055_v8 }
 0x726   : > { %v6066_v20 = vpack.c.bf16 %v6058_v19, %v6057_v57 }
 0x728   : > { %6910 = vmatmul.mubr.msk.bf16.gmra.mxu1 %vm5275_vm7, %v5780_v35  ;;  %6920 = vmatmul.mubr.msk.bf16.gmra.mxu0 %vm5275_vm7, %v5744_v30 }
 0x729   : > { %6923 = vmatprep.mubr.msk.bf16.mxu0 %vm5275_vm7, %v5745_v47  ;;  %6933 = vmatprep.mubr.msk.bf16.mxu1 %vm5275_vm7, %v6059_v56 }
 0x730   : > { %6924 = vmatmul.mubr.msk.bf16.gmra.mxu0 %vm5275_vm7, %v5746_v48  ;;  %6934 = vmatmul.mubr.msk.bf16.vlgmr.msra.gmra.mxu1 %vm5275_vm7, %v6060_v60 }
 0x731   : > { %6927 = vmatprep.mubr.msk.bf16.mxu0 %vm5275_vm7, %v5747_v40  ;;  %6937 = vmatprep.mubr.msk.bf16.mxu1 %vm5275_vm7, %v6061_v2 }
 0x738   : > { %6928 = vmatmul.mubr.msk.bf16.gmra.mxu0 %vm5275_vm7, %v5748_v41  ;;  %6938 = vmatmul.mubr.msk.bf16.gmra.mxu1 %vm5275_vm7, %v6062_v5 }
 0x739   : > { %6941 = vmatprep.mubr.msk.bf16.mxu1 %vm5275_vm7, %v6063_v29 }
 0x740   : > { %6942 = vmatmul.mubr.msk.bf16.gmra.mxu1 %vm5275_vm7, %v6064_v27 }
 0x741   : > { %6945 = vmatprep.mubr.msk.bf16.mxu1 %vm5275_vm7, %v6065_v17 }
 0x748   : > { %6946 = vmatmul.mubr.msk.bf16.gmra.mxu1 %vm5275_vm7, %v6066_v20 }
 0x7d8   : > { %v6899_v21 = vpop.f32.mrf.mxu0  ;;  %v6903_v22 = vpop.f32.mrf.mxu1 }
 0x7da   : > { %v5847_v28 = vpop.f32.mrf.mxu0  ;;  %v5863_v36 = vpop.f32.mrf.mxu1 }
 0x7dc   : > { %v6900_v3 = vpop.f32.mrf.mxu0  ;;  %v6904_v1 = vpop.f32.mrf.mxu1 }
 0x7de   : > { %v5850_v4 = vpop.f32.mrf.mxu0  ;;  %v5866_v32 = vpop.f32.mrf.mxu1 }
 0x7e0   : > { %v9081_v13 = vpop.f32.mrf.mxu1  ;;  %v6917_v63 = vpop.f32.mrf.mxu0 }
 0x7e1   : > { %v5983_v62 = vadd.f32 %v6917_v63, %v6899_v21 }
 0x7e2   : > { %v5879_v34 = vpop.f32.mrf.mxu1  ;;  %v5974_v11 = vpop.f32.mrf.mxu0 }
 0x7e3   : > { %v5975_v56 = vadd.f32 %v5974_v11, %v5847_v28 }
 0x7e4   : > { %v9083_v50 = vpop.f32.mrf.mxu1  ;;  %v6918_v55 = vpop.f32.mrf.mxu0 }
 0x7e5   : > { %v5986_v23 = vadd.f32 %v6918_v55, %v6900_v3 }
 0x7e6   : > { %v9085_v18 = vpop.f32.mrf.mxu1  ;;  %v5977_v33 = vpop.f32.mrf.mxu0 }
 0x7e7   : > { %v5978_v44 = vadd.f32 %v5977_v33, %v5850_v4 }
 0x7e8   : > { %v9087_v42 = vpop.f32.mrf.mxu1  ;;  %v6921_v49 = vpop.f32.mrf.mxu0 }
 0x7e9   : > { %v5999_v41 = vadd.f32 %v6921_v49, %v6903_v22 }
 0x7ea   : > { %v9089_v24 = vpop.f32.mrf.mxu1  ;;  %v5990_v6 = vpop.f32.mrf.mxu0 }
 0x7eb   : > { %v5991_v5 = vadd.f32 %v5990_v6, %v5863_v36 }
 0x7ec   : > { %v9091_v14 = vpop.f32.mrf.mxu1  ;;  %v6922_v38 = vpop.f32.mrf.mxu0 }
 0x7ed   : > { %v6002_v8 = vadd.f32 %v6922_v38, %v6904_v1 }
 0x7ee   : > { %v9093_v25 = vpop.f32.mrf.mxu1  ;;  %v5993_v35 = vpop.f32.mrf.mxu0 }
 0x7ef   : > { %v5994_v31 = vadd.f32 %v5993_v35, %v5866_v32 }
 0x7f0   : > { %v6925_v30 = vpop.f32.mrf.mxu0  ;;  %v6935_v47 = vpop.f32.mrf.mxu1 }
 0x7f1   : > { %v9097_v37 = vadd.f32 %v6935_v47, %v5983_v62 }
 0x7f2   : > { %v6006_v61 = vpop.f32.mrf.mxu0  ;;  %v6133_v10 = vpop.f32.mrf.mxu1 }
 0x7f3   : > { %v9095_v58 = vadd.f32 %v6133_v10, %v5975_v56  ;;  %v6253_v16 = vmul.f32 %v9097_v37, %v9097_v37  ;;  %v6215_v46 = vsel %vm5275_vm7, %v9097_v37, 0.0  ;;  %v6007_v63 = vadd.f32 %v6006_v61, %v5879_v34 }
 0x7f4   : > { %v6936_v59 = vpop.f32.mrf.mxu1  ;;  %v6926_v48 = vpop.f32.mrf.mxu0  ;;  %v6015_v56 = vadd.f32 %v6925_v30, %v9081_v13 }
 0x7f5   : > { %v6251_v40 = vmul.f32 %v9095_v58, %v9095_v58  ;;  %v9101_v2 = vadd.f32 %v6936_v59, %v5986_v23  ;;  %v6212_v26 = vsel %vm5275_vm7, %v9095_v58, 0.0  ;;  %v6270_v57 = vsel %vm5275_vm7, %v6253_v16, 0.0 }
 0x7f6   : > { %v6136_v60 = vpop.f32.mrf.mxu1  ;;  %v6009_v43 = vpop.f32.mrf.mxu0 }
 0x7f7   : > { %v9103_v0 = vadd.f32 %v6136_v60, %v5978_v44  ;;  %v6267_v9 = vsel %vm5275_vm7, %v6251_v40, 0.0  ;;  %v6254_v54 = vmul.f32 %v9101_v2, %v9101_v2  ;;  %v6217_v52 = vsel %vm5275_vm7, %v9101_v2, 0.0 }
 0x7f8   : > { %v6939_v12 = vpop.f32.mrf.mxu1  ;;  %v6929_v19 = vpop.f32.mrf.mxu0  ;;  %v6018_v60 = vadd.f32 %v6926_v48, %v9083_v50  ;;  %v6010_v40 = vadd.f32 %v6009_v43, %v9085_v18 }
 0x7f9   : > { %v6213_v7 = vsel %vm5275_vm7, %v9103_v0, 0.0  ;;  %v6252_v15 = vmul.f32 %v9103_v0, %v9103_v0  ;;  %v9124_v20 = vadd.f32 %v6939_v12, %v5999_v41  ;;  %v6272_v3 = vsel %vm5275_vm7, %v6254_v54, 0.0 }
 0x7fa   : > { %v6214_v29 = vadd.f32 %v6213_v7, %v6212_v26  ;;  %v6149_v39 = vpop.f32.mrf.mxu1  ;;  %v6022_v6 = vpop.f32.mrf.mxu0 }
 0x7fb   : > { %v6268_v53 = vsel %vm5275_vm7, %v6252_v15, 0.0  ;;  %v9119_v27 = vadd.f32 %v6149_v39, %v5991_v5  ;;  %v6257_v49 = vmul.f32 %v9124_v20, %v9124_v20  ;;  %v6223_v61 = vsel %vm5275_vm7, %v9124_v20, 0.0 }
 0x7fc   : > { %v6216_v45 = vadd.f32 %v6215_v46, %v6214_v29  ;;  %v6269_v51 = vadd.f32 %v6268_v53, %v6267_v9  ;;  %v6940_v17 = vpop.f32.mrf.mxu1  ;;  %v6930_v26 = vpop.f32.mrf.mxu0  ;;  %v6023_v46 = vadd.f32 %v6022_v6, %v9089_v24 }
 0x7fd   : > { %v6255_v28 = vmul.f32 %v9119_v27, %v9119_v27  ;;  %v6219_v1 = vsel %vm5275_vm7, %v9119_v27, 0.0  ;;  %v9131_v4 = vadd.f32 %v6940_v17, %v6002_v8  ;;  %v6278_v30 = vsel %vm5275_vm7, %v6257_v49, 0.0 }
 0x7fe   : > { %v6271_v21 = vadd.f32 %v6270_v57, %v6269_v51  ;;  %v6218_v22 = vadd.f32 %v6217_v52, %v6216_v45  ;;  %v6152_v36 = vpop.f32.mrf.mxu1  ;;  %v6025_v8 = vpop.f32.mrf.mxu0  ;;  %v6031_v57 = vadd.f32 %v6929_v19, %v9087_v42 }
 0x7ff   : > { %v9133_v32 = vadd.f32 %v6152_v36, %v5994_v31  ;;  %v6274_v38 = vsel %vm5275_vm7, %v6255_v28, 0.0  ;;  %v6258_v59 = vmul.f32 %v9131_v4, %v9131_v4  ;;  %v6225_v7 = vsel %vm5275_vm7, %v9131_v4, 0.0 }
 0x800   : > { %v6220_v11 = vadd.f32 %v6219_v1, %v6218_v22  ;;  %v6273_v55 = vadd.f32 %v6272_v3, %v6271_v21  ;;  %v6943_v33 = vpop.f32.mrf.mxu1  ;;  %v6034_v1 = vadd.f32 %v6930_v26, %v9091_v14 }
 0x801   : > { %v6221_v35 = vsel %vm5275_vm7, %v9133_v32, 0.0  ;;  %v6256_v47 = vmul.f32 %v9133_v32, %v9133_v32  ;;  %v9155_v15 = vadd.f32 %v6943_v33, %v6015_v56  ;;  %v6280_v50 = vsel %vm5275_vm7, %v6258_v59, 0.0 }
 0x802   : > { %v6275_v10 = vadd.f32 %v6274_v38, %v6273_v55  ;;  %v6222_v62 = vadd.f32 %v6221_v35, %v6220_v11  ;;  %v6165_v34 = vpop.f32.mrf.mxu1 }
 0x803   : > { %v6276_v23 = vsel %vm5275_vm7, %v6256_v47, 0.0  ;;  %v9148_v44 = vadd.f32 %v6165_v34, %v6007_v63  ;;  %v6261_v45 = vmul.f32 %v9155_v15, %v9155_v15  ;;  %v6231_v22 = vsel %vm5275_vm7, %v9155_v15, 0.0 }
 0x804   : > { %v6224_v12 = vadd.f32 %v6223_v61, %v6222_v62  ;;  %v6277_v16 = vadd.f32 %v6276_v23, %v6275_v10  ;;  %v6944_v13 = vpop.f32.mrf.mxu1  ;;  %v6026_v63 = vadd.f32 %v6025_v8, %v9093_v25 }
 0x805   : > { %v6259_v41 = vmul.f32 %v9148_v44, %v9148_v44  ;;  %v6227_v18 = vsel %vm5275_vm7, %v9148_v44, 0.0  ;;  %v9162_v48 = vadd.f32 %v6944_v13, %v6018_v60  ;;  %v6286_v19 = vsel %vm5275_vm7, %v6261_v45, 0.0 }
 0x806   : > { %v6279_v5 = vadd.f32 %v6278_v30, %v6277_v16  ;;  %v6226_v29 = vadd.f32 %v6225_v7, %v6224_v12  ;;  %v6168_v39 = vpop.f32.mrf.mxu1 }
 0x807   : > { %v9164_v43 = vadd.f32 %v6168_v39, %v6010_v40  ;;  %v6282_v51 = vsel %vm5275_vm7, %v6259_v41, 0.0  ;;  %v6262_v28 = vmul.f32 %v9162_v48, %v9162_v48  ;;  %v6233_v33 = vsel %vm5275_vm7, %v9162_v48, 0.0 }
 0x808   : > { %v6228_v9 = vadd.f32 %v6227_v18, %v6226_v29  ;;  %v6281_v54 = vadd.f32 %v6280_v50, %v6279_v5  ;;  %v6947_v53 = vpop.f32.mrf.mxu1 }
 0x809   : > { %v6229_v17 = vsel %vm5275_vm7, %v9164_v43, 0.0  ;;  %v6260_v31 = vmul.f32 %v9164_v43, %v9164_v43  ;;  %v9187_v49 = vadd.f32 %v6947_v53, %v6031_v57  ;;  %v6288_v14 = vsel %vm5275_vm7, %v6262_v28, 0.0 }
 0x80a   : > { %v6283_v52 = vadd.f32 %v6282_v51, %v6281_v54  ;;  %v6230_v21 = vadd.f32 %v6229_v17, %v6228_v9  ;;  %v6181_v24 = vpop.f32.mrf.mxu1 }
 0x80b   : > { %v6284_v36 = vsel %vm5275_vm7, %v6260_v31, 0.0  ;;  %v9180_v3 = vadd.f32 %v6181_v24, %v6023_v46  ;;  %v6265_v61 = vmul.f32 %v9187_v49, %v9187_v49  ;;  %v6239_v16 = vsel %vm5275_vm7, %v9187_v49, 0.0 }
 0x80c   : > { %v6232_v11 = vadd.f32 %v6231_v22, %v6230_v21  ;;  %v6285_v55 = vadd.f32 %v6284_v36, %v6283_v52  ;;  %v6948_v42 = vpop.f32.mrf.mxu1 }
 0x80d   : > { %v6263_v6 = vmul.f32 %v9180_v3, %v9180_v3  ;;  %v6235_v25 = vsel %vm5275_vm7, %v9180_v3, 0.0  ;;  %v9194_v56 = vadd.f32 %v6948_v42, %v6034_v1  ;;  %v6294_v41 = vsel %vm5275_vm7, %v6265_v61, 0.0 }
 0x80e   : > { %v6287_v38 = vadd.f32 %v6286_v19, %v6285_v55  ;;  %v6234_v35 = vadd.f32 %v6233_v33, %v6232_v11  ;;  %v6184_v47 = vpop.f32.mrf.mxu1 }
 0x80f   : > { %v9196_v10 = vadd.f32 %v6184_v47, %v6026_v63  ;;  %v6290_v59 = vsel %vm5275_vm7, %v6263_v6, 0.0  ;;  %v6266_v13 = vmul.f32 %v9194_v56, %v9194_v56  ;;  %v6241_v5 = vsel %vm5275_vm7, %v9194_v56, 0.0 }
 0x810   : > { %v6236_v62 = vadd.f32 %v6235_v25, %v6234_v35  ;;  %v6289_v34 = vadd.f32 %v6288_v14, %v6287_v38 }
 0x811   : > { %v6237_v23 = vsel %vm5275_vm7, %v9196_v10, 0.0  ;;  %v6264_v60 = vmul.f32 %v9196_v10, %v9196_v10  ;;  %v6296_v50 = vsel %vm5275_vm7, %v6266_v13, 0.0 }
 0x812   : > { %v6291_v40 = vadd.f32 %v6290_v59, %v6289_v34  ;;  %v6238_v12 = vadd.f32 %v6237_v23, %v6236_v62 }
 0x813   : > { %v6292_v30 = vsel %vm5275_vm7, %v6264_v60, 0.0 }
 0x814   : > { %v6240_v26 = vadd.f32 %v6239_v16, %v6238_v12  ;;  %v6293_v7 = vadd.f32 %v6292_v30, %v6291_v40 }
 0x816   : > { %v6242_v29 = vadd.f32 %v6241_v5, %v6240_v26  ;;  %v6295_v39 = vadd.f32 %v6294_v41, %v6293_v7 }
 0x818   : > { %v6243_v18 = vrot.slane %v6242_v29, 4  ;;  %v6297_v46 = vadd.f32 %v6296_v50, %v6295_v39 }
 0x81a   : > { %v6244_v9 = vadd.f32 %v6243_v18, %v6242_v29  ;;  %v6298_v54 = vrot.slane %v6297_v46, 4  ;;  %v6657_v29 = vld [vmem:[%s9280_s13] ss:$0 sm:$0xff] }
 0x81c   : > { %v6245_v53 = vrot.slane %v6244_v9, 2  ;;  %v6299_v8 = vadd.f32 %v6298_v54, %v6297_v46 }
 0x81e   : > { %v6246_v45 = vadd.f32 %v6245_v53, %v6244_v9  ;;  %v6300_v51 = vrot.slane %v6299_v8, 2 }
 0x820   : > { %v6247_v17 = vrot.slane %v6246_v45, 1  ;;  %v6301_v31 = vadd.f32 %v6300_v51, %v6299_v8 }
 0x822   : > { %v6248_v57 = vadd.f32 %v6247_v17, %v6246_v45  ;;  %v6302_v52 = vrot.slane %v6301_v31, 1 }
 0x824   : > { %v6250_v21 = vmul.f32 0.0078125, %v6248_v57  ;;  %v6303_v24 = vadd.f32 %v6302_v52, %v6301_v31 }
 0x826   : > { %v6304_v22 = vmul.f32 0.0078125, %v6303_v24  ;;  %v6305_v28 = vmul.f32 %v6250_v21, %v6250_v21  ;;  %v6308_v11 = vsub.f32 %v9095_v58, %v6250_v21  ;;  %v6309_v55 = vsub.f32 %v9103_v0, %v6250_v21 }
 0x827   : > { %v6310_v42 = vsub.f32 %v9097_v37, %v6250_v21  ;;  %v6311_v19 = vsub.f32 %v9101_v2, %v6250_v21  ;;  %v6312_v33 = vsub.f32 %v9119_v27, %v6250_v21  ;;  %v6313_v6 = vsub.f32 %v9133_v32, %v6250_v21 }
 0x828   : > { %v6306_v36 = vsub.f32 %v6304_v22, %v6305_v28  ;;  %v6314_v38 = vsub.f32 %v9124_v20, %v6250_v21  ;;  %v6315_v35 = vsub.f32 %v9131_v4, %v6250_v21  ;;  %v6316_v47 = vsub.f32 %v9148_v44, %v6250_v21 }
 0x829   : > { %v6317_v14 = vsub.f32 %v9164_v43, %v6250_v21  ;;  %v6318_v58 = vsub.f32 %v9155_v15, %v6250_v21  ;;  %v6319_v0 = vsub.f32 %v9162_v48, %v6250_v21  ;;  %v6320_v37 = vsub.f32 %v9180_v3, %v6250_v21  ;;  %v6656_v15 = vld [vmem:[%s9279_s12] ss:$0 sm:$0xff] }
 0x82a   : > { %v6307_v1 = vmax.f32 %v6306_v36, 0.0  ;;  %v6321_v2 = vsub.f32 %v9196_v10, %v6250_v21  ;;  %v6322_v27 = vsub.f32 %v9187_v49, %v6250_v21  ;;  %v6323_v32 = vsub.f32 %v9194_v56, %v6250_v21 }
 0x82c   : > { %v6324_v63 = vadd.f32 1e-05, %v6307_v1 }
 0x82e   : > { %7045 = vrsqrt.f32 %v6324_v63 }
 0x83b   : > { %v7046_v25 = vpop.eup %7045 }
 0x83c   : > { %v6326_v20 = vmul.f32 %v7046_v25, %v6308_v11  ;;  %v6327_v62 = vmul.f32 %v7046_v25, %v6309_v55  ;;  %v6328_v4 = vmul.f32 %v7046_v25, %v6310_v42  ;;  %v6329_v34 = vmul.f32 %v7046_v25, %v6311_v19 }
 0x83d   : > { %v6330_v44 = vmul.f32 %v7046_v25, %v6312_v33  ;;  %v6331_v61 = vmul.f32 %v7046_v25, %v6313_v6  ;;  %v6332_v43 = vmul.f32 %v7046_v25, %v6314_v38  ;;  %v6333_v59 = vmul.f32 %v7046_v25, %v6315_v35 }
 0x83e   : > { %v6334_v48 = vmul.f32 %v7046_v25, %v6316_v47  ;;  %v6335_v3 = vmul.f32 %v7046_v25, %v6317_v14  ;;  %v6336_v23 = vmul.f32 %v7046_v25, %v6318_v58  ;;  %v6337_v10 = vmul.f32 %v7046_v25, %v6319_v0 }
 0x83f   : > { %v6338_v60 = vmul.f32 %v7046_v25, %v6320_v37  ;;  %v6339_v49 = vmul.f32 %v7046_v25, %v6321_v2  ;;  %v6340_v40 = vmul.f32 %v7046_v25, %v6322_v27  ;;  %v6341_v56 = vmul.f32 %v7046_v25, %v6323_v32 }
 0x840   : > { %v6349_v12 = vmul.f32 %v6656_v15, %v6326_v20  ;;  %v6350_v16 = vmul.f32 %v6656_v15, %v6327_v62  ;;  %v6351_v13 = vmul.f32 %v6656_v15, %v6328_v4  ;;  %v6352_v30 = vmul.f32 %v6656_v15, %v6329_v34 }
 0x841   : > { %v6353_v26 = vmul.f32 %v6656_v15, %v6330_v44  ;;  %v6354_v7 = vmul.f32 %v6656_v15, %v6331_v61  ;;  %v6355_v41 = vmul.f32 %v6656_v15, %v6332_v43  ;;  %v6356_v5 = vmul.f32 %v6656_v15, %v6333_v59 }
 0x842   : > { %v6357_v39 = vmul.f32 %v6656_v15, %v6334_v48  ;;  %v6358_v50 = vmul.f32 %v6656_v15, %v6335_v3  ;;  %v6359_v18 = vmul.f32 %v6656_v15, %v6336_v23  ;;  %v6360_v46 = vmul.f32 %v6656_v15, %v6337_v10 }
 0x843   : > { %v6361_v9 = vmul.f32 %v6656_v15, %v6338_v60  ;;  %v6362_v54 = vmul.f32 %v6656_v15, %v6339_v49  ;;  %v6363_v53 = vmul.f32 %v6656_v15, %v6340_v40  ;;  %v6364_v8 = vmul.f32 %v6656_v15, %v6341_v56 }
 0x844   : > { %v6372_v45 = vadd.f32 %v6657_v29, %v6349_v12  ;;  %v6373_v51 = vadd.f32 %v6657_v29, %v6350_v16  ;;  %v6374_v17 = vadd.f32 %v6657_v29, %v6351_v13  ;;  %v6375_v31 = vadd.f32 %v6657_v29, %v6352_v30 }
 0x845   : > { %v6376_v57 = vadd.f32 %v6657_v29, %v6353_v26  ;;  %v6377_v52 = vadd.f32 %v6657_v29, %v6354_v7  ;;  %v6378_v21 = vadd.f32 %v6657_v29, %v6355_v41  ;;  %v6379_v24 = vadd.f32 %v6657_v29, %v6356_v5 }
 0x846   : > { %v6380_v22 = vadd.f32 %v6657_v29, %v6357_v39  ;;  %v6381_v28 = vadd.f32 %v6657_v29, %v6358_v50  ;;  %v6382_v36 = vadd.f32 %v6657_v29, %v6359_v18  ;;  %v6383_v1 = vadd.f32 %v6657_v29, %v6360_v46 }
 0x847   : > { %v6384_v63 = vadd.f32 %v6657_v29, %v6361_v9  ;;  %v6385_v11 = vadd.f32 %v6657_v29, %v6362_v54  ;;  %v6386_v55 = vadd.f32 %v6657_v29, %v6363_v53  ;;  %v6387_v42 = vadd.f32 %v6657_v29, %v6364_v8 }
 0x848   : > { %v6388_v19 = vmax.f32 %v6372_v45, 0.0  ;;  %v6389_v33 = vmax.f32 %v6373_v51, 0.0  ;;  %v6390_v6 = vmax.f32 %v6374_v17, 0.0  ;;  %v6391_v38 = vmax.f32 %v6375_v31, 0.0 }
 0x849   : > { %v6392_v35 = vmax.f32 %v6376_v57, 0.0  ;;  %v6393_v47 = vmax.f32 %v6377_v52, 0.0  ;;  %v6394_v14 = vmax.f32 %v6378_v21, 0.0  ;;  %v6395_v58 = vmax.f32 %v6379_v24, 0.0 }
 0x84a   : > { %v6396_v0 = vmax.f32 %v6380_v22, 0.0  ;;  %v6397_v25 = vmax.f32 %v6381_v28, 0.0  ;;  %v6398_v37 = vmax.f32 %v6382_v36, 0.0  ;;  %v6399_v2 = vmax.f32 %v6383_v1, 0.0  ;;  %6404 = vst.msk [vmem:[#allocation8] sm:$0xff] %vm5275_vm7, %v6388_v19  ;;  %6405 = vst.msk [vmem:[#allocation8 + $0x8] sm:$0xff] %vm5275_vm7, %v6389_v33 }
 0x84b   : > { %6406 = vst.msk [vmem:[#allocation8 + $0x10] sm:$0xff] %vm5275_vm7, %v6390_v6  ;;  %6407 = vst.msk [vmem:[#allocation8 + $0x18] sm:$0xff] %vm5275_vm7, %v6391_v38  ;;  %v6400_v27 = vmax.f32 %v6384_v63, 0.0  ;;  %v6401_v32 = vmax.f32 %v6385_v11, 0.0  ;;  %v6402_v20 = vmax.f32 %v6386_v55, 0.0  ;;  %v6403_v62 = vmax.f32 %v6387_v42, 0.0 }
 0x84c   : > { %6408 = vst.msk [vmem:[#allocation8 + $0x20] sm:$0xff] %vm5275_vm7, %v6392_v35  ;;  %6409 = vst.msk [vmem:[#allocation8 + $0x28] sm:$0xff] %vm5275_vm7, %v6393_v47 }
 0x84d   : > { %6410 = vst.msk [vmem:[#allocation8 + $0x30] sm:$0xff] %vm5275_vm7, %v6394_v14  ;;  %6411 = vst.msk [vmem:[#allocation8 + $0x38] sm:$0xff] %vm5275_vm7, %v6395_v58 }
 0x84e   : > { %6412 = vst.msk [vmem:[#allocation8 + $0x40] sm:$0xff] %vm5275_vm7, %v6396_v0  ;;  %6413 = vst.msk [vmem:[#allocation8 + $0x48] sm:$0xff] %vm5275_vm7, %v6397_v25 }
 0x84f   : > { %6414 = vst.msk [vmem:[#allocation8 + $0x50] sm:$0xff] %vm5275_vm7, %v6398_v37  ;;  %6415 = vst.msk [vmem:[#allocation8 + $0x58] sm:$0xff] %vm5275_vm7, %v6399_v2 }
 0x850   : > { %6416 = vst.msk [vmem:[#allocation8 + $0x60] sm:$0xff] %vm5275_vm7, %v6400_v27  ;;  %6417 = vst.msk [vmem:[#allocation8 + $0x68] sm:$0xff] %vm5275_vm7, %v6401_v32 }
 0x851   : > { %6418 = vst.msk [vmem:[#allocation8 + $0x70] sm:$0xff] %vm5275_vm7, %v6402_v20  ;;  %6419 = vst.msk [vmem:[#allocation8 + $0x78] sm:$0xff] %vm5275_vm7, %v6403_v62 }
 0x852 PF: > { %p6969_p6 = scmp.eq.s32.totalorder %s7180_s30, 4  ;;  %s7096_s15 = smov [#allocation8]  }
 0x853   : > { %s6426_s18 = sshll.u32 %s7096_s15, 4  ;;  %s6427_s18 = int_to_ptr.vmem [resolvable:$true] %s6426_s18 }
 0x854   : > { %s7047_s20 = scalar_lea.vmem %s6427_s18, 2048  ;;  %p7054_p10 = scmp.lt.s32.totalorder %s6427_s18, %s6427_s18 }
 0x855   : > { %p7048_p7 = scmp.ne.s32.totalorder %s6427_s18, %s7047_s20  ;;  %p7055_p11 = scmp.lt.s32.totalorder %s7047_s20, %s7047_s20 }
 0x857   : > { %p7049_p8 = pnand %p7048_p7, %p6969_p6  ;;  %p7056_p12 = por %p7055_p11, %p7054_p10 }
 0x859   : > { %p7050_p9 = pneg %p7049_p8 }
 0x85b   : > { %p7057_p13 = pnand %p7056_p12, %p7050_p9 }
 0x85d   : > { %7060 = shalt.err (!%p7057_p13)
}
 0x85e   : > { %s7097_s21 = smov 128   ;;  %s7098_s23 = smov 8  }
 0x85f   : > { %6966 = dma.vmem_to_hbm [thread:$0]  (%p6969_p6), %s6427_s18, 2048, %s9281_s14, [#allocation9], %s7097_s21, %s7097_s21, %s7098_s23  }
 0x860   : > { %7076 = dma.done.wait (%p6969_p6), [#allocation9], 2048  }
 0x861   : > { %7078 = vsyncadd (%p6969_p6), [#allocation9], 4294965248 }
 0x862 PF: > { %s25_s29 = sadd.s32 1, %s7081_s29  }
 0x863   : > { %p22_p0 = scmp.ge.s32.totalorder %s25_s29, 7  }
 0x865   :  { %24 = sbr.rel (!%p22_p0) target bundleno = 1 (0x1), region = 142 }
 0x86a   :  { %6442 = vsyncpa [#allocation9], 1 }
 0x86b   :  { %6444 = vsyncpa [#allocation9 + $0x1], 1 }

</bundles_post_ra>
